<compile_context>
chip_gen: v7x
topology: tpu7x:2x2x1
jax: 0.10.0
libtpu: 0.0.40
codegen_flags: <defaults>
</compile_context>

<pallas_src>
import functools

import jax
import jax.numpy as jnp
from jax.experimental import pallas as pl
from jax.experimental.pallas import tpu as pltpu

LN_EPS = 1e-5  # PyTorch nn.LayerNorm default


# ----------------------------------------------------------------------------
# In-kernel helpers (operate on values; masks are passed as refs)
# ----------------------------------------------------------------------------
def _layer_norm(x, g, b):
    mu = jnp.mean(x, axis=-1, keepdims=True)
    var = jnp.mean(jnp.square(x - mu), axis=-1, keepdims=True)
    return (x - mu) * jax.lax.rsqrt(var + LN_EPS) * g + b


def _mha(x_q, x_kv, mask_ref, wq, bq, wk, bk, wv, bv, wo, bo, n_head):
    """Multi-head attention for a block of B batch elements.

    x_q: [B, Sq, H] f32, x_kv: [B, Sk, H] f32.
    mask_ref: [B, 1, Mq, Sk] f32 ref with Mq in {1, Sq} (additive 0 / -1e9 mask).
    wq/wk/wv/wo: [H, H] bf16 refs, biases: [1, H] f32 refs.  Returns [B, Sq, H] f32.
    """
    B, Sq, H = x_q.shape
    Sk = x_kv.shape[1]
    dh = H // n_head
    scale = 1.0 / (dh ** 0.5)

    # Full-width projections on the row-flattened block: [B*S, H] @ [H, H]
    # (bf16 in, f32 accumulation) -> maximal MXU row fill for the block.
    xq = x_q.reshape(B * Sq, H).astype(jnp.bfloat16)
    xkv = x_kv.reshape(B * Sk, H).astype(jnp.bfloat16)
    q = (jnp.dot(xq, wq[...], preferred_element_type=jnp.float32) + bq[...]).reshape(B, Sq, H)
    k = (jnp.dot(xkv, wk[...], preferred_element_type=jnp.float32) + bk[...]).reshape(B, Sk, H)
    v = (jnp.dot(xkv, wv[...], preferred_element_type=jnp.float32) + bv[...]).reshape(B, Sk, H)

    def heads(a):  # [S, H] -> [n_head, S, dh]  (head-leading for the batched einsums)
        return jnp.stack(
            [a[:, h * dh:(h + 1) * dh] for h in range(n_head)], axis=0
        ).astype(jnp.bfloat16)

    ctx_rows = []
    for b in range(B):  # B is a small compile-time constant (batch block)
        q3, k3, v3 = heads(q[b]), heads(k[b]), heads(v[b])

        # Head-batched attention scores + online-stable softmax (f32).
        s = jnp.einsum("hqd,hkd->hqk", q3, k3,
                       preferred_element_type=jnp.float32) * scale
        s = s + mask_ref[b, 0]  # [Mq, Sk] broadcasts over heads (and queries if Mq==1)
        m = jnp.max(s, axis=-1, keepdims=True)
        e = jnp.exp(s - m)
        p = e * pl.reciprocal(jnp.sum(e, axis=-1, keepdims=True), approx=True)

        ctx = jnp.einsum("hqk,hkd->hqd", p.astype(jnp.bfloat16), v3,
                         preferred_element_type=jnp.float32)          # [h, Sq, dh]
        # Concatenate heads along the feature (lane) axis -> [Sq, H]
        ctx_rows.append(jnp.concatenate([ctx[h] for h in range(n_head)], axis=-1))

    ctx_all = ctx_rows[0] if B == 1 else jnp.concatenate(ctx_rows, axis=0)  # [B*Sq, H]

    # Single output projection with full contraction depth H.
    out = jnp.dot(ctx_all.astype(jnp.bfloat16), wo[...],
                  preferred_element_type=jnp.float32) + bo[...]
    return out.reshape(B, Sq, H)


# ----------------------------------------------------------------------------
# Fused per-layer kernel (optionally fusing the embedding LN and/or the logits)
# ----------------------------------------------------------------------------
def _decoder_block_kernel(*refs, n_head, fuse_embed, fuse_logits):
    in_refs = list(refs[:-1])
    out_ref = refs[-1]

    x_ref = in_refs.pop(0)
    if fuse_embed:
        pos_ref = in_refs.pop(0)
        eg_ref = in_refs.pop(0)
        eb_ref = in_refs.pop(0)
    enc_ref = in_refs.pop(0)
    smask_ref = in_refs.pop(0)
    cmask_ref = in_refs.pop(0)

    (wq1, bq1, wk1, bk1, wv1, bv1, wo1, bo1, g1, be1,
     wq2, bq2, wk2, bk2, wv2, bv2, wo2, bo2, g2, be2,
     fw1, fb1, fw2, fb2, g3, be3, *proj) = in_refs

    B, Sq, H = x_ref.shape

    # --- (fused) embedding: LayerNorm(word_emb + pos_emb) ------------------
    if fuse_embed:
        x = x_ref[...].astype(jnp.float32) + pos_ref[...].astype(jnp.float32)
        x = _layer_norm(x, eg_ref[...], eb_ref[...])
    else:
        x = x_ref[...].astype(jnp.float32)      # previous layer output (bf16 in HBM)

    enc = enc_ref[...].astype(jnp.float32)

    # --- masked self-attention + residual + LayerNorm -----------------------
    a1 = _mha(x, x, smask_ref, wq1, bq1, wk1, bk1, wv1, bv1, wo1, bo1, n_head)
    x = _layer_norm(a1 + x, g1[...], be1[...])

    # --- cross-attention + residual + LayerNorm -----------------------------
    a2 = _mha(x, enc, cmask_ref, wq2, bq2, wk2, bk2, wv2, bv2, wo2, bo2, n_head)
    x = _layer_norm(a2 + x, g2[...], be2[...])

    # --- feed-forward: fc1 -> relu -> fc2 -> +skip -> LayerNorm -------------
    xf = x.reshape(B * Sq, H).astype(jnp.bfloat16)
    h1 = jnp.dot(xf, fw1[...], preferred_element_type=jnp.float32) + fb1[...]
    h1 = jnp.maximum(h1, 0.0)
    y = jnp.dot(h1.astype(jnp.bfloat16), fw2[...],
                preferred_element_type=jnp.float32) + fb2[...]
    x = _layer_norm(y.reshape(B, Sq, H) + x, g3[...], be3[...])

    if fuse_logits:
        ow, ob = proj
        logits = jnp.dot(x.reshape(B * Sq, H).astype(jnp.bfloat16), ow[...],
                         preferred_element_type=jnp.float32) + ob[...]
        out_ref[...] = logits.reshape(B, Sq, ow.shape[1]).astype(out_ref.dtype)
    else:
        out_ref[...] = x.astype(out_ref.dtype)   # bf16 inter-layer activation


# ----------------------------------------------------------------------------
# Wrappers
# ----------------------------------------------------------------------------
def _resident_spec(arr):
    """Whole-array block, same block for every grid step (stays VMEM-resident)."""
    zeros = (0,) * arr.ndim
    return pl.BlockSpec(arr.shape, lambda b, _z=zeros: _z)


def _pick_batch_block(bs, seq_len, target_rows=256):
    """Batch block: ~target_rows MXU rows/step, but keep >=2 grid steps (v7x, 2 TCs)."""
    cap = max(1, target_rows // max(seq_len, 1))
    if bs >= 2:
        cap = min(cap, bs // 2)
    cap = max(1, min(cap, bs))
    for d in range(cap, 0, -1):
        if bs % d == 0:
            return d
    return 1


def decoder_block(x, enc, self_mask, cross_mask, lp, n_head,
                  embed=None, out_proj=None):
    bs, Sq, H = x.shape
    Sk = enc.shape[1]
    fuse_embed = embed is not None
    fuse_logits = out_proj is not None

    b_blk = _pick_batch_block(bs, Sq)
    grid = (bs // b_blk,)

    args = [x]
    in_specs = [pl.BlockSpec((b_blk, Sq, H), lambda b: (b, 0, 0))]
    if fuse_embed:
        pos, eg, eb = embed
        args += [pos, eg, eb]
        in_specs += [_resident_spec(pos), _resident_spec(eg), _resident_spec(eb)]

    args += [enc, self_mask, cross_mask]
    in_specs += [
        pl.BlockSpec((b_blk, Sk, H), lambda b: (b, 0, 0)),
        pl.BlockSpec((b_blk, 1) + self_mask.shape[2:], lambda b: (b, 0, 0, 0)),
        pl.BlockSpec((b_blk, 1) + cross_mask.shape[2:], lambda b: (b, 0, 0, 0)),
    ]

    a1, a2, ff = lp["att1"], lp["att2"], lp["ff"]
    weights = [
        a1["wq"], a1["bq"], a1["wk"], a1["bk"], a1["wv"], a1["bv"],
        a1["wo"], a1["bo"], lp["ln1_g"], lp["ln1_b"],
        a2["wq"], a2["bq"], a2["wk"], a2["bk"], a2["wv"], a2["bv"],
        a2["wo"], a2["bo"], lp["ln2_g"], lp["ln2_b"],
        ff["w1"], ff["b1"], ff["w2"], ff["b2"], ff["ln_g"], ff["ln_b"],
    ]
    if fuse_logits:
        weights += [out_proj[0], out_proj[1]]
    args += weights
    in_specs += [_resident_spec(w) for w in weights]

    if fuse_logits:
        V = out_proj[0].shape[1]
        out_shape = jax.ShapeDtypeStruct((bs, Sq, V), jnp.float32)
        out_specs = pl.BlockSpec((b_blk, Sq, V), lambda b: (b, 0, 0))
    else:
        out_shape = jax.ShapeDtypeStruct((bs, Sq, H), jnp.bfloat16)
        out_specs = pl.BlockSpec((b_blk, Sq, H), lambda b: (b, 0, 0))

    return pl.pallas_call(
        functools.partial(_decoder_block_kernel, n_head=n_head,
                          fuse_embed=fuse_embed, fuse_logits=fuse_logits),
        out_shape=out_shape,
        grid=grid,
        in_specs=in_specs,
        out_specs=out_specs,
        compiler_params=pltpu.CompilerParams(
            dimension_semantics=("parallel",),
            # Re-derive for realistic sizes / per generation (v7x has 64 MiB VMEM).
            vmem_limit_bytes=64 * 1024 * 1024,
        ),
    )(*args)


# ----------------------------------------------------------------------------
# Parameter init (deterministic, synthetic).  MXU weights pre-cast to bf16 ONCE.
# ----------------------------------------------------------------------------
def _nrm(key, shape, scale=0.02):
    return scale * jax.random.normal(key, shape, jnp.float32)


def _w(key, shape):
    return _nrm(key, shape).astype(jnp.bfloat16)     # matmul weight: bf16 at rest


def init_attention(key, H):
    ks = jax.random.split(key, 4)
    return {
        "wq": _w(ks[0], (H, H)), "bq": jnp.zeros((1, H), jnp.float32),
        "wk": _w(ks[1], (H, H)), "bk": jnp.zeros((1, H), jnp.float32),
        "wv": _w(ks[2], (H, H)), "bv": jnp.zeros((1, H), jnp.float32),
        "wo": _w(ks[3], (H, H)), "bo": jnp.zeros((1, H), jnp.float32),
    }


def init_params(key, vocab_size, max_len, H, I, n_layers):
    keys = jax.random.split(key, 3 + n_layers)
    params = {
        "word_emb": _nrm(keys[0], (vocab_size, H)),
        "pos_emb": _nrm(keys[1], (max_len, H)),
        "emb_ln_g": jnp.ones((1, H), jnp.float32),
        "emb_ln_b": jnp.zeros((1, H), jnp.float32),
        "out_w": _w(keys[2], (H, vocab_size)),
        "out_b": jnp.zeros((1, vocab_size), jnp.float32),
        "layers": [],
    }
    for l in range(n_layers):
        lk = jax.random.split(keys[3 + l], 4)
        params["layers"].append({
            "att1": init_attention(lk[0], H),
            "att2": init_attention(lk[1], H),
            "ln1_g": jnp.ones((1, H), jnp.float32),
            "ln1_b": jnp.zeros((1, H), jnp.float32),
            "ln2_g": jnp.ones((1, H), jnp.float32),
            "ln2_b": jnp.zeros((1, H), jnp.float32),
            "ff": {
                "w1": _w(lk[2], (H, I)), "b1": jnp.zeros((1, I), jnp.float32),
                "w2": _w(lk[3], (I, H)), "b2": jnp.zeros((1, H), jnp.float32),
                "ln_g": jnp.ones((1, H), jnp.float32),
                "ln_b": jnp.zeros((1, H), jnp.float32),
            },
        })
    return params


# ----------------------------------------------------------------------------
# Decoder forward: one fused Pallas kernel per decoder layer
# (embedding LN fused into the first, vocab projection into the last).
# ----------------------------------------------------------------------------
def decoder_forward(params, input_ids, attention_mask,
                    encoder_hidden_states, encoder_attention_mask, n_head):
    bs, S = input_ids.shape

    # TODO(synk): embedding gather (nn.Embedding lookup) stays in plain JAX (jnp.take).
    tok = jnp.take(params["word_emb"], input_ids, axis=0)       # [bs, S, H] f32
    pos = params["pos_emb"][:S]                                 # [S, H] f32

    n_layers = len(params["layers"])
    x = tok
    for li, lp in enumerate(params["layers"]):
        first = li == 0
        last = li == n_layers - 1
        x = decoder_block(
            x, encoder_hidden_states, attention_mask, encoder_attention_mask,
            lp, n_head,
            embed=(pos, params["emb_ln_g"], params["emb_ln_b"]) if first else None,
            out_proj=(params["out_w"], params["out_b"]) if last else None,
        )
    return x  # logits from the last (fuse_logits) block


# ----------------------------------------------------------------------------
if __name__ == "__main__":
    vocab_size = 64
    max_len = 16
    hidden_size = 32
    intermediate_size = 64
    n_head = 4
    n_layers = 2
    bs, trg_len, src_len = 2, 8, 8

    root = jax.random.PRNGKey(0)
    k_par, k_ids, k_enc = jax.random.split(root, 3)

    params = init_params(k_par, vocab_size, max_len, hidden_size,
                         intermediate_size, n_layers)

    input_ids = jax.random.randint(k_ids, (bs, trg_len), 0, vocab_size, jnp.int32)
    encoder_hidden_states = jax.random.normal(k_enc, (bs, src_len, hidden_size),
                                              jnp.float32)

    # causal (look-ahead) additive mask: 0 where allowed, large negative otherwise
    causal = jnp.where(jnp.tril(jnp.ones((trg_len, trg_len), jnp.float32)) > 0,
                       0.0, -1e9)
    attention_mask = jnp.broadcast_to(causal[None, None, :, :],
                                      (bs, 1, trg_len, trg_len)).astype(jnp.float32)
    encoder_attention_mask = jnp.zeros((bs, 1, 1, src_len), jnp.float32)

    fwd = jax.jit(functools.partial(decoder_forward, n_head=n_head))
    out = fwd(params, input_ids, attention_mask,
              encoder_hidden_states, encoder_attention_mask)
    out = jax.block_until_ready(out)

    assert out.shape == (bs, trg_len, vocab_size)
    assert bool(jnp.all(jnp.isfinite(out)))
    print("KERNEL_OK")
</pallas_src>

<mosaic_0001>
module attributes {stable_mosaic.version = 11 : i64} {
  func.func @_decoder_block_kernel(%arg0: i32, %arg1: memref<1x8x32xf32, #tpu.memory_space<vmem>>, %arg2: memref<8x32xf32, #tpu.memory_space<vmem>>, %arg3: memref<1x32xf32, #tpu.memory_space<vmem>>, %arg4: memref<1x32xf32, #tpu.memory_space<vmem>>, %arg5: memref<1x8x32xf32, #tpu.memory_space<vmem>>, %arg6: memref<1x1x8x8xf32, #tpu.memory_space<vmem>>, %arg7: memref<1x1x1x8xf32, #tpu.memory_space<vmem>>, %arg8: memref<32x32xbf16, #tpu.memory_space<vmem>>, %arg9: memref<1x32xf32, #tpu.memory_space<vmem>>, %arg10: memref<32x32xbf16, #tpu.memory_space<vmem>>, %arg11: memref<1x32xf32, #tpu.memory_space<vmem>>, %arg12: memref<32x32xbf16, #tpu.memory_space<vmem>>, %arg13: memref<1x32xf32, #tpu.memory_space<vmem>>, %arg14: memref<32x32xbf16, #tpu.memory_space<vmem>>, %arg15: memref<1x32xf32, #tpu.memory_space<vmem>>, %arg16: memref<1x32xf32, #tpu.memory_space<vmem>>, %arg17: memref<1x32xf32, #tpu.memory_space<vmem>>, %arg18: memref<32x32xbf16, #tpu.memory_space<vmem>>, %arg19: memref<1x32xf32, #tpu.memory_space<vmem>>, %arg20: memref<32x32xbf16, #tpu.memory_space<vmem>>, %arg21: memref<1x32xf32, #tpu.memory_space<vmem>>, %arg22: memref<32x32xbf16, #tpu.memory_space<vmem>>, %arg23: memref<1x32xf32, #tpu.memory_space<vmem>>, %arg24: memref<32x32xbf16, #tpu.memory_space<vmem>>, %arg25: memref<1x32xf32, #tpu.memory_space<vmem>>, %arg26: memref<1x32xf32, #tpu.memory_space<vmem>>, %arg27: memref<1x32xf32, #tpu.memory_space<vmem>>, %arg28: memref<32x64xbf16, #tpu.memory_space<vmem>>, %arg29: memref<1x64xf32, #tpu.memory_space<vmem>>, %arg30: memref<64x32xbf16, #tpu.memory_space<vmem>>, %arg31: memref<1x32xf32, #tpu.memory_space<vmem>>, %arg32: memref<1x32xf32, #tpu.memory_space<vmem>>, %arg33: memref<1x32xf32, #tpu.memory_space<vmem>>, %arg34: memref<1x8x32xbf16, #tpu.memory_space<vmem>>) attributes {dimension_semantics = [#tpu.dimension_semantics<parallel>], iteration_bounds = array<i64: 2>, scalar_prefetch = 0 : i64, scratch_operands = 0 : i64, tpu.core_type = #tpu.core_type<tc>, window_params = [{transform_indices = @transform_0, window_bounds = array<i64: 1, 8, 32>}, {pipeline_mode = #tpu.pipeline_mode<synchronous>, transform_indices = @transform_1, window_bounds = array<i64: 8, 32>}, {pipeline_mode = #tpu.pipeline_mode<synchronous>, transform_indices = @transform_2, window_bounds = array<i64: 1, 32>}, {pipeline_mode = #tpu.pipeline_mode<synchronous>, transform_indices = @transform_3, window_bounds = array<i64: 1, 32>}, {transform_indices = @transform_4, window_bounds = array<i64: 1, 8, 32>}, {transform_indices = @transform_5, window_bounds = array<i64: 1, 1, 8, 8>}, {transform_indices = @transform_6, window_bounds = array<i64: 1, 1, 1, 8>}, {pipeline_mode = #tpu.pipeline_mode<synchronous>, transform_indices = @transform_7, window_bounds = array<i64: 32, 32>}, {pipeline_mode = #tpu.pipeline_mode<synchronous>, transform_indices = @transform_8, window_bounds = array<i64: 1, 32>}, {pipeline_mode = #tpu.pipeline_mode<synchronous>, transform_indices = @transform_9, window_bounds = array<i64: 32, 32>}, {pipeline_mode = #tpu.pipeline_mode<synchronous>, transform_indices = @transform_10, window_bounds = array<i64: 1, 32>}, {pipeline_mode = #tpu.pipeline_mode<synchronous>, transform_indices = @transform_11, window_bounds = array<i64: 32, 32>}, {pipeline_mode = #tpu.pipeline_mode<synchronous>, transform_indices = @transform_12, window_bounds = array<i64: 1, 32>}, {pipeline_mode = #tpu.pipeline_mode<synchronous>, transform_indices = @transform_13, window_bounds = array<i64: 32, 32>}, {pipeline_mode = #tpu.pipeline_mode<synchronous>, transform_indices = @transform_14, window_bounds = array<i64: 1, 32>}, {pipeline_mode = #tpu.pipeline_mode<synchronous>, transform_indices = @transform_15, window_bounds = array<i64: 1, 32>}, {pipeline_mode = #tpu.pipeline_mode<synchronous>, transform_indices = @transform_16, window_bounds = array<i64: 1, 32>}, {pipeline_mode = #tpu.pipeline_mode<synchronous>, transform_indices = @transform_17, window_bounds = array<i64: 32, 32>}, {pipeline_mode = #tpu.pipeline_mode<synchronous>, transform_indices = @transform_18, window_bounds = array<i64: 1, 32>}, {pipeline_mode = #tpu.pipeline_mode<synchronous>, transform_indices = @transform_19, window_bounds = array<i64: 32, 32>}, {pipeline_mode = #tpu.pipeline_mode<synchronous>, transform_indices = @transform_20, window_bounds = array<i64: 1, 32>}, {pipeline_mode = #tpu.pipeline_mode<synchronous>, transform_indices = @transform_21, window_bounds = array<i64: 32, 32>}, {pipeline_mode = #tpu.pipeline_mode<synchronous>, transform_indices = @transform_22, window_bounds = array<i64: 1, 32>}, {pipeline_mode = #tpu.pipeline_mode<synchronous>, transform_indices = @transform_23, window_bounds = array<i64: 32, 32>}, {pipeline_mode = #tpu.pipeline_mode<synchronous>, transform_indices = @transform_24, window_bounds = array<i64: 1, 32>}, {pipeline_mode = #tpu.pipeline_mode<synchronous>, transform_indices = @transform_25, window_bounds = array<i64: 1, 32>}, {pipeline_mode = #tpu.pipeline_mode<synchronous>, transform_indices = @transform_26, window_bounds = array<i64: 1, 32>}, {pipeline_mode = #tpu.pipeline_mode<synchronous>, transform_indices = @transform_27, window_bounds = array<i64: 32, 64>}, {pipeline_mode = #tpu.pipeline_mode<synchronous>, transform_indices = @transform_28, window_bounds = array<i64: 1, 64>}, {pipeline_mode = #tpu.pipeline_mode<synchronous>, transform_indices = @transform_29, window_bounds = array<i64: 64, 32>}, {pipeline_mode = #tpu.pipeline_mode<synchronous>, transform_indices = @transform_30, window_bounds = array<i64: 1, 32>}, {pipeline_mode = #tpu.pipeline_mode<synchronous>, transform_indices = @transform_31, window_bounds = array<i64: 1, 32>}, {pipeline_mode = #tpu.pipeline_mode<synchronous>, transform_indices = @transform_32, window_bounds = array<i64: 1, 32>}, {transform_indices = @transform_33, window_bounds = array<i64: 1, 8, 32>}]} {
    %c0 = arith.constant 0 : index
    %c0_0 = arith.constant 0 : index
    %c0_1 = arith.constant 0 : index
    %0 = vector.load %arg1[%c0, %c0_0, %c0_1] : memref<1x8x32xf32, #tpu.memory_space<vmem>>, vector<1x8x32xf32>
    %c0_2 = arith.constant 0 : index
    %c0_3 = arith.constant 0 : index
    %1 = vector.load %arg2[%c0_2, %c0_3] : memref<8x32xf32, #tpu.memory_space<vmem>>, vector<8x32xf32>
    %2 = vector.shape_cast %1 : vector<8x32xf32> to vector<1x8x32xf32>
    %3 = arith.addf %0, %2 : vector<1x8x32xf32>
    %c0_4 = arith.constant 0 : index
    %c0_5 = arith.constant 0 : index
    %4 = vector.load %arg3[%c0_4, %c0_5] : memref<1x32xf32, #tpu.memory_space<vmem>>, vector<1x32xf32>
    %c0_6 = arith.constant 0 : index
    %c0_7 = arith.constant 0 : index
    %5 = vector.load %arg4[%c0_6, %c0_7] : memref<1x32xf32, #tpu.memory_space<vmem>>, vector<1x32xf32>
    %cst = arith.constant dense<0.000000e+00> : vector<1x8xf32>
    %6 = vector.multi_reduction <add>, %3, %cst [2] : vector<1x8x32xf32> to vector<1x8xf32>
    %7 = vector.shape_cast %6 : vector<1x8xf32> to vector<1x8x1xf32>
    %cst_8 = arith.constant 3.200000e+01 : f32
    %8 = vector.broadcast %cst_8 : f32 to vector<1x8x1xf32>
    %9 = arith.divf %7, %8 : vector<1x8x1xf32>
    %10 = vector.broadcast %9 : vector<1x8x1xf32> to vector<1x8x32xf32>
    %11 = arith.subf %3, %10 : vector<1x8x32xf32>
    %12 = arith.mulf %11, %11 : vector<1x8x32xf32>
    %cst_9 = arith.constant dense<0.000000e+00> : vector<1x8xf32>
    %13 = vector.multi_reduction <add>, %12, %cst_9 [2] : vector<1x8x32xf32> to vector<1x8xf32>
    %14 = vector.shape_cast %13 : vector<1x8xf32> to vector<1x8x1xf32>
    %cst_10 = arith.constant 3.200000e+01 : f32
    %15 = vector.broadcast %cst_10 : f32 to vector<1x8x1xf32>
    %16 = arith.divf %14, %15 : vector<1x8x1xf32>
    %17 = vector.broadcast %9 : vector<1x8x1xf32> to vector<1x8x32xf32>
    %18 = arith.subf %3, %17 : vector<1x8x32xf32>
    %cst_11 = arith.constant 9.99999974E-6 : f32
    %19 = vector.broadcast %cst_11 : f32 to vector<1x8x1xf32>
    %20 = arith.addf %16, %19 : vector<1x8x1xf32>
    %21 = math.rsqrt %20 : vector<1x8x1xf32>
    %22 = vector.broadcast %21 : vector<1x8x1xf32> to vector<1x8x32xf32>
    %23 = arith.mulf %18, %22 : vector<1x8x32xf32>
    %24 = vector.shape_cast %4 : vector<1x32xf32> to vector<1x1x32xf32>
    %25 = vector.broadcast %24 : vector<1x1x32xf32> to vector<1x8x32xf32>
    %26 = arith.mulf %23, %25 : vector<1x8x32xf32>
    %27 = vector.shape_cast %5 : vector<1x32xf32> to vector<1x1x32xf32>
    %28 = vector.broadcast %27 : vector<1x1x32xf32> to vector<1x8x32xf32>
    %29 = arith.addf %26, %28 : vector<1x8x32xf32>
    %c0_12 = arith.constant 0 : index
    %c0_13 = arith.constant 0 : index
    %c0_14 = arith.constant 0 : index
    %30 = vector.load %arg5[%c0_12, %c0_13, %c0_14] : memref<1x8x32xf32, #tpu.memory_space<vmem>>, vector<1x8x32xf32>
    %31 = vector.shape_cast %29 : vector<1x8x32xf32> to vector<8x32xf32>
    %32 = arith.truncf %31 : vector<8x32xf32> to vector<8x32xbf16>
    %33 = vector.shape_cast %29 : vector<1x8x32xf32> to vector<8x32xf32>
    %34 = arith.truncf %33 : vector<8x32xf32> to vector<8x32xbf16>
    %c0_15 = arith.constant 0 : index
    %c0_16 = arith.constant 0 : index
    %35 = vector.load %arg8[%c0_15, %c0_16] : memref<32x32xbf16, #tpu.memory_space<vmem>>, vector<32x32xbf16>
    %cst_17 = arith.constant dense<0.000000e+00> : vector<8x32xf32>
    %36 = tpu.matmul %32, %35, %cst_17 {dimension_numbers = #tpu.dot_dimension_numbers<[1], [0], [0], [1], [0, 0, 1, 1], [], []>} : vector<8x32xbf16>, vector<32x32xbf16>, vector<8x32xf32> -> vector<8x32xf32>
    %c0_18 = arith.constant 0 : index
    %c0_19 = arith.constant 0 : index
    %37 = vector.load %arg9[%c0_18, %c0_19] : memref<1x32xf32, #tpu.memory_space<vmem>>, vector<1x32xf32>
    %38 = vector.broadcast %37 : vector<1x32xf32> to vector<8x32xf32>
    %39 = arith.addf %36, %38 : vector<8x32xf32>
    %40 = vector.shape_cast %39 : vector<8x32xf32> to vector<1x8x32xf32>
    %c0_20 = arith.constant 0 : index
    %c0_21 = arith.constant 0 : index
    %41 = vector.load %arg10[%c0_20, %c0_21] : memref<32x32xbf16, #tpu.memory_space<vmem>>, vector<32x32xbf16>
    %cst_22 = arith.constant dense<0.000000e+00> : vector<8x32xf32>
    %42 = tpu.matmul %34, %41, %cst_22 {dimension_numbers = #tpu.dot_dimension_numbers<[1], [0], [0], [1], [0, 0, 1, 1], [], []>} : vector<8x32xbf16>, vector<32x32xbf16>, vector<8x32xf32> -> vector<8x32xf32>
    %c0_23 = arith.constant 0 : index
    %c0_24 = arith.constant 0 : index
    %43 = vector.load %arg11[%c0_23, %c0_24] : memref<1x32xf32, #tpu.memory_space<vmem>>, vector<1x32xf32>
    %44 = vector.broadcast %43 : vector<1x32xf32> to vector<8x32xf32>
    %45 = arith.addf %42, %44 : vector<8x32xf32>
    %46 = vector.shape_cast %45 : vector<8x32xf32> to vector<1x8x32xf32>
    %c0_25 = arith.constant 0 : index
    %c0_26 = arith.constant 0 : index
    %47 = vector.load %arg12[%c0_25, %c0_26] : memref<32x32xbf16, #tpu.memory_space<vmem>>, vector<32x32xbf16>
    %cst_27 = arith.constant dense<0.000000e+00> : vector<8x32xf32>
    %48 = tpu.matmul %34, %47, %cst_27 {dimension_numbers = #tpu.dot_dimension_numbers<[1], [0], [0], [1], [0, 0, 1, 1], [], []>} : vector<8x32xbf16>, vector<32x32xbf16>, vector<8x32xf32> -> vector<8x32xf32>
    %c0_28 = arith.constant 0 : index
    %c0_29 = arith.constant 0 : index
    %49 = vector.load %arg13[%c0_28, %c0_29] : memref<1x32xf32, #tpu.memory_space<vmem>>, vector<1x32xf32>
    %50 = vector.broadcast %49 : vector<1x32xf32> to vector<8x32xf32>
    %51 = arith.addf %48, %50 : vector<8x32xf32>
    %52 = vector.shape_cast %51 : vector<8x32xf32> to vector<1x8x32xf32>
    %53 = vector.shape_cast %40 : vector<1x8x32xf32> to vector<8x32xf32>
    %54 = vector.extract_strided_slice %53 {offsets = [0, 0], sizes = [8, 8], strides = [1, 1]} : vector<8x32xf32> to vector<8x8xf32>
    %55 = vector.extract_strided_slice %53 {offsets = [0, 8], sizes = [8, 8], strides = [1, 1]} : vector<8x32xf32> to vector<8x8xf32>
    %56 = vector.extract_strided_slice %53 {offsets = [0, 16], sizes = [8, 8], strides = [1, 1]} : vector<8x32xf32> to vector<8x8xf32>
    %57 = vector.extract_strided_slice %53 {offsets = [0, 24], sizes = [8, 8], strides = [1, 1]} : vector<8x32xf32> to vector<8x8xf32>
    %58 = vector.shape_cast %54 : vector<8x8xf32> to vector<1x8x8xf32>
    %59 = vector.shape_cast %55 : vector<8x8xf32> to vector<1x8x8xf32>
    %60 = vector.shape_cast %56 : vector<8x8xf32> to vector<1x8x8xf32>
    %61 = vector.shape_cast %57 : vector<8x8xf32> to vector<1x8x8xf32>
    %62 = tpu.concatenate %58, %59, %60, %61 in 0 : vector<1x8x8xf32>, vector<1x8x8xf32>, vector<1x8x8xf32>, vector<1x8x8xf32> -> vector<4x8x8xf32>
    %63 = arith.truncf %62 : vector<4x8x8xf32> to vector<4x8x8xbf16>
    %64 = vector.shape_cast %46 : vector<1x8x32xf32> to vector<8x32xf32>
    %65 = vector.extract_strided_slice %64 {offsets = [0, 0], sizes = [8, 8], strides = [1, 1]} : vector<8x32xf32> to vector<8x8xf32>
    %66 = vector.extract_strided_slice %64 {offsets = [0, 8], sizes = [8, 8], strides = [1, 1]} : vector<8x32xf32> to vector<8x8xf32>
    %67 = vector.extract_strided_slice %64 {offsets = [0, 16], sizes = [8, 8], strides = [1, 1]} : vector<8x32xf32> to vector<8x8xf32>
    %68 = vector.extract_strided_slice %64 {offsets = [0, 24], sizes = [8, 8], strides = [1, 1]} : vector<8x32xf32> to vector<8x8xf32>
    %69 = vector.shape_cast %65 : vector<8x8xf32> to vector<1x8x8xf32>
    %70 = vector.shape_cast %66 : vector<8x8xf32> to vector<1x8x8xf32>
    %71 = vector.shape_cast %67 : vector<8x8xf32> to vector<1x8x8xf32>
    %72 = vector.shape_cast %68 : vector<8x8xf32> to vector<1x8x8xf32>
    %73 = tpu.concatenate %69, %70, %71, %72 in 0 : vector<1x8x8xf32>, vector<1x8x8xf32>, vector<1x8x8xf32>, vector<1x8x8xf32> -> vector<4x8x8xf32>
    %74 = arith.truncf %73 : vector<4x8x8xf32> to vector<4x8x8xbf16>
    %75 = vector.shape_cast %52 : vector<1x8x32xf32> to vector<8x32xf32>
    %76 = vector.extract_strided_slice %75 {offsets = [0, 0], sizes = [8, 8], strides = [1, 1]} : vector<8x32xf32> to vector<8x8xf32>
    %77 = vector.extract_strided_slice %75 {offsets = [0, 8], sizes = [8, 8], strides = [1, 1]} : vector<8x32xf32> to vector<8x8xf32>
    %78 = vector.extract_strided_slice %75 {offsets = [0, 16], sizes = [8, 8], strides = [1, 1]} : vector<8x32xf32> to vector<8x8xf32>
    %79 = vector.extract_strided_slice %75 {offsets = [0, 24], sizes = [8, 8], strides = [1, 1]} : vector<8x32xf32> to vector<8x8xf32>
    %80 = vector.shape_cast %76 : vector<8x8xf32> to vector<1x8x8xf32>
    %81 = vector.shape_cast %77 : vector<8x8xf32> to vector<1x8x8xf32>
    %82 = vector.shape_cast %78 : vector<8x8xf32> to vector<1x8x8xf32>
    %83 = vector.shape_cast %79 : vector<8x8xf32> to vector<1x8x8xf32>
    %84 = tpu.concatenate %80, %81, %82, %83 in 0 : vector<1x8x8xf32>, vector<1x8x8xf32>, vector<1x8x8xf32>, vector<1x8x8xf32> -> vector<4x8x8xf32>
    %85 = arith.truncf %84 : vector<4x8x8xf32> to vector<4x8x8xbf16>
    "tpu.trace_start"() <{level = 10 : i32, message = "hqd,hkd->hqk"}> : () -> ()
    %cst_30 = arith.constant dense<0.000000e+00> : vector<4x8x8xf32>
    %86 = tpu.matmul %63, %74, %cst_30 {dimension_numbers = #tpu.dot_dimension_numbers<[2], [2], [1], [1], [0, 0, 0, 1, 1, 1], [0], [0]>} : vector<4x8x8xbf16>, vector<4x8x8xbf16>, vector<4x8x8xf32> -> vector<4x8x8xf32>
    "tpu.trace_stop"() : () -> ()
    %cst_31 = arith.constant 0.353553385 : f32
    %87 = vector.broadcast %cst_31 : f32 to vector<4x8x8xf32>
    %88 = arith.mulf %86, %87 : vector<4x8x8xf32>
    %c0_32 = arith.constant 0 : index
    %c0_33 = arith.constant 0 : index
    %c0_34 = arith.constant 0 : index
    %c0_35 = arith.constant 0 : index
    %89 = vector.load %arg6[%c0_32, %c0_33, %c0_34, %c0_35] : memref<1x1x8x8xf32, #tpu.memory_space<vmem>>, vector<1x1x8x8xf32>
    %90 = vector.shape_cast %89 : vector<1x1x8x8xf32> to vector<8x8xf32>
    %91 = vector.shape_cast %90 : vector<8x8xf32> to vector<1x8x8xf32>
    %92 = vector.broadcast %91 : vector<1x8x8xf32> to vector<4x8x8xf32>
    %93 = arith.addf %88, %92 : vector<4x8x8xf32>
    %cst_36 = arith.constant dense<0xFF800000> : vector<4x8xf32>
    %94 = vector.multi_reduction <maximumf>, %93, %cst_36 [2] : vector<4x8x8xf32> to vector<4x8xf32>
    %95 = vector.shape_cast %94 : vector<4x8xf32> to vector<4x8x1xf32>
    %96 = vector.broadcast %95 : vector<4x8x1xf32> to vector<4x8x8xf32>
    %97 = arith.subf %93, %96 : vector<4x8x8xf32>
    %98 = math.exp %97 : vector<4x8x8xf32>
    %cst_37 = arith.constant dense<0.000000e+00> : vector<4x8xf32>
    %99 = vector.multi_reduction <add>, %98, %cst_37 [2] : vector<4x8x8xf32> to vector<4x8xf32>
    %100 = vector.shape_cast %99 : vector<4x8xf32> to vector<4x8x1xf32>
    %101 = tpu.reciprocal %100 {approx = true} : vector<4x8x1xf32> -> vector<4x8x1xf32>
    %102 = vector.broadcast %101 : vector<4x8x1xf32> to vector<4x8x8xf32>
    %103 = arith.mulf %98, %102 : vector<4x8x8xf32>
    %104 = arith.truncf %103 : vector<4x8x8xf32> to vector<4x8x8xbf16>
    "tpu.trace_start"() <{level = 10 : i32, message = "hqk,hkd->hqd"}> : () -> ()
    %cst_38 = arith.constant dense<0.000000e+00> : vector<4x8x8xf32>
    %105 = tpu.matmul %104, %85, %cst_38 {dimension_numbers = #tpu.dot_dimension_numbers<[2], [1], [1], [2], [0, 0, 0, 1, 1, 2], [0], [0]>} : vector<4x8x8xbf16>, vector<4x8x8xbf16>, vector<4x8x8xf32> -> vector<4x8x8xf32>
    "tpu.trace_stop"() : () -> ()
    %106 = vector.extract_strided_slice %105 {offsets = [0, 0, 0], sizes = [1, 8, 8], strides = [1, 1, 1]} : vector<4x8x8xf32> to vector<1x8x8xf32>
    %107 = vector.shape_cast %106 : vector<1x8x8xf32> to vector<8x8xf32>
    %108 = vector.extract_strided_slice %105 {offsets = [1, 0, 0], sizes = [1, 8, 8], strides = [1, 1, 1]} : vector<4x8x8xf32> to vector<1x8x8xf32>
    %109 = vector.shape_cast %108 : vector<1x8x8xf32> to vector<8x8xf32>
    %110 = vector.extract_strided_slice %105 {offsets = [2, 0, 0], sizes = [1, 8, 8], strides = [1, 1, 1]} : vector<4x8x8xf32> to vector<1x8x8xf32>
    %111 = vector.shape_cast %110 : vector<1x8x8xf32> to vector<8x8xf32>
    %112 = vector.extract_strided_slice %105 {offsets = [3, 0, 0], sizes = [1, 8, 8], strides = [1, 1, 1]} : vector<4x8x8xf32> to vector<1x8x8xf32>
    %113 = vector.shape_cast %112 : vector<1x8x8xf32> to vector<8x8xf32>
    %114 = tpu.concatenate %107, %109, %111, %113 in 1 : vector<8x8xf32>, vector<8x8xf32>, vector<8x8xf32>, vector<8x8xf32> -> vector<8x32xf32>
    %115 = arith.truncf %114 : vector<8x32xf32> to vector<8x32xbf16>
    %c0_39 = arith.constant 0 : index
    %c0_40 = arith.constant 0 : index
    %116 = vector.load %arg14[%c0_39, %c0_40] : memref<32x32xbf16, #tpu.memory_space<vmem>>, vector<32x32xbf16>
    %cst_41 = arith.constant dense<0.000000e+00> : vector<8x32xf32>
    %117 = tpu.matmul %115, %116, %cst_41 {dimension_numbers = #tpu.dot_dimension_numbers<[1], [0], [0], [1], [0, 0, 1, 1], [], []>} : vector<8x32xbf16>, vector<32x32xbf16>, vector<8x32xf32> -> vector<8x32xf32>
    %c0_42 = arith.constant 0 : index
    %c0_43 = arith.constant 0 : index
    %118 = vector.load %arg15[%c0_42, %c0_43] : memref<1x32xf32, #tpu.memory_space<vmem>>, vector<1x32xf32>
    %119 = vector.broadcast %118 : vector<1x32xf32> to vector<8x32xf32>
    %120 = arith.addf %117, %119 : vector<8x32xf32>
    %121 = vector.shape_cast %120 : vector<8x32xf32> to vector<1x8x32xf32>
    %122 = arith.addf %121, %29 : vector<1x8x32xf32>
    %c0_44 = arith.constant 0 : index
    %c0_45 = arith.constant 0 : index
    %123 = vector.load %arg16[%c0_44, %c0_45] : memref<1x32xf32, #tpu.memory_space<vmem>>, vector<1x32xf32>
    %c0_46 = arith.constant 0 : index
    %c0_47 = arith.constant 0 : index
    %124 = vector.load %arg17[%c0_46, %c0_47] : memref<1x32xf32, #tpu.memory_space<vmem>>, vector<1x32xf32>
    %cst_48 = arith.constant dense<0.000000e+00> : vector<1x8xf32>
    %125 = vector.multi_reduction <add>, %122, %cst_48 [2] : vector<1x8x32xf32> to vector<1x8xf32>
    %126 = vector.shape_cast %125 : vector<1x8xf32> to vector<1x8x1xf32>
    %cst_49 = arith.constant 3.200000e+01 : f32
    %127 = vector.broadcast %cst_49 : f32 to vector<1x8x1xf32>
    %128 = arith.divf %126, %127 : vector<1x8x1xf32>
    %129 = vector.broadcast %128 : vector<1x8x1xf32> to vector<1x8x32xf32>
    %130 = arith.subf %122, %129 : vector<1x8x32xf32>
    %131 = arith.mulf %130, %130 : vector<1x8x32xf32>
    %cst_50 = arith.constant dense<0.000000e+00> : vector<1x8xf32>
    %132 = vector.multi_reduction <add>, %131, %cst_50 [2] : vector<1x8x32xf32> to vector<1x8xf32>
    %133 = vector.shape_cast %132 : vector<1x8xf32> to vector<1x8x1xf32>
    %cst_51 = arith.constant 3.200000e+01 : f32
    %134 = vector.broadcast %cst_51 : f32 to vector<1x8x1xf32>
    %135 = arith.divf %133, %134 : vector<1x8x1xf32>
    %136 = vector.broadcast %128 : vector<1x8x1xf32> to vector<1x8x32xf32>
    %137 = arith.subf %122, %136 : vector<1x8x32xf32>
    %cst_52 = arith.constant 9.99999974E-6 : f32
    %138 = vector.broadcast %cst_52 : f32 to vector<1x8x1xf32>
    %139 = arith.addf %135, %138 : vector<1x8x1xf32>
    %140 = math.rsqrt %139 : vector<1x8x1xf32>
    %141 = vector.broadcast %140 : vector<1x8x1xf32> to vector<1x8x32xf32>
    %142 = arith.mulf %137, %141 : vector<1x8x32xf32>
    %143 = vector.shape_cast %123 : vector<1x32xf32> to vector<1x1x32xf32>
    %144 = vector.broadcast %143 : vector<1x1x32xf32> to vector<1x8x32xf32>
    %145 = arith.mulf %142, %144 : vector<1x8x32xf32>
    %146 = vector.shape_cast %124 : vector<1x32xf32> to vector<1x1x32xf32>
    %147 = vector.broadcast %146 : vector<1x1x32xf32> to vector<1x8x32xf32>
    %148 = arith.addf %145, %147 : vector<1x8x32xf32>
    %149 = vector.shape_cast %148 : vector<1x8x32xf32> to vector<8x32xf32>
    %150 = arith.truncf %149 : vector<8x32xf32> to vector<8x32xbf16>
    %151 = vector.shape_cast %30 : vector<1x8x32xf32> to vector<8x32xf32>
    %152 = arith.truncf %151 : vector<8x32xf32> to vector<8x32xbf16>
    %c0_53 = arith.constant 0 : index
    %c0_54 = arith.constant 0 : index
    %153 = vector.load %arg18[%c0_53, %c0_54] : memref<32x32xbf16, #tpu.memory_space<vmem>>, vector<32x32xbf16>
    %cst_55 = arith.constant dense<0.000000e+00> : vector<8x32xf32>
    %154 = tpu.matmul %150, %153, %cst_55 {dimension_numbers = #tpu.dot_dimension_numbers<[1], [0], [0], [1], [0, 0, 1, 1], [], []>} : vector<8x32xbf16>, vector<32x32xbf16>, vector<8x32xf32> -> vector<8x32xf32>
    %c0_56 = arith.constant 0 : index
    %c0_57 = arith.constant 0 : index
    %155 = vector.load %arg19[%c0_56, %c0_57] : memref<1x32xf32, #tpu.memory_space<vmem>>, vector<1x32xf32>
    %156 = vector.broadcast %155 : vector<1x32xf32> to vector<8x32xf32>
    %157 = arith.addf %154, %156 : vector<8x32xf32>
    %158 = vector.shape_cast %157 : vector<8x32xf32> to vector<1x8x32xf32>
    %c0_58 = arith.constant 0 : index
    %c0_59 = arith.constant 0 : index
    %159 = vector.load %arg20[%c0_58, %c0_59] : memref<32x32xbf16, #tpu.memory_space<vmem>>, vector<32x32xbf16>
    %cst_60 = arith.constant dense<0.000000e+00> : vector<8x32xf32>
    %160 = tpu.matmul %152, %159, %cst_60 {dimension_numbers = #tpu.dot_dimension_numbers<[1], [0], [0], [1], [0, 0, 1, 1], [], []>} : vector<8x32xbf16>, vector<32x32xbf16>, vector<8x32xf32> -> vector<8x32xf32>
    %c0_61 = arith.constant 0 : index
    %c0_62 = arith.constant 0 : index
    %161 = vector.load %arg21[%c0_61, %c0_62] : memref<1x32xf32, #tpu.memory_space<vmem>>, vector<1x32xf32>
    %162 = vector.broadcast %161 : vector<1x32xf32> to vector<8x32xf32>
    %163 = arith.addf %160, %162 : vector<8x32xf32>
    %164 = vector.shape_cast %163 : vector<8x32xf32> to vector<1x8x32xf32>
    %c0_63 = arith.constant 0 : index
    %c0_64 = arith.constant 0 : index
    %165 = vector.load %arg22[%c0_63, %c0_64] : memref<32x32xbf16, #tpu.memory_space<vmem>>, vector<32x32xbf16>
    %cst_65 = arith.constant dense<0.000000e+00> : vector<8x32xf32>
    %166 = tpu.matmul %152, %165, %cst_65 {dimension_numbers = #tpu.dot_dimension_numbers<[1], [0], [0], [1], [0, 0, 1, 1], [], []>} : vector<8x32xbf16>, vector<32x32xbf16>, vector<8x32xf32> -> vector<8x32xf32>
    %c0_66 = arith.constant 0 : index
    %c0_67 = arith.constant 0 : index
    %167 = vector.load %arg23[%c0_66, %c0_67] : memref<1x32xf32, #tpu.memory_space<vmem>>, vector<1x32xf32>
    %168 = vector.broadcast %167 : vector<1x32xf32> to vector<8x32xf32>
    %169 = arith.addf %166, %168 : vector<8x32xf32>
    %170 = vector.shape_cast %169 : vector<8x32xf32> to vector<1x8x32xf32>
    %171 = vector.shape_cast %158 : vector<1x8x32xf32> to vector<8x32xf32>
    %172 = vector.extract_strided_slice %171 {offsets = [0, 0], sizes = [8, 8], strides = [1, 1]} : vector<8x32xf32> to vector<8x8xf32>
    %173 = vector.extract_strided_slice %171 {offsets = [0, 8], sizes = [8, 8], strides = [1, 1]} : vector<8x32xf32> to vector<8x8xf32>
    %174 = vector.extract_strided_slice %171 {offsets = [0, 16], sizes = [8, 8], strides = [1, 1]} : vector<8x32xf32> to vector<8x8xf32>
    %175 = vector.extract_strided_slice %171 {offsets = [0, 24], sizes = [8, 8], strides = [1, 1]} : vector<8x32xf32> to vector<8x8xf32>
    %176 = vector.shape_cast %172 : vector<8x8xf32> to vector<1x8x8xf32>
    %177 = vector.shape_cast %173 : vector<8x8xf32> to vector<1x8x8xf32>
    %178 = vector.shape_cast %174 : vector<8x8xf32> to vector<1x8x8xf32>
    %179 = vector.shape_cast %175 : vector<8x8xf32> to vector<1x8x8xf32>
    %180 = tpu.concatenate %176, %177, %178, %179 in 0 : vector<1x8x8xf32>, vector<1x8x8xf32>, vector<1x8x8xf32>, vector<1x8x8xf32> -> vector<4x8x8xf32>
    %181 = arith.truncf %180 : vector<4x8x8xf32> to vector<4x8x8xbf16>
    %182 = vector.shape_cast %164 : vector<1x8x32xf32> to vector<8x32xf32>
    %183 = vector.extract_strided_slice %182 {offsets = [0, 0], sizes = [8, 8], strides = [1, 1]} : vector<8x32xf32> to vector<8x8xf32>
    %184 = vector.extract_strided_slice %182 {offsets = [0, 8], sizes = [8, 8], strides = [1, 1]} : vector<8x32xf32> to vector<8x8xf32>
    %185 = vector.extract_strided_slice %182 {offsets = [0, 16], sizes = [8, 8], strides = [1, 1]} : vector<8x32xf32> to vector<8x8xf32>
    %186 = vector.extract_strided_slice %182 {offsets = [0, 24], sizes = [8, 8], strides = [1, 1]} : vector<8x32xf32> to vector<8x8xf32>
    %187 = vector.shape_cast %183 : vector<8x8xf32> to vector<1x8x8xf32>
    %188 = vector.shape_cast %184 : vector<8x8xf32> to vector<1x8x8xf32>
    %189 = vector.shape_cast %185 : vector<8x8xf32> to vector<1x8x8xf32>
    %190 = vector.shape_cast %186 : vector<8x8xf32> to vector<1x8x8xf32>
    %191 = tpu.concatenate %187, %188, %189, %190 in 0 : vector<1x8x8xf32>, vector<1x8x8xf32>, vector<1x8x8xf32>, vector<1x8x8xf32> -> vector<4x8x8xf32>
    %192 = arith.truncf %191 : vector<4x8x8xf32> to vector<4x8x8xbf16>
    %193 = vector.shape_cast %170 : vector<1x8x32xf32> to vector<8x32xf32>
    %194 = vector.extract_strided_slice %193 {offsets = [0, 0], sizes = [8, 8], strides = [1, 1]} : vector<8x32xf32> to vector<8x8xf32>
    %195 = vector.extract_strided_slice %193 {offsets = [0, 8], sizes = [8, 8], strides = [1, 1]} : vector<8x32xf32> to vector<8x8xf32>
    %196 = vector.extract_strided_slice %193 {offsets = [0, 16], sizes = [8, 8], strides = [1, 1]} : vector<8x32xf32> to vector<8x8xf32>
    %197 = vector.extract_strided_slice %193 {offsets = [0, 24], sizes = [8, 8], strides = [1, 1]} : vector<8x32xf32> to vector<8x8xf32>
    %198 = vector.shape_cast %194 : vector<8x8xf32> to vector<1x8x8xf32>
    %199 = vector.shape_cast %195 : vector<8x8xf32> to vector<1x8x8xf32>
    %200 = vector.shape_cast %196 : vector<8x8xf32> to vector<1x8x8xf32>
    %201 = vector.shape_cast %197 : vector<8x8xf32> to vector<1x8x8xf32>
    %202 = tpu.concatenate %198, %199, %200, %201 in 0 : vector<1x8x8xf32>, vector<1x8x8xf32>, vector<1x8x8xf32>, vector<1x8x8xf32> -> vector<4x8x8xf32>
    %203 = arith.truncf %202 : vector<4x8x8xf32> to vector<4x8x8xbf16>
    "tpu.trace_start"() <{level = 10 : i32, message = "hqd,hkd->hqk"}> : () -> ()
    %cst_68 = arith.constant dense<0.000000e+00> : vector<4x8x8xf32>
    %204 = tpu.matmul %181, %192, %cst_68 {dimension_numbers = #tpu.dot_dimension_numbers<[2], [2], [1], [1], [0, 0, 0, 1, 1, 1], [0], [0]>} : vector<4x8x8xbf16>, vector<4x8x8xbf16>, vector<4x8x8xf32> -> vector<4x8x8xf32>
    "tpu.trace_stop"() : () -> ()
    %cst_69 = arith.constant 0.353553385 : f32
    %205 = vector.broadcast %cst_69 : f32 to vector<4x8x8xf32>
    %206 = arith.mulf %204, %205 : vector<4x8x8xf32>
    %c0_70 = arith.constant 0 : index
    %c0_71 = arith.constant 0 : index
    %c0_72 = arith.constant 0 : index
    %c0_73 = arith.constant 0 : index
    %207 = vector.load %arg7[%c0_70, %c0_71, %c0_72, %c0_73] : memref<1x1x1x8xf32, #tpu.memory_space<vmem>>, vector<1x1x1x8xf32>
    %208 = vector.shape_cast %207 : vector<1x1x1x8xf32> to vector<1x8xf32>
    %209 = vector.shape_cast %208 : vector<1x8xf32> to vector<1x1x8xf32>
    %210 = vector.broadcast %209 : vector<1x1x8xf32> to vector<4x8x8xf32>
    %211 = arith.addf %206, %210 : vector<4x8x8xf32>
    %cst_74 = arith.constant dense<0xFF800000> : vector<4x8xf32>
    %212 = vector.multi_reduction <maximumf>, %211, %cst_74 [2] : vector<4x8x8xf32> to vector<4x8xf32>
    %213 = vector.shape_cast %212 : vector<4x8xf32> to vector<4x8x1xf32>
    %214 = vector.broadcast %213 : vector<4x8x1xf32> to vector<4x8x8xf32>
    %215 = arith.subf %211, %214 : vector<4x8x8xf32>
    %216 = math.exp %215 : vector<4x8x8xf32>
    %cst_75 = arith.constant dense<0.000000e+00> : vector<4x8xf32>
    %217 = vector.multi_reduction <add>, %216, %cst_75 [2] : vector<4x8x8xf32> to vector<4x8xf32>
    %218 = vector.shape_cast %217 : vector<4x8xf32> to vector<4x8x1xf32>
    %219 = tpu.reciprocal %218 {approx = true} : vector<4x8x1xf32> -> vector<4x8x1xf32>
    %220 = vector.broadcast %219 : vector<4x8x1xf32> to vector<4x8x8xf32>
    %221 = arith.mulf %216, %220 : vector<4x8x8xf32>
    %222 = arith.truncf %221 : vector<4x8x8xf32> to vector<4x8x8xbf16>
    "tpu.trace_start"() <{level = 10 : i32, message = "hqk,hkd->hqd"}> : () -> ()
    %cst_76 = arith.constant dense<0.000000e+00> : vector<4x8x8xf32>
    %223 = tpu.matmul %222, %203, %cst_76 {dimension_numbers = #tpu.dot_dimension_numbers<[2], [1], [1], [2], [0, 0, 0, 1, 1, 2], [0], [0]>} : vector<4x8x8xbf16>, vector<4x8x8xbf16>, vector<4x8x8xf32> -> vector<4x8x8xf32>
    "tpu.trace_stop"() : () -> ()
    %224 = vector.extract_strided_slice %223 {offsets = [0, 0, 0], sizes = [1, 8, 8], strides = [1, 1, 1]} : vector<4x8x8xf32> to vector<1x8x8xf32>
    %225 = vector.shape_cast %224 : vector<1x8x8xf32> to vector<8x8xf32>
    %226 = vector.extract_strided_slice %223 {offsets = [1, 0, 0], sizes = [1, 8, 8], strides = [1, 1, 1]} : vector<4x8x8xf32> to vector<1x8x8xf32>
    %227 = vector.shape_cast %226 : vector<1x8x8xf32> to vector<8x8xf32>
    %228 = vector.extract_strided_slice %223 {offsets = [2, 0, 0], sizes = [1, 8, 8], strides = [1, 1, 1]} : vector<4x8x8xf32> to vector<1x8x8xf32>
    %229 = vector.shape_cast %228 : vector<1x8x8xf32> to vector<8x8xf32>
    %230 = vector.extract_strided_slice %223 {offsets = [3, 0, 0], sizes = [1, 8, 8], strides = [1, 1, 1]} : vector<4x8x8xf32> to vector<1x8x8xf32>
    %231 = vector.shape_cast %230 : vector<1x8x8xf32> to vector<8x8xf32>
    %232 = tpu.concatenate %225, %227, %229, %231 in 1 : vector<8x8xf32>, vector<8x8xf32>, vector<8x8xf32>, vector<8x8xf32> -> vector<8x32xf32>
    %233 = arith.truncf %232 : vector<8x32xf32> to vector<8x32xbf16>
    %c0_77 = arith.constant 0 : index
    %c0_78 = arith.constant 0 : index
    %234 = vector.load %arg24[%c0_77, %c0_78] : memref<32x32xbf16, #tpu.memory_space<vmem>>, vector<32x32xbf16>
    %cst_79 = arith.constant dense<0.000000e+00> : vector<8x32xf32>
    %235 = tpu.matmul %233, %234, %cst_79 {dimension_numbers = #tpu.dot_dimension_numbers<[1], [0], [0], [1], [0, 0, 1, 1], [], []>} : vector<8x32xbf16>, vector<32x32xbf16>, vector<8x32xf32> -> vector<8x32xf32>
    %c0_80 = arith.constant 0 : index
    %c0_81 = arith.constant 0 : index
    %236 = vector.load %arg25[%c0_80, %c0_81] : memref<1x32xf32, #tpu.memory_space<vmem>>, vector<1x32xf32>
    %237 = vector.broadcast %236 : vector<1x32xf32> to vector<8x32xf32>
    %238 = arith.addf %235, %237 : vector<8x32xf32>
    %239 = vector.shape_cast %238 : vector<8x32xf32> to vector<1x8x32xf32>
    %240 = arith.addf %239, %148 : vector<1x8x32xf32>
    %c0_82 = arith.constant 0 : index
    %c0_83 = arith.constant 0 : index
    %241 = vector.load %arg26[%c0_82, %c0_83] : memref<1x32xf32, #tpu.memory_space<vmem>>, vector<1x32xf32>
    %c0_84 = arith.constant 0 : index
    %c0_85 = arith.constant 0 : index
    %242 = vector.load %arg27[%c0_84, %c0_85] : memref<1x32xf32, #tpu.memory_space<vmem>>, vector<1x32xf32>
    %cst_86 = arith.constant dense<0.000000e+00> : vector<1x8xf32>
    %243 = vector.multi_reduction <add>, %240, %cst_86 [2] : vector<1x8x32xf32> to vector<1x8xf32>
    %244 = vector.shape_cast %243 : vector<1x8xf32> to vector<1x8x1xf32>
    %cst_87 = arith.constant 3.200000e+01 : f32
    %245 = vector.broadcast %cst_87 : f32 to vector<1x8x1xf32>
    %246 = arith.divf %244, %245 : vector<1x8x1xf32>
    %247 = vector.broadcast %246 : vector<1x8x1xf32> to vector<1x8x32xf32>
    %248 = arith.subf %240, %247 : vector<1x8x32xf32>
    %249 = arith.mulf %248, %248 : vector<1x8x32xf32>
    %cst_88 = arith.constant dense<0.000000e+00> : vector<1x8xf32>
    %250 = vector.multi_reduction <add>, %249, %cst_88 [2] : vector<1x8x32xf32> to vector<1x8xf32>
    %251 = vector.shape_cast %250 : vector<1x8xf32> to vector<1x8x1xf32>
    %cst_89 = arith.constant 3.200000e+01 : f32
    %252 = vector.broadcast %cst_89 : f32 to vector<1x8x1xf32>
    %253 = arith.divf %251, %252 : vector<1x8x1xf32>
    %254 = vector.broadcast %246 : vector<1x8x1xf32> to vector<1x8x32xf32>
    %255 = arith.subf %240, %254 : vector<1x8x32xf32>
    %cst_90 = arith.constant 9.99999974E-6 : f32
    %256 = vector.broadcast %cst_90 : f32 to vector<1x8x1xf32>
    %257 = arith.addf %253, %256 : vector<1x8x1xf32>
    %258 = math.rsqrt %257 : vector<1x8x1xf32>
    %259 = vector.broadcast %258 : vector<1x8x1xf32> to vector<1x8x32xf32>
    %260 = arith.mulf %255, %259 : vector<1x8x32xf32>
    %261 = vector.shape_cast %241 : vector<1x32xf32> to vector<1x1x32xf32>
    %262 = vector.broadcast %261 : vector<1x1x32xf32> to vector<1x8x32xf32>
    %263 = arith.mulf %260, %262 : vector<1x8x32xf32>
    %264 = vector.shape_cast %242 : vector<1x32xf32> to vector<1x1x32xf32>
    %265 = vector.broadcast %264 : vector<1x1x32xf32> to vector<1x8x32xf32>
    %266 = arith.addf %263, %265 : vector<1x8x32xf32>
    %267 = vector.shape_cast %266 : vector<1x8x32xf32> to vector<8x32xf32>
    %268 = arith.truncf %267 : vector<8x32xf32> to vector<8x32xbf16>
    %c0_91 = arith.constant 0 : index
    %c0_92 = arith.constant 0 : index
    %269 = vector.load %arg28[%c0_91, %c0_92] : memref<32x64xbf16, #tpu.memory_space<vmem>>, vector<32x64xbf16>
    %cst_93 = arith.constant dense<0.000000e+00> : vector<8x64xf32>
    %270 = tpu.matmul %268, %269, %cst_93 {dimension_numbers = #tpu.dot_dimension_numbers<[1], [0], [0], [1], [0, 0, 1, 1], [], []>} : vector<8x32xbf16>, vector<32x64xbf16>, vector<8x64xf32> -> vector<8x64xf32>
    %c0_94 = arith.constant 0 : index
    %c0_95 = arith.constant 0 : index
    %271 = vector.load %arg29[%c0_94, %c0_95] : memref<1x64xf32, #tpu.memory_space<vmem>>, vector<1x64xf32>
    %272 = vector.broadcast %271 : vector<1x64xf32> to vector<8x64xf32>
    %273 = arith.addf %270, %272 : vector<8x64xf32>
    %cst_96 = arith.constant 0.000000e+00 : f32
    %274 = vector.broadcast %cst_96 : f32 to vector<8x64xf32>
    %275 = arith.maximumf %273, %274 : vector<8x64xf32>
    %276 = arith.truncf %275 : vector<8x64xf32> to vector<8x64xbf16>
    %c0_97 = arith.constant 0 : index
    %c0_98 = arith.constant 0 : index
    %277 = vector.load %arg30[%c0_97, %c0_98] : memref<64x32xbf16, #tpu.memory_space<vmem>>, vector<64x32xbf16>
    %cst_99 = arith.constant dense<0.000000e+00> : vector<8x32xf32>
    %278 = tpu.matmul %276, %277, %cst_99 {dimension_numbers = #tpu.dot_dimension_numbers<[1], [0], [0], [1], [0, 0, 1, 1], [], []>} : vector<8x64xbf16>, vector<64x32xbf16>, vector<8x32xf32> -> vector<8x32xf32>
    %c0_100 = arith.constant 0 : index
    %c0_101 = arith.constant 0 : index
    %279 = vector.load %arg31[%c0_100, %c0_101] : memref<1x32xf32, #tpu.memory_space<vmem>>, vector<1x32xf32>
    %280 = vector.broadcast %279 : vector<1x32xf32> to vector<8x32xf32>
    %281 = arith.addf %278, %280 : vector<8x32xf32>
    %282 = vector.shape_cast %281 : vector<8x32xf32> to vector<1x8x32xf32>
    %283 = arith.addf %282, %266 : vector<1x8x32xf32>
    %c0_102 = arith.constant 0 : index
    %c0_103 = arith.constant 0 : index
    %284 = vector.load %arg32[%c0_102, %c0_103] : memref<1x32xf32, #tpu.memory_space<vmem>>, vector<1x32xf32>
    %c0_104 = arith.constant 0 : index
    %c0_105 = arith.constant 0 : index
    %285 = vector.load %arg33[%c0_104, %c0_105] : memref<1x32xf32, #tpu.memory_space<vmem>>, vector<1x32xf32>
    %cst_106 = arith.constant dense<0.000000e+00> : vector<1x8xf32>
    %286 = vector.multi_reduction <add>, %283, %cst_106 [2] : vector<1x8x32xf32> to vector<1x8xf32>
    %287 = vector.shape_cast %286 : vector<1x8xf32> to vector<1x8x1xf32>
    %cst_107 = arith.constant 3.200000e+01 : f32
    %288 = vector.broadcast %cst_107 : f32 to vector<1x8x1xf32>
    %289 = arith.divf %287, %288 : vector<1x8x1xf32>
    %290 = vector.broadcast %289 : vector<1x8x1xf32> to vector<1x8x32xf32>
    %291 = arith.subf %283, %290 : vector<1x8x32xf32>
    %292 = arith.mulf %291, %291 : vector<1x8x32xf32>
    %cst_108 = arith.constant dense<0.000000e+00> : vector<1x8xf32>
    %293 = vector.multi_reduction <add>, %292, %cst_108 [2] : vector<1x8x32xf32> to vector<1x8xf32>
    %294 = vector.shape_cast %293 : vector<1x8xf32> to vector<1x8x1xf32>
    %cst_109 = arith.constant 3.200000e+01 : f32
    %295 = vector.broadcast %cst_109 : f32 to vector<1x8x1xf32>
    %296 = arith.divf %294, %295 : vector<1x8x1xf32>
    %297 = vector.broadcast %289 : vector<1x8x1xf32> to vector<1x8x32xf32>
    %298 = arith.subf %283, %297 : vector<1x8x32xf32>
    %cst_110 = arith.constant 9.99999974E-6 : f32
    %299 = vector.broadcast %cst_110 : f32 to vector<1x8x1xf32>
    %300 = arith.addf %296, %299 : vector<1x8x1xf32>
    %301 = math.rsqrt %300 : vector<1x8x1xf32>
    %302 = vector.broadcast %301 : vector<1x8x1xf32> to vector<1x8x32xf32>
    %303 = arith.mulf %298, %302 : vector<1x8x32xf32>
    %304 = vector.shape_cast %284 : vector<1x32xf32> to vector<1x1x32xf32>
    %305 = vector.broadcast %304 : vector<1x1x32xf32> to vector<1x8x32xf32>
    %306 = arith.mulf %303, %305 : vector<1x8x32xf32>
    %307 = vector.shape_cast %285 : vector<1x32xf32> to vector<1x1x32xf32>
    %308 = vector.broadcast %307 : vector<1x1x32xf32> to vector<1x8x32xf32>
    %309 = arith.addf %306, %308 : vector<1x8x32xf32>
    %310 = arith.truncf %309 : vector<1x8x32xf32> to vector<1x8x32xbf16>
    %c0_111 = arith.constant 0 : index
    %c0_112 = arith.constant 0 : index
    %c0_113 = arith.constant 0 : index
    %311 = vector.load %arg34[%c0_111, %c0_112, %c0_113] : memref<1x8x32xbf16, #tpu.memory_space<vmem>>, vector<1x8x32xbf16>
    tpu.vector_store %arg34[%c0_111, %c0_112, %c0_113], %310 {strides = array<i32>} : memref<1x8x32xbf16, #tpu.memory_space<vmem>>, vector<1x8x32xbf16>,
    return
  }
  func.func @transform_0(%arg0: i32) -> (i32, i32, i32) {
    %c0_i32 = arith.constant 0 : i32
    %c0_i32_0 = arith.constant 0 : i32
    %c0_i32_1 = arith.constant 0 : i32
    return %arg0, %c0_i32, %c0_i32_0 : i32, i32, i32
  }
  func.func @transform_1(%arg0: i32) -> (i32, i32) {
    %c0_i32 = arith.constant 0 : i32
    %c0_i32_0 = arith.constant 0 : i32
    %c0_i32_1 = arith.constant 0 : i32
    return %c0_i32, %c0_i32_0 : i32, i32
  }
  func.func @transform_2(%arg0: i32) -> (i32, i32) {
    %c0_i32 = arith.constant 0 : i32
    %c0_i32_0 = arith.constant 0 : i32
    %c0_i32_1 = arith.constant 0 : i32
    return %c0_i32, %c0_i32_0 : i32, i32
  }
  func.func @transform_3(%arg0: i32) -> (i32, i32) {
    %c0_i32 = arith.constant 0 : i32
    %c0_i32_0 = arith.constant 0 : i32
    %c0_i32_1 = arith.constant 0 : i32
    return %c0_i32, %c0_i32_0 : i32, i32
  }
  func.func @transform_4(%arg0: i32) -> (i32, i32, i32) {
    %c0_i32 = arith.constant 0 : i32
    %c0_i32_0 = arith.constant 0 : i32
    %c0_i32_1 = arith.constant 0 : i32
    return %arg0, %c0_i32, %c0_i32_0 : i32, i32, i32
  }
  func.func @transform_5(%arg0: i32) -> (i32, i32, i32, i32) {
    %c0_i32 = arith.constant 0 : i32
    %c0_i32_0 = arith.constant 0 : i32
    %c0_i32_1 = arith.constant 0 : i32
    %c0_i32_2 = arith.constant 0 : i32
    return %arg0, %c0_i32, %c0_i32_0, %c0_i32_1 : i32, i32, i32, i32
  }
  func.func @transform_6(%arg0: i32) -> (i32, i32, i32, i32) {
    %c0_i32 = arith.constant 0 : i32
    %c0_i32_0 = arith.constant 0 : i32
    %c0_i32_1 = arith.constant 0 : i32
    %c0_i32_2 = arith.constant 0 : i32
    return %arg0, %c0_i32, %c0_i32_0, %c0_i32_1 : i32, i32, i32, i32
  }
  func.func @transform_7(%arg0: i32) -> (i32, i32) {
    %c0_i32 = arith.constant 0 : i32
    %c0_i32_0 = arith.constant 0 : i32
    %c0_i32_1 = arith.constant 0 : i32
    return %c0_i32, %c0_i32_0 : i32, i32
  }
  func.func @transform_8(%arg0: i32) -> (i32, i32) {
    %c0_i32 = arith.constant 0 : i32
    %c0_i32_0 = arith.constant 0 : i32
    %c0_i32_1 = arith.constant 0 : i32
    return %c0_i32, %c0_i32_0 : i32, i32
  }
  func.func @transform_9(%arg0: i32) -> (i32, i32) {
    %c0_i32 = arith.constant 0 : i32
    %c0_i32_0 = arith.constant 0 : i32
    %c0_i32_1 = arith.constant 0 : i32
    return %c0_i32, %c0_i32_0 : i32, i32
  }
  func.func @transform_10(%arg0: i32) -> (i32, i32) {
    %c0_i32 = arith.constant 0 : i32
    %c0_i32_0 = arith.constant 0 : i32
    %c0_i32_1 = arith.constant 0 : i32
    return %c0_i32, %c0_i32_0 : i32, i32
  }
  func.func @transform_11(%arg0: i32) -> (i32, i32) {
    %c0_i32 = arith.constant 0 : i32
    %c0_i32_0 = arith.constant 0 : i32
    %c0_i32_1 = arith.constant 0 : i32
    return %c0_i32, %c0_i32_0 : i32, i32
  }
  func.func @transform_12(%arg0: i32) -> (i32, i32) {
    %c0_i32 = arith.constant 0 : i32
    %c0_i32_0 = arith.constant 0 : i32
    %c0_i32_1 = arith.constant 0 : i32
    return %c0_i32, %c0_i32_0 : i32, i32
  }
  func.func @transform_13(%arg0: i32) -> (i32, i32) {
    %c0_i32 = arith.constant 0 : i32
    %c0_i32_0 = arith.constant 0 : i32
    %c0_i32_1 = arith.constant 0 : i32
    return %c0_i32, %c0_i32_0 : i32, i32
  }
  func.func @transform_14(%arg0: i32) -> (i32, i32) {
    %c0_i32 = arith.constant 0 : i32
    %c0_i32_0 = arith.constant 0 : i32
    %c0_i32_1 = arith.constant 0 : i32
    return %c0_i32, %c0_i32_0 : i32, i32
  }
  func.func @transform_15(%arg0: i32) -> (i32, i32) {
    %c0_i32 = arith.constant 0 : i32
    %c0_i32_0 = arith.constant 0 : i32
    %c0_i32_1 = arith.constant 0 : i32
    return %c0_i32, %c0_i32_0 : i32, i32
  }
  func.func @transform_16(%arg0: i32) -> (i32, i32) {
    %c0_i32 = arith.constant 0 : i32
    %c0_i32_0 = arith.constant 0 : i32
    %c0_i32_1 = arith.constant 0 : i32
    return %c0_i32, %c0_i32_0 : i32, i32
  }
  func.func @transform_17(%arg0: i32) -> (i32, i32) {
    %c0_i32 = arith.constant 0 : i32
    %c0_i32_0 = arith.constant 0 : i32
    %c0_i32_1 = arith.constant 0 : i32
    return %c0_i32, %c0_i32_0 : i32, i32
  }
  func.func @transform_18(%arg0: i32) -> (i32, i32) {
    %c0_i32 = arith.constant 0 : i32
    %c0_i32_0 = arith.constant 0 : i32
    %c0_i32_1 = arith.constant 0 : i32
    return %c0_i32, %c0_i32_0 : i32, i32
  }
  func.func @transform_19(%arg0: i32) -> (i32, i32) {
    %c0_i32 = arith.constant 0 : i32
    %c0_i32_0 = arith.constant 0 : i32
    %c0_i32_1 = arith.constant 0 : i32
    return %c0_i32, %c0_i32_0 : i32, i32
  }
  func.func @transform_20(%arg0: i32) -> (i32, i32) {
    %c0_i32 = arith.constant 0 : i32
    %c0_i32_0 = arith.constant 0 : i32
    %c0_i32_1 = arith.constant 0 : i32
    return %c0_i32, %c0_i32_0 : i32, i32
  }
  func.func @transform_21(%arg0: i32) -> (i32, i32) {
    %c0_i32 = arith.constant 0 : i32
    %c0_i32_0 = arith.constant 0 : i32
    %c0_i32_1 = arith.constant 0 : i32
    return %c0_i32, %c0_i32_0 : i32, i32
  }
  func.func @transform_22(%arg0: i32) -> (i32, i32) {
    %c0_i32 = arith.constant 0 : i32
    %c0_i32_0 = arith.constant 0 : i32
    %c0_i32_1 = arith.constant 0 : i32
    return %c0_i32, %c0_i32_0 : i32, i32
  }
  func.func @transform_23(%arg0: i32) -> (i32, i32) {
    %c0_i32 = arith.constant 0 : i32
    %c0_i32_0 = arith.constant 0 : i32
    %c0_i32_1 = arith.constant 0 : i32
    return %c0_i32, %c0_i32_0 : i32, i32
  }
  func.func @transform_24(%arg0: i32) -> (i32, i32) {
    %c0_i32 = arith.constant 0 : i32
    %c0_i32_0 = arith.constant 0 : i32
    %c0_i32_1 = arith.constant 0 : i32
    return %c0_i32, %c0_i32_0 : i32, i32
  }
  func.func @transform_25(%arg0: i32) -> (i32, i32) {
    %c0_i32 = arith.constant 0 : i32
    %c0_i32_0 = arith.constant 0 : i32
    %c0_i32_1 = arith.constant 0 : i32
    return %c0_i32, %c0_i32_0 : i32, i32
  }
  func.func @transform_26(%arg0: i32) -> (i32, i32) {
    %c0_i32 = arith.constant 0 : i32
    %c0_i32_0 = arith.constant 0 : i32
    %c0_i32_1 = arith.constant 0 : i32
    return %c0_i32, %c0_i32_0 : i32, i32
  }
  func.func @transform_27(%arg0: i32) -> (i32, i32) {
    %c0_i32 = arith.constant 0 : i32
    %c0_i32_0 = arith.constant 0 : i32
    %c0_i32_1 = arith.constant 0 : i32
    return %c0_i32, %c0_i32_0 : i32, i32
  }
  func.func @transform_28(%arg0: i32) -> (i32, i32) {
    %c0_i32 = arith.constant 0 : i32
    %c0_i32_0 = arith.constant 0 : i32
    %c0_i32_1 = arith.constant 0 : i32
    return %c0_i32, %c0_i32_0 : i32, i32
  }
  func.func @transform_29(%arg0: i32) -> (i32, i32) {
    %c0_i32 = arith.constant 0 : i32
    %c0_i32_0 = arith.constant 0 : i32
    %c0_i32_1 = arith.constant 0 : i32
    return %c0_i32, %c0_i32_0 : i32, i32
  }
  func.func @transform_30(%arg0: i32) -> (i32, i32) {
    %c0_i32 = arith.constant 0 : i32
    %c0_i32_0 = arith.constant 0 : i32
    %c0_i32_1 = arith.constant 0 : i32
    return %c0_i32, %c0_i32_0 : i32, i32
  }
  func.func @transform_31(%arg0: i32) -> (i32, i32) {
    %c0_i32 = arith.constant 0 : i32
    %c0_i32_0 = arith.constant 0 : i32
    %c0_i32_1 = arith.constant 0 : i32
    return %c0_i32, %c0_i32_0 : i32, i32
  }
  func.func @transform_32(%arg0: i32) -> (i32, i32) {
    %c0_i32 = arith.constant 0 : i32
    %c0_i32_0 = arith.constant 0 : i32
    %c0_i32_1 = arith.constant 0 : i32
    return %c0_i32, %c0_i32_0 : i32, i32
  }
  func.func @transform_33(%arg0: i32) -> (i32, i32, i32) {
    %c0_i32 = arith.constant 0 : i32
    %c0_i32_0 = arith.constant 0 : i32
    %c0_i32_1 = arith.constant 0 : i32
    return %arg0, %c0_i32, %c0_i32_0 : i32, i32, i32
  }
}

module attributes {stable_mosaic.version = 11 : i64} {
  func.func @_decoder_block_kernel(%arg0: i32, %arg1: memref<1x8x32xbf16, #tpu.memory_space<vmem>>, %arg2: memref<1x8x32xf32, #tpu.memory_space<vmem>>, %arg3: memref<1x1x8x8xf32, #tpu.memory_space<vmem>>, %arg4: memref<1x1x1x8xf32, #tpu.memory_space<vmem>>, %arg5: memref<32x32xbf16, #tpu.memory_space<vmem>>, %arg6: memref<1x32xf32, #tpu.memory_space<vmem>>, %arg7: memref<32x32xbf16, #tpu.memory_space<vmem>>, %arg8: memref<1x32xf32, #tpu.memory_space<vmem>>, %arg9: memref<32x32xbf16, #tpu.memory_space<vmem>>, %arg10: memref<1x32xf32, #tpu.memory_space<vmem>>, %arg11: memref<32x32xbf16, #tpu.memory_space<vmem>>, %arg12: memref<1x32xf32, #tpu.memory_space<vmem>>, %arg13: memref<1x32xf32, #tpu.memory_space<vmem>>, %arg14: memref<1x32xf32, #tpu.memory_space<vmem>>, %arg15: memref<32x32xbf16, #tpu.memory_space<vmem>>, %arg16: memref<1x32xf32, #tpu.memory_space<vmem>>, %arg17: memref<32x32xbf16, #tpu.memory_space<vmem>>, %arg18: memref<1x32xf32, #tpu.memory_space<vmem>>, %arg19: memref<32x32xbf16, #tpu.memory_space<vmem>>, %arg20: memref<1x32xf32, #tpu.memory_space<vmem>>, %arg21: memref<32x32xbf16, #tpu.memory_space<vmem>>, %arg22: memref<1x32xf32, #tpu.memory_space<vmem>>, %arg23: memref<1x32xf32, #tpu.memory_space<vmem>>, %arg24: memref<1x32xf32, #tpu.memory_space<vmem>>, %arg25: memref<32x64xbf16, #tpu.memory_space<vmem>>, %arg26: memref<1x64xf32, #tpu.memory_space<vmem>>, %arg27: memref<64x32xbf16, #tpu.memory_space<vmem>>, %arg28: memref<1x32xf32, #tpu.memory_space<vmem>>, %arg29: memref<1x32xf32, #tpu.memory_space<vmem>>, %arg30: memref<1x32xf32, #tpu.memory_space<vmem>>, %arg31: memref<32x64xbf16, #tpu.memory_space<vmem>>, %arg32: memref<1x64xf32, #tpu.memory_space<vmem>>, %arg33: memref<1x8x64xf32, #tpu.memory_space<vmem>>) attributes {dimension_semantics = [#tpu.dimension_semantics<parallel>], iteration_bounds = array<i64: 2>, scalar_prefetch = 0 : i64, scratch_operands = 0 : i64, tpu.core_type = #tpu.core_type<tc>, window_params = [{transform_indices = @transform_0, window_bounds = array<i64: 1, 8, 32>}, {transform_indices = @transform_1, window_bounds = array<i64: 1, 8, 32>}, {transform_indices = @transform_2, window_bounds = array<i64: 1, 1, 8, 8>}, {transform_indices = @transform_3, window_bounds = array<i64: 1, 1, 1, 8>}, {pipeline_mode = #tpu.pipeline_mode<synchronous>, transform_indices = @transform_4, window_bounds = array<i64: 32, 32>}, {pipeline_mode = #tpu.pipeline_mode<synchronous>, transform_indices = @transform_5, window_bounds = array<i64: 1, 32>}, {pipeline_mode = #tpu.pipeline_mode<synchronous>, transform_indices = @transform_6, window_bounds = array<i64: 32, 32>}, {pipeline_mode = #tpu.pipeline_mode<synchronous>, transform_indices = @transform_7, window_bounds = array<i64: 1, 32>}, {pipeline_mode = #tpu.pipeline_mode<synchronous>, transform_indices = @transform_8, window_bounds = array<i64: 32, 32>}, {pipeline_mode = #tpu.pipeline_mode<synchronous>, transform_indices = @transform_9, window_bounds = array<i64: 1, 32>}, {pipeline_mode = #tpu.pipeline_mode<synchronous>, transform_indices = @transform_10, window_bounds = array<i64: 32, 32>}, {pipeline_mode = #tpu.pipeline_mode<synchronous>, transform_indices = @transform_11, window_bounds = array<i64: 1, 32>}, {pipeline_mode = #tpu.pipeline_mode<synchronous>, transform_indices = @transform_12, window_bounds = array<i64: 1, 32>}, {pipeline_mode = #tpu.pipeline_mode<synchronous>, transform_indices = @transform_13, window_bounds = array<i64: 1, 32>}, {pipeline_mode = #tpu.pipeline_mode<synchronous>, transform_indices = @transform_14, window_bounds = array<i64: 32, 32>}, {pipeline_mode = #tpu.pipeline_mode<synchronous>, transform_indices = @transform_15, window_bounds = array<i64: 1, 32>}, {pipeline_mode = #tpu.pipeline_mode<synchronous>, transform_indices = @transform_16, window_bounds = array<i64: 32, 32>}, {pipeline_mode = #tpu.pipeline_mode<synchronous>, transform_indices = @transform_17, window_bounds = array<i64: 1, 32>}, {pipeline_mode = #tpu.pipeline_mode<synchronous>, transform_indices = @transform_18, window_bounds = array<i64: 32, 32>}, {pipeline_mode = #tpu.pipeline_mode<synchronous>, transform_indices = @transform_19, window_bounds = array<i64: 1, 32>}, {pipeline_mode = #tpu.pipeline_mode<synchronous>, transform_indices = @transform_20, window_bounds = array<i64: 32, 32>}, {pipeline_mode = #tpu.pipeline_mode<synchronous>, transform_indices = @transform_21, window_bounds = array<i64: 1, 32>}, {pipeline_mode = #tpu.pipeline_mode<synchronous>, transform_indices = @transform_22, window_bounds = array<i64: 1, 32>}, {pipeline_mode = #tpu.pipeline_mode<synchronous>, transform_indices = @transform_23, window_bounds = array<i64: 1, 32>}, {pipeline_mode = #tpu.pipeline_mode<synchronous>, transform_indices = @transform_24, window_bounds = array<i64: 32, 64>}, {pipeline_mode = #tpu.pipeline_mode<synchronous>, transform_indices = @transform_25, window_bounds = array<i64: 1, 64>}, {pipeline_mode = #tpu.pipeline_mode<synchronous>, transform_indices = @transform_26, window_bounds = array<i64: 64, 32>}, {pipeline_mode = #tpu.pipeline_mode<synchronous>, transform_indices = @transform_27, window_bounds = array<i64: 1, 32>}, {pipeline_mode = #tpu.pipeline_mode<synchronous>, transform_indices = @transform_28, window_bounds = array<i64: 1, 32>}, {pipeline_mode = #tpu.pipeline_mode<synchronous>, transform_indices = @transform_29, window_bounds = array<i64: 1, 32>}, {pipeline_mode = #tpu.pipeline_mode<synchronous>, transform_indices = @transform_30, window_bounds = array<i64: 32, 64>}, {pipeline_mode = #tpu.pipeline_mode<synchronous>, transform_indices = @transform_31, window_bounds = array<i64: 1, 64>}, {transform_indices = @transform_32, window_bounds = array<i64: 1, 8, 64>}]} {
    %c0 = arith.constant 0 : index
    %c0_0 = arith.constant 0 : index
    %c0_1 = arith.constant 0 : index
    %0 = vector.load %arg1[%c0, %c0_0, %c0_1] : memref<1x8x32xbf16, #tpu.memory_space<vmem>>, vector<1x8x32xbf16>
    %1 = arith.extf %0 : vector<1x8x32xbf16> to vector<1x8x32xf32>
    %c0_2 = arith.constant 0 : index
    %c0_3 = arith.constant 0 : index
    %c0_4 = arith.constant 0 : index
    %2 = vector.load %arg2[%c0_2, %c0_3, %c0_4] : memref<1x8x32xf32, #tpu.memory_space<vmem>>, vector<1x8x32xf32>
    %3 = vector.shape_cast %1 : vector<1x8x32xf32> to vector<8x32xf32>
    %4 = arith.truncf %3 : vector<8x32xf32> to vector<8x32xbf16>
    %5 = vector.shape_cast %1 : vector<1x8x32xf32> to vector<8x32xf32>
    %6 = arith.truncf %5 : vector<8x32xf32> to vector<8x32xbf16>
    %c0_5 = arith.constant 0 : index
    %c0_6 = arith.constant 0 : index
    %7 = vector.load %arg5[%c0_5, %c0_6] : memref<32x32xbf16, #tpu.memory_space<vmem>>, vector<32x32xbf16>
    %cst = arith.constant dense<0.000000e+00> : vector<8x32xf32>
    %8 = tpu.matmul %4, %7, %cst {dimension_numbers = #tpu.dot_dimension_numbers<[1], [0], [0], [1], [0, 0, 1, 1], [], []>} : vector<8x32xbf16>, vector<32x32xbf16>, vector<8x32xf32> -> vector<8x32xf32>
    %c0_7 = arith.constant 0 : index
    %c0_8 = arith.constant 0 : index
    %9 = vector.load %arg6[%c0_7, %c0_8] : memref<1x32xf32, #tpu.memory_space<vmem>>, vector<1x32xf32>
    %10 = vector.broadcast %9 : vector<1x32xf32> to vector<8x32xf32>
    %11 = arith.addf %8, %10 : vector<8x32xf32>
    %12 = vector.shape_cast %11 : vector<8x32xf32> to vector<1x8x32xf32>
    %c0_9 = arith.constant 0 : index
    %c0_10 = arith.constant 0 : index
    %13 = vector.load %arg7[%c0_9, %c0_10] : memref<32x32xbf16, #tpu.memory_space<vmem>>, vector<32x32xbf16>
    %cst_11 = arith.constant dense<0.000000e+00> : vector<8x32xf32>
    %14 = tpu.matmul %6, %13, %cst_11 {dimension_numbers = #tpu.dot_dimension_numbers<[1], [0], [0], [1], [0, 0, 1, 1], [], []>} : vector<8x32xbf16>, vector<32x32xbf16>, vector<8x32xf32> -> vector<8x32xf32>
    %c0_12 = arith.constant 0 : index
    %c0_13 = arith.constant 0 : index
    %15 = vector.load %arg8[%c0_12, %c0_13] : memref<1x32xf32, #tpu.memory_space<vmem>>, vector<1x32xf32>
    %16 = vector.broadcast %15 : vector<1x32xf32> to vector<8x32xf32>
    %17 = arith.addf %14, %16 : vector<8x32xf32>
    %18 = vector.shape_cast %17 : vector<8x32xf32> to vector<1x8x32xf32>
    %c0_14 = arith.constant 0 : index
    %c0_15 = arith.constant 0 : index
    %19 = vector.load %arg9[%c0_14, %c0_15] : memref<32x32xbf16, #tpu.memory_space<vmem>>, vector<32x32xbf16>
    %cst_16 = arith.constant dense<0.000000e+00> : vector<8x32xf32>
    %20 = tpu.matmul %6, %19, %cst_16 {dimension_numbers = #tpu.dot_dimension_numbers<[1], [0], [0], [1], [0, 0, 1, 1], [], []>} : vector<8x32xbf16>, vector<32x32xbf16>, vector<8x32xf32> -> vector<8x32xf32>
    %c0_17 = arith.constant 0 : index
    %c0_18 = arith.constant 0 : index
    %21 = vector.load %arg10[%c0_17, %c0_18] : memref<1x32xf32, #tpu.memory_space<vmem>>, vector<1x32xf32>
    %22 = vector.broadcast %21 : vector<1x32xf32> to vector<8x32xf32>
    %23 = arith.addf %20, %22 : vector<8x32xf32>
    %24 = vector.shape_cast %23 : vector<8x32xf32> to vector<1x8x32xf32>
    %25 = vector.shape_cast %12 : vector<1x8x32xf32> to vector<8x32xf32>
    %26 = vector.extract_strided_slice %25 {offsets = [0, 0], sizes = [8, 8], strides = [1, 1]} : vector<8x32xf32> to vector<8x8xf32>
    %27 = vector.extract_strided_slice %25 {offsets = [0, 8], sizes = [8, 8], strides = [1, 1]} : vector<8x32xf32> to vector<8x8xf32>
    %28 = vector.extract_strided_slice %25 {offsets = [0, 16], sizes = [8, 8], strides = [1, 1]} : vector<8x32xf32> to vector<8x8xf32>
    %29 = vector.extract_strided_slice %25 {offsets = [0, 24], sizes = [8, 8], strides = [1, 1]} : vector<8x32xf32> to vector<8x8xf32>
    %30 = vector.shape_cast %26 : vector<8x8xf32> to vector<1x8x8xf32>
    %31 = vector.shape_cast %27 : vector<8x8xf32> to vector<1x8x8xf32>
    %32 = vector.shape_cast %28 : vector<8x8xf32> to vector<1x8x8xf32>
    %33 = vector.shape_cast %29 : vector<8x8xf32> to vector<1x8x8xf32>
    %34 = tpu.concatenate %30, %31, %32, %33 in 0 : vector<1x8x8xf32>, vector<1x8x8xf32>, vector<1x8x8xf32>, vector<1x8x8xf32> -> vector<4x8x8xf32>
    %35 = arith.truncf %34 : vector<4x8x8xf32> to vector<4x8x8xbf16>
    %36 = vector.shape_cast %18 : vector<1x8x32xf32> to vector<8x32xf32>
    %37 = vector.extract_strided_slice %36 {offsets = [0, 0], sizes = [8, 8], strides = [1, 1]} : vector<8x32xf32> to vector<8x8xf32>
    %38 = vector.extract_strided_slice %36 {offsets = [0, 8], sizes = [8, 8], strides = [1, 1]} : vector<8x32xf32> to vector<8x8xf32>
    %39 = vector.extract_strided_slice %36 {offsets = [0, 16], sizes = [8, 8], strides = [1, 1]} : vector<8x32xf32> to vector<8x8xf32>
    %40 = vector.extract_strided_slice %36 {offsets = [0, 24], sizes = [8, 8], strides = [1, 1]} : vector<8x32xf32> to vector<8x8xf32>
    %41 = vector.shape_cast %37 : vector<8x8xf32> to vector<1x8x8xf32>
    %42 = vector.shape_cast %38 : vector<8x8xf32> to vector<1x8x8xf32>
    %43 = vector.shape_cast %39 : vector<8x8xf32> to vector<1x8x8xf32>
    %44 = vector.shape_cast %40 : vector<8x8xf32> to vector<1x8x8xf32>
    %45 = tpu.concatenate %41, %42, %43, %44 in 0 : vector<1x8x8xf32>, vector<1x8x8xf32>, vector<1x8x8xf32>, vector<1x8x8xf32> -> vector<4x8x8xf32>
    %46 = arith.truncf %45 : vector<4x8x8xf32> to vector<4x8x8xbf16>
    %47 = vector.shape_cast %24 : vector<1x8x32xf32> to vector<8x32xf32>
    %48 = vector.extract_strided_slice %47 {offsets = [0, 0], sizes = [8, 8], strides = [1, 1]} : vector<8x32xf32> to vector<8x8xf32>
    %49 = vector.extract_strided_slice %47 {offsets = [0, 8], sizes = [8, 8], strides = [1, 1]} : vector<8x32xf32> to vector<8x8xf32>
    %50 = vector.extract_strided_slice %47 {offsets = [0, 16], sizes = [8, 8], strides = [1, 1]} : vector<8x32xf32> to vector<8x8xf32>
    %51 = vector.extract_strided_slice %47 {offsets = [0, 24], sizes = [8, 8], strides = [1, 1]} : vector<8x32xf32> to vector<8x8xf32>
    %52 = vector.shape_cast %48 : vector<8x8xf32> to vector<1x8x8xf32>
    %53 = vector.shape_cast %49 : vector<8x8xf32> to vector<1x8x8xf32>
    %54 = vector.shape_cast %50 : vector<8x8xf32> to vector<1x8x8xf32>
    %55 = vector.shape_cast %51 : vector<8x8xf32> to vector<1x8x8xf32>
    %56 = tpu.concatenate %52, %53, %54, %55 in 0 : vector<1x8x8xf32>, vector<1x8x8xf32>, vector<1x8x8xf32>, vector<1x8x8xf32> -> vector<4x8x8xf32>
    %57 = arith.truncf %56 : vector<4x8x8xf32> to vector<4x8x8xbf16>
    "tpu.trace_start"() <{level = 10 : i32, message = "hqd,hkd->hqk"}> : () -> ()
    %cst_19 = arith.constant dense<0.000000e+00> : vector<4x8x8xf32>
    %58 = tpu.matmul %35, %46, %cst_19 {dimension_numbers = #tpu.dot_dimension_numbers<[2], [2], [1], [1], [0, 0, 0, 1, 1, 1], [0], [0]>} : vector<4x8x8xbf16>, vector<4x8x8xbf16>, vector<4x8x8xf32> -> vector<4x8x8xf32>
    "tpu.trace_stop"() : () -> ()
    %cst_20 = arith.constant 0.353553385 : f32
    %59 = vector.broadcast %cst_20 : f32 to vector<4x8x8xf32>
    %60 = arith.mulf %58, %59 : vector<4x8x8xf32>
    %c0_21 = arith.constant 0 : index
    %c0_22 = arith.constant 0 : index
    %c0_23 = arith.constant 0 : index
    %c0_24 = arith.constant 0 : index
    %61 = vector.load %arg3[%c0_21, %c0_22, %c0_23, %c0_24] : memref<1x1x8x8xf32, #tpu.memory_space<vmem>>, vector<1x1x8x8xf32>
    %62 = vector.shape_cast %61 : vector<1x1x8x8xf32> to vector<8x8xf32>
    %63 = vector.shape_cast %62 : vector<8x8xf32> to vector<1x8x8xf32>
    %64 = vector.broadcast %63 : vector<1x8x8xf32> to vector<4x8x8xf32>
    %65 = arith.addf %60, %64 : vector<4x8x8xf32>
    %cst_25 = arith.constant dense<0xFF800000> : vector<4x8xf32>
    %66 = vector.multi_reduction <maximumf>, %65, %cst_25 [2] : vector<4x8x8xf32> to vector<4x8xf32>
    %67 = vector.shape_cast %66 : vector<4x8xf32> to vector<4x8x1xf32>
    %68 = vector.broadcast %67 : vector<4x8x1xf32> to vector<4x8x8xf32>
    %69 = arith.subf %65, %68 : vector<4x8x8xf32>
    %70 = math.exp %69 : vector<4x8x8xf32>
    %cst_26 = arith.constant dense<0.000000e+00> : vector<4x8xf32>
    %71 = vector.multi_reduction <add>, %70, %cst_26 [2] : vector<4x8x8xf32> to vector<4x8xf32>
    %72 = vector.shape_cast %71 : vector<4x8xf32> to vector<4x8x1xf32>
    %73 = tpu.reciprocal %72 {approx = true} : vector<4x8x1xf32> -> vector<4x8x1xf32>
    %74 = vector.broadcast %73 : vector<4x8x1xf32> to vector<4x8x8xf32>
    %75 = arith.mulf %70, %74 : vector<4x8x8xf32>
    %76 = arith.truncf %75 : vector<4x8x8xf32> to vector<4x8x8xbf16>
    "tpu.trace_start"() <{level = 10 : i32, message = "hqk,hkd->hqd"}> : () -> ()
    %cst_27 = arith.constant dense<0.000000e+00> : vector<4x8x8xf32>
    %77 = tpu.matmul %76, %57, %cst_27 {dimension_numbers = #tpu.dot_dimension_numbers<[2], [1], [1], [2], [0, 0, 0, 1, 1, 2], [0], [0]>} : vector<4x8x8xbf16>, vector<4x8x8xbf16>, vector<4x8x8xf32> -> vector<4x8x8xf32>
    "tpu.trace_stop"() : () -> ()
    %78 = vector.extract_strided_slice %77 {offsets = [0, 0, 0], sizes = [1, 8, 8], strides = [1, 1, 1]} : vector<4x8x8xf32> to vector<1x8x8xf32>
    %79 = vector.shape_cast %78 : vector<1x8x8xf32> to vector<8x8xf32>
    %80 = vector.extract_strided_slice %77 {offsets = [1, 0, 0], sizes = [1, 8, 8], strides = [1, 1, 1]} : vector<4x8x8xf32> to vector<1x8x8xf32>
    %81 = vector.shape_cast %80 : vector<1x8x8xf32> to vector<8x8xf32>
    %82 = vector.extract_strided_slice %77 {offsets = [2, 0, 0], sizes = [1, 8, 8], strides = [1, 1, 1]} : vector<4x8x8xf32> to vector<1x8x8xf32>
    %83 = vector.shape_cast %82 : vector<1x8x8xf32> to vector<8x8xf32>
    %84 = vector.extract_strided_slice %77 {offsets = [3, 0, 0], sizes = [1, 8, 8], strides = [1, 1, 1]} : vector<4x8x8xf32> to vector<1x8x8xf32>
    %85 = vector.shape_cast %84 : vector<1x8x8xf32> to vector<8x8xf32>
    %86 = tpu.concatenate %79, %81, %83, %85 in 1 : vector<8x8xf32>, vector<8x8xf32>, vector<8x8xf32>, vector<8x8xf32> -> vector<8x32xf32>
    %87 = arith.truncf %86 : vector<8x32xf32> to vector<8x32xbf16>
    %c0_28 = arith.constant 0 : index
    %c0_29 = arith.constant 0 : index
    %88 = vector.load %arg11[%c0_28, %c0_29] : memref<32x32xbf16, #tpu.memory_space<vmem>>, vector<32x32xbf16>
    %cst_30 = arith.constant dense<0.000000e+00> : vector<8x32xf32>
    %89 = tpu.matmul %87, %88, %cst_30 {dimension_numbers = #tpu.dot_dimension_numbers<[1], [0], [0], [1], [0, 0, 1, 1], [], []>} : vector<8x32xbf16>, vector<32x32xbf16>, vector<8x32xf32> -> vector<8x32xf32>
    %c0_31 = arith.constant 0 : index
    %c0_32 = arith.constant 0 : index
    %90 = vector.load %arg12[%c0_31, %c0_32] : memref<1x32xf32, #tpu.memory_space<vmem>>, vector<1x32xf32>
    %91 = vector.broadcast %90 : vector<1x32xf32> to vector<8x32xf32>
    %92 = arith.addf %89, %91 : vector<8x32xf32>
    %93 = vector.shape_cast %92 : vector<8x32xf32> to vector<1x8x32xf32>
    %94 = arith.addf %93, %1 : vector<1x8x32xf32>
    %c0_33 = arith.constant 0 : index
    %c0_34 = arith.constant 0 : index
    %95 = vector.load %arg13[%c0_33, %c0_34] : memref<1x32xf32, #tpu.memory_space<vmem>>, vector<1x32xf32>
    %c0_35 = arith.constant 0 : index
    %c0_36 = arith.constant 0 : index
    %96 = vector.load %arg14[%c0_35, %c0_36] : memref<1x32xf32, #tpu.memory_space<vmem>>, vector<1x32xf32>
    %cst_37 = arith.constant dense<0.000000e+00> : vector<1x8xf32>
    %97 = vector.multi_reduction <add>, %94, %cst_37 [2] : vector<1x8x32xf32> to vector<1x8xf32>
    %98 = vector.shape_cast %97 : vector<1x8xf32> to vector<1x8x1xf32>
    %cst_38 = arith.constant 3.200000e+01 : f32
    %99 = vector.broadcast %cst_38 : f32 to vector<1x8x1xf32>
    %100 = arith.divf %98, %99 : vector<1x8x1xf32>
    %101 = vector.broadcast %100 : vector<1x8x1xf32> to vector<1x8x32xf32>
    %102 = arith.subf %94, %101 : vector<1x8x32xf32>
    %103 = arith.mulf %102, %102 : vector<1x8x32xf32>
    %cst_39 = arith.constant dense<0.000000e+00> : vector<1x8xf32>
    %104 = vector.multi_reduction <add>, %103, %cst_39 [2] : vector<1x8x32xf32> to vector<1x8xf32>
    %105 = vector.shape_cast %104 : vector<1x8xf32> to vector<1x8x1xf32>
    %cst_40 = arith.constant 3.200000e+01 : f32
    %106 = vector.broadcast %cst_40 : f32 to vector<1x8x1xf32>
    %107 = arith.divf %105, %106 : vector<1x8x1xf32>
    %108 = vector.broadcast %100 : vector<1x8x1xf32> to vector<1x8x32xf32>
    %109 = arith.subf %94, %108 : vector<1x8x32xf32>
    %cst_41 = arith.constant 9.99999974E-6 : f32
    %110 = vector.broadcast %cst_41 : f32 to vector<1x8x1xf32>
    %111 = arith.addf %107, %110 : vector<1x8x1xf32>
    %112 = math.rsqrt %111 : vector<1x8x1xf32>
    %113 = vector.broadcast %112 : vector<1x8x1xf32> to vector<1x8x32xf32>
    %114 = arith.mulf %109, %113 : vector<1x8x32xf32>
    %115 = vector.shape_cast %95 : vector<1x32xf32> to vector<1x1x32xf32>
    %116 = vector.broadcast %115 : vector<1x1x32xf32> to vector<1x8x32xf32>
    %117 = arith.mulf %114, %116 : vector<1x8x32xf32>
    %118 = vector.shape_cast %96 : vector<1x32xf32> to vector<1x1x32xf32>
    %119 = vector.broadcast %118 : vector<1x1x32xf32> to vector<1x8x32xf32>
    %120 = arith.addf %117, %119 : vector<1x8x32xf32>
    %121 = vector.shape_cast %120 : vector<1x8x32xf32> to vector<8x32xf32>
    %122 = arith.truncf %121 : vector<8x32xf32> to vector<8x32xbf16>
    %123 = vector.shape_cast %2 : vector<1x8x32xf32> to vector<8x32xf32>
    %124 = arith.truncf %123 : vector<8x32xf32> to vector<8x32xbf16>
    %c0_42 = arith.constant 0 : index
    %c0_43 = arith.constant 0 : index
    %125 = vector.load %arg15[%c0_42, %c0_43] : memref<32x32xbf16, #tpu.memory_space<vmem>>, vector<32x32xbf16>
    %cst_44 = arith.constant dense<0.000000e+00> : vector<8x32xf32>
    %126 = tpu.matmul %122, %125, %cst_44 {dimension_numbers = #tpu.dot_dimension_numbers<[1], [0], [0], [1], [0, 0, 1, 1], [], []>} : vector<8x32xbf16>, vector<32x32xbf16>, vector<8x32xf32> -> vector<8x32xf32>
    %c0_45 = arith.constant 0 : index
    %c0_46 = arith.constant 0 : index
    %127 = vector.load %arg16[%c0_45, %c0_46] : memref<1x32xf32, #tpu.memory_space<vmem>>, vector<1x32xf32>
    %128 = vector.broadcast %127 : vector<1x32xf32> to vector<8x32xf32>
    %129 = arith.addf %126, %128 : vector<8x32xf32>
    %130 = vector.shape_cast %129 : vector<8x32xf32> to vector<1x8x32xf32>
    %c0_47 = arith.constant 0 : index
    %c0_48 = arith.constant 0 : index
    %131 = vector.load %arg17[%c0_47, %c0_48] : memref<32x32xbf16, #tpu.memory_space<vmem>>, vector<32x32xbf16>
    %cst_49 = arith.constant dense<0.000000e+00> : vector<8x32xf32>
    %132 = tpu.matmul %124, %131, %cst_49 {dimension_numbers = #tpu.dot_dimension_numbers<[1], [0], [0], [1], [0, 0, 1, 1], [], []>} : vector<8x32xbf16>, vector<32x32xbf16>, vector<8x32xf32> -> vector<8x32xf32>
    %c0_50 = arith.constant 0 : index
    %c0_51 = arith.constant 0 : index
    %133 = vector.load %arg18[%c0_50, %c0_51] : memref<1x32xf32, #tpu.memory_space<vmem>>, vector<1x32xf32>
    %134 = vector.broadcast %133 : vector<1x32xf32> to vector<8x32xf32>
    %135 = arith.addf %132, %134 : vector<8x32xf32>
    %136 = vector.shape_cast %135 : vector<8x32xf32> to vector<1x8x32xf32>
    %c0_52 = arith.constant 0 : index
    %c0_53 = arith.constant 0 : index
    %137 = vector.load %arg19[%c0_52, %c0_53] : memref<32x32xbf16, #tpu.memory_space<vmem>>, vector<32x32xbf16>
    %cst_54 = arith.constant dense<0.000000e+00> : vector<8x32xf32>
    %138 = tpu.matmul %124, %137, %cst_54 {dimension_numbers = #tpu.dot_dimension_numbers<[1], [0], [0], [1], [0, 0, 1, 1], [], []>} : vector<8x32xbf16>, vector<32x32xbf16>, vector<8x32xf32> -> vector<8x32xf32>
    %c0_55 = arith.constant 0 : index
    %c0_56 = arith.constant 0 : index
    %139 = vector.load %arg20[%c0_55, %c0_56] : memref<1x32xf32, #tpu.memory_space<vmem>>, vector<1x32xf32>
    %140 = vector.broadcast %139 : vector<1x32xf32> to vector<8x32xf32>
    %141 = arith.addf %138, %140 : vector<8x32xf32>
    %142 = vector.shape_cast %141 : vector<8x32xf32> to vector<1x8x32xf32>
    %143 = vector.shape_cast %130 : vector<1x8x32xf32> to vector<8x32xf32>
    %144 = vector.extract_strided_slice %143 {offsets = [0, 0], sizes = [8, 8], strides = [1, 1]} : vector<8x32xf32> to vector<8x8xf32>
    %145 = vector.extract_strided_slice %143 {offsets = [0, 8], sizes = [8, 8], strides = [1, 1]} : vector<8x32xf32> to vector<8x8xf32>
    %146 = vector.extract_strided_slice %143 {offsets = [0, 16], sizes = [8, 8], strides = [1, 1]} : vector<8x32xf32> to vector<8x8xf32>
    %147 = vector.extract_strided_slice %143 {offsets = [0, 24], sizes = [8, 8], strides = [1, 1]} : vector<8x32xf32> to vector<8x8xf32>
    %148 = vector.shape_cast %144 : vector<8x8xf32> to vector<1x8x8xf32>
    %149 = vector.shape_cast %145 : vector<8x8xf32> to vector<1x8x8xf32>
    %150 = vector.shape_cast %146 : vector<8x8xf32> to vector<1x8x8xf32>
    %151 = vector.shape_cast %147 : vector<8x8xf32> to vector<1x8x8xf32>
    %152 = tpu.concatenate %148, %149, %150, %151 in 0 : vector<1x8x8xf32>, vector<1x8x8xf32>, vector<1x8x8xf32>, vector<1x8x8xf32> -> vector<4x8x8xf32>
    %153 = arith.truncf %152 : vector<4x8x8xf32> to vector<4x8x8xbf16>
    %154 = vector.shape_cast %136 : vector<1x8x32xf32> to vector<8x32xf32>
    %155 = vector.extract_strided_slice %154 {offsets = [0, 0], sizes = [8, 8], strides = [1, 1]} : vector<8x32xf32> to vector<8x8xf32>
    %156 = vector.extract_strided_slice %154 {offsets = [0, 8], sizes = [8, 8], strides = [1, 1]} : vector<8x32xf32> to vector<8x8xf32>
    %157 = vector.extract_strided_slice %154 {offsets = [0, 16], sizes = [8, 8], strides = [1, 1]} : vector<8x32xf32> to vector<8x8xf32>
    %158 = vector.extract_strided_slice %154 {offsets = [0, 24], sizes = [8, 8], strides = [1, 1]} : vector<8x32xf32> to vector<8x8xf32>
    %159 = vector.shape_cast %155 : vector<8x8xf32> to vector<1x8x8xf32>
    %160 = vector.shape_cast %156 : vector<8x8xf32> to vector<1x8x8xf32>
    %161 = vector.shape_cast %157 : vector<8x8xf32> to vector<1x8x8xf32>
    %162 = vector.shape_cast %158 : vector<8x8xf32> to vector<1x8x8xf32>
    %163 = tpu.concatenate %159, %160, %161, %162 in 0 : vector<1x8x8xf32>, vector<1x8x8xf32>, vector<1x8x8xf32>, vector<1x8x8xf32> -> vector<4x8x8xf32>
    %164 = arith.truncf %163 : vector<4x8x8xf32> to vector<4x8x8xbf16>
    %165 = vector.shape_cast %142 : vector<1x8x32xf32> to vector<8x32xf32>
    %166 = vector.extract_strided_slice %165 {offsets = [0, 0], sizes = [8, 8], strides = [1, 1]} : vector<8x32xf32> to vector<8x8xf32>
    %167 = vector.extract_strided_slice %165 {offsets = [0, 8], sizes = [8, 8], strides = [1, 1]} : vector<8x32xf32> to vector<8x8xf32>
    %168 = vector.extract_strided_slice %165 {offsets = [0, 16], sizes = [8, 8], strides = [1, 1]} : vector<8x32xf32> to vector<8x8xf32>
    %169 = vector.extract_strided_slice %165 {offsets = [0, 24], sizes = [8, 8], strides = [1, 1]} : vector<8x32xf32> to vector<8x8xf32>
    %170 = vector.shape_cast %166 : vector<8x8xf32> to vector<1x8x8xf32>
    %171 = vector.shape_cast %167 : vector<8x8xf32> to vector<1x8x8xf32>
    %172 = vector.shape_cast %168 : vector<8x8xf32> to vector<1x8x8xf32>
    %173 = vector.shape_cast %169 : vector<8x8xf32> to vector<1x8x8xf32>
    %174 = tpu.concatenate %170, %171, %172, %173 in 0 : vector<1x8x8xf32>, vector<1x8x8xf32>, vector<1x8x8xf32>, vector<1x8x8xf32> -> vector<4x8x8xf32>
    %175 = arith.truncf %174 : vector<4x8x8xf32> to vector<4x8x8xbf16>
    "tpu.trace_start"() <{level = 10 : i32, message = "hqd,hkd->hqk"}> : () -> ()
    %cst_57 = arith.constant dense<0.000000e+00> : vector<4x8x8xf32>
    %176 = tpu.matmul %153, %164, %cst_57 {dimension_numbers = #tpu.dot_dimension_numbers<[2], [2], [1], [1], [0, 0, 0, 1, 1, 1], [0], [0]>} : vector<4x8x8xbf16>, vector<4x8x8xbf16>, vector<4x8x8xf32> -> vector<4x8x8xf32>
    "tpu.trace_stop"() : () -> ()
    %cst_58 = arith.constant 0.353553385 : f32
    %177 = vector.broadcast %cst_58 : f32 to vector<4x8x8xf32>
    %178 = arith.mulf %176, %177 : vector<4x8x8xf32>
    %c0_59 = arith.constant 0 : index
    %c0_60 = arith.constant 0 : index
    %c0_61 = arith.constant 0 : index
    %c0_62 = arith.constant 0 : index
    %179 = vector.load %arg4[%c0_59, %c0_60, %c0_61, %c0_62] : memref<1x1x1x8xf32, #tpu.memory_space<vmem>>, vector<1x1x1x8xf32>
    %180 = vector.shape_cast %179 : vector<1x1x1x8xf32> to vector<1x8xf32>
    %181 = vector.shape_cast %180 : vector<1x8xf32> to vector<1x1x8xf32>
    %182 = vector.broadcast %181 : vector<1x1x8xf32> to vector<4x8x8xf32>
    %183 = arith.addf %178, %182 : vector<4x8x8xf32>
    %cst_63 = arith.constant dense<0xFF800000> : vector<4x8xf32>
    %184 = vector.multi_reduction <maximumf>, %183, %cst_63 [2] : vector<4x8x8xf32> to vector<4x8xf32>
    %185 = vector.shape_cast %184 : vector<4x8xf32> to vector<4x8x1xf32>
    %186 = vector.broadcast %185 : vector<4x8x1xf32> to vector<4x8x8xf32>
    %187 = arith.subf %183, %186 : vector<4x8x8xf32>
    %188 = math.exp %187 : vector<4x8x8xf32>
    %cst_64 = arith.constant dense<0.000000e+00> : vector<4x8xf32>
    %189 = vector.multi_reduction <add>, %188, %cst_64 [2] : vector<4x8x8xf32> to vector<4x8xf32>
    %190 = vector.shape_cast %189 : vector<4x8xf32> to vector<4x8x1xf32>
    %191 = tpu.reciprocal %190 {approx = true} : vector<4x8x1xf32> -> vector<4x8x1xf32>
    %192 = vector.broadcast %191 : vector<4x8x1xf32> to vector<4x8x8xf32>
    %193 = arith.mulf %188, %192 : vector<4x8x8xf32>
    %194 = arith.truncf %193 : vector<4x8x8xf32> to vector<4x8x8xbf16>
    "tpu.trace_start"() <{level = 10 : i32, message = "hqk,hkd->hqd"}> : () -> ()
    %cst_65 = arith.constant dense<0.000000e+00> : vector<4x8x8xf32>
    %195 = tpu.matmul %194, %175, %cst_65 {dimension_numbers = #tpu.dot_dimension_numbers<[2], [1], [1], [2], [0, 0, 0, 1, 1, 2], [0], [0]>} : vector<4x8x8xbf16>, vector<4x8x8xbf16>, vector<4x8x8xf32> -> vector<4x8x8xf32>
    "tpu.trace_stop"() : () -> ()
    %196 = vector.extract_strided_slice %195 {offsets = [0, 0, 0], sizes = [1, 8, 8], strides = [1, 1, 1]} : vector<4x8x8xf32> to vector<1x8x8xf32>
    %197 = vector.shape_cast %196 : vector<1x8x8xf32> to vector<8x8xf32>
    %198 = vector.extract_strided_slice %195 {offsets = [1, 0, 0], sizes = [1, 8, 8], strides = [1, 1, 1]} : vector<4x8x8xf32> to vector<1x8x8xf32>
    %199 = vector.shape_cast %198 : vector<1x8x8xf32> to vector<8x8xf32>
    %200 = vector.extract_strided_slice %195 {offsets = [2, 0, 0], sizes = [1, 8, 8], strides = [1, 1, 1]} : vector<4x8x8xf32> to vector<1x8x8xf32>
    %201 = vector.shape_cast %200 : vector<1x8x8xf32> to vector<8x8xf32>
    %202 = vector.extract_strided_slice %195 {offsets = [3, 0, 0], sizes = [1, 8, 8], strides = [1, 1, 1]} : vector<4x8x8xf32> to vector<1x8x8xf32>
    %203 = vector.shape_cast %202 : vector<1x8x8xf32> to vector<8x8xf32>
    %204 = tpu.concatenate %197, %199, %201, %203 in 1 : vector<8x8xf32>, vector<8x8xf32>, vector<8x8xf32>, vector<8x8xf32> -> vector<8x32xf32>
    %205 = arith.truncf %204 : vector<8x32xf32> to vector<8x32xbf16>
    %c0_66 = arith.constant 0 : index
    %c0_67 = arith.constant 0 : index
    %206 = vector.load %arg21[%c0_66, %c0_67] : memref<32x32xbf16, #tpu.memory_space<vmem>>, vector<32x32xbf16>
    %cst_68 = arith.constant dense<0.000000e+00> : vector<8x32xf32>
    %207 = tpu.matmul %205, %206, %cst_68 {dimension_numbers = #tpu.dot_dimension_numbers<[1], [0], [0], [1], [0, 0, 1, 1], [], []>} : vector<8x32xbf16>, vector<32x32xbf16>, vector<8x32xf32> -> vector<8x32xf32>
    %c0_69 = arith.constant 0 : index
    %c0_70 = arith.constant 0 : index
    %208 = vector.load %arg22[%c0_69, %c0_70] : memref<1x32xf32, #tpu.memory_space<vmem>>, vector<1x32xf32>
    %209 = vector.broadcast %208 : vector<1x32xf32> to vector<8x32xf32>
    %210 = arith.addf %207, %209 : vector<8x32xf32>
    %211 = vector.shape_cast %210 : vector<8x32xf32> to vector<1x8x32xf32>
    %212 = arith.addf %211, %120 : vector<1x8x32xf32>
    %c0_71 = arith.constant 0 : index
    %c0_72 = arith.constant 0 : index
    %213 = vector.load %arg23[%c0_71, %c0_72] : memref<1x32xf32, #tpu.memory_space<vmem>>, vector<1x32xf32>
    %c0_73 = arith.constant 0 : index
    %c0_74 = arith.constant 0 : index
    %214 = vector.load %arg24[%c0_73, %c0_74] : memref<1x32xf32, #tpu.memory_space<vmem>>, vector<1x32xf32>
    %cst_75 = arith.constant dense<0.000000e+00> : vector<1x8xf32>
    %215 = vector.multi_reduction <add>, %212, %cst_75 [2] : vector<1x8x32xf32> to vector<1x8xf32>
    %216 = vector.shape_cast %215 : vector<1x8xf32> to vector<1x8x1xf32>
    %cst_76 = arith.constant 3.200000e+01 : f32
    %217 = vector.broadcast %cst_76 : f32 to vector<1x8x1xf32>
    %218 = arith.divf %216, %217 : vector<1x8x1xf32>
    %219 = vector.broadcast %218 : vector<1x8x1xf32> to vector<1x8x32xf32>
    %220 = arith.subf %212, %219 : vector<1x8x32xf32>
    %221 = arith.mulf %220, %220 : vector<1x8x32xf32>
    %cst_77 = arith.constant dense<0.000000e+00> : vector<1x8xf32>
    %222 = vector.multi_reduction <add>, %221, %cst_77 [2] : vector<1x8x32xf32> to vector<1x8xf32>
    %223 = vector.shape_cast %222 : vector<1x8xf32> to vector<1x8x1xf32>
    %cst_78 = arith.constant 3.200000e+01 : f32
    %224 = vector.broadcast %cst_78 : f32 to vector<1x8x1xf32>
    %225 = arith.divf %223, %224 : vector<1x8x1xf32>
    %226 = vector.broadcast %218 : vector<1x8x1xf32> to vector<1x8x32xf32>
    %227 = arith.subf %212, %226 : vector<1x8x32xf32>
    %cst_79 = arith.constant 9.99999974E-6 : f32
    %228 = vector.broadcast %cst_79 : f32 to vector<1x8x1xf32>
    %229 = arith.addf %225, %228 : vector<1x8x1xf32>
    %230 = math.rsqrt %229 : vector<1x8x1xf32>
    %231 = vector.broadcast %230 : vector<1x8x1xf32> to vector<1x8x32xf32>
    %232 = arith.mulf %227, %231 : vector<1x8x32xf32>
    %233 = vector.shape_cast %213 : vector<1x32xf32> to vector<1x1x32xf32>
    %234 = vector.broadcast %233 : vector<1x1x32xf32> to vector<1x8x32xf32>
    %235 = arith.mulf %232, %234 : vector<1x8x32xf32>
    %236 = vector.shape_cast %214 : vector<1x32xf32> to vector<1x1x32xf32>
    %237 = vector.broadcast %236 : vector<1x1x32xf32> to vector<1x8x32xf32>
    %238 = arith.addf %235, %237 : vector<1x8x32xf32>
    %239 = vector.shape_cast %238 : vector<1x8x32xf32> to vector<8x32xf32>
    %240 = arith.truncf %239 : vector<8x32xf32> to vector<8x32xbf16>
    %c0_80 = arith.constant 0 : index
    %c0_81 = arith.constant 0 : index
    %241 = vector.load %arg25[%c0_80, %c0_81] : memref<32x64xbf16, #tpu.memory_space<vmem>>, vector<32x64xbf16>
    %cst_82 = arith.constant dense<0.000000e+00> : vector<8x64xf32>
    %242 = tpu.matmul %240, %241, %cst_82 {dimension_numbers = #tpu.dot_dimension_numbers<[1], [0], [0], [1], [0, 0, 1, 1], [], []>} : vector<8x32xbf16>, vector<32x64xbf16>, vector<8x64xf32> -> vector<8x64xf32>
    %c0_83 = arith.constant 0 : index
    %c0_84 = arith.constant 0 : index
    %243 = vector.load %arg26[%c0_83, %c0_84] : memref<1x64xf32, #tpu.memory_space<vmem>>, vector<1x64xf32>
    %244 = vector.broadcast %243 : vector<1x64xf32> to vector<8x64xf32>
    %245 = arith.addf %242, %244 : vector<8x64xf32>
    %cst_85 = arith.constant 0.000000e+00 : f32
    %246 = vector.broadcast %cst_85 : f32 to vector<8x64xf32>
    %247 = arith.maximumf %245, %246 : vector<8x64xf32>
    %248 = arith.truncf %247 : vector<8x64xf32> to vector<8x64xbf16>
    %c0_86 = arith.constant 0 : index
    %c0_87 = arith.constant 0 : index
    %249 = vector.load %arg27[%c0_86, %c0_87] : memref<64x32xbf16, #tpu.memory_space<vmem>>, vector<64x32xbf16>
    %cst_88 = arith.constant dense<0.000000e+00> : vector<8x32xf32>
    %250 = tpu.matmul %248, %249, %cst_88 {dimension_numbers = #tpu.dot_dimension_numbers<[1], [0], [0], [1], [0, 0, 1, 1], [], []>} : vector<8x64xbf16>, vector<64x32xbf16>, vector<8x32xf32> -> vector<8x32xf32>
    %c0_89 = arith.constant 0 : index
    %c0_90 = arith.constant 0 : index
    %251 = vector.load %arg28[%c0_89, %c0_90] : memref<1x32xf32, #tpu.memory_space<vmem>>, vector<1x32xf32>
    %252 = vector.broadcast %251 : vector<1x32xf32> to vector<8x32xf32>
    %253 = arith.addf %250, %252 : vector<8x32xf32>
    %254 = vector.shape_cast %253 : vector<8x32xf32> to vector<1x8x32xf32>
    %255 = arith.addf %254, %238 : vector<1x8x32xf32>
    %c0_91 = arith.constant 0 : index
    %c0_92 = arith.constant 0 : index
    %256 = vector.load %arg29[%c0_91, %c0_92] : memref<1x32xf32, #tpu.memory_space<vmem>>, vector<1x32xf32>
    %c0_93 = arith.constant 0 : index
    %c0_94 = arith.constant 0 : index
    %257 = vector.load %arg30[%c0_93, %c0_94] : memref<1x32xf32, #tpu.memory_space<vmem>>, vector<1x32xf32>
    %cst_95 = arith.constant dense<0.000000e+00> : vector<1x8xf32>
    %258 = vector.multi_reduction <add>, %255, %cst_95 [2] : vector<1x8x32xf32> to vector<1x8xf32>
    %259 = vector.shape_cast %258 : vector<1x8xf32> to vector<1x8x1xf32>
    %cst_96 = arith.constant 3.200000e+01 : f32
    %260 = vector.broadcast %cst_96 : f32 to vector<1x8x1xf32>
    %261 = arith.divf %259, %260 : vector<1x8x1xf32>
    %262 = vector.broadcast %261 : vector<1x8x1xf32> to vector<1x8x32xf32>
    %263 = arith.subf %255, %262 : vector<1x8x32xf32>
    %264 = arith.mulf %263, %263 : vector<1x8x32xf32>
    %cst_97 = arith.constant dense<0.000000e+00> : vector<1x8xf32>
    %265 = vector.multi_reduction <add>, %264, %cst_97 [2] : vector<1x8x32xf32> to vector<1x8xf32>
    %266 = vector.shape_cast %265 : vector<1x8xf32> to vector<1x8x1xf32>
    %cst_98 = arith.constant 3.200000e+01 : f32
    %267 = vector.broadcast %cst_98 : f32 to vector<1x8x1xf32>
    %268 = arith.divf %266, %267 : vector<1x8x1xf32>
    %269 = vector.broadcast %261 : vector<1x8x1xf32> to vector<1x8x32xf32>
    %270 = arith.subf %255, %269 : vector<1x8x32xf32>
    %cst_99 = arith.constant 9.99999974E-6 : f32
    %271 = vector.broadcast %cst_99 : f32 to vector<1x8x1xf32>
    %272 = arith.addf %268, %271 : vector<1x8x1xf32>
    %273 = math.rsqrt %272 : vector<1x8x1xf32>
    %274 = vector.broadcast %273 : vector<1x8x1xf32> to vector<1x8x32xf32>
    %275 = arith.mulf %270, %274 : vector<1x8x32xf32>
    %276 = vector.shape_cast %256 : vector<1x32xf32> to vector<1x1x32xf32>
    %277 = vector.broadcast %276 : vector<1x1x32xf32> to vector<1x8x32xf32>
    %278 = arith.mulf %275, %277 : vector<1x8x32xf32>
    %279 = vector.shape_cast %257 : vector<1x32xf32> to vector<1x1x32xf32>
    %280 = vector.broadcast %279 : vector<1x1x32xf32> to vector<1x8x32xf32>
    %281 = arith.addf %278, %280 : vector<1x8x32xf32>
    %282 = vector.shape_cast %281 : vector<1x8x32xf32> to vector<8x32xf32>
    %283 = arith.truncf %282 : vector<8x32xf32> to vector<8x32xbf16>
    %c0_100 = arith.constant 0 : index
    %c0_101 = arith.constant 0 : index
    %284 = vector.load %arg31[%c0_100, %c0_101] : memref<32x64xbf16, #tpu.memory_space<vmem>>, vector<32x64xbf16>
    %cst_102 = arith.constant dense<0.000000e+00> : vector<8x64xf32>
    %285 = tpu.matmul %283, %284, %cst_102 {dimension_numbers = #tpu.dot_dimension_numbers<[1], [0], [0], [1], [0, 0, 1, 1], [], []>} : vector<8x32xbf16>, vector<32x64xbf16>, vector<8x64xf32> -> vector<8x64xf32>
    %c0_103 = arith.constant 0 : index
    %c0_104 = arith.constant 0 : index
    %286 = vector.load %arg32[%c0_103, %c0_104] : memref<1x64xf32, #tpu.memory_space<vmem>>, vector<1x64xf32>
    %287 = vector.broadcast %286 : vector<1x64xf32> to vector<8x64xf32>
    %288 = arith.addf %285, %287 : vector<8x64xf32>
    %289 = vector.shape_cast %288 : vector<8x64xf32> to vector<1x8x64xf32>
    %c0_105 = arith.constant 0 : index
    %c0_106 = arith.constant 0 : index
    %c0_107 = arith.constant 0 : index
    %290 = vector.load %arg33[%c0_105, %c0_106, %c0_107] : memref<1x8x64xf32, #tpu.memory_space<vmem>>, vector<1x8x64xf32>
    tpu.vector_store %arg33[%c0_105, %c0_106, %c0_107], %289 {strides = array<i32>} : memref<1x8x64xf32, #tpu.memory_space<vmem>>, vector<1x8x64xf32>,
    return
  }
  func.func @transform_0(%arg0: i32) -> (i32, i32, i32) {
    %c0_i32 = arith.constant 0 : i32
    %c0_i32_0 = arith.constant 0 : i32
    %c0_i32_1 = arith.constant 0 : i32
    return %arg0, %c0_i32, %c0_i32_0 : i32, i32, i32
  }
  func.func @transform_1(%arg0: i32) -> (i32, i32, i32) {
    %c0_i32 = arith.constant 0 : i32
    %c0_i32_0 = arith.constant 0 : i32
    %c0_i32_1 = arith.constant 0 : i32
    return %arg0, %c0_i32, %c0_i32_0 : i32, i32, i32
  }
  func.func @transform_2(%arg0: i32) -> (i32, i32, i32, i32) {
    %c0_i32 = arith.constant 0 : i32
    %c0_i32_0 = arith.constant 0 : i32
    %c0_i32_1 = arith.constant 0 : i32
    %c0_i32_2 = arith.constant 0 : i32
    return %arg0, %c0_i32, %c0_i32_0, %c0_i32_1 : i32, i32, i32, i32
  }
  func.func @transform_3(%arg0: i32) -> (i32, i32, i32, i32) {
    %c0_i32 = arith.constant 0 : i32
    %c0_i32_0 = arith.constant 0 : i32
    %c0_i32_1 = arith.constant 0 : i32
    %c0_i32_2 = arith.constant 0 : i32
    return %arg0, %c0_i32, %c0_i32_0, %c0_i32_1 : i32, i32, i32, i32
  }
  func.func @transform_4(%arg0: i32) -> (i32, i32) {
    %c0_i32 = arith.constant 0 : i32
    %c0_i32_0 = arith.constant 0 : i32
    %c0_i32_1 = arith.constant 0 : i32
    return %c0_i32, %c0_i32_0 : i32, i32
  }
  func.func @transform_5(%arg0: i32) -> (i32, i32) {
    %c0_i32 = arith.constant 0 : i32
    %c0_i32_0 = arith.constant 0 : i32
    %c0_i32_1 = arith.constant 0 : i32
    return %c0_i32, %c0_i32_0 : i32, i32
  }
  func.func @transform_6(%arg0: i32) -> (i32, i32) {
    %c0_i32 = arith.constant 0 : i32
    %c0_i32_0 = arith.constant 0 : i32
    %c0_i32_1 = arith.constant 0 : i32
    return %c0_i32, %c0_i32_0 : i32, i32
  }
  func.func @transform_7(%arg0: i32) -> (i32, i32) {
    %c0_i32 = arith.constant 0 : i32
    %c0_i32_0 = arith.constant 0 : i32
    %c0_i32_1 = arith.constant 0 : i32
    return %c0_i32, %c0_i32_0 : i32, i32
  }
  func.func @transform_8(%arg0: i32) -> (i32, i32) {
    %c0_i32 = arith.constant 0 : i32
    %c0_i32_0 = arith.constant 0 : i32
    %c0_i32_1 = arith.constant 0 : i32
    return %c0_i32, %c0_i32_0 : i32, i32
  }
  func.func @transform_9(%arg0: i32) -> (i32, i32) {
    %c0_i32 = arith.constant 0 : i32
    %c0_i32_0 = arith.constant 0 : i32
    %c0_i32_1 = arith.constant 0 : i32
    return %c0_i32, %c0_i32_0 : i32, i32
  }
  func.func @transform_10(%arg0: i32) -> (i32, i32) {
    %c0_i32 = arith.constant 0 : i32
    %c0_i32_0 = arith.constant 0 : i32
    %c0_i32_1 = arith.constant 0 : i32
    return %c0_i32, %c0_i32_0 : i32, i32
  }
  func.func @transform_11(%arg0: i32) -> (i32, i32) {
    %c0_i32 = arith.constant 0 : i32
    %c0_i32_0 = arith.constant 0 : i32
    %c0_i32_1 = arith.constant 0 : i32
    return %c0_i32, %c0_i32_0 : i32, i32
  }
  func.func @transform_12(%arg0: i32) -> (i32, i32) {
    %c0_i32 = arith.constant 0 : i32
    %c0_i32_0 = arith.constant 0 : i32
    %c0_i32_1 = arith.constant 0 : i32
    return %c0_i32, %c0_i32_0 : i32, i32
  }
  func.func @transform_13(%arg0: i32) -> (i32, i32) {
    %c0_i32 = arith.constant 0 : i32
    %c0_i32_0 = arith.constant 0 : i32
    %c0_i32_1 = arith.constant 0 : i32
    return %c0_i32, %c0_i32_0 : i32, i32
  }
  func.func @transform_14(%arg0: i32) -> (i32, i32) {
    %c0_i32 = arith.constant 0 : i32
    %c0_i32_0 = arith.constant 0 : i32
    %c0_i32_1 = arith.constant 0 : i32
    return %c0_i32, %c0_i32_0 : i32, i32
  }
  func.func @transform_15(%arg0: i32) -> (i32, i32) {
    %c0_i32 = arith.constant 0 : i32
    %c0_i32_0 = arith.constant 0 : i32
    %c0_i32_1 = arith.constant 0 : i32
    return %c0_i32, %c0_i32_0 : i32, i32
  }
  func.func @transform_16(%arg0: i32) -> (i32, i32) {
    %c0_i32 = arith.constant 0 : i32
    %c0_i32_0 = arith.constant 0 : i32
    %c0_i32_1 = arith.constant 0 : i32
    return %c0_i32, %c0_i32_0 : i32, i32
  }
  func.func @transform_17(%arg0: i32) -> (i32, i32) {
    %c0_i32 = arith.constant 0 : i32
    %c0_i32_0 = arith.constant 0 : i32
    %c0_i32_1 = arith.constant 0 : i32
    return %c0_i32, %c0_i32_0 : i32, i32
  }
  func.func @transform_18(%arg0: i32) -> (i32, i32) {
    %c0_i32 = arith.constant 0 : i32
    %c0_i32_0 = arith.constant 0 : i32
    %c0_i32_1 = arith.constant 0 : i32
    return %c0_i32, %c0_i32_0 : i32, i32
  }
  func.func @transform_19(%arg0: i32) -> (i32, i32) {
    %c0_i32 = arith.constant 0 : i32
    %c0_i32_0 = arith.constant 0 : i32
    %c0_i32_1 = arith.constant 0 : i32
    return %c0_i32, %c0_i32_0 : i32, i32
  }
  func.func @transform_20(%arg0: i32) -> (i32, i32) {
    %c0_i32 = arith.constant 0 : i32
    %c0_i32_0 = arith.constant 0 : i32
    %c0_i32_1 = arith.constant 0 : i32
    return %c0_i32, %c0_i32_0 : i32, i32
  }
  func.func @transform_21(%arg0: i32) -> (i32, i32) {
    %c0_i32 = arith.constant 0 : i32
    %c0_i32_0 = arith.constant 0 : i32
    %c0_i32_1 = arith.constant 0 : i32
    return %c0_i32, %c0_i32_0 : i32, i32
  }
  func.func @transform_22(%arg0: i32) -> (i32, i32) {
    %c0_i32 = arith.constant 0 : i32
    %c0_i32_0 = arith.constant 0 : i32
    %c0_i32_1 = arith.constant 0 : i32
    return %c0_i32, %c0_i32_0 : i32, i32
  }
  func.func @transform_23(%arg0: i32) -> (i32, i32) {
    %c0_i32 = arith.constant 0 : i32
    %c0_i32_0 = arith.constant 0 : i32
    %c0_i32_1 = arith.constant 0 : i32
    return %c0_i32, %c0_i32_0 : i32, i32
  }
  func.func @transform_24(%arg0: i32) -> (i32, i32) {
    %c0_i32 = arith.constant 0 : i32
    %c0_i32_0 = arith.constant 0 : i32
    %c0_i32_1 = arith.constant 0 : i32
    return %c0_i32, %c0_i32_0 : i32, i32
  }
  func.func @transform_25(%arg0: i32) -> (i32, i32) {
    %c0_i32 = arith.constant 0 : i32
    %c0_i32_0 = arith.constant 0 : i32
    %c0_i32_1 = arith.constant 0 : i32
    return %c0_i32, %c0_i32_0 : i32, i32
  }
  func.func @transform_26(%arg0: i32) -> (i32, i32) {
    %c0_i32 = arith.constant 0 : i32
    %c0_i32_0 = arith.constant 0 : i32
    %c0_i32_1 = arith.constant 0 : i32
    return %c0_i32, %c0_i32_0 : i32, i32
  }
  func.func @transform_27(%arg0: i32) -> (i32, i32) {
    %c0_i32 = arith.constant 0 : i32
    %c0_i32_0 = arith.constant 0 : i32
    %c0_i32_1 = arith.constant 0 : i32
    return %c0_i32, %c0_i32_0 : i32, i32
  }
  func.func @transform_28(%arg0: i32) -> (i32, i32) {
    %c0_i32 = arith.constant 0 : i32
    %c0_i32_0 = arith.constant 0 : i32
    %c0_i32_1 = arith.constant 0 : i32
    return %c0_i32, %c0_i32_0 : i32, i32
  }
  func.func @transform_29(%arg0: i32) -> (i32, i32) {
    %c0_i32 = arith.constant 0 : i32
    %c0_i32_0 = arith.constant 0 : i32
    %c0_i32_1 = arith.constant 0 : i32
    return %c0_i32, %c0_i32_0 : i32, i32
  }
  func.func @transform_30(%arg0: i32) -> (i32, i32) {
    %c0_i32 = arith.constant 0 : i32
    %c0_i32_0 = arith.constant 0 : i32
    %c0_i32_1 = arith.constant 0 : i32
    return %c0_i32, %c0_i32_0 : i32, i32
  }
  func.func @transform_31(%arg0: i32) -> (i32, i32) {
    %c0_i32 = arith.constant 0 : i32
    %c0_i32_0 = arith.constant 0 : i32
    %c0_i32_1 = arith.constant 0 : i32
    return %c0_i32, %c0_i32_0 : i32, i32
  }
  func.func @transform_32(%arg0: i32) -> (i32, i32, i32) {
    %c0_i32 = arith.constant 0 : i32
    %c0_i32_0 = arith.constant 0 : i32
    %c0_i32_1 = arith.constant 0 : i32
    return %arg0, %c0_i32, %c0_i32_0 : i32, i32, i32
  }
}

</mosaic_0001>

<bundles_post_ra>
// kernel: decoder_forward.3
= control target key start
LH: loop header
LB: loop body
LE: loop exit
PB: predicated region body
PF: predicated region fallthrough
CT: control target
= control target key end

     0   :  { %s5625_s6 = smov 1   ;;  %s5626_s10 = smov 2   ;;  %s6753_s0 = inlined_call_operand.smem [shape: u32[33], index: -1, kind: input, shape index: {}] }
   0x1   :  { %s5708_s5 = sld [smem:[%s6753_s0]]   ;;  %s5627_s14 = smov 3  }
   0x2   :  { %s5713_s9 = sld [smem:[%s6753_s0 + %s5625_s6]]   ;;  %s5628_s18 = smov 4  }
   0x3   :  { %s5718_s13 = sld [smem:[%s6753_s0 + %s5626_s10]]   ;;  %s5629_s22 = smov 5  }
   0x4   :  { %s5723_s17 = sld [smem:[%s6753_s0 + %s5627_s14]]   ;;  %s5630_s26 = smov 6  }
   0x5   :  { %s5728_s21 = sld [smem:[%s6753_s0 + %s5628_s18]]   ;;  %s5631_s30 = smov 7  }
   0x6   :  { %s5733_s25 = sld [smem:[%s6753_s0 + %s5629_s22]]   ;;  %s5632_s4 = smov 8  }
   0x7   :  { %6817 = sst [smem:[#allocation72_spill]] %s5708_s5  ;;  %s5633_s10 = smov 9  }
   0x8   :  { %6818 = sst [smem:[#allocation73_spill]] %s5713_s9  ;;  %s5634_s15 = smov 10  }
   0x9   :  { %6819 = sst [smem:[#allocation74_spill]] %s5718_s13  ;;  %s5635_s20 = smov 11  }
   0xa   :  { %6820 = sst [smem:[#allocation75_spill]] %s5723_s17  ;;  %s5637_s1 = smov 13  }
   0xb   :  { %6821 = sst [smem:[#allocation76_spill]] %s5728_s21  ;;  %s5638_s7 = smov 14  }
   0xc   :  { %6822 = sst [smem:[#allocation77_spill]] %s5733_s25  ;;  %s5640_s22 = smov 16  }
   0xd   :  { %s5738_s29 = sld [smem:[%s6753_s0 + %s5630_s26]]   ;;  %s5636_s26 = smov 12  }
   0xe   :  { %s5743_s3 = sld [smem:[%s6753_s0 + %s5631_s30]]   ;;  %s5641_s28 = smov 17  }
   0xf   :  { %s5748_s8 = sld [smem:[%s6753_s0 + %s5632_s4]]  }
  0x10   :  { %s5753_s14 = sld [smem:[%s6753_s0 + %s5633_s10]]  }
  0x11   :  { %s5758_s19 = sld [smem:[%s6753_s0 + %s5634_s15]]   ;;  %s5639_s15 = smov 15  }
  0x12   :  { %s5763_s24 = sld [smem:[%s6753_s0 + %s5635_s20]]  }
  0x13   :  { %6823 = sst [smem:[#allocation78_spill]] %s5738_s29 }
  0x14   :  { %6824 = sst [smem:[#allocation79_spill]] %s5743_s3 }
  0x15   :  { %6825 = sst [smem:[#allocation80_spill]] %s5748_s8 }
  0x16   :  { %6826 = sst [smem:[#allocation81_spill]] %s5753_s14 }
  0x17   :  { %6827 = sst [smem:[#allocation82_spill]] %s5758_s19 }
  0x18   :  { %6828 = sst [smem:[#allocation83_spill]] %s5763_s24 }
  0x19   :  { %s5768_s30 = sld [smem:[%s6753_s0 + %s5636_s26]]  }
  0x1a   :  { %s5773_s6 = sld [smem:[%s6753_s0 + %s5637_s1]]  }
  0x1b   :  { %s5778_s12 = sld [smem:[%s6753_s0 + %s5638_s7]]   ;;  %s5642_s7 = smov 18  }
  0x1c   :  { %s5783_s20 = sld [smem:[%s6753_s0 + %s5639_s15]]   ;;  %s5643_s15 = smov 19  }
  0x1d   :  { %s5788_s27 = sld [smem:[%s6753_s0 + %s5640_s22]]   ;;  %s5644_s22 = smov 20  }
  0x1e   :  { %s5793_s4 = sld [smem:[%s6753_s0 + %s5641_s28]]   ;;  %s5645_s28 = smov 21  }
  0x1f   :  { %6829 = sst [smem:[#allocation84_spill]] %s5768_s30 }
  0x20   :  { %6830 = sst [smem:[#allocation85_spill]] %s5773_s6 }
  0x21   :  { %6831 = sst [smem:[#allocation86_spill]] %s5778_s12 }
  0x22   :  { %6832 = sst [smem:[#allocation87_spill]] %s5783_s20 }
  0x23   :  { %6833 = sst [smem:[#allocation88_spill]] %s5788_s27 }
  0x24   :  { %6834 = sst [smem:[#allocation89_spill]] %s5793_s4 }
  0x25   :  { %s5798_s17 = sld [smem:[%s6753_s0 + %s5642_s7]]   ;;  %s5646_s7 = smov 22  }
  0x26   :  { %s5803_s5 = sld [smem:[%s6753_s0 + %s5643_s15]]   ;;  %s5647_s15 = smov 23  }
  0x27   :  { %s5808_s27 = sld [smem:[%s6753_s0 + %s5644_s22]]   ;;  %s5648_s22 = smov 24  }
  0x28   :  { %s5813_s12 = sld [smem:[%s6753_s0 + %s5645_s28]]   ;;  %s5649_s28 = smov 25  }
  0x29   :  { %s5823_s30 = sld [smem:[%s6753_s0 + %s5647_s15]]   ;;  %s5651_s15 = smov 27  }
  0x2a   :  { %s5833_s19 = sld [smem:[%s6753_s0 + %s5649_s28]]   ;;  %s5653_s28 = smov 29  }
  0x2b   :  { %6835 = sst [smem:[#allocation90_spill]] %s5798_s17 }
  0x2c   :  { %6836 = sst [smem:[#allocation91_spill]] %s5803_s5 }
  0x2d   :  { %6837 = sst [smem:[#allocation92_spill]] %s5808_s27 }
  0x2e   :  { %6838 = sst [smem:[#allocation93_spill]] %s5813_s12 }
  0x2f   :  { %s5818_s17 = sld [smem:[%s6753_s0 + %s5646_s7]]   ;;  %s5650_s7 = smov 26  }
  0x30   :  { %6840 = sst [smem:[#allocation95_spill]] %s5823_s30 }
  0x31   :  { %s5828_s27 = sld [smem:[%s6753_s0 + %s5648_s22]]   ;;  %s5652_s22 = smov 28  }
  0x32   :  { %6842 = sst [smem:[#allocation97_spill]] %s5833_s19 }
  0x33   :  { %s5843_s8 = sld [smem:[%s6753_s0 + %s5651_s15]]   ;;  %s5655_s15 = smov 31  }
  0x34   :  { %s5853_s29 = sld [smem:[%s6753_s0 + %s5653_s28]]  }
  0x35   :  { %6839 = sst [smem:[#allocation94_spill]] %s5818_s17 }
  0x36   :  { %s5838_s17 = sld [smem:[%s6753_s0 + %s5650_s7]]   ;;  %s5654_s7 = smov 30  }
  0x37   :  { %6841 = sst [smem:[#allocation96_spill]] %s5828_s27 }
  0x38   :  { %s5848_s27 = sld [smem:[%s6753_s0 + %s5652_s22]]   ;;  %s5656_s22 = smov 32  }
  0x39   :  { %6844 = sst [smem:[#allocation99_spill]] %s5843_s8 }
  0x3a   :  { %6846 = sst [smem:[#allocation101_spill]] %s5853_s29 }
  0x3b   :  { %s5863_s13 = sld [smem:[%s6753_s0 + %s5655_s15]]  }
  0x3c   :  { %6843 = sst [smem:[#allocation98_spill]] %s5838_s17 }
  0x3d   :  { %s5858_s17 = sld [smem:[%s6753_s0 + %s5654_s7]]  }
  0x3e   :  { %6845 = sst [smem:[#allocation100_spill]] %s5848_s27 }
  0x3f   :  { %s5868_s27 = sld [smem:[%s6753_s0 + %s5656_s22]]  }
  0x41   :  { %6847 = sst [smem:[#allocation102_spill]] %s5863_s13 }
  0x45   :  { %6848 = sst [smem:[#allocation103_spill]] %s5868_s27 }
  0x46   :  { %70 = vsyncpa [#allocation3], 0 }
  0x47   :  { %72 = vsyncpa [#allocation3 + $0x1], 0 }
  0x48   :  { %73 = vsyncpa [#allocation6], 0 }
  0x49   :  { %75 = vsyncpa [#allocation6 + $0x1], 0 }
  0x4a   :  { %76 = vsyncpa [#allocation9], 0 }
  0x4b   :  { %78 = vsyncpa [#allocation9 + $0x1], 0 }
  0x4c   :  { %79 = vsyncpa [#allocation12], 0 }
  0x4d   :  { %80 = vsyncpa [#allocation15], 0 }
  0x4e   :  { %81 = vsyncpa [#allocation18], 0 }
  0x4f   :  { %82 = vsyncpa [#allocation21], 0 }
  0x50   :  { %83 = vsyncpa [#allocation24], 0 }
  0x51   :  { %84 = vsyncpa [#allocation27], 0 }
  0x52   :  { %85 = vsyncpa [#allocation30], 0 }
  0x53   :  { %86 = vsyncpa [#allocation33], 0 }
  0x54   :  { %87 = vsyncpa [#allocation36], 0 }
  0x55   :  { %88 = vsyncpa [#allocation39], 0 }
  0x56   :  { %89 = vsyncpa [#allocation42], 0 }
  0x57   :  { %90 = vsyncpa [#allocation45], 0 }
  0x58   :  { %91 = vsyncpa [#allocation48], 0 }
  0x59   :  { %92 = vsyncpa [#allocation51], 0 }
  0x5a   :  { %93 = vsyncpa [#allocation4], 0 }
  0x5b   :  { %95 = vsyncpa [#allocation4 + $0x1], 0  ;;  %s5870_s0 = smov 0   ;;  %s5872_s28 = smov 0  }
  0x5c   :  { %s5874_s1 = smov 0   ;;  %s5876_s2 = smov 0  }
  0x5d LB: > { %s6849_s30 = sld [smem:[#allocation95_spill]]  ;;  %s6850_s29 = sld [smem:[#allocation101_spill]]  ;;  %s5619_s1 = sphi %s5874_s1, %s6938_s1   ;;  %s5615_s28 = sphi %s5872_s28, %s6937_s28   ;;  %s5611_s0 = sphi %s5870_s0, %s6936_s0   ;;  %s5623_s2 = sphi %s5876_s2, %s6939_s2  }
  0x5e   : > { %s6851_s25 = sld [smem:[#allocation77_spill]]  ;;  %s6852_s24 = sld [smem:[#allocation83_spill]] }
  0x5f   : > { %s6853_s21 = sld [smem:[#allocation76_spill]]  ;;  %s6854_s9 = sld [smem:[#allocation73_spill]] }
  0x60   : > { %s6855_s20 = sld [smem:[#allocation87_spill]]  ;;  %s6856_s19 = sld [smem:[#allocation97_spill]] }
  0x61   : > { %s6857_s14 = sld [smem:[#allocation81_spill]]  ;;  %s6858_s12 = sld [smem:[#allocation93_spill]] }
  0x62   : > { %s6859_s8 = sld [smem:[#allocation99_spill]]  ;;  %s6860_s6 = sld [smem:[#allocation85_spill]] }
  0x63   : > { %s6861_s5 = sld [smem:[#allocation91_spill]]  ;;  %s6862_s4 = sld [smem:[#allocation89_spill]] }
  0x64   : > { %s6863_s3 = sld [smem:[#allocation79_spill]]  ;;  %s5657_s7 = smov [#allocation10]  }
  0x65   : > { %s836_s10 = sshll.u32 %s5657_s7, 4  ;;  %s5891_s11 = sadd.s32 4294967295, %s5623_s2   ;;  %s5896_s10 = int_to_ptr.vmem [resolvable:$true] %s836_s10 }
  0x66   : > { %p3739_p0 = scmp.ge.s32.totalorder %s5623_s2, 1  ;;  %p6770_p1 = scmp.eq.s32.totalorder %s5891_s11, 0 }
  0x67   : > { %p824_p2 = scmp.lt.s32.totalorder %s5623_s2, 3  ;;  %s5658_s16 = smov [#allocation11]  }
  0x68   : > { %s850_s18 = sshll.u32 %s5658_s16, 4  ;;  %s5659_s23 = smov [#allocation14]   ;;  %s5911_s18 = int_to_ptr.vmem [resolvable:$true] %s850_s18 }
  0x69   : > { %p5898_p3 = pnand %p3739_p0, %p824_p2  ;;  %s874_s26 = sshll.u32 %s5659_s23, 4  ;;  %s5913_s26 = int_to_ptr.vmem [resolvable:$true] %s874_s26 }
  0x6a   : > { %s4585_s7 = scalar_lea.hbm %s6853_s21, 256 }
  0x6b   : > { %s6864_s15 = scalar_select %p5898_p3, 1, 0 }
  0x6c   : > { %p4260_p5 = pneg %p5898_p3  ;;  %p4586_p7 = scmp.ne.s32.totalorder %s6853_s21, %s4585_s7 }
  0x6d   : > { %6865 = sst [smem:[#allocation104_spill]] %s6864_s15  ;;  %p4592_p11 = scmp.lt.u32.totalorder %s4585_s7, %s6853_s21 }
  0x6e   : > { %p5907_p6 = pnand %p4260_p5, %p6770_p1 }
  0x70   : > { %s6866_s22 = scalar_select %p5907_p6, 1, 0 }
  0x71   : > { %p5919_p8 = pneg %p5907_p6 }
  0x73   : > { %s6867_s27 = scalar_select %p5919_p8, 1, 0 }
  0x74   : > { %p4588_p9 = pnand %p5919_p8, %p4586_p7 }
  0x76   : > { %p4589_p10 = pneg %p4588_p9 }
  0x78   : > { %p4594_p12 = pnand %p4592_p11, %p4589_p10 }
  0x7a   : > { %4597 = shalt.err (!%p4594_p12)
}
  0x7b   : > { %s4598_s16 = scalar_lea.vmem %s5896_s10, 256  ;;  %p4606_p5 = scmp.lt.s32.totalorder %s5896_s10, %s5896_s10 }
  0x7c   : > { %p4599_p13 = scmp.ne.s32.totalorder %s5896_s10, %s4598_s16  ;;  %p4607_p4 = scmp.lt.s32.totalorder %s4598_s16, %s4598_s16 }
  0x7e   : > { %p4601_p0 = pnand %p4599_p13, %p5919_p8  ;;  %p4608_p1 = por %p4607_p4, %p4606_p5 }
  0x80   : > { %p4602_p2 = pneg %p4601_p0 }
  0x82   : > { %p4609_p3 = pnand %p4608_p1, %p4602_p2 }
  0x84   : > { %4612 = shalt.err (!%p4609_p3)
}
  0x85   : > { %s6774_s23 = smov 64   ;;  %s6776_s7 = smov 4  }
  0x86   : > { %4263 = dma.hbm_to_vmem [thread:$0]  (!%p5907_p6), %s6853_s21, 256, %s5896_s10, [#allocation9], %s6774_s23, %s6774_s23, %s6776_s7  }
  0x87   : > { %s4613_s15 = scalar_lea.hbm %s6851_s25, 16 }
  0x88   : > { %p4614_p7 = scmp.ne.s32.totalorder %s6851_s25, %s4613_s15  ;;  %p4620_p3 = scmp.lt.u32.totalorder %s4613_s15, %s6851_s25 }
  0x8a   : > { %p4616_p4 = pnand %p4614_p7, %p5919_p8 }
  0x8c   : > { %p4617_p1 = pneg %p4616_p4 }
  0x8e   : > { %p4622_p9 = pnand %p4620_p3, %p4617_p1 }
  0x90   : > { %4625 = shalt.err (!%p4622_p9)
}
  0x91   : > { %s4626_s16 = scalar_lea.vmem %s5911_s18, 16  ;;  %s4633_s13 = scalar_lea.vmem %s5911_s18, 32 }
  0x92   : > { %p4627_p10 = scmp.ne.s32.totalorder %s5911_s18, %s4626_s16  ;;  %p4634_p13 = scmp.lt.s32.totalorder %s5911_s18, %s5911_s18 }
  0x93   : > { %p4635_p0 = scmp.lt.s32.totalorder %s4633_s13, %s4626_s16 }
  0x94   : > { %p4629_p11 = pnand %p4627_p10, %p5919_p8 }
  0x95   : > { %p4636_p2 = por %p4635_p0, %p4634_p13 }
  0x96   : > { %p4630_p12 = pneg %p4629_p11 }
  0x98   : > { %p4637_p5 = pnand %p4636_p2, %p4630_p12 }
  0x9a   : > { %4640 = shalt.err (!%p4637_p5)
}
  0x9b   : > { %4266 = dma.hbm_to_vmem [thread:$0]  (!%p5907_p6), %s6851_s25, 16, %s5911_s18, [#allocation12]  }
  0x9c   : > { %s4641_s10 = scalar_lea.hbm %s6863_s3, 16 }
  0x9d   : > { %p4642_p7 = scmp.ne.s32.totalorder %s6863_s3, %s4641_s10  ;;  %p4648_p3 = scmp.lt.u32.totalorder %s4641_s10, %s6863_s3 }
  0x9f   : > { %p4644_p4 = pnand %p4642_p7, %p5919_p8 }
  0xa1   : > { %p4645_p1 = pneg %p4644_p4 }
  0xa3   : > { %p4650_p9 = pnand %p4648_p3, %p4645_p1 }
  0xa5   : > { %4653 = shalt.err (!%p4650_p9)
}
  0xa6   : > { %s4654_s13 = scalar_lea.vmem %s5913_s26, 16  ;;  %s4661_s15 = scalar_lea.vmem %s5913_s26, 32 }
  0xa7   : > { %p4655_p10 = scmp.ne.s32.totalorder %s5913_s26, %s4654_s13  ;;  %p4662_p13 = scmp.lt.s32.totalorder %s5913_s26, %s5913_s26 }
  0xa8   : > { %p4663_p0 = scmp.lt.s32.totalorder %s4661_s15, %s4654_s13 }
  0xa9   : > { %p4657_p11 = pnand %p4655_p10, %p5919_p8 }
  0xaa   : > { %p4664_p2 = por %p4663_p0, %p4662_p13 }
  0xab   : > { %p4658_p12 = pneg %p4657_p11 }
  0xad   : > { %p4665_p5 = pnand %p4664_p2, %p4658_p12 }
  0xaf   : > { %4668 = shalt.err (!%p4665_p5)
}
  0xb0   : > { %4272 = dma.hbm_to_vmem [thread:$0]  (!%p5907_p6), %s6863_s3, 16, %s5913_s26, [#allocation15]  }
  0xb1   : > { %s5662_s18 = smov [#allocation17]   ;;  %s5663_s10 = smov [#allocation20]  }
  0xb2   : > { %s898_s16 = sshll.u32 %s5662_s18, 4  ;;  %s922_s23 = sshll.u32 %s5663_s10, 4  ;;  %s899_s16 = int_to_ptr.vmem [resolvable:$true] %s898_s16  ;;  %s923_s23 = int_to_ptr.vmem [resolvable:$true] %s922_s23 }
  0xb3   : > { %s4669_s7 = scalar_lea.hbm %s6857_s14, 16 }
  0xb4   : > { %p4670_p7 = scmp.ne.s32.totalorder %s6857_s14, %s4669_s7  ;;  %p4676_p3 = scmp.lt.u32.totalorder %s4669_s7, %s6857_s14 }
  0xb6   : > { %p4672_p4 = pnand %p4670_p7, %p5919_p8 }
  0xb8   : > { %p4673_p1 = pneg %p4672_p4 }
  0xba   : > { %p4678_p9 = pnand %p4676_p3, %p4673_p1 }
  0xbc   : > { %4681 = shalt.err (!%p4678_p9)
}
  0xbd   : > { %s4682_s13 = scalar_lea.vmem %s899_s16, 16  ;;  %s4689_s26 = scalar_lea.vmem %s899_s16, 32 }
  0xbe   : > { %p4683_p10 = scmp.ne.s32.totalorder %s899_s16, %s4682_s13  ;;  %p4690_p13 = scmp.lt.s32.totalorder %s899_s16, %s899_s16 }
  0xbf   : > { %p4691_p0 = scmp.lt.s32.totalorder %s4689_s26, %s4682_s13 }
  0xc0   : > { %p4685_p11 = pnand %p4683_p10, %p5919_p8 }
  0xc1   : > { %p4692_p2 = por %p4691_p0, %p4690_p13 }
  0xc2   : > { %p4686_p12 = pneg %p4685_p11 }
  0xc4   : > { %p4693_p5 = pnand %p4692_p2, %p4686_p12 }
  0xc6   : > { %4696 = shalt.err (!%p4693_p5)
}
  0xc7   : > { %4278 = dma.hbm_to_vmem [thread:$0]  (!%p5907_p6), %s6857_s14, 16, %s899_s16, [#allocation18]  }
  0xc8   : > { %s4697_s7 = scalar_lea.hbm %s6852_s24, 16 }
  0xc9   : > { %p4698_p7 = scmp.ne.s32.totalorder %s6852_s24, %s4697_s7  ;;  %p4704_p3 = scmp.lt.u32.totalorder %s4697_s7, %s6852_s24 }
  0xcb   : > { %p4700_p4 = pnand %p4698_p7, %p5919_p8 }
  0xcd   : > { %p4701_p1 = pneg %p4700_p4 }
  0xcf   : > { %p4706_p9 = pnand %p4704_p3, %p4701_p1 }
  0xd1   : > { %4709 = shalt.err (!%p4706_p9)
}
  0xd2   : > { %s4710_s15 = scalar_lea.vmem %s923_s23, 16  ;;  %s4717_s18 = scalar_lea.vmem %s923_s23, 32 }
  0xd3   : > { %p4711_p10 = scmp.ne.s32.totalorder %s923_s23, %s4710_s15  ;;  %p4718_p13 = scmp.lt.s32.totalorder %s923_s23, %s923_s23 }
  0xd4   : > { %p4719_p0 = scmp.lt.s32.totalorder %s4717_s18, %s4710_s15 }
  0xd5   : > { %p4713_p11 = pnand %p4711_p10, %p5919_p8 }
  0xd6   : > { %p4720_p2 = por %p4719_p0, %p4718_p13 }
  0xd7   : > { %p4714_p12 = pneg %p4713_p11 }
  0xd9   : > { %p4721_p5 = pnand %p4720_p2, %p4714_p12 }
  0xdb   : > { %4724 = shalt.err (!%p4721_p5)
}
  0xdc   : > { %4284 = dma.hbm_to_vmem [thread:$0]  (!%p5907_p6), %s6852_s24, 16, %s923_s23, [#allocation21]  }
  0xdd   : > { %s5664_s16 = smov [#allocation23]   ;;  %s5665_s13 = smov [#allocation26]  }
  0xde   : > { %s944_s10 = sshll.u32 %s5664_s16, 4  ;;  %s968_s26 = sshll.u32 %s5665_s13, 4  ;;  %s945_s10 = int_to_ptr.vmem [resolvable:$true] %s944_s10  ;;  %s969_s26 = int_to_ptr.vmem [resolvable:$true] %s968_s26 }
  0xdf   : > { %s4725_s7 = scalar_lea.hbm %s6860_s6, 16 }
  0xe0   : > { %p4726_p7 = scmp.ne.s32.totalorder %s6860_s6, %s4725_s7  ;;  %p4732_p3 = scmp.lt.u32.totalorder %s4725_s7, %s6860_s6 }
  0xe2   : > { %p4728_p4 = pnand %p4726_p7, %p5919_p8 }
  0xe4   : > { %p4729_p1 = pneg %p4728_p4 }
  0xe6   : > { %p4734_p9 = pnand %p4732_p3, %p4729_p1 }
  0xe8   : > { %4737 = shalt.err (!%p4734_p9)
}
  0xe9   : > { %s4738_s15 = scalar_lea.vmem %s945_s10, 16  ;;  %s4745_s23 = scalar_lea.vmem %s945_s10, 32 }
  0xea   : > { %p4739_p10 = scmp.ne.s32.totalorder %s945_s10, %s4738_s15  ;;  %p4746_p13 = scmp.lt.s32.totalorder %s945_s10, %s945_s10 }
  0xeb   : > { %p4747_p0 = scmp.lt.s32.totalorder %s4745_s23, %s4738_s15 }
  0xec   : > { %p4741_p11 = pnand %p4739_p10, %p5919_p8 }
  0xed   : > { %p4748_p2 = por %p4747_p0, %p4746_p13 }
  0xee   : > { %p4742_p12 = pneg %p4741_p11 }
  0xf0   : > { %p4749_p5 = pnand %p4748_p2, %p4742_p12 }
  0xf2   : > { %4752 = shalt.err (!%p4749_p5)
}
  0xf3   : > { %4290 = dma.hbm_to_vmem [thread:$0]  (!%p5907_p6), %s6860_s6, 16, %s945_s10, [#allocation24]  }
  0xf4   : > { %s4753_s18 = scalar_lea.hbm %s6855_s20, 16 }
  0xf5   : > { %p4754_p7 = scmp.ne.s32.totalorder %s6855_s20, %s4753_s18  ;;  %p4760_p3 = scmp.lt.u32.totalorder %s4753_s18, %s6855_s20 }
  0xf7   : > { %p4756_p4 = pnand %p4754_p7, %p5919_p8 }
  0xf9   : > { %p4757_p1 = pneg %p4756_p4 }
  0xfb   : > { %p4762_p9 = pnand %p4760_p3, %p4757_p1 }
  0xfd   : > { %4765 = shalt.err (!%p4762_p9)
}
  0xfe   : > { %s4766_s16 = scalar_lea.vmem %s969_s26, 16  ;;  %s4773_s13 = scalar_lea.vmem %s969_s26, 32 }
  0xff   : > { %p4767_p10 = scmp.ne.s32.totalorder %s969_s26, %s4766_s16  ;;  %p4774_p13 = scmp.lt.s32.totalorder %s969_s26, %s969_s26 }
 0x100   : > { %p4775_p0 = scmp.lt.s32.totalorder %s4773_s13, %s4766_s16 }
 0x101   : > { %p4769_p11 = pnand %p4767_p10, %p5919_p8 }
 0x102   : > { %p4776_p2 = por %p4775_p0, %p4774_p13 }
 0x103   : > { %p4770_p12 = pneg %p4769_p11 }
 0x105   : > { %p4777_p5 = pnand %p4776_p2, %p4770_p12 }
 0x107   : > { %4780 = shalt.err (!%p4777_p5)
}
 0x108   : > { %4296 = dma.hbm_to_vmem [thread:$0]  (!%p5907_p6), %s6855_s20, 16, %s969_s26, [#allocation27]  }
 0x109   : > { %s5666_s10 = smov [#allocation29]   ;;  %s5667_s15 = smov [#allocation32]  }
 0x10a   : > { %s992_s7 = sshll.u32 %s5666_s10, 4  ;;  %s1016_s23 = sshll.u32 %s5667_s15, 4  ;;  %s993_s7 = int_to_ptr.vmem [resolvable:$true] %s992_s7  ;;  %s1017_s23 = int_to_ptr.vmem [resolvable:$true] %s1016_s23 }
 0x10b   : > { %s4781_s18 = scalar_lea.hbm %s6862_s4, 16 }
 0x10c   : > { %p4782_p7 = scmp.ne.s32.totalorder %s6862_s4, %s4781_s18  ;;  %p4788_p3 = scmp.lt.u32.totalorder %s4781_s18, %s6862_s4 }
 0x10e   : > { %p4784_p4 = pnand %p4782_p7, %p5919_p8 }
 0x110   : > { %p4785_p1 = pneg %p4784_p4 }
 0x112   : > { %p4790_p9 = pnand %p4788_p3, %p4785_p1 }
 0x114   : > { %4793 = shalt.err (!%p4790_p9)
}
 0x115   : > { %s4794_s16 = scalar_lea.vmem %s993_s7, 16  ;;  %s4801_s26 = scalar_lea.vmem %s993_s7, 32 }
 0x116   : > { %p4795_p10 = scmp.ne.s32.totalorder %s993_s7, %s4794_s16  ;;  %p4802_p13 = scmp.lt.s32.totalorder %s993_s7, %s993_s7 }
 0x117   : > { %p4803_p0 = scmp.lt.s32.totalorder %s4801_s26, %s4794_s16 }
 0x118   : > { %p4797_p11 = pnand %p4795_p10, %p5919_p8 }
 0x119   : > { %p4804_p2 = por %p4803_p0, %p4802_p13 }
 0x11a   : > { %p4798_p12 = pneg %p4797_p11 }
 0x11c   : > { %p4805_p5 = pnand %p4804_p2, %p4798_p12 }
 0x11e   : > { %4808 = shalt.err (!%p4805_p5)
}
 0x11f   : > { %4302 = dma.hbm_to_vmem [thread:$0]  (!%p5907_p6), %s6862_s4, 16, %s993_s7, [#allocation30]  }
 0x120   : > { %s4809_s13 = scalar_lea.hbm %s6861_s5, 16 }
 0x121   : > { %p4810_p7 = scmp.ne.s32.totalorder %s6861_s5, %s4809_s13  ;;  %p4816_p3 = scmp.lt.u32.totalorder %s4809_s13, %s6861_s5 }
 0x123   : > { %p4812_p4 = pnand %p4810_p7, %p5919_p8 }
 0x125   : > { %p4813_p1 = pneg %p4812_p4 }
 0x127   : > { %p4818_p9 = pnand %p4816_p3, %p4813_p1 }
 0x129   : > { %4821 = shalt.err (!%p4818_p9)
}
 0x12a   : > { %s4822_s10 = scalar_lea.vmem %s1017_s23, 16  ;;  %s4829_s15 = scalar_lea.vmem %s1017_s23, 32 }
 0x12b   : > { %p4823_p10 = scmp.ne.s32.totalorder %s1017_s23, %s4822_s10  ;;  %p4830_p13 = scmp.lt.s32.totalorder %s1017_s23, %s1017_s23 }
 0x12c   : > { %p4831_p0 = scmp.lt.s32.totalorder %s4829_s15, %s4822_s10 }
 0x12d   : > { %p4825_p11 = pnand %p4823_p10, %p5919_p8 }
 0x12e   : > { %p4832_p2 = por %p4831_p0, %p4830_p13 }
 0x12f   : > { %p4826_p12 = pneg %p4825_p11 }
 0x131   : > { %p4833_p5 = pnand %p4832_p2, %p4826_p12 }
 0x133   : > { %4836 = shalt.err (!%p4833_p5)
}
 0x134   : > { %4308 = dma.hbm_to_vmem [thread:$0]  (!%p5907_p6), %s6861_s5, 16, %s1017_s23, [#allocation33]  }
 0x135   : > { %s5668_s7 = smov [#allocation35]   ;;  %s5669_s16 = smov [#allocation38]  }
 0x136   : > { %s1040_s18 = sshll.u32 %s5668_s7, 4  ;;  %s1062_s26 = sshll.u32 %s5669_s16, 4  ;;  %s1041_s18 = int_to_ptr.vmem [resolvable:$true] %s1040_s18  ;;  %s1063_s26 = int_to_ptr.vmem [resolvable:$true] %s1062_s26 }
 0x137   : > { %s4837_s13 = scalar_lea.hbm %s6858_s12, 16 }
 0x138   : > { %p4838_p7 = scmp.ne.s32.totalorder %s6858_s12, %s4837_s13  ;;  %p4844_p3 = scmp.lt.u32.totalorder %s4837_s13, %s6858_s12 }
 0x13a   : > { %p4840_p4 = pnand %p4838_p7, %p5919_p8 }
 0x13c   : > { %p4841_p1 = pneg %p4840_p4 }
 0x13e   : > { %p4846_p9 = pnand %p4844_p3, %p4841_p1 }
 0x140   : > { %4849 = shalt.err (!%p4846_p9)
}
 0x141   : > { %s4850_s10 = scalar_lea.vmem %s1041_s18, 16  ;;  %s4857_s23 = scalar_lea.vmem %s1041_s18, 32 }
 0x142   : > { %p4851_p10 = scmp.ne.s32.totalorder %s1041_s18, %s4850_s10  ;;  %p4858_p13 = scmp.lt.s32.totalorder %s1041_s18, %s1041_s18 }
 0x143   : > { %p4859_p0 = scmp.lt.s32.totalorder %s4857_s23, %s4850_s10 }
 0x144   : > { %p4853_p11 = pnand %p4851_p10, %p5919_p8 }
 0x145   : > { %p4860_p2 = por %p4859_p0, %p4858_p13 }
 0x146   : > { %p4854_p12 = pneg %p4853_p11 }
 0x148   : > { %p4861_p5 = pnand %p4860_p2, %p4854_p12 }
 0x14a   : > { %4864 = shalt.err (!%p4861_p5)
}
 0x14b   : > { %4314 = dma.hbm_to_vmem [thread:$0]  (!%p5907_p6), %s6858_s12, 16, %s1041_s18, [#allocation36]  }
 0x14c   : > { %s4865_s15 = scalar_lea.hbm %s6849_s30, 16 }
 0x14d   : > { %p4866_p7 = scmp.ne.s32.totalorder %s6849_s30, %s4865_s15  ;;  %p4872_p3 = scmp.lt.u32.totalorder %s4865_s15, %s6849_s30 }
 0x14f   : > { %p4868_p4 = pnand %p4866_p7, %p5919_p8 }
 0x151   : > { %p4869_p1 = pneg %p4868_p4 }
 0x153   : > { %p4874_p9 = pnand %p4872_p3, %p4869_p1 }
 0x155   : > { %4877 = shalt.err (!%p4874_p9)
}
 0x156   : > { %s4878_s7 = scalar_lea.vmem %s1063_s26, 16  ;;  %s4885_s16 = scalar_lea.vmem %s1063_s26, 32 }
 0x157   : > { %p4879_p10 = scmp.ne.s32.totalorder %s1063_s26, %s4878_s7  ;;  %p4886_p13 = scmp.lt.s32.totalorder %s1063_s26, %s1063_s26 }
 0x158   : > { %p4887_p0 = scmp.lt.s32.totalorder %s4885_s16, %s4878_s7 }
 0x159   : > { %p4881_p11 = pnand %p4879_p10, %p5919_p8 }
 0x15a   : > { %p4888_p2 = por %p4887_p0, %p4886_p13 }
 0x15b   : > { %p4882_p12 = pneg %p4881_p11 }
 0x15d   : > { %p4889_p5 = pnand %p4888_p2, %p4882_p12 }
 0x15f   : > { %4892 = shalt.err (!%p4889_p5)
}
 0x160   : > { %4320 = dma.hbm_to_vmem [thread:$0]  (!%p5907_p6), %s6849_s30, 16, %s1063_s26, [#allocation39]  }
 0x161   : > { %s5670_s18 = smov [#allocation41]   ;;  %s5671_s10 = smov [#allocation44]  }
 0x162   : > { %s1086_s13 = sshll.u32 %s5670_s18, 4  ;;  %s1110_s23 = sshll.u32 %s5671_s10, 4  ;;  %s1087_s13 = int_to_ptr.vmem [resolvable:$true] %s1086_s13  ;;  %s1111_s23 = int_to_ptr.vmem [resolvable:$true] %s1110_s23 }
 0x163   : > { %s4893_s15 = scalar_lea.hbm %s6856_s19, 16 }
 0x164   : > { %p4894_p7 = scmp.ne.s32.totalorder %s6856_s19, %s4893_s15  ;;  %p4900_p3 = scmp.lt.u32.totalorder %s4893_s15, %s6856_s19 }
 0x166   : > { %p4896_p4 = pnand %p4894_p7, %p5919_p8 }
 0x168   : > { %p4897_p1 = pneg %p4896_p4 }
 0x16a   : > { %p4902_p9 = pnand %p4900_p3, %p4897_p1 }
 0x16c   : > { %4905 = shalt.err (!%p4902_p9)
}
 0x16d   : > { %s4906_s7 = scalar_lea.vmem %s1087_s13, 16  ;;  %s4913_s26 = scalar_lea.vmem %s1087_s13, 32 }
 0x16e   : > { %p4907_p10 = scmp.ne.s32.totalorder %s1087_s13, %s4906_s7  ;;  %p4914_p13 = scmp.lt.s32.totalorder %s1087_s13, %s1087_s13 }
 0x16f   : > { %p4915_p0 = scmp.lt.s32.totalorder %s4913_s26, %s4906_s7 }
 0x170   : > { %p4909_p11 = pnand %p4907_p10, %p5919_p8 }
 0x171   : > { %p4916_p2 = por %p4915_p0, %p4914_p13 }
 0x172   : > { %p4910_p12 = pneg %p4909_p11 }
 0x174   : > { %p4917_p5 = pnand %p4916_p2, %p4910_p12 }
 0x176   : > { %4920 = shalt.err (!%p4917_p5)
}
 0x177   : > { %4326 = dma.hbm_to_vmem [thread:$0]  (!%p5907_p6), %s6856_s19, 16, %s1087_s13, [#allocation42]  }
 0x178   : > { %s4921_s16 = scalar_lea.hbm %s6859_s8, 16 }
 0x179   : > { %p4922_p7 = scmp.ne.s32.totalorder %s6859_s8, %s4921_s16  ;;  %p4928_p3 = scmp.lt.u32.totalorder %s4921_s16, %s6859_s8 }
 0x17b   : > { %p4924_p4 = pnand %p4922_p7, %p5919_p8 }
 0x17d   : > { %p4925_p1 = pneg %p4924_p4 }
 0x17f   : > { %p4930_p9 = pnand %p4928_p3, %p4925_p1 }
 0x181   : > { %4933 = shalt.err (!%p4930_p9)
}
 0x182   : > { %s4934_s18 = scalar_lea.vmem %s1111_s23, 16  ;;  %s4941_s10 = scalar_lea.vmem %s1111_s23, 32 }
 0x183   : > { %p4935_p10 = scmp.ne.s32.totalorder %s1111_s23, %s4934_s18  ;;  %p4942_p13 = scmp.lt.s32.totalorder %s1111_s23, %s1111_s23 }
 0x184   : > { %p4943_p0 = scmp.lt.s32.totalorder %s4941_s10, %s4934_s18 }
 0x185   : > { %p4937_p11 = pnand %p4935_p10, %p5919_p8 }
 0x186   : > { %p4944_p2 = por %p4943_p0, %p4942_p13 }
 0x187   : > { %p4938_p12 = pneg %p4937_p11 }
 0x189   : > { %p4945_p5 = pnand %p4944_p2, %p4938_p12 }
 0x18b   : > { %4948 = shalt.err (!%p4945_p5)
}
 0x18c   : > { %4332 = dma.hbm_to_vmem [thread:$0]  (!%p5907_p6), %s6859_s8, 16, %s1111_s23, [#allocation45]  }
 0x18d   : > { %s5672_s13 = smov [#allocation47]   ;;  %s4949_s7 = scalar_lea.hbm %s6850_s29, 16 }
 0x18e   : > { %s1132_s15 = sshll.u32 %s5672_s13, 4  ;;  %p4950_p7 = scmp.ne.s32.totalorder %s6850_s29, %s4949_s7  ;;  %s1133_s15 = int_to_ptr.vmem [resolvable:$true] %s1132_s15 }
 0x18f   : > { %p4956_p3 = scmp.lt.u32.totalorder %s4949_s7, %s6850_s29 }
 0x190   : > { %p4952_p4 = pnand %p4950_p7, %p5919_p8 }
 0x192   : > { %p4953_p1 = pneg %p4952_p4 }
 0x194   : > { %p4958_p9 = pnand %p4956_p3, %p4953_p1 }
 0x196   : > { %4961 = shalt.err (!%p4958_p9)
}
 0x197   : > { %s4962_s26 = scalar_lea.vmem %s1133_s15, 16  ;;  %s4969_s16 = scalar_lea.vmem %s1133_s15, 32 }
 0x198   : > { %p4963_p10 = scmp.ne.s32.totalorder %s1133_s15, %s4962_s26  ;;  %p4970_p13 = scmp.lt.s32.totalorder %s1133_s15, %s1133_s15 }
 0x199   : > { %p4971_p0 = scmp.lt.s32.totalorder %s4969_s16, %s4962_s26 }
 0x19a   : > { %p4965_p11 = pnand %p4963_p10, %p5919_p8 }
 0x19b   : > { %p4972_p2 = por %p4971_p0, %p4970_p13 }
 0x19c   : > { %p4966_p12 = pneg %p4965_p11 }
 0x19e   : > { %p4973_p5 = pnand %p4972_p2, %p4966_p12 }
 0x1a0   : > { %4976 = shalt.err (!%p4973_p5)
}
 0x1a1   : > { %4338 = dma.hbm_to_vmem [thread:$0]  (!%p5907_p6), %s6850_s29, 16, %s1133_s15, [#allocation48]  }
 0x1a2   : > { %s3738_s23 = sadd.s32 4294967294, %s5623_s2   ;;  %s6083_s18 = sadd.s32 1, %s5623_s2  }
 0x1a3   : > { %s105_s10 = ssub.s32 %s5623_s2, %s6083_s18  ;;  %s108_s13 = sadd.s32 1, %s5619_s1 }
 0x1a4   : > { %p106_p7 = scmp.eq.s32.totalorder %s105_s10, 0  ;;  %p115_p4 = scmp.ne.s32.totalorder %s5619_s1, %s5615_s28 }
 0x1a5   : > { %p116_p1 = scmp.eq.s32.totalorder %s5623_s2, 0  ;;  %p121_p3 = scmp.ne.s32.totalorder %s5615_s28, %s5611_s0 }
 0x1a6   : > { %s6094_s7 = scalar_select %p106_p7, %s5619_s1, %s108_s13  }
 0x1a7   : > { %p117_p9 = por %p116_p1, %p115_p4  ;;  %p6868_p10 = scmp.eq.s32.totalorder %s5891_s11, 0 }
 0x1a8   : > { %p811_p12 = scmp.eq.s32.totalorder %s5891_s11, 1  ;;  %p817_p13 = scmp.eq.s32.totalorder %s3738_s23, 1 }
 0x1a9   : > { %p6098_p11 = por %p6868_p10, %p121_p3  ;;  %p4390_p0 = scmp.lt.s32.totalorder %s5623_s2, 2 }
 0x1aa   : > { %s6105_s26 = sand.u32 1, %s5619_s1   ;;  %p6107_p2 = por %p811_p12, %p115_p4 }
 0x1ab   : > { %s6869_s15 = scalar_select %p6098_p11, 1, 0 }
 0x1ac   : > { %s6870_s16 = scalar_select %p6107_p2, 1, 0 }
 0x1ad   : > { %p6111_p5 = por %p817_p13, %p121_p3  ;;  %p6115_p7 = pnand %p4390_p0, %p117_p9 }
 0x1ae   : > { %s6787_s23 = sand.u32 1, %s5623_s2   ;;  %s6793_s3 = sshll.u32 %s6105_s26, 3 }
 0x1af   : > { %s6871_s10 = scalar_select %p6111_p5, 1, 0 }
 0x1b0   : > { %s6872_s13 = scalar_select %p6115_p7, 1, 0 }
 0x1b1   : > { %s6794_s4 = sshll.u32 %s5623_s2, 7  ;;  %s1189_s5 = scalar_lea.vmem [#allocation5], %s6793_s3 }
 0x1b2   : > { %s1196_s6 = sshll.u32 %s1189_s5, 4  ;;  %s6127_s8 = scalar_lea.hbm %s6854_s9, %s6794_s4  ;;  %s6129_s6 = int_to_ptr.vmem [resolvable:$true] %s1196_s6 }
 0x1b3   : > { %s6133_s12 = scalar_lea.sflag [#allocation6], %s6787_s23  ;;  %s4977_s14 = scalar_lea.hbm %s6127_s8, 128 }
 0x1b4   : > { %p4978_p4 = scmp.ne.s32.totalorder %s6127_s8, %s4977_s14  ;;  %p6139_p1 = pneg %p6115_p7 }
 0x1b5   : > { %s4982_s5 = scalar_lea.hbm %s6854_s9, 256  ;;  %p4983_p10 = scmp.lt.u32.totalorder %s6127_s8, %s6854_s9 }
 0x1b6   : > { %s6873_s19 = scalar_select %p6139_p1, 1, 0 }
 0x1b7   : > { %p4980_p3 = pnand %p6139_p1, %p4978_p4  ;;  %p4984_p12 = scmp.lt.u32.totalorder %s4982_s5, %s4977_s14 }
 0x1b8   : > { %p4986_p0 = scmp.lt.u32.totalorder %s4977_s14, %s6127_s8 }
 0x1b9   : > { %p4981_p9 = pneg %p4980_p3  ;;  %p4985_p13 = por %p4984_p12, %p4983_p10 }
 0x1bb   : > { %p4987_p5 = por %p4986_p0, %p4985_p13 }
 0x1bd   : > { %p4988_p2 = pnand %p4987_p5, %p4981_p9 }
 0x1bf   : > { %4991 = shalt.err (!%p4988_p2)
}
 0x1c0   : > { %s4992_s23 = scalar_lea.vmem %s6129_s6, 128  ;;  %s5673_s3 = smov [#allocation5]  }
 0x1c1   : > { %p4993_p11 = scmp.ne.s32.totalorder %s6129_s6, %s4992_s23  ;;  %s4997_s4 = sshll.u32 %s5673_s3, 4  ;;  %s4998_s4 = int_to_ptr.vmem [resolvable:$false] %s4997_s4 }
 0x1c2   : > { %s4999_s20 = scalar_lea.vmem %s4998_s4, 256  ;;  %p5000_p4 = scmp.lt.s32.totalorder %s6129_s6, %s4998_s4 }
 0x1c3   : > { %p4995_p6 = pnand %p4993_p11, %p6139_p1  ;;  %p5001_p3 = scmp.lt.s32.totalorder %s4999_s20, %s4992_s23 }
 0x1c5   : > { %p4996_p8 = pneg %p4995_p6  ;;  %p5002_p10 = por %p5001_p3, %p5000_p4 }
 0x1c7   : > { %p5003_p12 = pnand %p5002_p10, %p4996_p8 }
 0x1c9   : > { %5006 = shalt.err (!%p5003_p12)
}
 0x1ca   : > { %s6874_s14 = sld [smem:[#allocation74_spill]]  ;;  %s6875_s5 = sld [smem:[#allocation78_spill]] }
 0x1cb   : > { %4351 = dma.hbm_to_vmem [thread:$0]  (!%p6115_p7), %s6127_s8, 128, %s6129_s6, %s6133_s12  }
 0x1cc   : > { %s6876_s3 = sshll.u32 %s5623_s2, 7  ;;  %s5674_s4 = smov [#allocation13]  }
 0x1cd   : > { %s860_s20 = sshll.u32 %s5674_s4, 4  ;;  %s5675_s23 = smov [#allocation16]   ;;  %s861_s20 = int_to_ptr.vmem [resolvable:$true] %s860_s20 }
 0x1ce   : > { %s884_s21 = sshll.u32 %s5675_s23, 4  ;;  %p6877_p8 = scmp.ne.s32.totalorder %s6867_s27, 0  ;;  %s885_s21 = int_to_ptr.vmem [resolvable:$true] %s884_s21 }
 0x1d0   : > { %s6162_s9 = scalar_lea.hbm %s6874_s14, %s6876_s3  ;;  %s5007_s24 = scalar_lea.hbm %s6875_s5, 256 }
 0x1d1   : > { %p5008_p6 = scmp.ne.s32.totalorder %s6875_s5, %s5007_s24  ;;  %p5014_p5 = scmp.lt.u32.totalorder %s5007_s24, %s6875_s5 }
 0x1d3   : > { %p5010_p11 = pnand %p5008_p6, %p6877_p8 }
 0x1d5   : > { %p5011_p2 = pneg %p5010_p11 }
 0x1d7   : > { %p5016_p9 = pnand %p5014_p5, %p5011_p2 }
 0x1d9   : > { %5019 = shalt.err (!%p5016_p9)
}
 0x1da   : > { %s5020_s25 = scalar_lea.vmem %s861_s20, 256  ;;  %p5028_p3 = scmp.lt.s32.totalorder %s861_s20, %s861_s20 }
 0x1db   : > { %p5021_p13 = scmp.ne.s32.totalorder %s861_s20, %s5020_s25  ;;  %p5029_p10 = scmp.lt.s32.totalorder %s5020_s25, %s5020_s25 }
 0x1dd   : > { %p5023_p0 = pnand %p5021_p13, %p6877_p8  ;;  %p5030_p12 = por %p5029_p10, %p5028_p3 }
 0x1df   : > { %p5024_p4 = pneg %p5023_p0 }
 0x1e1   : > { %p5031_p7 = pnand %p5030_p12, %p5024_p4 }
 0x1e3   : > { %5034 = shalt.err (!%p5031_p7)
}
 0x1e4   : > { %p6878_p1 = scmp.ne.s32.totalorder %s6866_s22, 0  ;;  %s6879_s8 = smov 4  }
 0x1e5   : > { %s6880_s6 = smov 64   ;;  %s6881_s24 = sld [smem:[#allocation80_spill]] }
 0x1e6   : > { %4269 = dma.hbm_to_vmem [thread:$0]  (!%p6878_p1), %s6875_s5, 256, %s861_s20, [#allocation12], %s6880_s6, %s6880_s6, %s6879_s8  }
 0x1eb   : > { %s5035_s3 = scalar_lea.hbm %s6881_s24, 256 }
 0x1ec   : > { %p5036_p6 = scmp.ne.s32.totalorder %s6881_s24, %s5035_s3  ;;  %p5042_p5 = scmp.lt.u32.totalorder %s5035_s3, %s6881_s24 }
 0x1ee   : > { %p5038_p11 = pnand %p5036_p6, %p6877_p8 }
 0x1f0   : > { %p5039_p2 = pneg %p5038_p11 }
 0x1f2   : > { %p5044_p9 = pnand %p5042_p5, %p5039_p2 }
 0x1f4   : > { %5047 = shalt.err (!%p5044_p9)
}
 0x1f5   : > { %s5048_s25 = scalar_lea.vmem %s885_s21, 256  ;;  %p5056_p4 = scmp.lt.s32.totalorder %s885_s21, %s885_s21 }
 0x1f6   : > { %p5049_p7 = scmp.ne.s32.totalorder %s885_s21, %s5048_s25  ;;  %p5057_p3 = scmp.lt.s32.totalorder %s5048_s25, %s5048_s25 }
 0x1f8   : > { %p5051_p13 = pnand %p5049_p7, %p6877_p8  ;;  %p5058_p10 = por %p5057_p3, %p5056_p4 }
 0x1fa   : > { %p5052_p0 = pneg %p5051_p13 }
 0x1fc   : > { %p5059_p12 = pnand %p5058_p10, %p5052_p0 }
 0x1fe   : > { %5062 = shalt.err (!%p5059_p12)
}
 0x1ff   : > { %s6882_s4 = sld [smem:[#allocation82_spill]]  ;;  %s5676_s20 = smov [#allocation19]  }
 0x200   : > { %4275 = dma.hbm_to_vmem [thread:$0]  (!%p6878_p1), %s6881_s24, 256, %s885_s21, [#allocation15], %s6880_s6, %s6880_s6, %s6879_s8  }
 0x201   : > { %s908_s23 = sshll.u32 %s5676_s20, 4  ;;  %s5677_s3 = smov [#allocation22]   ;;  %s909_s23 = int_to_ptr.vmem [resolvable:$true] %s908_s23 }
 0x202   : > { %s933_s5 = sshll.u32 %s5677_s3, 4  ;;  %s934_s5 = int_to_ptr.vmem [resolvable:$true] %s933_s5 }
 0x205   : > { %s5063_s25 = scalar_lea.hbm %s6882_s4, 256 }
 0x206   : > { %p5064_p6 = scmp.ne.s32.totalorder %s6882_s4, %s5063_s25  ;;  %p5070_p5 = scmp.lt.u32.totalorder %s5063_s25, %s6882_s4 }
 0x208   : > { %p5066_p11 = pnand %p5064_p6, %p6877_p8 }
 0x20a   : > { %p5067_p2 = pneg %p5066_p11 }
 0x20c   : > { %p5072_p9 = pnand %p5070_p5, %p5067_p2 }
 0x20e   : > { %5075 = shalt.err (!%p5072_p9)
}
 0x20f   : > { %s5076_s29 = scalar_lea.vmem %s909_s23, 256  ;;  %p5084_p4 = scmp.lt.s32.totalorder %s909_s23, %s909_s23 }
 0x210   : > { %p5077_p7 = scmp.ne.s32.totalorder %s909_s23, %s5076_s29  ;;  %p5085_p3 = scmp.lt.s32.totalorder %s5076_s29, %s5076_s29 }
 0x212   : > { %p5079_p13 = pnand %p5077_p7, %p6877_p8  ;;  %p5086_p10 = por %p5085_p3, %p5084_p4 }
 0x214   : > { %p5080_p0 = pneg %p5079_p13 }
 0x216   : > { %p5087_p12 = pnand %p5086_p10, %p5080_p0 }
 0x218   : > { %5090 = shalt.err (!%p5087_p12)
}
 0x219   : > { %s6883_s21 = sld [smem:[#allocation84_spill]] }
 0x21a   : > { %4281 = dma.hbm_to_vmem [thread:$0]  (!%p6878_p1), %s6882_s4, 256, %s909_s23, [#allocation18], %s6880_s6, %s6880_s6, %s6879_s8  }
 0x21f   : > { %s5091_s20 = scalar_lea.hbm %s6883_s21, 16 }
 0x220   : > { %p5092_p6 = scmp.ne.s32.totalorder %s6883_s21, %s5091_s20  ;;  %p5098_p5 = scmp.lt.u32.totalorder %s5091_s20, %s6883_s21 }
 0x222   : > { %p5094_p11 = pnand %p5092_p6, %p6877_p8 }
 0x224   : > { %p5095_p2 = pneg %p5094_p11 }
 0x226   : > { %p5100_p9 = pnand %p5098_p5, %p5095_p2 }
 0x228   : > { %5103 = shalt.err (!%p5100_p9)
}
 0x229   : > { %s5104_s29 = scalar_lea.vmem %s934_s5, 16  ;;  %s5111_s3 = scalar_lea.vmem %s934_s5, 32 }
 0x22a   : > { %p5105_p7 = scmp.ne.s32.totalorder %s934_s5, %s5104_s29  ;;  %p5112_p4 = scmp.lt.s32.totalorder %s934_s5, %s934_s5 }
 0x22b   : > { %p5113_p3 = scmp.lt.s32.totalorder %s5111_s3, %s5104_s29 }
 0x22c   : > { %p5107_p13 = pnand %p5105_p7, %p6877_p8 }
 0x22d   : > { %p5114_p10 = por %p5113_p3, %p5112_p4 }
 0x22e   : > { %p5108_p0 = pneg %p5107_p13 }
 0x230   : > { %p5115_p12 = pnand %p5114_p10, %p5108_p0 }
 0x232   : > { %5118 = shalt.err (!%p5115_p12)
}
 0x233   : > { %s6884_s23 = sld [smem:[#allocation86_spill]]  ;;  %s5678_s25 = smov [#allocation25]  }
 0x234   : > { %4287 = dma.hbm_to_vmem [thread:$0]  (!%p6878_p1), %s6883_s21, 16, %s934_s5, [#allocation21]  }
 0x235   : > { %s954_s20 = sshll.u32 %s5678_s25, 4  ;;  %s5679_s4 = smov [#allocation28]   ;;  %s955_s20 = int_to_ptr.vmem [resolvable:$true] %s954_s20 }
 0x236   : > { %s978_s24 = sshll.u32 %s5679_s4, 4  ;;  %s979_s24 = int_to_ptr.vmem [resolvable:$true] %s978_s24 }
 0x239   : > { %s5119_s30 = scalar_lea.hbm %s6884_s23, 256 }
 0x23a   : > { %p5120_p6 = scmp.ne.s32.totalorder %s6884_s23, %s5119_s30  ;;  %p5126_p5 = scmp.lt.u32.totalorder %s5119_s30, %s6884_s23 }
 0x23c   : > { %p5122_p11 = pnand %p5120_p6, %p6877_p8 }
 0x23e   : > { %p5123_p2 = pneg %p5122_p11 }
 0x240   : > { %p5128_p9 = pnand %p5126_p5, %p5123_p2 }
 0x242   : > { %5131 = shalt.err (!%p5128_p9)
}
 0x243   : > { %s5132_s29 = scalar_lea.vmem %s955_s20, 256  ;;  %p5140_p4 = scmp.lt.s32.totalorder %s955_s20, %s955_s20 }
 0x244   : > { %p5133_p7 = scmp.ne.s32.totalorder %s955_s20, %s5132_s29  ;;  %p5141_p3 = scmp.lt.s32.totalorder %s5132_s29, %s5132_s29 }
 0x246   : > { %p5135_p13 = pnand %p5133_p7, %p6877_p8  ;;  %p5142_p10 = por %p5141_p3, %p5140_p4 }
 0x248   : > { %p5136_p0 = pneg %p5135_p13 }
 0x24a   : > { %p5143_p12 = pnand %p5142_p10, %p5136_p0 }
 0x24c   : > { %5146 = shalt.err (!%p5143_p12)
}
 0x24d   : > { %s6885_s30 = sld [smem:[#allocation88_spill]] }
 0x24e   : > { %4293 = dma.hbm_to_vmem [thread:$0]  (!%p6878_p1), %s6884_s23, 256, %s955_s20, [#allocation24], %s6880_s6, %s6880_s6, %s6879_s8  }
 0x253   : > { %s5147_s5 = scalar_lea.hbm %s6885_s30, 256 }
 0x254   : > { %p5148_p6 = scmp.ne.s32.totalorder %s6885_s30, %s5147_s5  ;;  %p5154_p5 = scmp.lt.u32.totalorder %s5147_s5, %s6885_s30 }
 0x256   : > { %p5150_p11 = pnand %p5148_p6, %p6877_p8 }
 0x258   : > { %p5151_p2 = pneg %p5150_p11 }
 0x25a   : > { %p5156_p9 = pnand %p5154_p5, %p5151_p2 }
 0x25c   : > { %5159 = shalt.err (!%p5156_p9)
}
 0x25d   : > { %s5160_s4 = scalar_lea.vmem %s979_s24, 256  ;;  %p5168_p4 = scmp.lt.s32.totalorder %s979_s24, %s979_s24 }
 0x25e   : > { %p5161_p7 = scmp.ne.s32.totalorder %s979_s24, %s5160_s4  ;;  %p5169_p3 = scmp.lt.s32.totalorder %s5160_s4, %s5160_s4 }
 0x260   : > { %p5163_p13 = pnand %p5161_p7, %p6877_p8  ;;  %p5170_p10 = por %p5169_p3, %p5168_p4 }
 0x262   : > { %p5164_p0 = pneg %p5163_p13 }
 0x264   : > { %p5171_p12 = pnand %p5170_p10, %p5164_p0 }
 0x266   : > { %5174 = shalt.err (!%p5171_p12)
}
 0x267   : > { %s6886_s3 = sld [smem:[#allocation90_spill]]  ;;  %s5680_s25 = smov [#allocation31]  }
 0x268   : > { %4299 = dma.hbm_to_vmem [thread:$0]  (!%p6878_p1), %s6885_s30, 256, %s979_s24, [#allocation27], %s6880_s6, %s6880_s6, %s6879_s8  }
 0x269   : > { %s1002_s20 = sshll.u32 %s5680_s25, 4  ;;  %s5681_s29 = smov [#allocation34]   ;;  %s1003_s20 = int_to_ptr.vmem [resolvable:$true] %s1002_s20 }
 0x26a   : > { %s1026_s5 = sshll.u32 %s5681_s29, 4  ;;  %s1027_s5 = int_to_ptr.vmem [resolvable:$true] %s1026_s5 }
 0x26d   : > { %s5175_s4 = scalar_lea.hbm %s6886_s3, 256 }
 0x26e   : > { %p5176_p6 = scmp.ne.s32.totalorder %s6886_s3, %s5175_s4  ;;  %p5182_p5 = scmp.lt.u32.totalorder %s5175_s4, %s6886_s3 }
 0x270   : > { %p5178_p11 = pnand %p5176_p6, %p6877_p8 }
 0x272   : > { %p5179_p2 = pneg %p5178_p11 }
 0x274   : > { %p5184_p9 = pnand %p5182_p5, %p5179_p2 }
 0x276   : > { %5187 = shalt.err (!%p5184_p9)
}
 0x277   : > { %s5188_s21 = scalar_lea.vmem %s1003_s20, 256  ;;  %p5196_p4 = scmp.lt.s32.totalorder %s1003_s20, %s1003_s20 }
 0x278   : > { %p5189_p7 = scmp.ne.s32.totalorder %s1003_s20, %s5188_s21  ;;  %p5197_p3 = scmp.lt.s32.totalorder %s5188_s21, %s5188_s21 }
 0x27a   : > { %p5191_p13 = pnand %p5189_p7, %p6877_p8  ;;  %p5198_p10 = por %p5197_p3, %p5196_p4 }
 0x27c   : > { %p5192_p0 = pneg %p5191_p13 }
 0x27e   : > { %p5199_p12 = pnand %p5198_p10, %p5192_p0 }
 0x280   : > { %5202 = shalt.err (!%p5199_p12)
}
 0x281   : > { %s6887_s24 = sld [smem:[#allocation92_spill]] }
 0x282   : > { %4305 = dma.hbm_to_vmem [thread:$0]  (!%p6878_p1), %s6886_s3, 256, %s1003_s20, [#allocation30], %s6880_s6, %s6880_s6, %s6879_s8  }
 0x287   : > { %s5203_s25 = scalar_lea.hbm %s6887_s24, 256 }
 0x288   : > { %p5204_p6 = scmp.ne.s32.totalorder %s6887_s24, %s5203_s25  ;;  %p5210_p5 = scmp.lt.u32.totalorder %s5203_s25, %s6887_s24 }
 0x28a   : > { %p5206_p11 = pnand %p5204_p6, %p6877_p8 }
 0x28c   : > { %p5207_p2 = pneg %p5206_p11 }
 0x28e   : > { %p5212_p9 = pnand %p5210_p5, %p5207_p2 }
 0x290   : > { %5215 = shalt.err (!%p5212_p9)
}
 0x291   : > { %s5216_s21 = scalar_lea.vmem %s1027_s5, 256  ;;  %p5224_p4 = scmp.lt.s32.totalorder %s1027_s5, %s1027_s5 }
 0x292   : > { %p5217_p7 = scmp.ne.s32.totalorder %s1027_s5, %s5216_s21  ;;  %p5225_p3 = scmp.lt.s32.totalorder %s5216_s21, %s5216_s21 }
 0x294   : > { %p5219_p13 = pnand %p5217_p7, %p6877_p8  ;;  %p5226_p10 = por %p5225_p3, %p5224_p4 }
 0x296   : > { %p5220_p0 = pneg %p5219_p13 }
 0x298   : > { %p5227_p12 = pnand %p5226_p10, %p5220_p0 }
 0x29a   : > { %5230 = shalt.err (!%p5227_p12)
}
 0x29b   : > { %s6888_s20 = sld [smem:[#allocation94_spill]]  ;;  %s5682_s29 = smov [#allocation37]  }
 0x29c   : > { %4311 = dma.hbm_to_vmem [thread:$0]  (!%p6878_p1), %s6887_s24, 256, %s1027_s5, [#allocation33], %s6880_s6, %s6880_s6, %s6879_s8  }
 0x29d   : > { %s1051_s4 = sshll.u32 %s5682_s29, 4  ;;  %s5683_s25 = smov [#allocation40]   ;;  %s1052_s4 = int_to_ptr.vmem [resolvable:$true] %s1051_s4 }
 0x29e   : > { %s1072_s3 = sshll.u32 %s5683_s25, 4  ;;  %s1073_s3 = int_to_ptr.vmem [resolvable:$true] %s1072_s3 }
 0x2a1   : > { %s5231_s21 = scalar_lea.hbm %s6888_s20, 16 }
 0x2a2   : > { %p5232_p6 = scmp.ne.s32.totalorder %s6888_s20, %s5231_s21  ;;  %p5238_p5 = scmp.lt.u32.totalorder %s5231_s21, %s6888_s20 }
 0x2a4   : > { %p5234_p11 = pnand %p5232_p6, %p6877_p8 }
 0x2a6   : > { %p5235_p2 = pneg %p5234_p11 }
 0x2a8   : > { %p5240_p9 = pnand %p5238_p5, %p5235_p2 }
 0x2aa   : > { %5243 = shalt.err (!%p5240_p9)
}
 0x2ab   : > { %s5244_s23 = scalar_lea.vmem %s1052_s4, 16  ;;  %s5251_s5 = scalar_lea.vmem %s1052_s4, 32 }
 0x2ac   : > { %p5245_p7 = scmp.ne.s32.totalorder %s1052_s4, %s5244_s23  ;;  %p5252_p4 = scmp.lt.s32.totalorder %s1052_s4, %s1052_s4 }
 0x2ad   : > { %p5253_p3 = scmp.lt.s32.totalorder %s5251_s5, %s5244_s23 }
 0x2ae   : > { %p5247_p13 = pnand %p5245_p7, %p6877_p8 }
 0x2af   : > { %p5254_p10 = por %p5253_p3, %p5252_p4 }
 0x2b0   : > { %p5248_p0 = pneg %p5247_p13 }
 0x2b2   : > { %p5255_p12 = pnand %p5254_p10, %p5248_p0 }
 0x2b4   : > { %5258 = shalt.err (!%p5255_p12)
}
 0x2b5   : > { %s6889_s29 = sld [smem:[#allocation96_spill]] }
 0x2b6   : > { %4317 = dma.hbm_to_vmem [thread:$0]  (!%p6878_p1), %s6888_s20, 16, %s1052_s4, [#allocation36]  }
 0x2bb   : > { %s5259_s25 = scalar_lea.hbm %s6889_s29, 256 }
 0x2bc   : > { %p5260_p6 = scmp.ne.s32.totalorder %s6889_s29, %s5259_s25  ;;  %p5266_p5 = scmp.lt.u32.totalorder %s5259_s25, %s6889_s29 }
 0x2be   : > { %p5262_p11 = pnand %p5260_p6, %p6877_p8 }
 0x2c0   : > { %p5263_p2 = pneg %p5262_p11 }
 0x2c2   : > { %p5268_p9 = pnand %p5266_p5, %p5263_p2 }
 0x2c4   : > { %5271 = shalt.err (!%p5268_p9)
}
 0x2c5   : > { %s5272_s23 = scalar_lea.vmem %s1073_s3, 256  ;;  %p5280_p4 = scmp.lt.s32.totalorder %s1073_s3, %s1073_s3 }
 0x2c6   : > { %p5273_p7 = scmp.ne.s32.totalorder %s1073_s3, %s5272_s23  ;;  %p5281_p3 = scmp.lt.s32.totalorder %s5272_s23, %s5272_s23 }
 0x2c8   : > { %p5275_p13 = pnand %p5273_p7, %p6877_p8  ;;  %p5282_p10 = por %p5281_p3, %p5280_p4 }
 0x2ca   : > { %p5276_p0 = pneg %p5275_p13 }
 0x2cc   : > { %p5283_p12 = pnand %p5282_p10, %p5276_p0 }
 0x2ce   : > { %5286 = shalt.err (!%p5283_p12)
}
 0x2cf   : > { %s6890_s4 = sld [smem:[#allocation98_spill]]  ;;  %s5684_s21 = smov [#allocation43]  }
 0x2d0   : > { %4323 = dma.hbm_to_vmem [thread:$0]  (!%p6878_p1), %s6889_s29, 256, %s1073_s3, [#allocation39], %s6880_s6, %s6880_s6, %s6879_s8  }
 0x2d1   : > { %s1096_s5 = sshll.u32 %s5684_s21, 4  ;;  %s5685_s25 = smov [#allocation46]   ;;  %s1097_s5 = int_to_ptr.vmem [resolvable:$true] %s1096_s5 }
 0x2d2   : > { %s1121_s20 = sshll.u32 %s5685_s25, 4  ;;  %s1122_s20 = int_to_ptr.vmem [resolvable:$true] %s1121_s20 }
 0x2d5   : > { %s5287_s23 = scalar_lea.hbm %s6890_s4, 512 }
 0x2d6   : > { %p5288_p6 = scmp.ne.s32.totalorder %s6890_s4, %s5287_s23  ;;  %p5294_p5 = scmp.lt.u32.totalorder %s5287_s23, %s6890_s4 }
 0x2d8   : > { %p5290_p11 = pnand %p5288_p6, %p6877_p8 }
 0x2da   : > { %p5291_p2 = pneg %p5290_p11 }
 0x2dc   : > { %p5296_p9 = pnand %p5294_p5, %p5291_p2 }
 0x2de   : > { %5299 = shalt.err (!%p5296_p9)
}
 0x2df   : > { %s5300_s24 = scalar_lea.vmem %s1097_s5, 512  ;;  %p5308_p4 = scmp.lt.s32.totalorder %s1097_s5, %s1097_s5 }
 0x2e0   : > { %p5301_p7 = scmp.ne.s32.totalorder %s1097_s5, %s5300_s24  ;;  %p5309_p3 = scmp.lt.s32.totalorder %s5300_s24, %s5300_s24 }
 0x2e2   : > { %p5303_p13 = pnand %p5301_p7, %p6877_p8  ;;  %p5310_p10 = por %p5309_p3, %p5308_p4 }
 0x2e4   : > { %p5304_p0 = pneg %p5303_p13 }
 0x2e6   : > { %p5311_p12 = pnand %p5310_p10, %p5304_p0 }
 0x2e8   : > { %5314 = shalt.err (!%p5311_p12)
}
 0x2e9   : > { %s6891_s3 = sld [smem:[#allocation100_spill]] }
 0x2ea   : > { %4329 = dma.hbm_to_vmem [thread:$0]  (!%p6878_p1), %s6890_s4, 512, %s1097_s5, [#allocation42], %s6880_s6, %s6880_s6, %s6879_s8  }
 0x2ef   : > { %s5315_s21 = scalar_lea.hbm %s6891_s3, 16 }
 0x2f0   : > { %p5316_p6 = scmp.ne.s32.totalorder %s6891_s3, %s5315_s21  ;;  %p5322_p5 = scmp.lt.u32.totalorder %s5315_s21, %s6891_s3 }
 0x2f2   : > { %p5318_p11 = pnand %p5316_p6, %p6877_p8 }
 0x2f4   : > { %p5319_p2 = pneg %p5318_p11 }
 0x2f6   : > { %p5324_p9 = pnand %p5322_p5, %p5319_p2 }
 0x2f8   : > { %5327 = shalt.err (!%p5324_p9)
}
 0x2f9   : > { %s5328_s24 = scalar_lea.vmem %s1122_s20, 16  ;;  %s5335_s25 = scalar_lea.vmem %s1122_s20, 32 }
 0x2fa   : > { %p5329_p7 = scmp.ne.s32.totalorder %s1122_s20, %s5328_s24  ;;  %p5336_p4 = scmp.lt.s32.totalorder %s1122_s20, %s1122_s20 }
 0x2fb   : > { %p5337_p3 = scmp.lt.s32.totalorder %s5335_s25, %s5328_s24 }
 0x2fc   : > { %p5331_p13 = pnand %p5329_p7, %p6877_p8 }
 0x2fd   : > { %p5338_p10 = por %p5337_p3, %p5336_p4 }
 0x2fe   : > { %p5332_p0 = pneg %p5331_p13 }
 0x300   : > { %p5339_p12 = pnand %p5338_p10, %p5332_p0 }
 0x302   : > { %5342 = shalt.err (!%p5339_p12)
}
 0x303   : > { %4335 = dma.hbm_to_vmem [thread:$0]  (!%p6878_p1), %s6891_s3, 16, %s1122_s20, [#allocation45]  }
 0x304   : > { %s5686_s5 = smov [#allocation49]   ;;  %s5687_s21 = smov [#allocation50]  }
 0x305   : > { %s1142_s23 = sshll.u32 %s5686_s5, 4  ;;  %s1156_s4 = sshll.u32 %s5687_s21, 4  ;;  %s1143_s23 = int_to_ptr.vmem [resolvable:$true] %s1142_s23  ;;  %s1157_s4 = int_to_ptr.vmem [resolvable:$true] %s1156_s4 }
 0x306   : > { %s5343_s29 = scalar_lea.hbm %s5858_s17, 256 }
 0x307   : > { %p5344_p6 = scmp.ne.s32.totalorder %s5858_s17, %s5343_s29  ;;  %p5350_p5 = scmp.lt.u32.totalorder %s5343_s29, %s5858_s17 }
 0x309   : > { %p5346_p11 = pnand %p5344_p6, %p6877_p8 }
 0x30b   : > { %p5347_p2 = pneg %p5346_p11 }
 0x30d   : > { %p5352_p9 = pnand %p5350_p5, %p5347_p2 }
 0x30f   : > { %5355 = shalt.err (!%p5352_p9)
}
 0x310   : > { %s5356_s24 = scalar_lea.vmem %s1143_s23, 256  ;;  %p5364_p4 = scmp.lt.s32.totalorder %s1143_s23, %s1143_s23 }
 0x311   : > { %p5357_p7 = scmp.ne.s32.totalorder %s1143_s23, %s5356_s24  ;;  %p5365_p3 = scmp.lt.s32.totalorder %s5356_s24, %s5356_s24 }
 0x313   : > { %p5359_p13 = pnand %p5357_p7, %p6877_p8  ;;  %p5366_p10 = por %p5365_p3, %p5364_p4 }
 0x315   : > { %p5360_p0 = pneg %p5359_p13 }
 0x317   : > { %p5367_p12 = pnand %p5366_p10, %p5360_p0 }
 0x319   : > { %5370 = shalt.err (!%p5367_p12)
}
 0x31a   : > { %s6892_s20 = sld [smem:[#allocation102_spill]] }
 0x31b   : > { %4341 = dma.hbm_to_vmem [thread:$0]  (!%p6878_p1), %s5858_s17, 256, %s1143_s23, [#allocation48], %s6880_s6, %s6880_s6, %s6879_s8  }
 0x320   : > { %s5371_s29 = scalar_lea.hbm %s6892_s20, 16 }
 0x321   : > { %p5372_p6 = scmp.ne.s32.totalorder %s6892_s20, %s5371_s29  ;;  %p5378_p5 = scmp.lt.u32.totalorder %s5371_s29, %s6892_s20 }
 0x323   : > { %p5374_p11 = pnand %p5372_p6, %p6877_p8 }
 0x325   : > { %p5375_p2 = pneg %p5374_p11 }
 0x327   : > { %p5380_p9 = pnand %p5378_p5, %p5375_p2 }
 0x329   : > { %5383 = shalt.err (!%p5380_p9)
}
 0x32a   : > { %s5384_s25 = scalar_lea.vmem %s1157_s4, 16  ;;  %s5391_s5 = scalar_lea.vmem %s1157_s4, 32 }
 0x32b   : > { %p5385_p7 = scmp.ne.s32.totalorder %s1157_s4, %s5384_s25  ;;  %p5392_p4 = scmp.lt.s32.totalorder %s1157_s4, %s1157_s4 }
 0x32c   : > { %p5393_p3 = scmp.lt.s32.totalorder %s5391_s5, %s5384_s25 }
 0x32d   : > { %p5387_p13 = pnand %p5385_p7, %p6877_p8 }
 0x32e   : > { %p5394_p10 = por %p5393_p3, %p5392_p4 }
 0x32f   : > { %p5388_p0 = pneg %p5387_p13 }
 0x331   : > { %p5395_p12 = pnand %p5394_p10, %p5388_p0 }
 0x333   : > { %5398 = shalt.err (!%p5395_p12)
}
 0x334   : > { %s6893_s8 = sld [smem:[#allocation72_spill]]  ;;  %s3769_s27 = sshll.u32 %s6105_s26, 2 }
 0x335   : > { %4344 = dma.hbm_to_vmem [thread:$0]  (!%p6878_p1), %s6892_s20, 16, %s1157_s4, [#allocation51]  }
 0x336   : > { %s3770_s6 = sshll.u32 %s5623_s2, 6  ;;  %s1171_s21 = scalar_lea.vmem [#allocation2], %s3769_s27 }
 0x337   : > { %s1178_s22 = sshll.u32 %s1171_s21, 4  ;;  %s6894_s24 = sshll.u32 %s6105_s26, 3  ;;  %s6341_s22 = int_to_ptr.vmem [resolvable:$true] %s1178_s22 }
 0x338   : > { %s1207_s29 = scalar_lea.vmem [#allocation7], %s6894_s24  ;;  %s1168_s5 = scalar_lea.sflag [#allocation3], %s6105_s26 }
 0x339   : > { %s1214_s25 = sshll.u32 %s1207_s29, 4  ;;  %p6895_p8 = scmp.ne.s32.totalorder %s6873_s19, 0  ;;  %s6343_s25 = int_to_ptr.vmem [resolvable:$true] %s1214_s25 }
 0x33a   : > { %s6337_s23 = scalar_lea.hbm %s6893_s8, %s3770_s6  ;;  %s5404_s6 = scalar_lea.hbm %s6893_s8, 128 }
 0x33b   : > { %s5399_s4 = scalar_lea.hbm %s6337_s23, 64  ;;  %p5405_p2 = scmp.lt.u32.totalorder %s6337_s23, %s6893_s8 }
 0x33c   : > { %p5400_p1 = scmp.ne.s32.totalorder %s6337_s23, %s5399_s4  ;;  %p5406_p5 = scmp.lt.u32.totalorder %s5404_s6, %s5399_s4 }
 0x33d   : > { %p5408_p7 = scmp.lt.u32.totalorder %s5399_s4, %s6337_s23 }
 0x33e   : > { %p5402_p6 = pnand %p5400_p1, %p6895_p8  ;;  %p5407_p9 = por %p5406_p5, %p5405_p2 }
 0x340   : > { %p5403_p11 = pneg %p5402_p6  ;;  %p5409_p13 = por %p5408_p7, %p5407_p9 }
 0x342   : > { %p5410_p0 = pnand %p5409_p13, %p5403_p11 }
 0x344   : > { %5413 = shalt.err (!%p5410_p0)
}
 0x345   : > { %s5414_s27 = scalar_lea.vmem %s6341_s22, 64  ;;  %s5688_s21 = smov [#allocation2]  }
 0x346   : > { %p5415_p4 = scmp.ne.s32.totalorder %s6341_s22, %s5414_s27  ;;  %s5419_s24 = sshll.u32 %s5688_s21, 4  ;;  %s5420_s24 = int_to_ptr.vmem [resolvable:$false] %s5419_s24 }
 0x347   : > { %s5421_s29 = scalar_lea.vmem %s5420_s24, 128  ;;  %p5422_p12 = scmp.lt.s32.totalorder %s6341_s22, %s5420_s24 }
 0x348   : > { %p5417_p3 = pnand %p5415_p4, %p6895_p8  ;;  %p5423_p1 = scmp.lt.s32.totalorder %s5421_s29, %s5414_s27 }
 0x34a   : > { %p5418_p10 = pneg %p5417_p3  ;;  %p5424_p6 = por %p5423_p1, %p5422_p12 }
 0x34c   : > { %p5425_p2 = pnand %p5424_p6, %p5418_p10 }
 0x34e   : > { %5428 = shalt.err (!%p5425_p2)
}
 0x34f   : > { %p6896_p11 = scmp.ne.s32.totalorder %s6872_s13, 0  ;;  %s5429_s4 = scalar_lea.hbm %s6162_s9, 128 }
 0x350   : > { %p5430_p5 = scmp.ne.s32.totalorder %s6162_s9, %s5429_s4  ;;  %s5434_s6 = scalar_lea.hbm %s6874_s14, 256 }
 0x351   : > { %4348 = dma.hbm_to_vmem [thread:$0]  (!%p6896_p11), %s6337_s23, 64, %s6341_s22, %s1168_s5  }
 0x352   : > { %p5432_p9 = pnand %p5430_p5, %p6895_p8  ;;  %p5435_p13 = scmp.lt.u32.totalorder %s6162_s9, %s6874_s14 }
 0x353   : > { %p5436_p0 = scmp.lt.u32.totalorder %s5434_s6, %s5429_s4  ;;  %p5438_p3 = scmp.lt.u32.totalorder %s5429_s4, %s6162_s9 }
 0x354   : > { %p5433_p7 = pneg %p5432_p9 }
 0x355   : > { %p5437_p4 = por %p5436_p0, %p5435_p13 }
 0x357   : > { %p5439_p10 = por %p5438_p3, %p5437_p4 }
 0x359   : > { %p5440_p12 = pnand %p5439_p10, %p5433_p7 }
 0x35b   : > { %5443 = shalt.err (!%p5440_p12)
}
 0x35c   : > { %s5444_s27 = scalar_lea.vmem %s6343_s25, 128  ;;  %s5689_s23 = smov [#allocation7]  }
 0x35d   : > { %p5445_p1 = scmp.ne.s32.totalorder %s6343_s25, %s5444_s27  ;;  %s5449_s22 = sshll.u32 %s5689_s23, 4  ;;  %s5450_s22 = int_to_ptr.vmem [resolvable:$false] %s5449_s22 }
 0x35e   : > { %s5451_s5 = scalar_lea.vmem %s5450_s22, 256  ;;  %p5452_p5 = scmp.lt.s32.totalorder %s6343_s25, %s5450_s22 }
 0x35f   : > { %p5447_p6 = pnand %p5445_p1, %p6895_p8  ;;  %p5453_p9 = scmp.lt.s32.totalorder %s5451_s5, %s5444_s27 }
 0x361   : > { %p5448_p2 = pneg %p5447_p6  ;;  %p5454_p13 = por %p5453_p9, %p5452_p5 }
 0x363   : > { %p5455_p0 = pnand %p5454_p13, %p5448_p2 }
 0x365   : > { %5458 = shalt.err (!%p5455_p0)
}
 0x366   : > { %s6897_s21 = sld [smem:[#allocation75_spill]]  ;;  %s3775_s24 = sshll.u32 %s5623_s2, 4 }
 0x367   : > { %4354 = dma.hbm_to_vmem [thread:$0]  (!%p6896_p11), %s6162_s9, 128, %s6343_s25, %s6133_s12  }
 0x368   : > { %s1224_s4 = scalar_lea.vmem [#allocation8], %s6105_s26  ;;  %s6898_s27 = sand.u32 1, %s5623_s2  }
 0x369   : > { %s1231_s6 = sshll.u32 %s1224_s4, 4  ;;  %s1222_s23 = scalar_lea.sflag [#allocation9], %s6898_s27  ;;  %s1232_s6 = int_to_ptr.vmem [resolvable:$true] %s1231_s6 }
 0x36c   : > { %s6383_s29 = scalar_lea.hbm %s6897_s21, %s3775_s24  ;;  %s5464_s5 = scalar_lea.hbm %s6897_s21, 32 }
 0x36d   : > { %s5459_s22 = scalar_lea.hbm %s6383_s29, 16  ;;  %p5465_p10 = scmp.lt.u32.totalorder %s6383_s29, %s6897_s21 }
 0x36e   : > { %p5460_p7 = scmp.ne.s32.totalorder %s6383_s29, %s5459_s22  ;;  %p5466_p12 = scmp.lt.u32.totalorder %s5464_s5, %s5459_s22 }
 0x36f   : > { %p5468_p6 = scmp.lt.u32.totalorder %s5459_s22, %s6383_s29 }
 0x370   : > { %p5462_p4 = pnand %p5460_p7, %p6895_p8  ;;  %p5467_p1 = por %p5466_p12, %p5465_p10 }
 0x372   : > { %p5463_p3 = pneg %p5462_p4  ;;  %p5469_p2 = por %p5468_p6, %p5467_p1 }
 0x374   : > { %p5470_p5 = pnand %p5469_p2, %p5463_p3 }
 0x376   : > { %5473 = shalt.err (!%p5470_p5)
}
 0x377   : > { %s5474_s9 = scalar_lea.vmem %s1232_s6, 16  ;;  %s5690_s12 = smov [#allocation8]  }
 0x378   : > { %p5475_p9 = scmp.ne.s32.totalorder %s1232_s6, %s5474_s9  ;;  %s5479_s26 = sshll.u32 %s5690_s12, 4  ;;  %s5480_s26 = int_to_ptr.vmem [resolvable:$false] %s5479_s26 }
 0x379   : > { %s5481_s25 = scalar_lea.vmem %s5480_s26, 32  ;;  %p5482_p7 = scmp.lt.s32.totalorder %s1232_s6, %s5480_s26 }
 0x37a   : > { %p5477_p13 = pnand %p5475_p9, %p6895_p8  ;;  %p5483_p4 = scmp.lt.s32.totalorder %s5481_s25, %s5474_s9 }
 0x37c   : > { %p5478_p0 = pneg %p5477_p13  ;;  %p5484_p11 = por %p5483_p4, %p5482_p7 }
 0x37e   : > { %p5485_p10 = pnand %p5484_p11, %p5478_p0 }
 0x380   : > { %5488 = shalt.err (!%p5485_p10)
}
 0x381   : > { %p6899_p12 = scmp.ne.s32.totalorder %s6872_s13, 0  ;;  %s6900_s24 = sld [smem:[#allocation104_spill]] }
 0x383   : > { %4357 = dma.hbm_to_vmem [thread:$0]  (!%p6899_p12), %s6383_s29, 16, %s1232_s6, %s1222_s23  }
 0x387   : > { %p6901_p3 = scmp.ne.s32.totalorder %s6900_s24, 0 }
 0x388   : > { %s6404_s19 = sand.u32 (!%p6901_p3), 1, %s5615_s28   ;;  %p6902_p8 = scmp.ne.s32.totalorder (!%p6901_p3), %s6869_s15, 0 }
 0x389   : > { %1240 = sbr.rel (%p6901_p3) target bundleno = 5424 (0x1530), region = 148  ;;  %s3777_s4 = sshll.u32 (!%p6901_p3), %s6404_s19, 2 }
 0x38a   : > { %s1243_s27 = scalar_lea.sflag (!%p6901_p3), [#allocation3], %s6404_s19  ;;  %s6408_s22 = scalar_lea.vmem (!%p6901_p3), [#allocation2], %s3777_s4 }
 0x390   : > { %5534 = dma.done.wait (%p6902_p8), %s1243_s27, 64  }
 0x391   : > { %5536 = vsyncadd (%p6902_p8), %s1243_s27, 4294967232  ;;  %s1251_s13 = sand.u32 1, %s5891_s11   ;;  %s6416_s29 = sshll.u32 %s6404_s19, 3 }
 0x392   : > { %s1252_s6 = scalar_lea.sflag [#allocation6], %s1251_s13  ;;  %s1255_s23 = scalar_lea.vmem [#allocation5], %s6416_s29 }
 0x393   : > { %5538 = dma.done.wait (%p6902_p8), %s1252_s6, 256  }
 0x394   : > { %5540 = vsyncadd (%p6902_p8), %s1252_s6, 4294967040  ;;  %s1264_s5 = scalar_lea.vmem [#allocation7], %s6416_s29  ;;  %s1270_s9 = scalar_lea.sflag [#allocation9], %s1251_s13 }
 0x395   : > { %s1272_s12 = scalar_lea.vmem [#allocation8], %s6404_s19 }
 0x396   : > { %5542 = dma.done.wait (%p6902_p8), %s1270_s9, 16  }
 0x397   : > { %5544 = vsyncadd (%p6902_p8), %s1270_s9, 4294967280  ;;  %p6903_p11 = scmp.eq.s32.totalorder %s5891_s11, 0 }
 0x399   : > { %5546 = dma.done.wait (%p6903_p11), [#allocation9], 256   ;;  %p6904_p1 = pmov %p6903_p11 }
 0x39b   : > { %5548 = vsyncadd (%p6904_p1), [#allocation9], 4294967040  ;;  %p6905_p6 = pmov %p6904_p1 }
 0x39c   : > { %p6906_p2 = pmov %p6904_p1 }
 0x39d   : > { %5550 = dma.done.wait (%p6905_p6), [#allocation12], 272  }
 0x39e   : > { %5552 = vsyncadd (%p6906_p2), [#allocation12], 4294967024  ;;  %p6907_p5 = pmov %p6904_p1 }
 0x39f   : > { %p6908_p9 = pmov %p6904_p1 }
 0x3a0   : > { %5554 = dma.done.wait (%p6907_p5), [#allocation15], 272  }
 0x3a1   : > { %5556 = vsyncadd (%p6908_p9), [#allocation15], 4294967024  ;;  %p6909_p13 = pmov %p6904_p1 }
 0x3a2   : > { %p6910_p0 = pmov %p6904_p1 }
 0x3a3   : > { %5558 = dma.done.wait (%p6909_p13), [#allocation18], 272  }
 0x3a4   : > { %5560 = vsyncadd (%p6910_p0), [#allocation18], 4294967024  ;;  %p6911_p7 = pmov %p6910_p0 }
 0x3a5   : > { %p6912_p4 = pmov %p6910_p0 }
 0x3a6   : > { %5562 = dma.done.wait (%p6911_p7), [#allocation21], 32  }
 0x3a7   : > { %5564 = vsyncadd (%p6912_p4), [#allocation21], 4294967264  ;;  %p6913_p10 = pmov %p6910_p0 }
 0x3a8   : > { %p6914_p12 = pmov %p6910_p0 }
 0x3a9   : > { %5566 = dma.done.wait (%p6913_p10), [#allocation24], 272  }
 0x3aa   : > { %5568 = vsyncadd (%p6914_p12), [#allocation24], 4294967024  ;;  %p6915_p3 = pmov %p6910_p0 }
 0x3ab   : > { %p6916_p8 = pmov %p6910_p0 }
 0x3ac   : > { %5570 = dma.done.wait (%p6915_p3), [#allocation27], 272  }
 0x3ad   : > { %5572 = vsyncadd (%p6916_p8), [#allocation27], 4294967024  ;;  %p6917_p11 = pmov %p6910_p0 }
 0x3ae   : > { %p6918_p1 = pmov %p6910_p0 }
 0x3af   : > { %5574 = dma.done.wait (%p6917_p11), [#allocation30], 272  }
 0x3b0   : > { %5576 = vsyncadd (%p6918_p1), [#allocation30], 4294967024  ;;  %p6919_p6 = pmov %p6910_p0 }
 0x3b1   : > { %p6920_p2 = pmov %p6910_p0 }
 0x3b2   : > { %5578 = dma.done.wait (%p6919_p6), [#allocation33], 272  }
 0x3b3   : > { %5580 = vsyncadd (%p6920_p2), [#allocation33], 4294967024  ;;  %p6921_p5 = pmov %p6910_p0 }
 0x3b4   : > { %p6922_p9 = pmov %p6910_p0 }
 0x3b5   : > { %5582 = dma.done.wait (%p6921_p5), [#allocation36], 32  }
 0x3b6   : > { %5584 = vsyncadd (%p6922_p9), [#allocation36], 4294967264  ;;  %p6923_p13 = pmov %p6910_p0 }
 0x3b8   : > { %5586 = dma.done.wait (%p6923_p13), [#allocation39], 272  }
 0x3b9   : > { %5588 = vsyncadd (%p6910_p0), [#allocation39], 4294967024  ;;  %p6924_p7 = pmov %p6910_p0 }
 0x3ba   : > { %p6925_p4 = pmov %p6910_p0 }
 0x3bb   : > { %5590 = dma.done.wait (%p6924_p7), [#allocation42], 528  }
 0x3bc   : > { %5592 = vsyncadd (%p6925_p4), [#allocation42], 4294966768  ;;  %p6926_p10 = pmov %p6910_p0 }
 0x3bd   : > { %p6927_p12 = pmov %p6910_p0 }
 0x3be   : > { %5594 = dma.done.wait (%p6926_p10), [#allocation45], 32  }
 0x3bf   : > { %5596 = vsyncadd (%p6927_p12), [#allocation45], 4294967264  ;;  %p6928_p3 = pmov %p6910_p0 }
 0x3c0   : > { %p6929_p8 = pmov %p6910_p0 }
 0x3c1   : > { %5598 = dma.done.wait (%p6928_p3), [#allocation48], 272  }
 0x3c2   : > { %5600 = vsyncadd (%p6929_p8), [#allocation48], 4294967024  ;;  %p6930_p11 = pmov %p6910_p0 }
 0x3c3   : > { %p6931_p1 = pmov %p6910_p0 }
 0x3c4   : > { %5602 = dma.done.wait (%p6930_p11), [#allocation51], 16  }
 0x3c5   : > { %5604 = vsyncadd (%p6931_p1), [#allocation51], 4294967280  ;;  %v5691_v0 = vmov 0.0   ;;  %vm5692_vm0 = vmmov 0   ;;  %v4522_v1 = vld [vmem:[#allocation10] sm:$0xff]   ;;  %v4523_v2 = vld [vmem:[#allocation13] sm:$0xff]  }
 0x3c6   : > { %3950 = vmatprep.subr.bf16.mxu0 %v5691_v0  ;;  %3958 = vmatprep.subr.bf16.mxu1 %v5691_v0  ;;  %v4524_v3 = vld [vmem:[#allocation10 + $0x8] sm:$0xff]   ;;  %v4525_v4 = vld [vmem:[#allocation13 + $0x8] sm:$0xff]   ;;  %vm1507_vm1 = vcmask 261120   ;;  %v3810_v9 = vld [vmem:[#allocation11] ss:$0 sm:$0xff]  ;;  %s5693_s15 = smov 120  }
 0x3c7   : > { %3954 = vmatprep.mubr.msk.bf16.mxu0 %vm5692_vm0, %v5691_v0  ;;  %3962 = vmatprep.mubr.msk.bf16.mxu1 %vm5692_vm0, %v5691_v0  ;;  %v6498_v5 = vld [vmem:[%s6408_s22] sm:$0xf]  ;;  %v4527_v7 = vld [vmem:[#allocation16] sm:$0xff]   ;;  %v4528_v8 = vld [vmem:[#allocation16 + $0x8] sm:$0xff]   ;;  %vm1719_vm2 = vcmask 64512   ;;  %s5694_s26 = smov 104  }
 0x3c8   : > { %3951 = vmatpush3.bf16.msra.mxu0 %v4522_v1  ;;  %3959 = vmatpush3.bf16.msra.mxu1 %v4523_v2  ;;  %v3809_v6 = vcombine.low %v6498_v5, %v6498_v5  ;;  %v3814_v10 = vld [vmem:[#allocation14] ss:$0 sm:$0xff]  ;;  %s5695_s25 = smov 112   ;;  %v3818_v31 = vld [vmem:[#allocation17] ss:$0 sm:$0xff]  ;;  %vm1964_vm3 = vcmask 1043456  }
 0x3c9   : > { %3952 = vmatprep.subr.bf16.mxu0 %v5691_v0  ;;  %3960 = vmatprep.subr.bf16.mxu1 %v5691_v0  ;;  %v1908_v48 = vld [vmem:[%s1264_s5] sm:$0xff]  ;;  %s5696_s24 = smov 8   ;;  %s5697_s4 = smov 16   ;;  %vm2159_vm4 = vcmask 130048   ;;  %vm2161_vm5 = vcmask 195584   ;;  %vm3151_vm6 = vcmask 523264  }
 0x3ca   : > { %s5698_s27 = smov 24   ;;  %s6932_s22 = sld [smem:[#allocation103_spill]] }
 0x3cb   : > { %s3880_s13 = sshll.u32 %s5891_s11, 7  ;;  %s1478_s6 = scalar_lea.vmem [#allocation52], %s6416_s29 }
 0x3cc   : > { %3953 = vmatpush3.bf16.msra.mxu0 %v4524_v3  ;;  %3961 = vmatpush3.bf16.msra.mxu1 %v4525_v4  ;;  %s3294_s9 = scalar_lea.sflag [#allocation4], %s6404_s19  ;;  %p6933_p2 = scmp.ne.s32.totalorder %s6870_s16, 0 }
 0x3cd   : > { %3966 = vmatprep.subr.bf16.mxu0 %v5691_v0  ;;  %3974 = vmatprep.subr.bf16.mxu1 %v5691_v0  ;;  %s5699_s11 = smov [#allocation52]  }
 0x3ce   : > { %s5493_s29 = sshll.u32 %s5699_s11, 4  ;;  %s5494_s29 = int_to_ptr.vmem [resolvable:$false] %s5493_s29 }
 0x3cf   : > { %3955 = vmatmul.mubr.msk.bf16.vlgmr.msra.gmra.mrb[0].mxu0 %vm1507_vm1, %v3809_v6  ;;  %3963 = vmatmul.mubr.msk.bf16.vlgmr.msra.gmra.mrb[0].mxu1 %vm1507_vm1, %v3809_v6 }
 0x3d0   : > { %3970 = vmatprep.mubr.msk.bf16.mxu0 %vm5692_vm0, %v5691_v0  ;;  %3976 = vmatprep.mubr.msk.bf16.mxu1 %vm5692_vm0, %v5691_v0  ;;  %s6712_s5 = scalar_lea.hbm %s6932_s22, %s3880_s13 }
 0x3d1   : > { %3967 = vmatpush3.bf16.msra.mxu0 %v4527_v7 }
 0x3d2   : > { %3968 = vmatprep.subr.bf16.mxu0 %v5691_v0 }
 0x3d5   : > { %3969 = vmatpush3.bf16.msra.mxu0 %v4528_v8 }
 0x3d6   : > { %3980 = vmatprep.subr.bf16.mxu0 %v5691_v0 }
 0x3d8   : > { %3971 = vmatmul.mubr.msk.bf16.vlgmr.msra.gmra.mrb[4].mxu0 %vm1507_vm1, %v3809_v6 }
 0x3d9   : > { %3982 = vmatprep.mubr.msk.bf16.mxu0 %vm5692_vm0, %v5691_v0 }
 0x4a2   : > { %v1545_v11 = vpop.f32.mrb[0].mxu0  ;;  %v1608_v13 = vpop.f32.mrb[0].mxu1 }
 0x4a3   : > { %v1546_v12 = vadd.f32 %v3810_v9, %v1545_v11  ;;  %v3956_v14 = vpop.f32.mrb[1].mxu0  ;;  %v1609_v15 = vadd.f32 %v3814_v10, %v1608_v13  ;;  %v3964_v16 = vpop.f32.mrb[1].mxu1 }
 0x4a4   : > { %v1548_v17 = vpop.f32.mrb[2].mxu0  ;;  %v1611_v18 = vpop.f32.mrb[2].mxu1 }
 0x4a5   : > { %1678 = vrot.lane.b32.xlu1 %v1546_v12, %s5693_s15  ;;  %v3957_v19 = vpop.f32.mrb[3].mxu0  ;;  %1692 = vrot.lane.b32.xlu0 %v1609_v15, %s5693_s15  ;;  %v3965_v20 = vpop.f32.mrb[3].mxu1  ;;  %v1701_v21 = vpack.c.bf16 %v1609_v15, %v1609_v15  ;;  %v1687_v23 = vpack.c.bf16 %v1546_v12, %v1546_v12 }
 0x4a7   : > { %v1724_v22 = vsel %vm1719_vm2, %v1701_v21, 0 }
 0x4a8   : > { %3975 = vmatpush3.bf16.xpose.msra.mxu1 %v1724_v22 }
 0x4a9   : > { %1698 = vrot.lane.b32.xlu1 %v1609_v15, %s5694_s26  ;;  %1695 = vrot.lane.b32.xlu0 %v1609_v15, %s5695_s25 }
 0x4aa   : > { %3986 = vmatprep.subr.bf16.mxu1 %v5691_v0 }
 0x4ab   : > { %v1671_v24 = vpop.f32.mrb[4].mxu0 }
 0x4ac   : > { %v3972_v25 = vpop.f32.mrb[5].mxu0  ;;  %v6528_v36 = vadd.f32 %v3818_v31, %v1671_v24 }
 0x4ad   : > { %1684 = vrot.lane.b32.xlu1 %v1546_v12, %s5694_s26  ;;  %1681 = vrot.lane.b32.xlu0 %v1546_v12, %s5695_s25  ;;  %v1674_v26 = vpop.f32.mrb[6].mxu0 }
 0x4ae   : > { %v3973_v27 = vpop.f32.mrb[7].mxu0  ;;  %v1715_v40 = vpack.c.bf16 %v6528_v36, %v6528_v36 }
 0x4af   : > { %3977 = vmatmul.mubr.msk.bf16.vlgmr.msra.gmra.mrb[4].mxu1 %vm1719_vm2, %v1687_v23 }
 0x4b0   : > { %3988 = vmatprep.mubr.msk.bf16.mxu1 %vm5692_vm0, %v5691_v0  ;;  %v1966_v44 = vsel %vm1964_vm3, %v1715_v40, 0 }
 0x517   : > { %v1679_v28 = vpop.permute.xlu1 %1678  ;;  %v1693_v29 = vpop.permute.xlu0 %1692 }
 0x518   : > { %v1702_v30 = vpack.c.bf16 %v1693_v29, %v1693_v29  ;;  %v1688_v39 = vpack.c.bf16 %v1679_v28, %v1679_v28 }
 0x51a   : > { %v1770_v32 = vsel %vm1719_vm2, %v1702_v30, 0 }
 0x51b   : > { %v1696_v33 = vpop.permute.xlu0 %1695  ;;  %3981 = vmatpush3.bf16.xpose.msra.mxu0 %v1770_v32  ;;  %v1699_v34 = vpop.permute.xlu1 %1698 }
 0x51c   : > { %v1703_v35 = vpack.c.bf16 %v1696_v33, %v1696_v33  ;;  %3992 = vmatprep.subr.bf16.mxu0 %v5691_v0  ;;  %v1704_v38 = vpack.c.bf16 %v1699_v34, %v1699_v34 }
 0x51e   : > { %v1816_v37 = vsel %vm1719_vm2, %v1703_v35, 0  ;;  %v1862_v42 = vsel %vm1719_vm2, %v1704_v38, 0 }
 0x51f   : > { %3987 = vmatpush3.bf16.xpose.msra.mxu1 %v1816_v37  ;;  %v1682_v41 = vpop.permute.xlu0 %1681  ;;  %v1685_v45 = vpop.permute.xlu1 %1684 }
 0x520   : > { %3998 = vmatprep.subr.bf16.mxu1 %v5691_v0  ;;  %v1689_v43 = vpack.c.bf16 %v1682_v41, %v1682_v41  ;;  %v1690_v46 = vpack.c.bf16 %v1685_v45, %v1685_v45 }
 0x522   : > { %3983 = vmatmul.mubr.msk.bf16.vlgmr.msra.gmra.mrb[8].mxu0 %vm1719_vm2, %v1688_v39 }
 0x523   : > { %3993 = vmatpush3.bf16.xpose.msra.mxu0 %v1862_v42  ;;  %3994 = vmatprep.mubr.msk.bf16.mxu0 %vm5692_vm0, %v5691_v0 }
 0x524   : > { %4004 = vmatprep.subr.bf16.mxu0 %v5691_v0 }
 0x526   : > { %3989 = vmatmul.mubr.msk.bf16.vlgmr.msra.gmra.mrb[8].mxu1 %vm1719_vm2, %v1689_v43 }
 0x527   : > { %3999 = vmatpush3.bf16.msra.mxu1 %v1966_v44  ;;  %4000 = vmatprep.mubr.msk.bf16.mxu1 %vm5692_vm0, %v5691_v0 }
 0x528   : > { %4010 = vmatprep.subr.bf16.mxu1 %v5691_v0 }
 0x52a   : > { %3995 = vmatmul.mubr.msk.bf16.vlgmr.msra.gmra.mrb[12].mxu0 %vm1719_vm2, %v1690_v46 }
 0x52b   : > { %4006 = vmatprep.mubr.msk.bf16.mxu0 %vm5692_vm0, %v5691_v0 }
 0x582   : > { %v1760_v47 = vpop.f32.mrb[4].mxu1 }
 0x583   : > { %v1904_v49 = vmul.f32 0.35355338, %v1760_v47  ;;  %v3978_v50 = vpop.f32.mrb[5].mxu1 }
 0x584   : > { %v1763_v51 = vpop.f32.mrb[6].mxu1 }
 0x585   : > { %v3979_v52 = vpop.f32.mrb[7].mxu1  ;;  %v1909_v53 = vadd.f32 %v1908_v48, %v1904_v49 }
 0x587   : > { %v1913_v54 = vsel %vm1719_vm2, %v1909_v53, -inf }
 0x588   : > { %1914 = vmax.xlane.f32.xlu0 %v1913_v54 }
 0x5f5   : > { %v1806_v55 = vpop.f32.mrb[8].mxu0 }
 0x5f6   : > { %v1905_v56 = vmul.f32 0.35355338, %v1806_v55  ;;  %v3984_v57 = vpop.f32.mrb[9].mxu0 }
 0x5f7   : > { %v1809_v58 = vpop.f32.mrb[10].mxu0 }
 0x5f8   : > { %v3985_v59 = vpop.f32.mrb[11].mxu0  ;;  %v1910_v60 = vadd.f32 %v1908_v48, %v1905_v56 }
 0x5f9   : > { %v1852_v61 = vpop.f32.mrb[8].mxu1 }
 0x5fa   : > { %v1906_v62 = vmul.f32 0.35355338, %v1852_v61  ;;  %v3990_v63 = vpop.f32.mrb[9].mxu1  ;;  %v1916_v1 = vsel %vm1719_vm2, %v1910_v60, -inf }
 0x5fb   : > { %v1855_v2 = vpop.f32.mrb[10].mxu1  ;;  %1917 = vmax.xlane.f32.xlu1 %v1916_v1  ;;  %v4529_v63 = vld [vmem:[#allocation19] sm:$0xff]   ;;  %v4530_v1 = vld [vmem:[#allocation19 + $0x8] sm:$0xff]  }
 0x5fc   : > { %v3991_v3 = vpop.f32.mrb[11].mxu1  ;;  %v1911_v4 = vadd.f32 %v1908_v48, %v1906_v62 }
 0x5fd   : > { %v1898_v6 = vpop.f32.mrb[12].mxu0 }
 0x5fe   : > { %v1907_v7 = vmul.f32 0.35355338, %v1898_v6  ;;  %v3996_v8 = vpop.f32.mrb[13].mxu0  ;;  %v1919_v9 = vsel %vm1719_vm2, %v1911_v4, -inf }
 0x5ff   : > { %1920 = vmax.xlane.f32.xlu0 %v1919_v9  ;;  %v1901_v10 = vpop.f32.mrb[14].mxu0 }
 0x600   : > { %v3997_v11 = vpop.f32.mrb[15].mxu0  ;;  %v1912_v12 = vadd.f32 %v1908_v48, %v1907_v7 }
 0x602   : > { %v1922_v13 = vsel %vm1719_vm2, %v1912_v12, -inf }
 0x603   : > { %1923 = vmax.xlane.f32.xlu0 %v1922_v13 }
 0x60c   : > { %1706 = vrot.lane.b32.xlu1 %v6528_v36, %s5693_s15 }
 0x615   : > { %v1915_v14 = vpop.xlane.xlu0 %1914 }
 0x616   : > { %v1925_v15 = vsub.f32 %v1909_v53, %v1915_v14 }
 0x618   : > { %v1929_v16 = vmul.f32 1.442695, %v1925_v15 }
 0x61a   : > { %4547 = vpow2.f32 %v1929_v16 }
 0x624   : > { %v4548_v17 = vpop.eup %4547 }
 0x625   : > { %v1937_v18 = vsel %vm1719_vm2, %v4548_v17, 0.0 }
 0x630   : > { %1938 = vadd.xlane.f32.xlu1 %v1937_v18 }
 0x688   : > { %v1918_v19 = vpop.xlane.xlu1 %1917 }
 0x689   : > { %v1926_v20 = vsub.f32 %v1910_v60, %v1918_v19 }
 0x68b   : > { %v1931_v21 = vmul.f32 1.442695, %v1926_v20 }
 0x68c   : > { %v1921_v22 = vpop.xlane.xlu0 %1920  ;;  %v1707_v23 = vpop.permute.xlu1 %1706 }
 0x68d   : > { %4549 = vpow2.f32 %v1931_v21  ;;  %v1927_v24 = vsub.f32 %v1911_v4, %v1921_v22  ;;  %v1716_v25 = vpack.c.bf16 %v1707_v23, %v1707_v23  ;;  %v3830_v22 = vld [vmem:[#allocation20] ss:$0 sm:$0xff]  ;;  %v1481_v23 = vunpack.c.l.bf16 %v6498_v5 }
 0x68e   : > { %v4532_v5 = vld [vmem:[#allocation28 + $0x8] sm:$0xff]  }
 0x68f   : > { %v1933_v26 = vmul.f32 1.442695, %v1927_v24  ;;  %v2012_v27 = vsel %vm1964_vm3, %v1716_v25, 0 }
 0x690   : > { %4005 = vmatpush3.bf16.msra.mxu0 %v2012_v27  ;;  %v1924_v28 = vpop.xlane.xlu0 %1923 }
 0x691   : > { %4551 = vpow2.f32 %v1933_v26  ;;  %v1928_v29 = vsub.f32 %v1912_v12, %v1924_v28  ;;  %4016 = vmatprep.subr.bf16.mxu0 %v5691_v0 }
 0x693   : > { %v1935_v30 = vmul.f32 1.442695, %v1928_v29 }
 0x695   : > { %4553 = vpow2.f32 %v1935_v30 }
 0x697   : > { %v4550_v31 = vpop.eup %4549 }
 0x698   : > { %v1940_v32 = vsel %vm1719_vm2, %v4550_v31, 0.0 }
 0x699   : > { %1941 = vadd.xlane.f32.xlu0 %v1940_v32 }
 0x69b   : > { %v4552_v33 = vpop.eup %4551 }
 0x69c   : > { %v1943_v34 = vsel %vm1719_vm2, %v4552_v33, 0.0 }
 0x69d   : > { %1944 = vadd.xlane.f32.xlu1 %v1943_v34 }
 0x69f   : > { %v4554_v35 = vpop.eup %4553 }
 0x6a0   : > { %v1946_v37 = vsel %vm1719_vm2, %v4554_v35, 0.0 }
 0x6a1   : > { %1947 = vadd.xlane.f32.xlu0 %v1946_v37  ;;  %v4531_v37 = vld [vmem:[#allocation28] sm:$0xff]  }
 0x6ae   : > { %1712 = vrot.lane.b32.xlu1 %v6528_v36, %s5694_s26 }
 0x6b7   : > { %1709 = vrot.lane.b32.xlu0 %v6528_v36, %s5695_s25 }
 0x6bd   : > { %v1939_v38 = vpop.xlane.xlu1 %1938 }
 0x6be   : > { %4555 = vrcp.f32 %v1939_v38  ;;  %v1482_v38 = vld [vmem:[%s1255_s23] sm:$0xff]  ;;  %s3307_s23 = sshll.u32 %s1478_s6, 4  ;;  %s6714_s23 = int_to_ptr.vmem [resolvable:$true] %s3307_s23 }
 0x6bf   : > { %p5496_p13 = scmp.lt.s32.totalorder %s6714_s23, %s5494_s29 }
 0x6c8   : > { %v4556_v39 = vpop.eup %4555 }
 0x6c9   : > { %v1953_v40 = vmul.f32 %v4556_v39, %v4548_v17  ;;  %v2262_v39 = vpack.c.bf16 %v1482_v38, %v1482_v38 }
 0x6cb   : > { %v1957_v41 = vpack.c.bf16 %v1953_v40, %v1953_v40  ;;  %v4533_v40 = vld [vmem:[#allocation25] sm:$0xff]  }
 0x6cd   : > { %4001 = vmatmul.mubr.msk.bf16.vlgmr.msra.gmra.mrb[12].mxu1 %vm1719_vm2, %v1957_v41  ;;  %v4534_v41 = vld [vmem:[#allocation25 + $0x8] sm:$0xff]  }
 0x6ce   : > { %4012 = vmatprep.mubr.msk.bf16.mxu1 %vm5692_vm0, %v5691_v0 }
 0x726   : > { %v1942_v42 = vpop.xlane.xlu0 %1941 }
 0x727   : > { %4557 = vrcp.f32 %v1942_v42 }
 0x72a   : > { %v1945_v43 = vpop.xlane.xlu1 %1944 }
 0x72b   : > { %4559 = vrcp.f32 %v1945_v43 }
 0x72e   : > { %v1948_v44 = vpop.xlane.xlu0 %1947  ;;  %v1713_v45 = vpop.permute.xlu1 %1712 }
 0x72f   : > { %4561 = vrcp.f32 %v1948_v44  ;;  %v1718_v36 = vpack.c.bf16 %v1713_v45, %v1713_v45 }
 0x731   : > { %v4558_v46 = vpop.eup %4557  ;;  %v2104_v54 = vsel %vm1964_vm3, %v1718_v36, 0  ;;  %v3835_v36 = vld [vmem:[#allocation23] ss:$0 sm:$0xff] }
 0x732   : > { %v1954_v47 = vmul.f32 %v4558_v46, %v4550_v31  ;;  %v1710_v48 = vpop.permute.xlu0 %1709  ;;  %v3834_v46 = vld [vmem:[#allocation22] ss:$0 sm:$0xff] }
 0x733   : > { %v1717_v49 = vpack.c.bf16 %v1710_v48, %v1710_v48 }
 0x734   : > { %v1958_v50 = vpack.c.bf16 %v1954_v47, %v1954_v47 }
 0x735   : > { %v4560_v51 = vpop.eup %4559  ;;  %v2058_v52 = vsel %vm1964_vm3, %v1717_v49, 0 }
 0x736   : > { %v1955_v53 = vmul.f32 %v4560_v51, %v4552_v33  ;;  %4007 = vmatmul.mubr.msk.bf16.vlgmr.msra.gmra.mrb[16].mxu0 %vm1719_vm2, %v1958_v50  ;;  %4011 = vmatpush3.bf16.msra.mxu1 %v2058_v52  ;;  %v3840_v51 = vld [vmem:[#allocation29] ss:$0 sm:$0xff] }
 0x737   : > { %4017 = vmatpush3.bf16.msra.mxu0 %v2104_v54  ;;  %4018 = vmatprep.mubr.msk.bf16.mxu0 %vm5692_vm0, %v5691_v0 }
 0x738   : > { %v1959_v55 = vpack.c.bf16 %v1955_v53, %v1955_v53  ;;  %4022 = vmatprep.subr.bf16.mxu1 %v5691_v0  ;;  %4030 = vmatprep.subr.bf16.mxu0 %v5691_v0 }
 0x739   : > { %v4562_v56 = vpop.eup %4561 }
 0x73a   : > { %v1956_v57 = vmul.f32 %v4562_v56, %v4554_v35  ;;  %4013 = vmatmul.mubr.msk.bf16.vlgmr.msra.gmra.mrb[16].mxu1 %vm1719_vm2, %v1959_v55 }
 0x73b   : > { %4026 = vmatprep.mubr.msk.bf16.mxu1 %vm5692_vm0, %v5691_v0  ;;  %4023 = vmatpush3.bf16.msra.mxu1 %v4529_v63 }
 0x73c   : > { %v1960_v58 = vpack.c.bf16 %v1956_v57, %v1956_v57  ;;  %4024 = vmatprep.subr.bf16.mxu1 %v5691_v0 }
 0x73e   : > { %4019 = vmatmul.mubr.msk.bf16.vlgmr.msra.gmra.mrb[20].mxu0 %vm1719_vm2, %v1960_v58 }
 0x73f   : > { %4034 = vmatprep.mubr.msk.bf16.mxu0 %vm5692_vm0, %v5691_v0  ;;  %4025 = vmatpush3.bf16.msra.mxu1 %v4530_v1  ;;  %v3836_v1 = vld [vmem:[#allocation26] ss:$0 sm:$0xff] }
 0x740   : > { %4038 = vmatprep.subr.bf16.mxu1 %v5691_v0  ;;  %4031 = vmatpush3.bf16.msra.mxu0 %v4533_v40 }
 0x741   : > { %4032 = vmatprep.subr.bf16.mxu0 %v5691_v0 }
 0x744   : > { %4033 = vmatpush3.bf16.msra.mxu0 %v4534_v41 }
 0x745   : > { %4046 = vmatprep.subr.bf16.mxu0 %v5691_v0 }
 0x7a0   : > { %v2002_v59 = vpop.f32.mrb[12].mxu1 }
 0x7a1   : > { %v4002_v60 = vpop.f32.mrb[13].mxu1 }
 0x7a2   : > { %v2005_v61 = vpop.f32.mrb[14].mxu1  ;;  %v4536_v60 = vld [vmem:[#allocation31 + $0x8] sm:$0xff]  }
 0x7a3   : > { %v4003_v62 = vpop.f32.mrb[15].mxu1 }
 0x809   : > { %v2048_v2 = vpop.f32.mrb[16].mxu0 }
 0x80a   : > { %2147 = vrot.lane.b32.xlu1 %v2048_v2, %s5696_s24  ;;  %v4008_v3 = vpop.f32.mrb[17].mxu0 }
 0x80b   : > { %v2051_v4 = vpop.f32.mrb[18].mxu0 }
 0x80c   : > { %v4009_v6 = vpop.f32.mrb[19].mxu0 }
 0x80d   : > { %v2094_v7 = vpop.f32.mrb[16].mxu1 }
 0x80e   : > { %2151 = vrot.lane.b32.xlu0 %v2094_v7, %s5697_s4  ;;  %v4014_v8 = vpop.f32.mrb[17].mxu1 }
 0x80f   : > { %v2097_v9 = vpop.f32.mrb[18].mxu1 }
 0x810   : > { %v4015_v10 = vpop.f32.mrb[19].mxu1 }
 0x811   : > { %v2140_v11 = vpop.f32.mrb[20].mxu0 }
 0x812   : > { %2155 = vrot.lane.b32.xlu1 %v2140_v11, %s5698_s27  ;;  %v4020_v12 = vpop.f32.mrb[21].mxu0 }
 0x813   : > { %v2143_v13 = vpop.f32.mrb[22].mxu0 }
 0x814   : > { %v4021_v14 = vpop.f32.mrb[23].mxu0 }
 0x87c   : > { %v2148_v15 = vpop.permute.xlu1 %2147 }
 0x87d   : > { %v2158_v17 = vsel %vm1719_vm2, %v2002_v59, %v2148_v15  ;;  %v4535_v59 = vld [vmem:[#allocation31] sm:$0xff]  }
 0x880   : > { %v2152_v16 = vpop.permute.xlu0 %2151 }
 0x881   : > { %v2160_v18 = vsel %vm2159_vm4, %v2158_v17, %v2152_v16  ;;  %v3844_v16 = vld [vmem:[#allocation32] ss:$0 sm:$0xff] }
 0x884   : > { %v2156_v19 = vpop.permute.xlu1 %2155 }
 0x885   : > { %v2162_v20 = vsel %vm2161_vm5, %v2160_v18, %v2156_v19 }
 0x886   : > { %v2163_v21 = vpack.c.bf16 %v2162_v20, %v2162_v20 }
 0x888   : > { %4027 = vmatmul.mubr.msk.bf16.vlgmr.msra.gmra.mrb[20].mxu1 %vm1507_vm1, %v2163_v21 }
 0x889   : > { %4042 = vmatprep.mubr.msk.bf16.mxu1 %vm5692_vm0, %v5691_v0  ;;  %4039 = vmatpush3.bf16.msra.mxu1 %v4531_v37 }
 0x88a   : > { %4040 = vmatprep.subr.bf16.mxu1 %v5691_v0 }
 0x88d   : > { %4041 = vmatpush3.bf16.msra.mxu1 %v4532_v5 }
 0x88e   : > { %4054 = vmatprep.subr.bf16.mxu1 %v5691_v0 }
 0x890   : > { %4043 = vmatmul.mubr.msk.bf16.vlgmr.msra.gmra.mrb[24].mxu1 %vm1507_vm1, %v2262_v39 }
 0x891   : > { %4056 = vmatprep.mubr.msk.bf16.mxu1 %vm5692_vm0, %v5691_v0 }
 0x95b   : > { %v2224_v24 = vpop.f32.mrb[20].mxu1 }
 0x95c   : > { %v2225_v25 = vadd.f32 %v3830_v22, %v2224_v24  ;;  %v4028_v26 = vpop.f32.mrb[21].mxu1 }
 0x95d   : > { %v2227_v27 = vpop.f32.mrb[22].mxu1 }
 0x95e   : > { %v4029_v28 = vpop.f32.mrb[23].mxu1  ;;  %v2230_v29 = vadd.f32 %v2225_v25, %v1481_v23 }
 0x960   : > { %v2233_v30 = vsel %vm1507_vm1, %v2230_v29, 0.0 }
 0x961   : > { %2234 = vadd.xlane.f32.xlu0 %v2233_v30  ;;  %v3852_v30 = vld [vmem:[%s1272_s12] ss:$0 sm:$0xff]  ;;  %s5489_s12 = scalar_lea.vmem %s6714_s23, 128 }
 0x962   : > { %p5490_p6 = scmp.ne.s32.totalorder %s6714_s23, %s5489_s12 }
 0x963   : > { %v2389_v52 = vpop.f32.mrb[24].mxu1 }
 0x964   : > { %v2390_v53 = vadd.f32 %v3840_v51, %v2389_v52  ;;  %v4044_v54 = vpop.f32.mrb[25].mxu1  ;;  %p5491_p5 = pnand %p5490_p6, %p6933_p2 }
 0x965   : > { %v2392_v55 = vpop.f32.mrb[26].mxu1 }
 0x966   : > { %v4045_v56 = vpop.f32.mrb[27].mxu1  ;;  %v2482_v57 = vpack.c.bf16 %v2390_v53, %v2390_v53  ;;  %p5492_p9 = pneg %p5491_p5 }
 0x968   : > { %v2504_v58 = vsel %vm1719_vm2, %v2482_v57, 0 }
 0x969   : > { %4055 = vmatpush3.bf16.xpose.msra.mxu1 %v2504_v58 }
 0x96a   : > { %4066 = vmatprep.subr.bf16.mxu1 %v5691_v0 }
 0x977   : > { %2473 = vrot.lane.b32.xlu0 %v2390_v53, %s5693_s15 }
 0x9ee   : > { %v2235_v31 = vpop.xlane.xlu0 %2234 }
 0x9ef   : > { %v2237_v32 = vmul.f32 0.03125, %v2235_v31 }
 0x9f1   : > { %v2238_v33 = vsub.f32 %v2230_v29, %v2237_v32 }
 0x9f2   : > { %v2474_v61 = vpop.permute.xlu0 %2473 }
 0x9f3   : > { %v2239_v34 = vmul.f32 %v2238_v33, %v2238_v33  ;;  %v2483_v62 = vpack.c.bf16 %v2474_v61, %v2474_v61 }
 0x9f5   : > { %v2240_v35 = vsel %vm1507_vm1, %v2239_v34, 0.0  ;;  %v2550_v63 = vsel %vm1719_vm2, %v2483_v62, 0 }
 0x9f6   : > { %2241 = vadd.xlane.f32.xlu1 %v2240_v35 }
 0xa07   : > { %2476 = vrot.lane.b32.xlu1 %v2390_v53, %s5695_s25 }
 0xa0b   : > { %2479 = vrot.lane.b32.xlu1 %v2390_v53, %s5694_s26 }
 0xa83   : > { %v2242_v42 = vpop.xlane.xlu1 %2241 }
 0xa84   : > { %v2243_v43 = vmul.f32 0.03125, %v2242_v42 }
 0xa86   : > { %v2244_v44 = vadd.f32 1e-05, %v2243_v43 }
 0xa87   : > { %v2477_v2 = vpop.permute.xlu1 %2476 }
 0xa88   : > { %4563 = vrsqrt.f32 %v2244_v44  ;;  %v2484_v3 = vpack.c.bf16 %v2477_v2, %v2477_v2 }
 0xa8a   : > { %v2596_v11 = vsel %vm1719_vm2, %v2484_v3, 0 }
 0xa8b   : > { %v2480_v17 = vpop.permute.xlu1 %2479 }
 0xa8c   : > { %v2485_v19 = vpack.c.bf16 %v2480_v17, %v2480_v17 }
 0xa8e   : > { %v2642_v23 = vsel %vm1719_vm2, %v2485_v19, 0 }
 0xa92   : > { %v4564_v45 = vpop.eup %4563 }
 0xa93   : > { %v2246_v47 = vmul.f32 %v4564_v45, %v2238_v33 }
 0xa95   : > { %v2253_v48 = vmul.f32 %v3834_v46, %v2246_v47 }
 0xa97   : > { %v6604_v49 = vadd.f32 %v3835_v36, %v2253_v48 }
 0xa99   : > { %v2261_v50 = vpack.c.bf16 %v6604_v49, %v6604_v49 }
 0xa9b   : > { %4035 = vmatmul.mubr.msk.bf16.vlgmr.msra.gmra.mrb[24].mxu0 %vm1507_vm1, %v2261_v50 }
 0xa9c   : > { %4050 = vmatprep.mubr.msk.bf16.mxu0 %vm5692_vm0, %v5691_v0  ;;  %4047 = vmatpush3.bf16.msra.mxu0 %v4535_v59 }
 0xa9d   : > { %4048 = vmatprep.subr.bf16.mxu0 %v5691_v0 }
 0xaa0   : > { %4049 = vmatpush3.bf16.msra.mxu0 %v4536_v60 }
 0xaa1   : > { %4060 = vmatprep.subr.bf16.mxu0 %v5691_v0 }
 0xaa3   : > { %4051 = vmatmul.mubr.msk.bf16.vlgmr.msra.gmra.mrb[28].mxu0 %vm1507_vm1, %v2262_v39 }
 0xaa4   : > { %4062 = vmatprep.mubr.msk.bf16.mxu0 %vm5692_vm0, %v5691_v0 }
 0xaa9   : > { %4061 = vmatpush3.bf16.xpose.msra.mxu0 %v2550_v63 }
 0xaaa   : > { %4072 = vmatprep.subr.bf16.mxu0 %v5691_v0 }
 0xb6e   : > { %v2323_v4 = vpop.f32.mrb[24].mxu0 }
 0xb6f   : > { %v2324_v6 = vadd.f32 %v3836_v1, %v2323_v4  ;;  %v4036_v7 = vpop.f32.mrb[25].mxu0 }
 0xb70   : > { %v2326_v8 = vpop.f32.mrb[26].mxu0 }
 0xb71   : > { %v2468_v9 = vpack.c.bf16 %v2324_v6, %v2324_v6  ;;  %2465 = vrot.lane.b32.xlu1 %v2324_v6, %s5694_s26  ;;  %2459 = vrot.lane.b32.xlu0 %v2324_v6, %s5693_s15  ;;  %v4037_v10 = vpop.f32.mrb[27].mxu0 }
 0xb73   : > { %4057 = vmatmul.mubr.msk.bf16.vlgmr.msra.gmra.mrb[28].mxu1 %vm1719_vm2, %v2468_v9 }
 0xb74   : > { %4067 = vmatpush3.bf16.xpose.msra.mxu1 %v2596_v11  ;;  %4068 = vmatprep.mubr.msk.bf16.mxu1 %vm5692_vm0, %v5691_v0 }
 0xb75   : > { %2462 = vrot.lane.b32.xlu0 %v2324_v6, %s5695_s25  ;;  %4078 = vmatprep.subr.bf16.mxu1 %v5691_v0 }
 0xb76   : > { %v2452_v12 = vpop.f32.mrb[28].mxu0 }
 0xb77   : > { %v4052_v13 = vpop.f32.mrb[29].mxu0  ;;  %v6631_v18 = vadd.f32 %v3844_v16, %v2452_v12 }
 0xb78   : > { %v2455_v14 = vpop.f32.mrb[30].mxu0 }
 0xb79   : > { %v4053_v15 = vpop.f32.mrb[31].mxu0  ;;  %v2496_v22 = vpack.c.bf16 %v6631_v18, %v6631_v18 }
 0xb7b   : > { %v2751_v26 = vsel %vm1964_vm3, %v2496_v22, 0 }
 0xbe3   : > { %v2460_v20 = vpop.permute.xlu0 %2459  ;;  %v2466_v27 = vpop.permute.xlu1 %2465 }
 0xbe4   : > { %v2469_v21 = vpack.c.bf16 %v2460_v20, %v2460_v20  ;;  %v2471_v28 = vpack.c.bf16 %v2466_v27, %v2466_v27 }
 0xbe6   : > { %4063 = vmatmul.mubr.msk.bf16.vlgmr.msra.gmra.mrb[32].mxu0 %vm1719_vm2, %v2469_v21 }
 0xbe7   : > { %4073 = vmatpush3.bf16.xpose.msra.mxu0 %v2642_v23  ;;  %v2463_v24 = vpop.permute.xlu0 %2462  ;;  %4074 = vmatprep.mubr.msk.bf16.mxu0 %vm5692_vm0, %v5691_v0 }
 0xbe8   : > { %v2470_v25 = vpack.c.bf16 %v2463_v24, %v2463_v24  ;;  %4084 = vmatprep.subr.bf16.mxu0 %v5691_v0 }
 0xbea   : > { %4069 = vmatmul.mubr.msk.bf16.vlgmr.msra.gmra.mrb[32].mxu1 %vm1719_vm2, %v2470_v25 }
 0xbeb   : > { %4079 = vmatpush3.bf16.msra.mxu1 %v2751_v26  ;;  %4080 = vmatprep.mubr.msk.bf16.mxu1 %vm5692_vm0, %v5691_v0 }
 0xbec   : > { %4090 = vmatprep.subr.bf16.mxu1 %v5691_v0 }
 0xbee   : > { %4075 = vmatmul.mubr.msk.bf16.vlgmr.msra.gmra.mrb[36].mxu0 %vm1719_vm2, %v2471_v28 }
 0xbef   : > { %4086 = vmatprep.mubr.msk.bf16.mxu0 %vm5692_vm0, %v5691_v0 }
 0xc46   : > { %v2540_v29 = vpop.f32.mrb[28].mxu1 }
 0xc47   : > { %v2684_v31 = vmul.f32 0.35355338, %v2540_v29  ;;  %v4058_v32 = vpop.f32.mrb[29].mxu1 }
 0xc48   : > { %v2543_v33 = vpop.f32.mrb[30].mxu1 }
 0xc49   : > { %v4059_v34 = vpop.f32.mrb[31].mxu1  ;;  %v2695_v35 = vadd.f32 %v3852_v30, %v2684_v31 }
 0xc4b   : > { %v2699_v37 = vsel %vm1719_vm2, %v2695_v35, -inf }
 0xc4c   : > { %2700 = vmax.xlane.f32.xlu0 %v2699_v37 }
 0xcb9   : > { %v2586_v5 = vpop.f32.mrb[32].mxu0 }
 0xcba   : > { %v2685_v38 = vmul.f32 0.35355338, %v2586_v5  ;;  %v4064_v39 = vpop.f32.mrb[33].mxu0 }
 0xcbb   : > { %v2589_v40 = vpop.f32.mrb[34].mxu0 }
 0xcbc   : > { %v4065_v41 = vpop.f32.mrb[35].mxu0  ;;  %v2696_v42 = vadd.f32 %v3852_v30, %v2685_v38 }
 0xcbd   : > { %v2632_v43 = vpop.f32.mrb[32].mxu1 }
 0xcbe   : > { %v2686_v44 = vmul.f32 0.35355338, %v2632_v43  ;;  %v4070_v45 = vpop.f32.mrb[33].mxu1  ;;  %v2702_v46 = vsel %vm1719_vm2, %v2696_v42, -inf }
 0xcbf   : > { %2703 = vmax.xlane.f32.xlu1 %v2702_v46  ;;  %v2635_v47 = vpop.f32.mrb[34].mxu1  ;;  %v4537_v45 = vld [vmem:[#allocation34] sm:$0xff]   ;;  %v4538_v46 = vld [vmem:[#allocation34 + $0x8] sm:$0xff]  }
 0xcc0   : > { %v4071_v36 = vpop.f32.mrb[35].mxu1  ;;  %v2697_v48 = vadd.f32 %v3852_v30, %v2686_v44 }
 0xcc1   : > { %v2678_v50 = vpop.f32.mrb[36].mxu0 }
 0xcc2   : > { %v2687_v51 = vmul.f32 0.35355338, %v2678_v50  ;;  %v4076_v52 = vpop.f32.mrb[37].mxu0  ;;  %v2705_v53 = vsel %vm1719_vm2, %v2697_v48, -inf }
 0xcc3   : > { %v2681_v54 = vpop.f32.mrb[38].mxu0  ;;  %2706 = vmax.xlane.f32.xlu0 %v2705_v53 }
 0xcc4   : > { %v4077_v55 = vpop.f32.mrb[39].mxu0  ;;  %v2698_v56 = vadd.f32 %v3852_v30, %v2687_v51 }
 0xcc6   : > { %v2708_v57 = vsel %vm1719_vm2, %v2698_v56, -inf }
 0xcc7   : > { %2709 = vmax.xlane.f32.xlu0 %v2708_v57 }
 0xcd0   : > { %2487 = vrot.lane.b32.xlu1 %v6631_v18, %s5693_s15  ;;  %s5495_s15 = scalar_lea.vmem %s5494_s29, 256 }
 0xcd1   : > { %p5497_p0 = scmp.lt.s32.totalorder %s5495_s15, %s5489_s12 }
 0xcd3   : > { %p5498_p7 = por %p5497_p0, %p5496_p13 }
 0xcd5   : > { %p5499_p4 = pnand %p5498_p7, %p5492_p9 }
 0xcd9   : > { %v2701_v58 = vpop.xlane.xlu0 %2700 }
 0xcda   : > { %v2711_v59 = vsub.f32 %v2695_v35, %v2701_v58 }
 0xcdc   : > { %v2715_v60 = vmul.f32 1.442695, %v2711_v59 }
 0xcde   : > { %4565 = vpow2.f32 %v2715_v60 }
 0xce8   : > { %v4566_v61 = vpop.eup %4565 }
 0xce9   : > { %v2723_v62 = vsel %vm1719_vm2, %v4566_v61, 0.0 }
 0xcf4   : > { %2724 = vadd.xlane.f32.xlu1 %v2723_v62 }
 0xd4c   : > { %v2704_v63 = vpop.xlane.xlu1 %2703 }
 0xd4d   : > { %v2712_v1 = vsub.f32 %v2696_v42, %v2704_v63 }
 0xd4f   : > { %v2717_v2 = vmul.f32 1.442695, %v2712_v1 }
 0xd50   : > { %v2488_v3 = vpop.permute.xlu1 %2487  ;;  %v2707_v4 = vpop.xlane.xlu0 %2706 }
 0xd51   : > { %4567 = vpow2.f32 %v2717_v2  ;;  %v2497_v6 = vpack.c.bf16 %v2488_v3, %v2488_v3  ;;  %v2713_v7 = vsub.f32 %v2697_v48, %v2707_v4  ;;  %v3857_v3 = vld [vmem:[#allocation35] ss:$0 sm:$0xff] }
 0xd53   : > { %v2797_v8 = vsel %vm1964_vm3, %v2497_v6, 0  ;;  %v2719_v9 = vmul.f32 1.442695, %v2713_v7 }
 0xd54   : > { %4085 = vmatpush3.bf16.msra.mxu0 %v2797_v8  ;;  %v2710_v10 = vpop.xlane.xlu0 %2709 }
 0xd55   : > { %4569 = vpow2.f32 %v2719_v9  ;;  %v2714_v11 = vsub.f32 %v2698_v56, %v2710_v10  ;;  %4096 = vmatprep.subr.bf16.mxu0 %v5691_v0 }
 0xd57   : > { %v2721_v12 = vmul.f32 1.442695, %v2714_v11 }
 0xd59   : > { %4571 = vpow2.f32 %v2721_v12 }
 0xd5b   : > { %v4568_v13 = vpop.eup %4567 }
 0xd5c   : > { %v2726_v14 = vsel %vm1719_vm2, %v4568_v13, 0.0 }
 0xd5d   : > { %2727 = vadd.xlane.f32.xlu0 %v2726_v14 }
 0xd5f   : > { %v4570_v15 = vpop.eup %4569 }
 0xd60   : > { %v2729_v16 = vsel %vm1719_vm2, %v4570_v15, 0.0 }
 0xd61   : > { %2730 = vadd.xlane.f32.xlu1 %v2729_v16 }
 0xd63   : > { %v4572_v17 = vpop.eup %4571 }
 0xd64   : > { %v2732_v19 = vsel %vm1719_vm2, %v4572_v17, 0.0 }
 0xd65   : > { %2733 = vadd.xlane.f32.xlu0 %v2732_v19  ;;  %v4540_v19 = vld [vmem:[#allocation40 + $0x8] sm:$0xff]  }
 0xd72   : > { %2493 = vrot.lane.b32.xlu1 %v6631_v18, %s5694_s26 }
 0xd7b   : > { %2490 = vrot.lane.b32.xlu0 %v6631_v18, %s5695_s25 }
 0xd81   : > { %v2725_v20 = vpop.xlane.xlu1 %2724 }
 0xd82   : > { %4573 = vrcp.f32 %v2725_v20  ;;  %v4541_v20 = vld [vmem:[#allocation43] sm:$0xff]  }
 0xd8c   : > { %v4574_v21 = vpop.eup %4573 }
 0xd8d   : > { %v2739_v22 = vmul.f32 %v4574_v21, %v4566_v61 }
 0xd8f   : > { %v2743_v23 = vpack.c.bf16 %v2739_v22, %v2739_v22 }
 0xd91   : > { %4081 = vmatmul.mubr.msk.bf16.vlgmr.msra.gmra.mrb[36].mxu1 %vm1719_vm2, %v2743_v23 }
 0xd92   : > { %4092 = vmatprep.mubr.msk.bf16.mxu1 %vm5692_vm0, %v5691_v0 }
 0xdea   : > { %v2728_v24 = vpop.xlane.xlu0 %2727 }
 0xdeb   : > { %4575 = vrcp.f32 %v2728_v24 }
 0xdee   : > { %v2731_v25 = vpop.xlane.xlu1 %2730 }
 0xdef   : > { %4577 = vrcp.f32 %v2731_v25  ;;  %v3861_v25 = vld [vmem:[#allocation37] ss:$0 sm:$0xff] }
 0xdf2   : > { %v2734_v26 = vpop.xlane.xlu0 %2733  ;;  %v2494_v27 = vpop.permute.xlu1 %2493 }
 0xdf3   : > { %4579 = vrcp.f32 %v2734_v26  ;;  %v2499_v18 = vpack.c.bf16 %v2494_v27, %v2494_v27  ;;  %v3862_v27 = vld [vmem:[#allocation38] ss:$0 sm:$0xff] }
 0xdf5   : > { %v4576_v28 = vpop.eup %4575  ;;  %v2889_v37 = vsel %vm1964_vm3, %v2499_v18, 0 }
 0xdf6   : > { %v2740_v29 = vmul.f32 %v4576_v28, %v4568_v13  ;;  %v2491_v30 = vpop.permute.xlu0 %2490 }
 0xdf7   : > { %v2498_v31 = vpack.c.bf16 %v2491_v30, %v2491_v30  ;;  %v4543_v30 = vld [vmem:[#allocation43 + $0x10] sm:$0xff]  }
 0xdf8   : > { %v2744_v32 = vpack.c.bf16 %v2740_v29, %v2740_v29 }
 0xdf9   : > { %v4578_v33 = vpop.eup %4577  ;;  %v2843_v34 = vsel %vm1964_vm3, %v2498_v31, 0  ;;  %v4544_v31 = vld [vmem:[#allocation43 + $0x18] sm:$0xff]  }
 0xdfa   : > { %v2741_v35 = vmul.f32 %v4578_v33, %v4570_v15  ;;  %4087 = vmatmul.mubr.msk.bf16.vlgmr.msra.gmra.mrb[40].mxu0 %vm1719_vm2, %v2744_v32  ;;  %4091 = vmatpush3.bf16.msra.mxu1 %v2843_v34  ;;  %v3863_v32 = vld [vmem:[#allocation41] ss:$0 sm:$0xff] }
 0xdfb   : > { %4097 = vmatpush3.bf16.msra.mxu0 %v2889_v37  ;;  %4098 = vmatprep.mubr.msk.bf16.mxu0 %vm5692_vm0, %v5691_v0 }
 0xdfc   : > { %v2745_v5 = vpack.c.bf16 %v2741_v35, %v2741_v35  ;;  %4102 = vmatprep.subr.bf16.mxu1 %v5691_v0  ;;  %4110 = vmatprep.subr.bf16.mxu0 %v5691_v0 }
 0xdfd   : > { %v4580_v38 = vpop.eup %4579 }
 0xdfe   : > { %v2742_v39 = vmul.f32 %v4580_v38, %v4572_v17  ;;  %4093 = vmatmul.mubr.msk.bf16.vlgmr.msra.gmra.mrb[40].mxu1 %vm1719_vm2, %v2745_v5  ;;  %v4539_v17 = vld [vmem:[#allocation40] sm:$0xff]  }
 0xdff   : > { %4106 = vmatprep.mubr.msk.bf16.mxu1 %vm5692_vm0, %v5691_v0  ;;  %4103 = vmatpush3.bf16.msra.mxu1 %v4537_v45 }
 0xe00   : > { %v2746_v40 = vpack.c.bf16 %v2742_v39, %v2742_v39  ;;  %4104 = vmatprep.subr.bf16.mxu1 %v5691_v0 }
 0xe02   : > { %4099 = vmatmul.mubr.msk.bf16.vlgmr.msra.gmra.mrb[44].mxu0 %vm1719_vm2, %v2746_v40  ;;  %v3867_v40 = vld [vmem:[#allocation44] ss:$0 sm:$0xff] }
 0xe03   : > { %4114 = vmatprep.mubr.msk.bf16.mxu0 %vm5692_vm0, %v5691_v0  ;;  %4105 = vmatpush3.bf16.msra.mxu1 %v4538_v46 }
 0xe04   : > { %4118 = vmatprep.subr.bf16.mxu1 %v5691_v0  ;;  %4111 = vmatpush3.bf16.msra.mxu0 %v4539_v17 }
 0xe05   : > { %4112 = vmatprep.subr.bf16.mxu0 %v5691_v0 }
 0xe08   : > { %4113 = vmatpush3.bf16.msra.mxu0 %v4540_v19 }
 0xe09   : > { %4130 = vmatprep.subr.bf16.mxu0 %v5691_v0 }
 0xe64   : > { %v2787_v41 = vpop.f32.mrb[36].mxu1 }
 0xe65   : > { %v4082_v42 = vpop.f32.mrb[37].mxu1 }
 0xe66   : > { %v2790_v43 = vpop.f32.mrb[38].mxu1 }
 0xe67   : > { %v4083_v44 = vpop.f32.mrb[39].mxu1 }
 0xecd   : > { %v2833_v47 = vpop.f32.mrb[40].mxu0 }
 0xece   : > { %2932 = vrot.lane.b32.xlu1 %v2833_v47, %s5696_s24  ;;  %v4088_v36 = vpop.f32.mrb[41].mxu0 }
 0xecf   : > { %v2836_v48 = vpop.f32.mrb[42].mxu0 }
 0xed0   : > { %v4089_v50 = vpop.f32.mrb[43].mxu0 }
 0xed1   : > { %v2879_v51 = vpop.f32.mrb[40].mxu1 }
 0xed2   : > { %2936 = vrot.lane.b32.xlu0 %v2879_v51, %s5697_s4  ;;  %v4094_v52 = vpop.f32.mrb[41].mxu1 }
 0xed3   : > { %v2882_v53 = vpop.f32.mrb[42].mxu1 }
 0xed4   : > { %v4095_v54 = vpop.f32.mrb[43].mxu1  ;;  %v4545_v53 = vld [vmem:[#allocation49] sm:$0xff]  }
 0xed5   : > { %v2925_v55 = vpop.f32.mrb[44].mxu0  ;;  %v4546_v54 = vld [vmem:[#allocation49 + $0x8] sm:$0xff]  }
 0xed6   : > { %2940 = vrot.lane.b32.xlu1 %v2925_v55, %s5698_s27  ;;  %v4100_v56 = vpop.f32.mrb[45].mxu0 }
 0xed7   : > { %v2928_v57 = vpop.f32.mrb[46].mxu0 }
 0xed8   : > { %v4101_v58 = vpop.f32.mrb[47].mxu0 }
 0xf40   : > { %v2933_v59 = vpop.permute.xlu1 %2932 }
 0xf41   : > { %v2943_v61 = vsel %vm1719_vm2, %v2787_v41, %v2933_v59  ;;  %v3873_v59 = vld [vmem:[#allocation46] ss:$0 sm:$0xff] }
 0xf44   : > { %v2937_v60 = vpop.permute.xlu0 %2936 }
 0xf45   : > { %v2944_v62 = vsel %vm2159_vm4, %v2943_v61, %v2937_v60  ;;  %v3874_v61 = vld [vmem:[#allocation47] ss:$0 sm:$0xff] }
 0xf48   : > { %v2941_v63 = vpop.permute.xlu1 %2940 }
 0xf49   : > { %v2945_v1 = vsel %vm2161_vm5, %v2944_v62, %v2941_v63 }
 0xf4a   : > { %v2946_v2 = vpack.c.bf16 %v2945_v1, %v2945_v1 }
 0xf4c   : > { %4107 = vmatmul.mubr.msk.bf16.vlgmr.msra.gmra.mrb[44].mxu1 %vm1507_vm1, %v2946_v2  ;;  %v3875_v2 = vld [vmem:[#allocation50] ss:$0 sm:$0xff] }
 0xf4d   : > { %4126 = vmatprep.mubr.msk.bf16.mxu1 %vm5692_vm0, %v5691_v0  ;;  %4119 = vmatpush3.bf16.msra.mxu1 %v4541_v20 }
 0xf4e   : > { %4120 = vmatprep.subr.bf16.mxu1 %v5691_v0 }
0x101f   : > { %v3007_v4 = vpop.f32.mrb[44].mxu1 }
0x1020   : > { %v3008_v6 = vadd.f32 %v3857_v3, %v3007_v4  ;;  %v4108_v7 = vpop.f32.mrb[45].mxu1 }
0x1021   : > { %v3010_v8 = vpop.f32.mrb[46].mxu1 }
0x1022   : > { %v4109_v9 = vpop.f32.mrb[47].mxu1  ;;  %v3013_v10 = vadd.f32 %v3008_v6, %v6604_v49  ;;  %v4542_v49 = vld [vmem:[#allocation43 + $0x8] sm:$0xff]  }
0x1023   : > { %4121 = vmatpush3.bf16.msra.mxu1 %v4542_v49 }
0x1024   : > { %v3016_v11 = vsel %vm1507_vm1, %v3013_v10, 0.0  ;;  %4122 = vmatprep.subr.bf16.mxu1 %v5691_v0 }
0x1025   : > { %3017 = vadd.xlane.f32.xlu0 %v3016_v11 }
0x1027   : > { %4123 = vmatpush3.bf16.msra.mxu1 %v4543_v30 }
0x1028   : > { %4124 = vmatprep.subr.bf16.mxu1 %v5691_v0 }
0x102b   : > { %4125 = vmatpush3.bf16.msra.mxu1 %v4544_v31 }
0x10b2   : > { %v3018_v12 = vpop.xlane.xlu0 %3017 }
0x10b3   : > { %v3019_v13 = vmul.f32 0.03125, %v3018_v12 }
0x10b5   : > { %v3020_v14 = vsub.f32 %v3013_v10, %v3019_v13 }
0x10b7   : > { %v3021_v15 = vmul.f32 %v3020_v14, %v3020_v14 }
0x10b9   : > { %v3022_v16 = vsel %vm1507_vm1, %v3021_v15, 0.0 }
0x10ba   : > { %3023 = vadd.xlane.f32.xlu1 %v3022_v16 }
0x1147   : > { %v3024_v21 = vpop.xlane.xlu1 %3023 }
0x1148   : > { %v3025_v22 = vmul.f32 0.03125, %v3024_v21 }
0x114a   : > { %v3026_v23 = vadd.f32 1e-05, %v3025_v22 }
0x114c   : > { %4581 = vrsqrt.f32 %v3026_v23 }
0x1156   : > { %v4582_v24 = vpop.eup %4581 }
0x1157   : > { %v3028_v26 = vmul.f32 %v4582_v24, %v3020_v14 }
0x1159   : > { %v3035_v28 = vmul.f32 %v3861_v25, %v3028_v26 }
0x115b   : > { %v3042_v29 = vadd.f32 %v3862_v27, %v3035_v28 }
0x115d   : > { %v3043_v18 = vpack.c.bf16 %v3042_v29, %v3042_v29 }
0x115f   : > { %4115 = vmatmul.mubr.msk.bf16.vlgmr.msra.gmra.mrb[48].mxu0 %vm1507_vm1, %v3043_v18 }
0x1160   : > { %4134 = vmatprep.mubr.msk.bf16.mxu0 %vm5692_vm0, %v5691_v0  ;;  %4131 = vmatpush3.bf16.msra.mxu0 %v4545_v53 }
0x1161   : > { %4132 = vmatprep.subr.bf16.mxu0 %v5691_v0 }
0x1164   : > { %4133 = vmatpush3.bf16.msra.mxu0 %v4546_v54 }
0x1232   : > { %v3104_v33 = vpop.f32.mrb[48].mxu0 }
0x1233   : > { %v3105_v34 = vadd.f32 %v3863_v32, %v3104_v33  ;;  %v4116_v35 = vpop.f32.mrb[49].mxu0 }
0x1234   : > { %v3107_v37 = vpop.f32.mrb[50].mxu0 }
0x1235   : > { %v3110_v5 = vmax.f32 %v3105_v34, 0.0  ;;  %v4117_v38 = vpop.f32.mrb[51].mxu0 }
0x1237   : > { %v3111_v39 = vpack.c.bf16 %v3110_v5, %v3110_v5 }
0x1239   : > { %4127 = vmatmul.mubr.msk.bf16.vlgmr.msra.gmra.mrb[48].mxu1 %vm3151_vm6, %v3111_v39 }
0x130c   : > { %v3189_v41 = vpop.f32.mrb[48].mxu1 }
0x130d   : > { %v3190_v42 = vadd.f32 %v3867_v40, %v3189_v41  ;;  %v4128_v43 = vpop.f32.mrb[49].mxu1 }
0x130e   : > { %v3192_v44 = vpop.f32.mrb[50].mxu1 }
0x130f   : > { %v4129_v45 = vpop.f32.mrb[51].mxu1  ;;  %v3195_v46 = vadd.f32 %v3190_v42, %v3042_v29 }
0x1311   : > { %v3198_v47 = vsel %vm1507_vm1, %v3195_v46, 0.0 }
0x1312   : > { %3199 = vadd.xlane.f32.xlu0 %v3198_v47 }
0x139f   : > { %v3200_v36 = vpop.xlane.xlu0 %3199 }
0x13a0   : > { %v3201_v48 = vmul.f32 0.03125, %v3200_v36 }
0x13a2   : > { %v3202_v50 = vsub.f32 %v3195_v46, %v3201_v48 }
0x13a4   : > { %v3203_v51 = vmul.f32 %v3202_v50, %v3202_v50 }
0x13a6   : > { %v3204_v52 = vsel %vm1507_vm1, %v3203_v51, 0.0 }
0x13a7   : > { %3205 = vadd.xlane.f32.xlu0 %v3204_v52 }
0x1434   : > { %v3206_v55 = vpop.xlane.xlu0 %3205 }
0x1435   : > { %v3207_v56 = vmul.f32 0.03125, %v3206_v55 }
0x1437   : > { %v3208_v57 = vadd.f32 1e-05, %v3207_v56 }
0x1439   : > { %4583 = vrsqrt.f32 %v3208_v57 }
0x1443   : > { %v4584_v58 = vpop.eup %4583 }
0x1444   : > { %v3210_v60 = vmul.f32 %v4584_v58, %v3202_v50 }
0x1446   : > { %v3217_v62 = vmul.f32 %v3873_v59, %v3210_v60 }
0x1448   : > { %v3224_v63 = vadd.f32 %v3874_v61, %v3217_v62 }
0x144a   : > { %v3225_v1 = vpack.c.bf16 %v3224_v63, %v3224_v63 }
0x144c   : > { %4135 = vmatmul.mubr.msk.bf16.vlgmr.msra.gmra.mrb[52].mxu0 %vm1507_vm1, %v3225_v1 }
0x151f   : > { %v3286_v0 = vpop.f32.mrb[52].mxu0 }
0x1520   : > { %v3287_v3 = vadd.f32 %v3875_v2, %v3286_v0  ;;  %v4136_v4 = vpop.f32.mrb[53].mxu0 }
0x1521   : > { %v3289_v6 = vpop.f32.mrb[54].mxu0 }
0x1522   : > { %v4137_v7 = vpop.f32.mrb[55].mxu0  ;;  %3292 = vst.msk [vmem:[%s1478_s6] sm:$0xff] %vm3151_vm6, %v3287_v3 }
0x1523   : > { %5502 = shalt.err (!%p5499_p4)
}
0x1524   : > { %s5503_s19 = scalar_lea.hbm %s6712_s5, 128  ;;  %s5507_s26 = scalar_lea.hbm %s6932_s22, 256 }
0x1525   : > { %p5504_p10 = scmp.ne.s32.totalorder %s6712_s5, %s5503_s19  ;;  %p5508_p8 = scmp.lt.u32.totalorder %s6712_s5, %s6932_s22 }
0x1526   : > { %p5509_p11 = scmp.lt.u32.totalorder %s5507_s26, %s5503_s19  ;;  %p5511_p6 = scmp.lt.u32.totalorder %s5503_s19, %s6712_s5 }
0x1527   : > { %p5505_p12 = pnand %p5504_p10, %p6933_p2 }
0x1528   : > { %p5510_p1 = por %p5509_p11, %p5508_p8 }
0x1529   : > { %p5506_p3 = pneg %p5505_p12 }
0x152a   : > { %p5512_p5 = por %p5511_p6, %p5510_p1 }
0x152c   : > { %p5513_p9 = pnand %p5512_p5, %p5506_p3 }
0x152e   : > { %5516 = shalt.err (!%p5513_p9)
}
0x152f   : > { %4258 = dma.vmem_to_hbm [thread:$0]  (%p6933_p2), %s6714_s23, 128, %s6712_s5, %s3294_s9  }
0x1530 PF: > { %s3319_s25 = sand.u32 1, %s5611_s0   ;;  %p6934_p13 = scmp.ne.s32.totalorder %s6871_s10, 0 }
0x1531   : > { %p6935_p0 = scmp.ge.s32.totalorder %s5623_s2, 2  ;;  %s3320_s24 = scalar_lea.sflag [#allocation4], %s3319_s25 }
0x1533   : > { %p4359_p7 = pnand %p6935_p0, %p6934_p13 }
0x1535   : > { %5606 = dma.done.wait (!%p4359_p7), %s3320_s24, 128  }
0x1536   : > { %5608 = vsyncadd (!%p4359_p7), %s3320_s24, 4294967168  ;;  %p98_p4 = scmp.ge.s32.totalorder %s6083_s18, 4   ;;  %s6936_s0 = smov %s5615_s28 }
0x1537   : > { %s6937_s28 = smov %s5619_s1  ;;  %s6938_s1 = smov %s6094_s7 }
0x1538   : > { %s6939_s2 = smov %s6083_s18  ;;  %100 = sbr.rel (!%p98_p4) target bundleno = 93 (0x5d), region = 374 }
0x153f   :  { %3325 = vsyncpa [#allocation3], 1 }
0x1540   :  { %3327 = vsyncpa [#allocation3 + $0x1], 1 }
0x1541   :  { %3328 = vsyncpa [#allocation6], 1 }
0x1542   :  { %3330 = vsyncpa [#allocation6 + $0x1], 1 }
0x1543   :  { %3331 = vsyncpa [#allocation9], 1 }
0x1544   :  { %3333 = vsyncpa [#allocation9 + $0x1], 1 }
0x1545   :  { %3334 = vsyncpa [#allocation12], 1 }
0x1546   :  { %3335 = vsyncpa [#allocation15], 1 }
0x1547   :  { %3336 = vsyncpa [#allocation18], 1 }
0x1548   :  { %3337 = vsyncpa [#allocation21], 1 }
0x1549   :  { %3338 = vsyncpa [#allocation24], 1 }
0x154a   :  { %3339 = vsyncpa [#allocation27], 1 }
0x154b   :  { %3340 = vsyncpa [#allocation30], 1 }
0x154c   :  { %3341 = vsyncpa [#allocation33], 1 }
0x154d   :  { %3342 = vsyncpa [#allocation36], 1 }
0x154e   :  { %3343 = vsyncpa [#allocation39], 1 }
0x154f   :  { %3344 = vsyncpa [#allocation42], 1 }
0x1550   :  { %3345 = vsyncpa [#allocation45], 1 }
0x1551   :  { %3346 = vsyncpa [#allocation48], 1 }
0x1552   :  { %3347 = vsyncpa [#allocation51], 1 }
0x1553   :  { %3348 = vsyncpa [#allocation4], 1 }
0x1554   :  { %3350 = vsyncpa [#allocation4 + $0x1], 1 }

// kernel: decoder_forward.2
= control target key start
LH: loop header
LB: loop body
LE: loop exit
PB: predicated region body
PF: predicated region fallthrough
CT: control target
= control target key end

     0   :  { %s5652_s6 = smov 1   ;;  %s5653_s10 = smov 2   ;;  %s6751_s0 = inlined_call_operand.smem [shape: u32[34], index: -1, kind: input, shape index: {}] }
   0x1   :  { %s5737_s5 = sld [smem:[%s6751_s0]]   ;;  %s5654_s14 = smov 3  }
   0x2   :  { %s5742_s9 = sld [smem:[%s6751_s0 + %s5652_s6]]   ;;  %s5655_s18 = smov 4  }
   0x3   :  { %s5747_s13 = sld [smem:[%s6751_s0 + %s5653_s10]]   ;;  %s5656_s22 = smov 5  }
   0x4   :  { %s5752_s17 = sld [smem:[%s6751_s0 + %s5654_s14]]   ;;  %s5657_s26 = smov 6  }
   0x5   :  { %s5757_s21 = sld [smem:[%s6751_s0 + %s5655_s18]]   ;;  %s5658_s30 = smov 7  }
   0x6   :  { %s5762_s25 = sld [smem:[%s6751_s0 + %s5656_s22]]   ;;  %s5659_s4 = smov 8  }
   0x7   :  { %6820 = sst [smem:[#allocation71_spill]] %s5737_s5  ;;  %s5660_s10 = smov 9  }
   0x8   :  { %6821 = sst [smem:[#allocation72_spill]] %s5742_s9  ;;  %s5661_s15 = smov 10  }
   0x9   :  { %6822 = sst [smem:[#allocation73_spill]] %s5747_s13  ;;  %s5662_s20 = smov 11  }
   0xa   :  { %s5767_s29 = sld [smem:[%s6751_s0 + %s5657_s26]]   ;;  %s5663_s26 = smov 12  }
   0xb   :  { %s5772_s3 = sld [smem:[%s6751_s0 + %s5658_s30]]   ;;  %s5664_s1 = smov 13  }
   0xc   :  { %6823 = sst [smem:[#allocation74_spill]] %s5762_s25  ;;  %s5665_s7 = smov 14  }
   0xd   :  { %s5777_s8 = sld [smem:[%s6751_s0 + %s5659_s4]]   ;;  %s5667_s22 = smov 16  }
   0xe   :  { %s5782_s14 = sld [smem:[%s6751_s0 + %s5660_s10]]   ;;  %s5668_s28 = smov 17  }
   0xf   :  { %s5787_s19 = sld [smem:[%s6751_s0 + %s5661_s15]]   ;;  %s5666_s15 = smov 15  }
  0x10   :  { %6824 = sst [smem:[#allocation75_spill]] %s5767_s29 }
  0x11   :  { %6825 = sst [smem:[#allocation76_spill]] %s5772_s3 }
  0x12   :  { %s5792_s24 = sld [smem:[%s6751_s0 + %s5662_s20]]  }
  0x13   :  { %6826 = sst [smem:[#allocation77_spill]] %s5777_s8 }
  0x14   :  { %s5797_s30 = sld [smem:[%s6751_s0 + %s5663_s26]]  }
  0x15   :  { %6827 = sst [smem:[#allocation78_spill]] %s5787_s19 }
  0x16   :  { %s5802_s6 = sld [smem:[%s6751_s0 + %s5664_s1]]  }
  0x17   :  { %s5807_s12 = sld [smem:[%s6751_s0 + %s5665_s7]]   ;;  %s5669_s7 = smov 18  }
  0x18   :  { %s5812_s20 = sld [smem:[%s6751_s0 + %s5666_s15]]   ;;  %s5670_s15 = smov 19  }
  0x19   :  { %s5817_s27 = sld [smem:[%s6751_s0 + %s5667_s22]]   ;;  %s5671_s22 = smov 20  }
  0x1a   :  { %6828 = sst [smem:[#allocation79_spill]] %s5797_s30 }
  0x1b   :  { %s5822_s4 = sld [smem:[%s6751_s0 + %s5668_s28]]   ;;  %s5672_s28 = smov 21  }
  0x1c   :  { %6829 = sst [smem:[#allocation80_spill]] %s5802_s6 }
  0x1d   :  { %6830 = sst [smem:[#allocation81_spill]] %s5807_s12 }
  0x1e   :  { %s5827_s29 = sld [smem:[%s6751_s0 + %s5669_s7]]   ;;  %s5673_s7 = smov 22  }
  0x1f   :  { %6831 = sst [smem:[#allocation82_spill]] %s5817_s27 }
  0x20   :  { %s5832_s12 = sld [smem:[%s6751_s0 + %s5670_s15]]   ;;  %s5674_s15 = smov 23  }
  0x21   :  { %6832 = sst [smem:[#allocation83_spill]] %s5822_s4 }
  0x22   :  { %s5837_s27 = sld [smem:[%s6751_s0 + %s5671_s22]]   ;;  %s5675_s22 = smov 24  }
  0x23   :  { %s5842_s30 = sld [smem:[%s6751_s0 + %s5672_s28]]   ;;  %s5676_s28 = smov 25  }
  0x24   :  { %6833 = sst [smem:[#allocation84_spill]] %s5827_s29 }
  0x25   :  { %s5847_s29 = sld [smem:[%s6751_s0 + %s5673_s7]]   ;;  %s5677_s7 = smov 26  }
  0x26   :  { %6834 = sst [smem:[#allocation85_spill]] %s5832_s12 }
  0x27   :  { %s5852_s19 = sld [smem:[%s6751_s0 + %s5674_s15]]   ;;  %s5678_s15 = smov 27  }
  0x28   :  { %6835 = sst [smem:[#allocation86_spill]] %s5837_s27 }
  0x29   :  { %s5857_s27 = sld [smem:[%s6751_s0 + %s5675_s22]]   ;;  %s5679_s22 = smov 28  }
  0x2a   :  { %s5862_s8 = sld [smem:[%s6751_s0 + %s5676_s28]]   ;;  %s5680_s28 = smov 29  }
  0x2b   :  { %6836 = sst [smem:[#allocation87_spill]] %s5847_s29 }
  0x2c   :  { %s5867_s29 = sld [smem:[%s6751_s0 + %s5677_s7]]   ;;  %s5681_s7 = smov 30  }
  0x2d   :  { %s5872_s3 = sld [smem:[%s6751_s0 + %s5678_s15]]   ;;  %s5682_s15 = smov 31  }
  0x2e   :  { %s5882_s25 = sld [smem:[%s6751_s0 + %s5680_s28]]   ;;  %s5684_s28 = smov 33  }
  0x2f   :  { %6837 = sst [smem:[#allocation88_spill]] %s5857_s27 }
  0x30   :  { %6838 = sst [smem:[#allocation89_spill]] %s5862_s8 }
  0x31   :  { %s5877_s27 = sld [smem:[%s6751_s0 + %s5679_s22]]   ;;  %s5683_s22 = smov 32  }
  0x32   :  { %6839 = sst [smem:[#allocation90_spill]] %s5867_s29 }
  0x33   :  { %6840 = sst [smem:[#allocation91_spill]] %s5872_s3 }
  0x34   :  { %6842 = sst [smem:[#allocation93_spill]] %s5882_s25 }
  0x35   :  { %s5887_s29 = sld [smem:[%s6751_s0 + %s5681_s7]]  }
  0x36   :  { %s5892_s3 = sld [smem:[%s6751_s0 + %s5682_s15]]  }
  0x37   :  { %6841 = sst [smem:[#allocation92_spill]] %s5877_s27 }
  0x38   :  { %s5897_s27 = sld [smem:[%s6751_s0 + %s5683_s22]]  }
  0x39   :  { %s5902_s25 = sld [smem:[%s6751_s0 + %s5684_s28]]  }
  0x3c   :  { %6843 = sst [smem:[#allocation94_spill]] %s5892_s3 }
  0x3e   :  { %6844 = sst [smem:[#allocation95_spill]] %s5897_s27 }
  0x3f   :  { %6845 = sst [smem:[#allocation96_spill]] %s5902_s25 }
  0x40   :  { %72 = vsyncpa [#allocation3], 0 }
  0x41   :  { %74 = vsyncpa [#allocation3 + $0x1], 0 }
  0x42   :  { %75 = vsyncpa [#allocation6], 0 }
  0x43   :  { %76 = vsyncpa [#allocation9], 0 }
  0x44   :  { %77 = vsyncpa [#allocation16], 0 }
  0x45   :  { %78 = vsyncpa [#allocation19], 0 }
  0x46   :  { %79 = vsyncpa [#allocation22], 0 }
  0x47   :  { %80 = vsyncpa [#allocation25], 0 }
  0x48   :  { %81 = vsyncpa [#allocation28], 0 }
  0x49   :  { %82 = vsyncpa [#allocation31], 0 }
  0x4a   :  { %83 = vsyncpa [#allocation34], 0 }
  0x4b   :  { %84 = vsyncpa [#allocation37], 0 }
  0x4c   :  { %85 = vsyncpa [#allocation40], 0 }
  0x4d   :  { %86 = vsyncpa [#allocation43], 0 }
  0x4e   :  { %87 = vsyncpa [#allocation46], 0 }
  0x4f   :  { %88 = vsyncpa [#allocation49], 0 }
  0x50   :  { %89 = vsyncpa [#allocation4], 0 }
  0x51   :  { %91 = vsyncpa [#allocation4 + $0x1], 0  ;;  %s5904_s0 = smov 0   ;;  %s5906_s7 = smov 0  }
  0x52   :  { %s5908_s10 = smov 0   ;;  %s5910_s11 = smov 0  }
  0x53 LB: > { %s6846_s13 = sld [smem:[#allocation73_spill]]  ;;  %s6847_s12 = sld [smem:[#allocation85_spill]]  ;;  %s5650_s11 = sphi %s5910_s11, %s6956_s11   ;;  %s5646_s10 = sphi %s5908_s10, %s6959_s10   ;;  %s5642_s7 = sphi %s5906_s7, %s6958_s7   ;;  %s5638_s0 = sphi %s5904_s0, %s6957_s0  }
  0x54   : > { %s6848_s8 = sld [smem:[#allocation89_spill]]  ;;  %s6849_s6 = sld [smem:[#allocation80_spill]] }
  0x55   : > { %s6850_s3 = sld [smem:[#allocation94_spill]]  ;;  %s6851_s4 = sld [smem:[#allocation83_spill]] }
  0x56   : > { %s6852_s9 = sld [smem:[#allocation72_spill]]  ;;  %s6853_s5 = sld [smem:[#allocation71_spill]] }
  0x57   : > { %6854 = sst [smem:[#allocation97_spill]] %s5638_s0  ;;  %s5925_s15 = sadd.s32 4294967295, %s5650_s11  }
  0x58   : > { %6855 = sst [smem:[#allocation98_spill]] %s5642_s7  ;;  %s3739_s16 = sadd.s32 4294967294, %s5650_s11  }
  0x59   : > { %6856 = sst [smem:[#allocation99_spill]] %s5646_s10  ;;  %s5929_s18 = sadd.s32 1, %s5650_s11  }
  0x5a   : > { %6857 = sst [smem:[#allocation100_spill]] %s5650_s11  ;;  %s104_s22 = sadd.s32 1, %s5646_s10 }
  0x5b   : > { %6858 = sst [smem:[#allocation101_spill]] %s5925_s15  ;;  %s101_s23 = ssub.s32 %s5650_s11, %s5929_s18 }
  0x5c   : > { %6859 = sst [smem:[#allocation102_spill]] %s5929_s18  ;;  %p111_p0 = scmp.ne.s32.totalorder %s5646_s10, %s5642_s7 }
  0x5d   : > { %p102_p1 = scmp.eq.s32.totalorder %s101_s23, 0  ;;  %p112_p2 = scmp.eq.s32.totalorder %s5650_s11, 0 }
  0x5e   : > { %p117_p3 = scmp.ne.s32.totalorder %s5642_s7, %s5638_s0  ;;  %p6768_p4 = scmp.eq.s32.totalorder %s5925_s15, 0 }
  0x5f   : > { %s5941_s26 = scalar_select %p102_p1, %s5646_s10, %s104_s22  }
  0x60   : > { %p5943_p5 = por %p112_p2, %p111_p0  ;;  %p5949_p6 = por %p6768_p4, %p117_p3 }
  0x61   : > { %6860 = sst [smem:[#allocation103_spill]] %s5941_s26  ;;  %p828_p7 = scmp.eq.s32.totalorder %s5925_s15, 1 }
  0x62   : > { %s6862_s1 = scalar_select %p5949_p6, 1, 0 }
  0x63   : > { %p834_p8 = scmp.eq.s32.totalorder %s3739_s16, 1  ;;  %p3740_p9 = scmp.ge.s32.totalorder %s5650_s11, 1 }
  0x64   : > { %6863 = sst [smem:[#allocation104_spill]] %s6862_s1  ;;  %p841_p10 = scmp.lt.s32.totalorder %s5650_s11, 3 }
  0x65   : > { %p5956_p11 = por %p828_p7, %p111_p0  ;;  %p5960_p12 = por %p834_p8, %p117_p3 }
  0x66   : > { %p5964_p13 = pnand %p3740_p9, %p841_p10  ;;  %p4387_p2 = scmp.lt.s32.totalorder %s5650_s11, 2 }
  0x67   : > { %s6864_s2 = scalar_select %p5956_p11, 1, 0 }
  0x68   : > { %s6866_s22 = scalar_select %p5960_p12, 1, 0 }
  0x69   : > { %6865 = sst [smem:[#allocation105_spill]] %s6864_s2  ;;  %p4253_p4 = pneg %p5964_p13 }
  0x6a   : > { %6867 = sst [smem:[#allocation106_spill]] %s6866_s22  ;;  %s1193_s16 = sand.u32 1, %s5650_s11  }
  0x6b   : > { %s6868_s23 = scalar_select %p5964_p13, 1, 0 }
  0x6c   : > { %s6780_s26 = sand.u32 1, %s5646_s10   ;;  %p6870_p6 = scmp.eq.s32.totalorder %s5925_s15, 0 }
  0x6d   : > { %6869 = sst [smem:[#allocation107_spill]] %s6868_s23  ;;  %s5982_s0 = sshll.u32 %s6780_s26, 3 }
  0x6e   : > { %p5976_p0 = pnand %p4253_p4, %p6870_p6  ;;  %s5985_s22 = sshll.u32 %s5650_s11, 7 }
  0x6f   : > { %s5989_s2 = scalar_lea.hbm %s6853_s5, %s5985_s22  ;;  %s1197_s25 = scalar_lea.vmem [#allocation2], %s5982_s0 }
  0x70   : > { %s6871_s18 = scalar_select %p5976_p0, 1, 0 }
  0x71   : > { %s1204_s1 = sshll.u32 %s1197_s25, 4  ;;  %p5994_p3 = pnand %p4387_p2, %p5943_p5  ;;  %s5998_s1 = int_to_ptr.vmem [resolvable:$true] %s1204_s1 }
  0x72   : > { %s5685_s26 = smov [#allocation5]   ;;  %s6002_s23 = scalar_lea.sflag [#allocation3], %s1193_s16 }
  0x73   : > { %s6872_s7 = scalar_select %p5994_p3, 1, 0 }
  0x74   : > { %s6000_s15 = sshll.u32 %s5685_s26, 4  ;;  %s4584_s10 = scalar_lea.hbm %s5989_s2, 128  ;;  %s855_s15 = int_to_ptr.vmem [resolvable:$true] %s6000_s15 }
  0x75   : > { %p4585_p4 = scmp.ne.s32.totalorder %s5989_s2, %s4584_s10  ;;  %p6008_p6 = pneg %p5994_p3 }
  0x76   : > { %s4589_s25 = scalar_lea.hbm %s6853_s5, 256  ;;  %p4590_p8 = scmp.lt.u32.totalorder %s5989_s2, %s6853_s5 }
  0x77   : > { %s6873_s11 = scalar_select %p6008_p6, 1, 0 }
  0x78   : > { %p4587_p5 = pnand %p6008_p6, %p4585_p4  ;;  %p4591_p9 = scmp.lt.u32.totalorder %s4589_s25, %s4584_s10 }
  0x79   : > { %p4593_p2 = scmp.lt.u32.totalorder %s4584_s10, %s5989_s2 }
  0x7a   : > { %p4588_p7 = pneg %p4587_p5  ;;  %p4592_p10 = por %p4591_p9, %p4590_p8 }
  0x7c   : > { %p4594_p1 = por %p4593_p2, %p4592_p10 }
  0x7e   : > { %p4595_p12 = pnand %p4594_p1, %p4588_p7 }
  0x80   : > { %4598 = shalt.err (!%p4595_p12)
}
  0x81   : > { %s4599_s26 = scalar_lea.vmem %s5998_s1, 128  ;;  %s5686_s28 = smov [#allocation2]  }
  0x82   : > { %p4600_p11 = scmp.ne.s32.totalorder %s5998_s1, %s4599_s26  ;;  %s4604_s16 = sshll.u32 %s5686_s28, 4  ;;  %s4605_s16 = int_to_ptr.vmem [resolvable:$false] %s4604_s16 }
  0x83   : > { %s4606_s27 = scalar_lea.vmem %s4605_s16, 256  ;;  %p4607_p4 = scmp.lt.s32.totalorder %s5998_s1, %s4605_s16 }
  0x84   : > { %p4602_p13 = pnand %p4600_p11, %p6008_p6  ;;  %p4608_p5 = scmp.lt.s32.totalorder %s4606_s27, %s4599_s26 }
  0x86   : > { %p4603_p0 = pneg %p4602_p13  ;;  %p4609_p8 = por %p4608_p5, %p4607_p4 }
  0x88   : > { %p4610_p9 = pnand %p4609_p8, %p4603_p0 }
  0x8a   : > { %4613 = shalt.err (!%p4610_p9)
}
  0x8b   : > { %4344 = dma.hbm_to_vmem [thread:$0]  (!%p5994_p3), %s5989_s2, 128, %s5998_s1, %s6002_s23  }
  0x8c   : > { %s4614_s10 = scalar_lea.hbm %s6852_s9, 128  ;;  %p6874_p12 = scmp.ne.s32.totalorder %s6871_s18, 0 }
  0x8d   : > { %p4615_p11 = scmp.ne.s32.totalorder %s6852_s9, %s4614_s10  ;;  %p4621_p7 = scmp.lt.u32.totalorder %s4614_s10, %s6852_s9 }
  0x8e   : > { %p6033_p13 = pneg %p6874_p12 }
  0x90   : > { %s6875_s27 = scalar_select %p6033_p13, 1, 0 }
  0x91   : > { %p4617_p1 = pnand %p6033_p13, %p4615_p11 }
  0x93   : > { %p4618_p0 = pneg %p4617_p1 }
  0x95   : > { %p4623_p10 = pnand %p4621_p7, %p4618_p0 }
  0x97   : > { %4626 = shalt.err (!%p4623_p10)
}
  0x98   : > { %s4627_s25 = scalar_lea.vmem %s855_s15, 128  ;;  %p4635_p8 = scmp.lt.s32.totalorder %s855_s15, %s855_s15 }
  0x99   : > { %p4628_p2 = scmp.ne.s32.totalorder %s855_s15, %s4627_s25  ;;  %p4636_p9 = scmp.lt.s32.totalorder %s4627_s25, %s4627_s25 }
  0x9b   : > { %p4630_p4 = pnand %p4628_p2, %p6033_p13  ;;  %p4637_p3 = por %p4636_p9, %p4635_p8 }
  0x9d   : > { %p4631_p5 = pneg %p4630_p4 }
  0x9f   : > { %p4638_p6 = pnand %p4637_p3, %p4631_p5 }
  0xa1   : > { %4641 = shalt.err (!%p4638_p6)
}
  0xa2   : > { %4256 = dma.hbm_to_vmem [thread:$0]  (!%p6874_p12), %s6852_s9, 128, %s855_s15, [#allocation6]  }
  0xa3   : > { %s6047_s1 = scalar_lea.hbm %s5757_s21, %s5985_s22  ;;  %s1215_s2 = scalar_lea.vmem [#allocation10], %s5982_s0 }
  0xa4   : > { %s1222_s26 = sshll.u32 %s1215_s2, 4  ;;  %s4642_s28 = scalar_lea.hbm %s6047_s1, 128  ;;  %s1223_s26 = int_to_ptr.vmem [resolvable:$true] %s1222_s26 }
  0xa5   : > { %p4643_p3 = scmp.ne.s32.totalorder %s6047_s1, %s4642_s28  ;;  %p6876_p6 = scmp.ne.s32.totalorder %s6873_s11, 0 }
  0xa6   : > { %s4647_s16 = scalar_lea.hbm %s5757_s21, 256  ;;  %p4648_p0 = scmp.lt.u32.totalorder %s6047_s1, %s5757_s21 }
  0xa7   : > { %p4645_p11 = pnand %p4643_p3, %p6876_p6  ;;  %p4649_p7 = scmp.lt.u32.totalorder %s4647_s16, %s4642_s28 }
  0xa8   : > { %p4651_p2 = scmp.lt.u32.totalorder %s4642_s28, %s6047_s1 }
  0xa9   : > { %p4646_p1 = pneg %p4645_p11  ;;  %p4650_p10 = por %p4649_p7, %p4648_p0 }
  0xab   : > { %p4652_p4 = por %p4651_p2, %p4650_p10 }
  0xad   : > { %p4653_p5 = pnand %p4652_p4, %p4646_p1 }
  0xaf   : > { %4656 = shalt.err (!%p4653_p5)
}
  0xb0   : > { %s4657_s15 = scalar_lea.vmem %s1223_s26, 128  ;;  %s5687_s10 = smov [#allocation10]  }
  0xb1   : > { %p4658_p8 = scmp.ne.s32.totalorder %s1223_s26, %s4657_s15  ;;  %s4662_s25 = sshll.u32 %s5687_s10, 4  ;;  %s4663_s25 = int_to_ptr.vmem [resolvable:$false] %s4662_s25 }
  0xb2   : > { %s4664_s2 = scalar_lea.vmem %s4663_s25, 256  ;;  %p4665_p3 = scmp.lt.s32.totalorder %s1223_s26, %s4663_s25 }
  0xb3   : > { %p4660_p9 = pnand %p4658_p8, %p6876_p6  ;;  %p4666_p11 = scmp.lt.s32.totalorder %s4664_s2, %s4657_s15 }
  0xb5   : > { %p4661_p12 = pneg %p4660_p9  ;;  %p4667_p13 = por %p4666_p11, %p4665_p3 }
  0xb7   : > { %p4668_p0 = pnand %p4667_p13, %p4661_p12 }
  0xb9   : > { %4671 = shalt.err (!%p4668_p0)
}
  0xba   : > { %p6877_p7 = scmp.ne.s32.totalorder %s6872_s7, 0  ;;  %s5688_s28 = smov [#allocation7]  }
  0xbb   : > { %s865_s16 = sshll.u32 %s5688_s28, 4  ;;  %s5689_s10 = smov [#allocation8]   ;;  %s866_s16 = int_to_ptr.vmem [resolvable:$true] %s865_s16 }
  0xbc   : > { %4347 = dma.hbm_to_vmem [thread:$0]  (!%p6877_p7), %s6047_s1, 128, %s1223_s26, %s6002_s23  }
  0xbd   : > { %s876_s5 = sshll.u32 %s5689_s10, 4  ;;  %s4672_s9 = scalar_lea.hbm %s6846_s13, 16  ;;  %s877_s5 = int_to_ptr.vmem [resolvable:$true] %s876_s5 }
  0xbe   : > { %p4673_p1 = scmp.ne.s32.totalorder %s6846_s13, %s4672_s9  ;;  %p6878_p10 = scmp.ne.s32.totalorder %s6875_s27, 0 }
  0xbf   : > { %p4679_p13 = scmp.lt.u32.totalorder %s4672_s9, %s6846_s13 }
  0xc0   : > { %p4675_p2 = pnand %p4673_p1, %p6878_p10 }
  0xc2   : > { %p4676_p12 = pneg %p4675_p2 }
  0xc4   : > { %p4681_p4 = pnand %p4679_p13, %p4676_p12 }
  0xc6   : > { %4684 = shalt.err (!%p4681_p4)
}
  0xc7   : > { %s4685_s15 = scalar_lea.vmem %s866_s16, 16  ;;  %s4692_s1 = scalar_lea.vmem %s866_s16, 32 }
  0xc8   : > { %p4686_p5 = scmp.ne.s32.totalorder %s866_s16, %s4685_s15  ;;  %p4693_p3 = scmp.lt.s32.totalorder %s866_s16, %s866_s16 }
  0xc9   : > { %p4694_p11 = scmp.lt.s32.totalorder %s4692_s1, %s4685_s15 }
  0xca   : > { %p4688_p8 = pnand %p4686_p5, %p6878_p10 }
  0xcb   : > { %p4695_p0 = por %p4694_p11, %p4693_p3 }
  0xcc   : > { %p4689_p9 = pneg %p4688_p8 }
  0xce   : > { %p4696_p7 = pnand %p4695_p0, %p4689_p9 }
  0xd0   : > { %4699 = shalt.err (!%p4696_p7)
}
  0xd1   : > { %p6879_p6 = scmp.ne.s32.totalorder %s6871_s18, 0  ;;  %s4700_s9 = scalar_lea.hbm %s5752_s17, 16 }
  0xd2   : > { %p4701_p1 = scmp.ne.s32.totalorder %s5752_s17, %s4700_s9  ;;  %p4707_p13 = scmp.lt.u32.totalorder %s4700_s9, %s5752_s17 }
  0xd3   : > { %4259 = dma.hbm_to_vmem [thread:$0]  (!%p6879_p6), %s6846_s13, 16, %s866_s16, [#allocation6]  }
  0xd4   : > { %p4703_p2 = pnand %p4701_p1, %p6878_p10 }
  0xd6   : > { %p4704_p12 = pneg %p4703_p2 }
  0xd8   : > { %p4709_p4 = pnand %p4707_p13, %p4704_p12 }
  0xda   : > { %4712 = shalt.err (!%p4709_p4)
}
  0xdb   : > { %s4713_s26 = scalar_lea.vmem %s877_s5, 16  ;;  %s4720_s25 = scalar_lea.vmem %s877_s5, 32 }
  0xdc   : > { %p4714_p7 = scmp.ne.s32.totalorder %s877_s5, %s4713_s26  ;;  %p4721_p9 = scmp.lt.s32.totalorder %s877_s5, %s877_s5 }
  0xdd   : > { %p4722_p3 = scmp.lt.s32.totalorder %s4720_s25, %s4713_s26 }
  0xde   : > { %p4716_p5 = pnand %p4714_p7, %p6878_p10 }
  0xdf   : > { %p4723_p11 = por %p4722_p3, %p4721_p9 }
  0xe0   : > { %p4717_p8 = pneg %p4716_p5 }
  0xe2   : > { %p4724_p0 = pnand %p4723_p11, %p4717_p8 }
  0xe4   : > { %4727 = shalt.err (!%p4724_p0)
}
  0xe5   : > { %4262 = dma.hbm_to_vmem [thread:$0]  (!%p6879_p6), %s5752_s17, 16, %s877_s5, [#allocation9]  }
  0xe6   : > { %s5690_s2 = smov [#allocation15]   ;;  %s5691_s16 = smov [#allocation18]  }
  0xe7   : > { %s910_s28 = sshll.u32 %s5690_s2, 4  ;;  %s934_s10 = sshll.u32 %s5691_s16, 4  ;;  %s911_s28 = int_to_ptr.vmem [resolvable:$true] %s910_s28  ;;  %s935_s10 = int_to_ptr.vmem [resolvable:$true] %s934_s10 }
  0xe8   : > { %s4728_s15 = scalar_lea.hbm %s5782_s14, 256 }
  0xe9   : > { %p4729_p1 = scmp.ne.s32.totalorder %s5782_s14, %s4728_s15  ;;  %p4735_p13 = scmp.lt.u32.totalorder %s4728_s15, %s5782_s14 }
  0xeb   : > { %p4731_p2 = pnand %p4729_p1, %p6878_p10 }
  0xed   : > { %p4732_p12 = pneg %p4731_p2 }
  0xef   : > { %p4737_p4 = pnand %p4735_p13, %p4732_p12 }
  0xf1   : > { %4740 = shalt.err (!%p4737_p4)
}
  0xf2   : > { %s4741_s1 = scalar_lea.vmem %s911_s28, 256  ;;  %p4749_p9 = scmp.lt.s32.totalorder %s911_s28, %s911_s28 }
  0xf3   : > { %p4742_p7 = scmp.ne.s32.totalorder %s911_s28, %s4741_s1  ;;  %p4750_p3 = scmp.lt.s32.totalorder %s4741_s1, %s4741_s1 }
  0xf5   : > { %p4744_p5 = pnand %p4742_p7, %p6878_p10  ;;  %p4751_p11 = por %p4750_p3, %p4749_p9 }
  0xf7   : > { %p4745_p8 = pneg %p4744_p5 }
  0xf9   : > { %p4752_p0 = pnand %p4751_p11, %p4745_p8 }
  0xfb   : > { %4755 = shalt.err (!%p4752_p0)
}
  0xfc   : > { %s6803_s5 = smov 64   ;;  %s6804_s9 = smov 4  }
  0xfd   : > { %4271 = dma.hbm_to_vmem [thread:$0]  (!%p6879_p6), %s5782_s14, 256, %s911_s28, [#allocation16], %s6803_s5, %s6803_s5, %s6804_s9  }
  0xfe   : > { %s4756_s26 = scalar_lea.hbm %s5792_s24, 256 }
  0xff   : > { %p4757_p1 = scmp.ne.s32.totalorder %s5792_s24, %s4756_s26  ;;  %p4763_p13 = scmp.lt.u32.totalorder %s4756_s26, %s5792_s24 }
 0x101   : > { %p4759_p2 = pnand %p4757_p1, %p6878_p10 }
 0x103   : > { %p4760_p12 = pneg %p4759_p2 }
 0x105   : > { %p4765_p4 = pnand %p4763_p13, %p4760_p12 }
 0x107   : > { %4768 = shalt.err (!%p4765_p4)
}
 0x108   : > { %s4769_s25 = scalar_lea.vmem %s935_s10, 256  ;;  %p4777_p9 = scmp.lt.s32.totalorder %s935_s10, %s935_s10 }
 0x109   : > { %p4770_p7 = scmp.ne.s32.totalorder %s935_s10, %s4769_s25  ;;  %p4778_p3 = scmp.lt.s32.totalorder %s4769_s25, %s4769_s25 }
 0x10b   : > { %p4772_p5 = pnand %p4770_p7, %p6878_p10  ;;  %p4779_p11 = por %p4778_p3, %p4777_p9 }
 0x10d   : > { %p4773_p8 = pneg %p4772_p5 }
 0x10f   : > { %p4780_p0 = pnand %p4779_p11, %p4773_p8 }
 0x111   : > { %4783 = shalt.err (!%p4780_p0)
}
 0x112   : > { %4277 = dma.hbm_to_vmem [thread:$0]  (!%p6879_p6), %s5792_s24, 256, %s935_s10, [#allocation19], %s6803_s5, %s6803_s5, %s6804_s9  }
 0x113   : > { %s5694_s2 = smov [#allocation21]   ;;  %s5695_s16 = smov [#allocation24]  }
 0x114   : > { %s958_s28 = sshll.u32 %s5694_s2, 4  ;;  %s983_s15 = sshll.u32 %s5695_s16, 4  ;;  %s959_s28 = int_to_ptr.vmem [resolvable:$true] %s958_s28  ;;  %s984_s15 = int_to_ptr.vmem [resolvable:$true] %s983_s15 }
 0x115   : > { %s4784_s1 = scalar_lea.hbm %s6849_s6, 256 }
 0x116   : > { %p4785_p1 = scmp.ne.s32.totalorder %s6849_s6, %s4784_s1  ;;  %p4791_p13 = scmp.lt.u32.totalorder %s4784_s1, %s6849_s6 }
 0x118   : > { %p4787_p2 = pnand %p4785_p1, %p6878_p10 }
 0x11a   : > { %p4788_p12 = pneg %p4787_p2 }
 0x11c   : > { %p4793_p4 = pnand %p4791_p13, %p4788_p12 }
 0x11e   : > { %4796 = shalt.err (!%p4793_p4)
}
 0x11f   : > { %s4797_s26 = scalar_lea.vmem %s959_s28, 256  ;;  %p4805_p9 = scmp.lt.s32.totalorder %s959_s28, %s959_s28 }
 0x120   : > { %p4798_p7 = scmp.ne.s32.totalorder %s959_s28, %s4797_s26  ;;  %p4806_p3 = scmp.lt.s32.totalorder %s4797_s26, %s4797_s26 }
 0x122   : > { %p4800_p5 = pnand %p4798_p7, %p6878_p10  ;;  %p4807_p11 = por %p4806_p3, %p4805_p9 }
 0x124   : > { %p4801_p8 = pneg %p4800_p5 }
 0x126   : > { %p4808_p0 = pnand %p4807_p11, %p4801_p8 }
 0x128   : > { %4811 = shalt.err (!%p4808_p0)
}
 0x129   : > { %4283 = dma.hbm_to_vmem [thread:$0]  (!%p6879_p6), %s6849_s6, 256, %s959_s28, [#allocation22], %s6803_s5, %s6803_s5, %s6804_s9  }
 0x12a   : > { %s4812_s10 = scalar_lea.hbm %s5812_s20, 16 }
 0x12b   : > { %p4813_p1 = scmp.ne.s32.totalorder %s5812_s20, %s4812_s10  ;;  %p4819_p13 = scmp.lt.u32.totalorder %s4812_s10, %s5812_s20 }
 0x12d   : > { %p4815_p2 = pnand %p4813_p1, %p6878_p10 }
 0x12f   : > { %p4816_p12 = pneg %p4815_p2 }
 0x131   : > { %p4821_p4 = pnand %p4819_p13, %p4816_p12 }
 0x133   : > { %4824 = shalt.err (!%p4821_p4)
}
 0x134   : > { %s4825_s25 = scalar_lea.vmem %s984_s15, 16  ;;  %s4832_s2 = scalar_lea.vmem %s984_s15, 32 }
 0x135   : > { %p4826_p7 = scmp.ne.s32.totalorder %s984_s15, %s4825_s25  ;;  %p4833_p9 = scmp.lt.s32.totalorder %s984_s15, %s984_s15 }
 0x136   : > { %p4834_p3 = scmp.lt.s32.totalorder %s4832_s2, %s4825_s25 }
 0x137   : > { %p4828_p5 = pnand %p4826_p7, %p6878_p10 }
 0x138   : > { %p4835_p11 = por %p4834_p3, %p4833_p9 }
 0x139   : > { %p4829_p8 = pneg %p4828_p5 }
 0x13b   : > { %p4836_p0 = pnand %p4835_p11, %p4829_p8 }
 0x13d   : > { %4839 = shalt.err (!%p4836_p0)
}
 0x13e   : > { %4289 = dma.hbm_to_vmem [thread:$0]  (!%p6879_p6), %s5812_s20, 16, %s984_s15, [#allocation25]  }
 0x13f   : > { %s5696_s28 = smov [#allocation27]   ;;  %s5697_s1 = smov [#allocation30]  }
 0x140   : > { %s1004_s16 = sshll.u32 %s5696_s28, 4  ;;  %s1028_s26 = sshll.u32 %s5697_s1, 4  ;;  %s1005_s16 = int_to_ptr.vmem [resolvable:$true] %s1004_s16  ;;  %s1029_s26 = int_to_ptr.vmem [resolvable:$true] %s1028_s26 }
 0x141   : > { %s4840_s10 = scalar_lea.hbm %s6851_s4, 256 }
 0x142   : > { %p4841_p1 = scmp.ne.s32.totalorder %s6851_s4, %s4840_s10  ;;  %p4847_p13 = scmp.lt.u32.totalorder %s4840_s10, %s6851_s4 }
 0x144   : > { %p4843_p2 = pnand %p4841_p1, %p6878_p10 }
 0x146   : > { %p4844_p12 = pneg %p4843_p2 }
 0x148   : > { %p4849_p4 = pnand %p4847_p13, %p4844_p12 }
 0x14a   : > { %4852 = shalt.err (!%p4849_p4)
}
 0x14b   : > { %s4853_s25 = scalar_lea.vmem %s1005_s16, 256  ;;  %p4861_p9 = scmp.lt.s32.totalorder %s1005_s16, %s1005_s16 }
 0x14c   : > { %p4854_p7 = scmp.ne.s32.totalorder %s1005_s16, %s4853_s25  ;;  %p4862_p3 = scmp.lt.s32.totalorder %s4853_s25, %s4853_s25 }
 0x14e   : > { %p4856_p5 = pnand %p4854_p7, %p6878_p10  ;;  %p4863_p11 = por %p4862_p3, %p4861_p9 }
 0x150   : > { %p4857_p8 = pneg %p4856_p5 }
 0x152   : > { %p4864_p0 = pnand %p4863_p11, %p4857_p8 }
 0x154   : > { %4867 = shalt.err (!%p4864_p0)
}
 0x155   : > { %4295 = dma.hbm_to_vmem [thread:$0]  (!%p6879_p6), %s6851_s4, 256, %s1005_s16, [#allocation28], %s6803_s5, %s6803_s5, %s6804_s9  }
 0x156   : > { %s4868_s15 = scalar_lea.hbm %s6847_s12, 256 }
 0x157   : > { %p4869_p1 = scmp.ne.s32.totalorder %s6847_s12, %s4868_s15  ;;  %p4875_p13 = scmp.lt.u32.totalorder %s4868_s15, %s6847_s12 }
 0x159   : > { %p4871_p2 = pnand %p4869_p1, %p6878_p10 }
 0x15b   : > { %p4872_p12 = pneg %p4871_p2 }
 0x15d   : > { %p4877_p4 = pnand %p4875_p13, %p4872_p12 }
 0x15f   : > { %4880 = shalt.err (!%p4877_p4)
}
 0x160   : > { %s4881_s2 = scalar_lea.vmem %s1029_s26, 256  ;;  %p4889_p9 = scmp.lt.s32.totalorder %s1029_s26, %s1029_s26 }
 0x161   : > { %p4882_p7 = scmp.ne.s32.totalorder %s1029_s26, %s4881_s2  ;;  %p4890_p3 = scmp.lt.s32.totalorder %s4881_s2, %s4881_s2 }
 0x163   : > { %p4884_p5 = pnand %p4882_p7, %p6878_p10  ;;  %p4891_p11 = por %p4890_p3, %p4889_p9 }
 0x165   : > { %p4885_p8 = pneg %p4884_p5 }
 0x167   : > { %p4892_p0 = pnand %p4891_p11, %p4885_p8 }
 0x169   : > { %4895 = shalt.err (!%p4892_p0)
}
 0x16a   : > { %4301 = dma.hbm_to_vmem [thread:$0]  (!%p6879_p6), %s6847_s12, 256, %s1029_s26, [#allocation31], %s6803_s5, %s6803_s5, %s6804_s9  }
 0x16b   : > { %s5698_s28 = smov [#allocation33]   ;;  %s5699_s1 = smov [#allocation36]  }
 0x16c   : > { %s1052_s16 = sshll.u32 %s5698_s28, 4  ;;  %s1076_s10 = sshll.u32 %s5699_s1, 4  ;;  %s1053_s16 = int_to_ptr.vmem [resolvable:$true] %s1052_s16  ;;  %s1077_s10 = int_to_ptr.vmem [resolvable:$true] %s1076_s10 }
 0x16d   : > { %s4896_s25 = scalar_lea.hbm %s5842_s30, 256 }
 0x16e   : > { %p4897_p1 = scmp.ne.s32.totalorder %s5842_s30, %s4896_s25  ;;  %p4903_p13 = scmp.lt.u32.totalorder %s4896_s25, %s5842_s30 }
 0x170   : > { %p4899_p2 = pnand %p4897_p1, %p6878_p10 }
 0x172   : > { %p4900_p12 = pneg %p4899_p2 }
 0x174   : > { %p4905_p4 = pnand %p4903_p13, %p4900_p12 }
 0x176   : > { %4908 = shalt.err (!%p4905_p4)
}
 0x177   : > { %s4909_s15 = scalar_lea.vmem %s1053_s16, 256  ;;  %p4917_p9 = scmp.lt.s32.totalorder %s1053_s16, %s1053_s16 }
 0x178   : > { %p4910_p7 = scmp.ne.s32.totalorder %s1053_s16, %s4909_s15  ;;  %p4918_p3 = scmp.lt.s32.totalorder %s4909_s15, %s4909_s15 }
 0x17a   : > { %p4912_p5 = pnand %p4910_p7, %p6878_p10  ;;  %p4919_p11 = por %p4918_p3, %p4917_p9 }
 0x17c   : > { %p4913_p8 = pneg %p4912_p5 }
 0x17e   : > { %p4920_p0 = pnand %p4919_p11, %p4913_p8 }
 0x180   : > { %4923 = shalt.err (!%p4920_p0)
}
 0x181   : > { %4307 = dma.hbm_to_vmem [thread:$0]  (!%p6879_p6), %s5842_s30, 256, %s1053_s16, [#allocation34], %s6803_s5, %s6803_s5, %s6804_s9  }
 0x182   : > { %s4924_s26 = scalar_lea.hbm %s5852_s19, 256 }
 0x183   : > { %p4925_p1 = scmp.ne.s32.totalorder %s5852_s19, %s4924_s26  ;;  %p4931_p13 = scmp.lt.u32.totalorder %s4924_s26, %s5852_s19 }
 0x185   : > { %p4927_p2 = pnand %p4925_p1, %p6878_p10 }
 0x187   : > { %p4928_p12 = pneg %p4927_p2 }
 0x189   : > { %p4933_p4 = pnand %p4931_p13, %p4928_p12 }
 0x18b   : > { %4936 = shalt.err (!%p4933_p4)
}
 0x18c   : > { %s4937_s2 = scalar_lea.vmem %s1077_s10, 256  ;;  %p4945_p9 = scmp.lt.s32.totalorder %s1077_s10, %s1077_s10 }
 0x18d   : > { %p4938_p7 = scmp.ne.s32.totalorder %s1077_s10, %s4937_s2  ;;  %p4946_p3 = scmp.lt.s32.totalorder %s4937_s2, %s4937_s2 }
 0x18f   : > { %p4940_p5 = pnand %p4938_p7, %p6878_p10  ;;  %p4947_p11 = por %p4946_p3, %p4945_p9 }
 0x191   : > { %p4941_p8 = pneg %p4940_p5 }
 0x193   : > { %p4948_p0 = pnand %p4947_p11, %p4941_p8 }
 0x195   : > { %4951 = shalt.err (!%p4948_p0)
}
 0x196   : > { %4313 = dma.hbm_to_vmem [thread:$0]  (!%p6879_p6), %s5852_s19, 256, %s1077_s10, [#allocation37], %s6803_s5, %s6803_s5, %s6804_s9  }
 0x197   : > { %s5700_s28 = smov [#allocation39]   ;;  %s5701_s1 = smov [#allocation42]  }
 0x198   : > { %s1101_s16 = sshll.u32 %s5700_s28, 4  ;;  %s1122_s25 = sshll.u32 %s5701_s1, 4  ;;  %s1102_s16 = int_to_ptr.vmem [resolvable:$true] %s1101_s16  ;;  %s1123_s25 = int_to_ptr.vmem [resolvable:$true] %s1122_s25 }
 0x199   : > { %s4952_s15 = scalar_lea.hbm %s6848_s8, 16 }
 0x19a   : > { %p4953_p1 = scmp.ne.s32.totalorder %s6848_s8, %s4952_s15  ;;  %p4959_p13 = scmp.lt.u32.totalorder %s4952_s15, %s6848_s8 }
 0x19c   : > { %p4955_p2 = pnand %p4953_p1, %p6878_p10 }
 0x19e   : > { %p4956_p12 = pneg %p4955_p2 }
 0x1a0   : > { %p4961_p4 = pnand %p4959_p13, %p4956_p12 }
 0x1a2   : > { %4964 = shalt.err (!%p4961_p4)
}
 0x1a3   : > { %s4965_s26 = scalar_lea.vmem %s1102_s16, 16  ;;  %s4972_s10 = scalar_lea.vmem %s1102_s16, 32 }
 0x1a4   : > { %p4966_p7 = scmp.ne.s32.totalorder %s1102_s16, %s4965_s26  ;;  %p4973_p9 = scmp.lt.s32.totalorder %s1102_s16, %s1102_s16 }
 0x1a5   : > { %p4974_p3 = scmp.lt.s32.totalorder %s4972_s10, %s4965_s26 }
 0x1a6   : > { %p4968_p5 = pnand %p4966_p7, %p6878_p10 }
 0x1a7   : > { %p4975_p11 = por %p4974_p3, %p4973_p9 }
 0x1a8   : > { %p4969_p8 = pneg %p4968_p5 }
 0x1aa   : > { %p4976_p0 = pnand %p4975_p11, %p4969_p8 }
 0x1ac   : > { %4979 = shalt.err (!%p4976_p0)
}
 0x1ad   : > { %s6880_s2 = sld [smem:[#allocation91_spill]] }
 0x1ae   : > { %4319 = dma.hbm_to_vmem [thread:$0]  (!%p6879_p6), %s6848_s8, 16, %s1102_s16, [#allocation40]  }
 0x1b3   : > { %s4980_s28 = scalar_lea.hbm %s6880_s2, 256 }
 0x1b4   : > { %p4981_p1 = scmp.ne.s32.totalorder %s6880_s2, %s4980_s28  ;;  %p4987_p13 = scmp.lt.u32.totalorder %s4980_s28, %s6880_s2 }
 0x1b6   : > { %p4983_p2 = pnand %p4981_p1, %p6878_p10 }
 0x1b8   : > { %p4984_p12 = pneg %p4983_p2 }
 0x1ba   : > { %p4989_p4 = pnand %p4987_p13, %p4984_p12 }
 0x1bc   : > { %4992 = shalt.err (!%p4989_p4)
}
 0x1bd   : > { %s4993_s1 = scalar_lea.vmem %s1123_s25, 256  ;;  %p5001_p9 = scmp.lt.s32.totalorder %s1123_s25, %s1123_s25 }
 0x1be   : > { %p4994_p7 = scmp.ne.s32.totalorder %s1123_s25, %s4993_s1  ;;  %p5002_p3 = scmp.lt.s32.totalorder %s4993_s1, %s4993_s1 }
 0x1c0   : > { %p4996_p5 = pnand %p4994_p7, %p6878_p10  ;;  %p5003_p11 = por %p5002_p3, %p5001_p9 }
 0x1c2   : > { %p4997_p8 = pneg %p4996_p5 }
 0x1c4   : > { %p5004_p0 = pnand %p5003_p11, %p4997_p8 }
 0x1c6   : > { %5007 = shalt.err (!%p5004_p0)
}
 0x1c7   : > { %s6881_s16 = sld [smem:[#allocation93_spill]]  ;;  %s5702_s15 = smov [#allocation45]  }
 0x1c8   : > { %4325 = dma.hbm_to_vmem [thread:$0]  (!%p6879_p6), %s6880_s2, 256, %s1123_s25, [#allocation43], %s6803_s5, %s6803_s5, %s6804_s9  }
 0x1c9   : > { %s1146_s26 = sshll.u32 %s5702_s15, 4  ;;  %s5703_s10 = smov [#allocation48]   ;;  %s1147_s26 = int_to_ptr.vmem [resolvable:$true] %s1146_s26 }
 0x1ca   : > { %s1171_s28 = sshll.u32 %s5703_s10, 4  ;;  %s1172_s28 = int_to_ptr.vmem [resolvable:$true] %s1171_s28 }
 0x1cd   : > { %s5008_s1 = scalar_lea.hbm %s6881_s16, 512 }
 0x1ce   : > { %p5009_p1 = scmp.ne.s32.totalorder %s6881_s16, %s5008_s1  ;;  %p5015_p13 = scmp.lt.u32.totalorder %s5008_s1, %s6881_s16 }
 0x1d0   : > { %p5011_p2 = pnand %p5009_p1, %p6878_p10 }
 0x1d2   : > { %p5012_p12 = pneg %p5011_p2 }
 0x1d4   : > { %p5017_p4 = pnand %p5015_p13, %p5012_p12 }
 0x1d6   : > { %5020 = shalt.err (!%p5017_p4)
}
 0x1d7   : > { %s5021_s4 = scalar_lea.vmem %s1147_s26, 512  ;;  %p5029_p9 = scmp.lt.s32.totalorder %s1147_s26, %s1147_s26 }
 0x1d8   : > { %p5022_p7 = scmp.ne.s32.totalorder %s1147_s26, %s5021_s4  ;;  %p5030_p3 = scmp.lt.s32.totalorder %s5021_s4, %s5021_s4 }
 0x1da   : > { %p5024_p5 = pnand %p5022_p7, %p6878_p10  ;;  %p5031_p11 = por %p5030_p3, %p5029_p9 }
 0x1dc   : > { %p5025_p8 = pneg %p5024_p5 }
 0x1de   : > { %p5032_p0 = pnand %p5031_p11, %p5025_p8 }
 0x1e0   : > { %5035 = shalt.err (!%p5032_p0)
}
 0x1e1   : > { %4331 = dma.hbm_to_vmem [thread:$0]  (!%p6879_p6), %s6881_s16, 512, %s1147_s26, [#allocation46], %s6803_s5, %s6803_s5, %s6804_s9  }
 0x1e2   : > { %s5036_s25 = scalar_lea.hbm %s6850_s3, 16 }
 0x1e3   : > { %p5037_p1 = scmp.ne.s32.totalorder %s6850_s3, %s5036_s25  ;;  %p5043_p13 = scmp.lt.u32.totalorder %s5036_s25, %s6850_s3 }
 0x1e5   : > { %p5039_p2 = pnand %p5037_p1, %p6878_p10 }
 0x1e7   : > { %p5040_p12 = pneg %p5039_p2 }
 0x1e9   : > { %p5045_p4 = pnand %p5043_p13, %p5040_p12 }
 0x1eb   : > { %5048 = shalt.err (!%p5045_p4)
}
 0x1ec   : > { %s5049_s4 = scalar_lea.vmem %s1172_s28, 16  ;;  %s5056_s15 = scalar_lea.vmem %s1172_s28, 32 }
 0x1ed   : > { %p5050_p7 = scmp.ne.s32.totalorder %s1172_s28, %s5049_s4  ;;  %p5057_p9 = scmp.lt.s32.totalorder %s1172_s28, %s1172_s28 }
 0x1ee   : > { %p5058_p3 = scmp.lt.s32.totalorder %s5056_s15, %s5049_s4 }
 0x1ef   : > { %p5052_p5 = pnand %p5050_p7, %p6878_p10 }
 0x1f0   : > { %p5059_p11 = por %p5058_p3, %p5057_p9 }
 0x1f1   : > { %p5053_p8 = pneg %p5052_p5 }
 0x1f3   : > { %p5060_p0 = pnand %p5059_p11, %p5053_p8 }
 0x1f5   : > { %5063 = shalt.err (!%p5060_p0)
}
 0x1f6   : > { %s6882_s26 = sld [smem:[#allocation74_spill]]  ;;  %s1233_s1 = scalar_lea.vmem [#allocation11], %s5982_s0 }
 0x1f7   : > { %4337 = dma.hbm_to_vmem [thread:$0]  (!%p6879_p6), %s6850_s3, 16, %s1172_s28, [#allocation49]  }
 0x1f8   : > { %s1240_s25 = sshll.u32 %s1233_s1, 4  ;;  %p6883_p2 = scmp.ne.s32.totalorder %s6873_s11, 0  ;;  %s1241_s25 = int_to_ptr.vmem [resolvable:$true] %s1240_s25 }
 0x1fc   : > { %s6233_s10 = scalar_lea.hbm %s6882_s26, %s5985_s22  ;;  %s5069_s15 = scalar_lea.hbm %s6882_s26, 256 }
 0x1fd   : > { %s5064_s4 = scalar_lea.hbm %s6233_s10, 128  ;;  %p5070_p4 = scmp.lt.u32.totalorder %s6233_s10, %s6882_s26 }
 0x1fe   : > { %p5065_p1 = scmp.ne.s32.totalorder %s6233_s10, %s5064_s4  ;;  %p5071_p7 = scmp.lt.u32.totalorder %s5069_s15, %s5064_s4 }
 0x1ff   : > { %p5073_p8 = scmp.lt.u32.totalorder %s5064_s4, %s6233_s10 }
 0x200   : > { %p5067_p12 = pnand %p5065_p1, %p6883_p2  ;;  %p5072_p5 = por %p5071_p7, %p5070_p4 }
 0x202   : > { %p5068_p13 = pneg %p5067_p12  ;;  %p5074_p9 = por %p5073_p8, %p5072_p5 }
 0x204   : > { %p5075_p3 = pnand %p5074_p9, %p5068_p13 }
 0x206   : > { %5078 = shalt.err (!%p5075_p3)
}
 0x207   : > { %s5079_s22 = scalar_lea.vmem %s1241_s25, 128  ;;  %s5704_s0 = smov [#allocation11]  }
 0x208   : > { %p5080_p11 = scmp.ne.s32.totalorder %s1241_s25, %s5079_s22  ;;  %s5084_s28 = sshll.u32 %s5704_s0, 4  ;;  %s5085_s28 = int_to_ptr.vmem [resolvable:$false] %s5084_s28 }
 0x209   : > { %s5086_s1 = scalar_lea.vmem %s5085_s28, 256  ;;  %p5087_p1 = scmp.lt.s32.totalorder %s1241_s25, %s5085_s28 }
 0x20a   : > { %p5082_p0 = pnand %p5080_p11, %p6883_p2  ;;  %p5088_p12 = scmp.lt.s32.totalorder %s5086_s1, %s5079_s22 }
 0x20c   : > { %p5083_p6 = pneg %p5082_p0  ;;  %p5089_p10 = por %p5088_p12, %p5087_p1 }
 0x20e   : > { %p5090_p4 = pnand %p5089_p10, %p5083_p6 }
 0x210   : > { %5093 = shalt.err (!%p5090_p4)
}
 0x211   : > { %p6884_p7 = scmp.ne.s32.totalorder %s6872_s7, 0  ;;  %s6885_s4 = sld [smem:[#allocation76_spill]] }
 0x212   : > { %s5705_s15 = smov [#allocation13]   ;;  %s5706_s0 = smov [#allocation14]  }
 0x213   : > { %4350 = dma.hbm_to_vmem [thread:$0]  (!%p6884_p7), %s6233_s10, 128, %s1241_s25, %s6002_s23  }
 0x214   : > { %s886_s5 = sshll.u32 %s5705_s15, 4  ;;  %s900_s9 = sshll.u32 %s5706_s0, 4  ;;  %s887_s5 = int_to_ptr.vmem [resolvable:$true] %s886_s5  ;;  %s901_s9 = int_to_ptr.vmem [resolvable:$true] %s900_s9 }
 0x215   : > { %p6886_p5 = scmp.ne.s32.totalorder %s6875_s27, 0 }
 0x217   : > { %s5094_s2 = scalar_lea.hbm %s6885_s4, 256 }
 0x218   : > { %p5095_p13 = scmp.ne.s32.totalorder %s6885_s4, %s5094_s2  ;;  %p5101_p10 = scmp.lt.u32.totalorder %s5094_s2, %s6885_s4 }
 0x21a   : > { %p5097_p8 = pnand %p5095_p13, %p6886_p5 }
 0x21c   : > { %p5098_p6 = pneg %p5097_p8 }
 0x21e   : > { %p5103_p9 = pnand %p5101_p10, %p5098_p6 }
 0x220   : > { %5106 = shalt.err (!%p5103_p9)
}
 0x221   : > { %s5107_s22 = scalar_lea.vmem %s887_s5, 256  ;;  %p5115_p1 = scmp.lt.s32.totalorder %s887_s5, %s887_s5 }
 0x222   : > { %p5108_p3 = scmp.ne.s32.totalorder %s887_s5, %s5107_s22  ;;  %p5116_p12 = scmp.lt.s32.totalorder %s5107_s22, %s5107_s22 }
 0x224   : > { %p5110_p11 = pnand %p5108_p3, %p6886_p5  ;;  %p5117_p4 = por %p5116_p12, %p5115_p1 }
 0x226   : > { %p5111_p0 = pneg %p5110_p11 }
 0x228   : > { %p5118_p7 = pnand %p5117_p4, %p5111_p0 }
 0x22a   : > { %5121 = shalt.err (!%p5118_p7)
}
 0x22b   : > { %p6887_p2 = scmp.ne.s32.totalorder %s6871_s18, 0  ;;  %s6888_s10 = smov 4  }
 0x22c   : > { %s6889_s25 = smov 64   ;;  %s6890_s2 = sld [smem:[#allocation77_spill]] }
 0x22d   : > { %4265 = dma.hbm_to_vmem [thread:$0]  (!%p6887_p2), %s6885_s4, 256, %s887_s5, [#allocation6], %s6889_s25, %s6889_s25, %s6888_s10  }
 0x232   : > { %s5122_s28 = scalar_lea.hbm %s6890_s2, 16 }
 0x233   : > { %p5123_p13 = scmp.ne.s32.totalorder %s6890_s2, %s5122_s28  ;;  %p5129_p10 = scmp.lt.u32.totalorder %s5122_s28, %s6890_s2 }
 0x235   : > { %p5125_p8 = pnand %p5123_p13, %p6886_p5 }
 0x237   : > { %p5126_p6 = pneg %p5125_p8 }
 0x239   : > { %p5131_p9 = pnand %p5129_p10, %p5126_p6 }
 0x23b   : > { %5134 = shalt.err (!%p5131_p9)
}
 0x23c   : > { %s5135_s1 = scalar_lea.vmem %s901_s9, 16  ;;  %s5142_s15 = scalar_lea.vmem %s901_s9, 32 }
 0x23d   : > { %p5136_p7 = scmp.ne.s32.totalorder %s901_s9, %s5135_s1  ;;  %p5143_p0 = scmp.lt.s32.totalorder %s901_s9, %s901_s9 }
 0x23e   : > { %p5144_p1 = scmp.lt.s32.totalorder %s5142_s15, %s5135_s1 }
 0x23f   : > { %p5138_p3 = pnand %p5136_p7, %p6886_p5 }
 0x240   : > { %p5145_p12 = por %p5144_p1, %p5143_p0 }
 0x241   : > { %p5139_p11 = pneg %p5138_p3 }
 0x243   : > { %p5146_p4 = pnand %p5145_p12, %p5139_p11 }
 0x245   : > { %5149 = shalt.err (!%p5146_p4)
}
 0x246   : > { %s6891_s5 = sld [smem:[#allocation78_spill]]  ;;  %s5707_s0 = smov [#allocation17]  }
 0x247   : > { %4268 = dma.hbm_to_vmem [thread:$0]  (!%p6887_p2), %s6890_s2, 16, %s901_s9, [#allocation9]  }
 0x248   : > { %s924_s22 = sshll.u32 %s5707_s0, 4  ;;  %s5708_s10 = smov [#allocation20]   ;;  %s925_s22 = int_to_ptr.vmem [resolvable:$true] %s924_s22 }
 0x249   : > { %s948_s25 = sshll.u32 %s5708_s10, 4  ;;  %s949_s25 = int_to_ptr.vmem [resolvable:$true] %s948_s25 }
 0x24c   : > { %s5150_s28 = scalar_lea.hbm %s6891_s5, 16 }
 0x24d   : > { %p5151_p13 = scmp.ne.s32.totalorder %s6891_s5, %s5150_s28  ;;  %p5157_p10 = scmp.lt.u32.totalorder %s5150_s28, %s6891_s5 }
 0x24f   : > { %p5153_p8 = pnand %p5151_p13, %p6886_p5 }
 0x251   : > { %p5154_p6 = pneg %p5153_p8 }
 0x253   : > { %p5159_p9 = pnand %p5157_p10, %p5154_p6 }
 0x255   : > { %5162 = shalt.err (!%p5159_p9)
}
 0x256   : > { %s5163_s1 = scalar_lea.vmem %s925_s22, 16  ;;  %s5170_s9 = scalar_lea.vmem %s925_s22, 32 }
 0x257   : > { %p5164_p7 = scmp.ne.s32.totalorder %s925_s22, %s5163_s1  ;;  %p5171_p0 = scmp.lt.s32.totalorder %s925_s22, %s925_s22 }
 0x258   : > { %p5172_p1 = scmp.lt.s32.totalorder %s5170_s9, %s5163_s1 }
 0x259   : > { %p5166_p3 = pnand %p5164_p7, %p6886_p5 }
 0x25a   : > { %p5173_p12 = por %p5172_p1, %p5171_p0 }
 0x25b   : > { %p5167_p11 = pneg %p5166_p3 }
 0x25d   : > { %p5174_p4 = pnand %p5173_p12, %p5167_p11 }
 0x25f   : > { %5177 = shalt.err (!%p5174_p4)
}
 0x260   : > { %s6892_s15 = sld [smem:[#allocation79_spill]] }
 0x261   : > { %4274 = dma.hbm_to_vmem [thread:$0]  (!%p6887_p2), %s6891_s5, 16, %s925_s22, [#allocation16]  }
 0x266   : > { %s5178_s0 = scalar_lea.hbm %s6892_s15, 16 }
 0x267   : > { %p5179_p13 = scmp.ne.s32.totalorder %s6892_s15, %s5178_s0  ;;  %p5185_p10 = scmp.lt.u32.totalorder %s5178_s0, %s6892_s15 }
 0x269   : > { %p5181_p8 = pnand %p5179_p13, %p6886_p5 }
 0x26b   : > { %p5182_p6 = pneg %p5181_p8 }
 0x26d   : > { %p5187_p9 = pnand %p5185_p10, %p5182_p6 }
 0x26f   : > { %5190 = shalt.err (!%p5187_p9)
}
 0x270   : > { %s5191_s10 = scalar_lea.vmem %s949_s25, 16  ;;  %s5198_s28 = scalar_lea.vmem %s949_s25, 32 }
 0x271   : > { %p5192_p7 = scmp.ne.s32.totalorder %s949_s25, %s5191_s10  ;;  %p5199_p0 = scmp.lt.s32.totalorder %s949_s25, %s949_s25 }
 0x272   : > { %p5200_p1 = scmp.lt.s32.totalorder %s5198_s28, %s5191_s10 }
 0x273   : > { %p5194_p3 = pnand %p5192_p7, %p6886_p5 }
 0x274   : > { %p5201_p12 = por %p5200_p1, %p5199_p0 }
 0x275   : > { %p5195_p11 = pneg %p5194_p3 }
 0x277   : > { %p5202_p4 = pnand %p5201_p12, %p5195_p11 }
 0x279   : > { %5205 = shalt.err (!%p5202_p4)
}
 0x27a   : > { %s6893_s22 = sld [smem:[#allocation81_spill]]  ;;  %s5709_s1 = smov [#allocation23]  }
 0x27b   : > { %4280 = dma.hbm_to_vmem [thread:$0]  (!%p6887_p2), %s6892_s15, 16, %s949_s25, [#allocation19]  }
 0x27c   : > { %s972_s9 = sshll.u32 %s5709_s1, 4  ;;  %s5710_s0 = smov [#allocation26]   ;;  %s973_s9 = int_to_ptr.vmem [resolvable:$true] %s972_s9 }
 0x27d   : > { %s994_s2 = sshll.u32 %s5710_s0, 4  ;;  %s995_s2 = int_to_ptr.vmem [resolvable:$true] %s994_s2 }
 0x280   : > { %s5206_s3 = scalar_lea.hbm %s6893_s22, 16 }
 0x281   : > { %p5207_p13 = scmp.ne.s32.totalorder %s6893_s22, %s5206_s3  ;;  %p5213_p10 = scmp.lt.u32.totalorder %s5206_s3, %s6893_s22 }
 0x283   : > { %p5209_p8 = pnand %p5207_p13, %p6886_p5 }
 0x285   : > { %p5210_p6 = pneg %p5209_p8 }
 0x287   : > { %p5215_p9 = pnand %p5213_p10, %p5210_p6 }
 0x289   : > { %5218 = shalt.err (!%p5215_p9)
}
 0x28a   : > { %s5219_s10 = scalar_lea.vmem %s973_s9, 16  ;;  %s5226_s25 = scalar_lea.vmem %s973_s9, 32 }
 0x28b   : > { %p5220_p7 = scmp.ne.s32.totalorder %s973_s9, %s5219_s10  ;;  %p5227_p0 = scmp.lt.s32.totalorder %s973_s9, %s973_s9 }
 0x28c   : > { %p5228_p1 = scmp.lt.s32.totalorder %s5226_s25, %s5219_s10 }
 0x28d   : > { %p5222_p3 = pnand %p5220_p7, %p6886_p5 }
 0x28e   : > { %p5229_p12 = por %p5228_p1, %p5227_p0 }
 0x28f   : > { %p5223_p11 = pneg %p5222_p3 }
 0x291   : > { %p5230_p4 = pnand %p5229_p12, %p5223_p11 }
 0x293   : > { %5233 = shalt.err (!%p5230_p4)
}
 0x294   : > { %s6894_s28 = sld [smem:[#allocation82_spill]] }
 0x295   : > { %4286 = dma.hbm_to_vmem [thread:$0]  (!%p6887_p2), %s6893_s22, 16, %s973_s9, [#allocation22]  }
 0x29a   : > { %s5234_s3 = scalar_lea.hbm %s6894_s28, 16 }
 0x29b   : > { %p5235_p13 = scmp.ne.s32.totalorder %s6894_s28, %s5234_s3  ;;  %p5241_p10 = scmp.lt.u32.totalorder %s5234_s3, %s6894_s28 }
 0x29d   : > { %p5237_p8 = pnand %p5235_p13, %p6886_p5 }
 0x29f   : > { %p5238_p6 = pneg %p5237_p8 }
 0x2a1   : > { %p5243_p9 = pnand %p5241_p10, %p5238_p6 }
 0x2a3   : > { %5246 = shalt.err (!%p5243_p9)
}
 0x2a4   : > { %s5247_s1 = scalar_lea.vmem %s995_s2, 16  ;;  %s5254_s0 = scalar_lea.vmem %s995_s2, 32 }
 0x2a5   : > { %p5248_p7 = scmp.ne.s32.totalorder %s995_s2, %s5247_s1  ;;  %p5255_p0 = scmp.lt.s32.totalorder %s995_s2, %s995_s2 }
 0x2a6   : > { %p5256_p1 = scmp.lt.s32.totalorder %s5254_s0, %s5247_s1 }
 0x2a7   : > { %p5250_p3 = pnand %p5248_p7, %p6886_p5 }
 0x2a8   : > { %p5257_p12 = por %p5256_p1, %p5255_p0 }
 0x2a9   : > { %p5251_p11 = pneg %p5250_p3 }
 0x2ab   : > { %p5258_p4 = pnand %p5257_p12, %p5251_p11 }
 0x2ad   : > { %5261 = shalt.err (!%p5258_p4)
}
 0x2ae   : > { %s6895_s9 = sld [smem:[#allocation84_spill]]  ;;  %s5711_s10 = smov [#allocation29]  }
 0x2af   : > { %4292 = dma.hbm_to_vmem [thread:$0]  (!%p6887_p2), %s6894_s28, 16, %s995_s2, [#allocation25]  }
 0x2b0   : > { %s1018_s25 = sshll.u32 %s5711_s10, 4  ;;  %s5712_s3 = smov [#allocation32]   ;;  %s1019_s25 = int_to_ptr.vmem [resolvable:$true] %s1018_s25 }
 0x2b1   : > { %s1042_s4 = sshll.u32 %s5712_s3, 4  ;;  %s1043_s4 = int_to_ptr.vmem [resolvable:$true] %s1042_s4 }
 0x2b4   : > { %s5262_s5 = scalar_lea.hbm %s6895_s9, 16 }
 0x2b5   : > { %p5263_p13 = scmp.ne.s32.totalorder %s6895_s9, %s5262_s5  ;;  %p5269_p10 = scmp.lt.u32.totalorder %s5262_s5, %s6895_s9 }
 0x2b7   : > { %p5265_p8 = pnand %p5263_p13, %p6886_p5 }
 0x2b9   : > { %p5266_p6 = pneg %p5265_p8 }
 0x2bb   : > { %p5271_p9 = pnand %p5269_p10, %p5266_p6 }
 0x2bd   : > { %5274 = shalt.err (!%p5271_p9)
}
 0x2be   : > { %s5275_s1 = scalar_lea.vmem %s1019_s25, 16  ;;  %s5282_s2 = scalar_lea.vmem %s1019_s25, 32 }
 0x2bf   : > { %p5276_p7 = scmp.ne.s32.totalorder %s1019_s25, %s5275_s1  ;;  %p5283_p0 = scmp.lt.s32.totalorder %s1019_s25, %s1019_s25 }
 0x2c0   : > { %p5284_p1 = scmp.lt.s32.totalorder %s5282_s2, %s5275_s1 }
 0x2c1   : > { %p5278_p3 = pnand %p5276_p7, %p6886_p5 }
 0x2c2   : > { %p5285_p12 = por %p5284_p1, %p5283_p0 }
 0x2c3   : > { %p5279_p11 = pneg %p5278_p3 }
 0x2c5   : > { %p5286_p4 = pnand %p5285_p12, %p5279_p11 }
 0x2c7   : > { %5289 = shalt.err (!%p5286_p4)
}
 0x2c8   : > { %s6896_s0 = sld [smem:[#allocation86_spill]] }
 0x2c9   : > { %4298 = dma.hbm_to_vmem [thread:$0]  (!%p6887_p2), %s6895_s9, 16, %s1019_s25, [#allocation28]  }
 0x2ce   : > { %s6897_s3 = smov %s6896_s0  ;;  %s5290_s5 = scalar_lea.hbm %s6896_s0, 16 }
 0x2cf   : > { %p5291_p13 = scmp.ne.s32.totalorder %s6897_s3, %s5290_s5  ;;  %p5297_p10 = scmp.lt.u32.totalorder %s5290_s5, %s6897_s3 }
 0x2d1   : > { %p5293_p8 = pnand %p5291_p13, %p6886_p5 }
 0x2d3   : > { %p5294_p6 = pneg %p5293_p8 }
 0x2d5   : > { %p5299_p9 = pnand %p5297_p10, %p5294_p6 }
 0x2d7   : > { %5302 = shalt.err (!%p5299_p9)
}
 0x2d8   : > { %s5303_s10 = scalar_lea.vmem %s1043_s4, 16  ;;  %s5310_s1 = scalar_lea.vmem %s1043_s4, 32 }
 0x2d9   : > { %p5304_p7 = scmp.ne.s32.totalorder %s1043_s4, %s5303_s10  ;;  %p5311_p0 = scmp.lt.s32.totalorder %s1043_s4, %s1043_s4 }
 0x2da   : > { %p5312_p1 = scmp.lt.s32.totalorder %s5310_s1, %s5303_s10 }
 0x2db   : > { %p5306_p3 = pnand %p5304_p7, %p6886_p5 }
 0x2dc   : > { %p5313_p12 = por %p5312_p1, %p5311_p0 }
 0x2dd   : > { %p5307_p11 = pneg %p5306_p3 }
 0x2df   : > { %p5314_p4 = pnand %p5313_p12, %p5307_p11 }
 0x2e1   : > { %5317 = shalt.err (!%p5314_p4)
}
 0x2e2   : > { %s6898_s25 = sld [smem:[#allocation87_spill]]  ;;  %s5713_s2 = smov [#allocation35]  }
 0x2e3   : > { %4304 = dma.hbm_to_vmem [thread:$0]  (!%p6887_p2), %s6897_s3, 16, %s1043_s4, [#allocation31]  }
 0x2e4   : > { %s1066_s0 = sshll.u32 %s5713_s2, 4  ;;  %s5714_s5 = smov [#allocation38]   ;;  %s1067_s0 = int_to_ptr.vmem [resolvable:$true] %s1066_s0 }
 0x2e5   : > { %s1090_s6 = sshll.u32 %s5714_s5, 4  ;;  %s1091_s6 = int_to_ptr.vmem [resolvable:$true] %s1090_s6 }
 0x2e8   : > { %s5318_s8 = scalar_lea.hbm %s6898_s25, 16 }
 0x2e9   : > { %p5319_p13 = scmp.ne.s32.totalorder %s6898_s25, %s5318_s8  ;;  %p5325_p10 = scmp.lt.u32.totalorder %s5318_s8, %s6898_s25 }
 0x2eb   : > { %p5321_p8 = pnand %p5319_p13, %p6886_p5 }
 0x2ed   : > { %p5322_p6 = pneg %p5321_p8 }
 0x2ef   : > { %p5327_p9 = pnand %p5325_p10, %p5322_p6 }
 0x2f1   : > { %5330 = shalt.err (!%p5327_p9)
}
 0x2f2   : > { %s5331_s10 = scalar_lea.vmem %s1067_s0, 16  ;;  %s5338_s4 = scalar_lea.vmem %s1067_s0, 32 }
 0x2f3   : > { %p5332_p7 = scmp.ne.s32.totalorder %s1067_s0, %s5331_s10  ;;  %p5339_p0 = scmp.lt.s32.totalorder %s1067_s0, %s1067_s0 }
 0x2f4   : > { %p5340_p1 = scmp.lt.s32.totalorder %s5338_s4, %s5331_s10 }
 0x2f5   : > { %p5334_p3 = pnand %p5332_p7, %p6886_p5 }
 0x2f6   : > { %p5341_p12 = por %p5340_p1, %p5339_p0 }
 0x2f7   : > { %p5335_p11 = pneg %p5334_p3 }
 0x2f9   : > { %p5342_p4 = pnand %p5341_p12, %p5335_p11 }
 0x2fb   : > { %5345 = shalt.err (!%p5342_p4)
}
 0x2fc   : > { %s6899_s1 = sld [smem:[#allocation88_spill]] }
 0x2fd   : > { %4310 = dma.hbm_to_vmem [thread:$0]  (!%p6887_p2), %s6898_s25, 16, %s1067_s0, [#allocation34]  }
 0x302   : > { %s5346_s8 = scalar_lea.hbm %s6899_s1, 16 }
 0x303   : > { %p5347_p13 = scmp.ne.s32.totalorder %s6899_s1, %s5346_s8  ;;  %p5353_p10 = scmp.lt.u32.totalorder %s5346_s8, %s6899_s1 }
 0x305   : > { %p5349_p8 = pnand %p5347_p13, %p6886_p5 }
 0x307   : > { %p5350_p6 = pneg %p5349_p8 }
 0x309   : > { %p5355_p9 = pnand %p5353_p10, %p5350_p6 }
 0x30b   : > { %5358 = shalt.err (!%p5355_p9)
}
 0x30c   : > { %s5359_s2 = scalar_lea.vmem %s1091_s6, 16  ;;  %s5366_s5 = scalar_lea.vmem %s1091_s6, 32 }
 0x30d   : > { %p5360_p7 = scmp.ne.s32.totalorder %s1091_s6, %s5359_s2  ;;  %p5367_p0 = scmp.lt.s32.totalorder %s1091_s6, %s1091_s6 }
 0x30e   : > { %p5368_p1 = scmp.lt.s32.totalorder %s5366_s5, %s5359_s2 }
 0x30f   : > { %p5362_p3 = pnand %p5360_p7, %p6886_p5 }
 0x310   : > { %p5369_p12 = por %p5368_p1, %p5367_p0 }
 0x311   : > { %p5363_p11 = pneg %p5362_p3 }
 0x313   : > { %p5370_p4 = pnand %p5369_p12, %p5363_p11 }
 0x315   : > { %5373 = shalt.err (!%p5370_p4)
}
 0x316   : > { %s6900_s0 = sld [smem:[#allocation90_spill]]  ;;  %s5715_s10 = smov [#allocation41]  }
 0x317   : > { %4316 = dma.hbm_to_vmem [thread:$0]  (!%p6887_p2), %s6899_s1, 16, %s1091_s6, [#allocation37]  }
 0x318   : > { %s1112_s8 = sshll.u32 %s5715_s10, 4  ;;  %s5716_s3 = smov [#allocation44]   ;;  %s1113_s8 = int_to_ptr.vmem [resolvable:$true] %s1112_s8 }
 0x319   : > { %s1136_s9 = sshll.u32 %s5716_s3, 4  ;;  %s1137_s9 = int_to_ptr.vmem [resolvable:$true] %s1136_s9 }
 0x31c   : > { %s6901_s4 = smov %s6900_s0  ;;  %s5374_s12 = scalar_lea.hbm %s6900_s0, 16 }
 0x31d   : > { %p5375_p13 = scmp.ne.s32.totalorder %s6901_s4, %s5374_s12  ;;  %p5381_p10 = scmp.lt.u32.totalorder %s5374_s12, %s6901_s4 }
 0x31f   : > { %p5377_p8 = pnand %p5375_p13, %p6886_p5 }
 0x321   : > { %p5378_p6 = pneg %p5377_p8 }
 0x323   : > { %p5383_p9 = pnand %p5381_p10, %p5378_p6 }
 0x325   : > { %5386 = shalt.err (!%p5383_p9)
}
 0x326   : > { %s5387_s2 = scalar_lea.vmem %s1113_s8, 16  ;;  %s5394_s6 = scalar_lea.vmem %s1113_s8, 32 }
 0x327   : > { %p5388_p7 = scmp.ne.s32.totalorder %s1113_s8, %s5387_s2  ;;  %p5395_p0 = scmp.lt.s32.totalorder %s1113_s8, %s1113_s8 }
 0x328   : > { %p5396_p1 = scmp.lt.s32.totalorder %s5394_s6, %s5387_s2 }
 0x329   : > { %p5390_p3 = pnand %p5388_p7, %p6886_p5 }
 0x32a   : > { %p5397_p12 = por %p5396_p1, %p5395_p0 }
 0x32b   : > { %p5391_p11 = pneg %p5390_p3 }
 0x32d   : > { %p5398_p4 = pnand %p5397_p12, %p5391_p11 }
 0x32f   : > { %5401 = shalt.err (!%p5398_p4)
}
 0x330   : > { %s6902_s3 = sld [smem:[#allocation92_spill]] }
 0x331   : > { %4322 = dma.hbm_to_vmem [thread:$0]  (!%p6887_p2), %s6901_s4, 16, %s1113_s8, [#allocation40]  }
 0x336   : > { %s5402_s12 = scalar_lea.hbm %s6902_s3, 16 }
 0x337   : > { %p5403_p13 = scmp.ne.s32.totalorder %s6902_s3, %s5402_s12  ;;  %p5409_p10 = scmp.lt.u32.totalorder %s5402_s12, %s6902_s3 }
 0x339   : > { %p5405_p8 = pnand %p5403_p13, %p6886_p5 }
 0x33b   : > { %p5406_p6 = pneg %p5405_p8 }
 0x33d   : > { %p5411_p9 = pnand %p5409_p10, %p5406_p6 }
 0x33f   : > { %5414 = shalt.err (!%p5411_p9)
}
 0x340   : > { %s5415_s5 = scalar_lea.vmem %s1137_s9, 16  ;;  %s5422_s0 = scalar_lea.vmem %s1137_s9, 32 }
 0x341   : > { %p5416_p7 = scmp.ne.s32.totalorder %s1137_s9, %s5415_s5  ;;  %p5423_p0 = scmp.lt.s32.totalorder %s1137_s9, %s1137_s9 }
 0x342   : > { %p5424_p1 = scmp.lt.s32.totalorder %s5422_s0, %s5415_s5 }
 0x343   : > { %p5418_p3 = pnand %p5416_p7, %p6886_p5 }
 0x344   : > { %p5425_p12 = por %p5424_p1, %p5423_p0 }
 0x345   : > { %p5419_p11 = pneg %p5418_p3 }
 0x347   : > { %p5426_p4 = pnand %p5425_p12, %p5419_p11 }
 0x349   : > { %5429 = shalt.err (!%p5426_p4)
}
 0x34a   : > { %4328 = dma.hbm_to_vmem [thread:$0]  (!%p6887_p2), %s6902_s3, 16, %s1137_s9, [#allocation43]  }
 0x34b   : > { %s5717_s10 = smov [#allocation47]   ;;  %s5718_s2 = smov [#allocation50]  }
 0x34c   : > { %s1160_s8 = sshll.u32 %s5717_s10, 4  ;;  %s1182_s6 = sshll.u32 %s5718_s2, 4  ;;  %s1161_s8 = int_to_ptr.vmem [resolvable:$true] %s1160_s8  ;;  %s1183_s6 = int_to_ptr.vmem [resolvable:$true] %s1182_s6 }
 0x34d   : > { %s5430_s12 = scalar_lea.hbm %s5887_s29, 16 }
 0x34e   : > { %p5431_p13 = scmp.ne.s32.totalorder %s5887_s29, %s5430_s12  ;;  %p5437_p10 = scmp.lt.u32.totalorder %s5430_s12, %s5887_s29 }
 0x350   : > { %p5433_p8 = pnand %p5431_p13, %p6886_p5 }
 0x352   : > { %p5434_p6 = pneg %p5433_p8 }
 0x354   : > { %p5439_p9 = pnand %p5437_p10, %p5434_p6 }
 0x356   : > { %5442 = shalt.err (!%p5439_p9)
}
 0x357   : > { %s5443_s5 = scalar_lea.vmem %s1161_s8, 16  ;;  %s5450_s9 = scalar_lea.vmem %s1161_s8, 32 }
 0x358   : > { %p5444_p7 = scmp.ne.s32.totalorder %s1161_s8, %s5443_s5  ;;  %p5451_p0 = scmp.lt.s32.totalorder %s1161_s8, %s1161_s8 }
 0x359   : > { %p5452_p1 = scmp.lt.s32.totalorder %s5450_s9, %s5443_s5 }
 0x35a   : > { %p5446_p3 = pnand %p5444_p7, %p6886_p5 }
 0x35b   : > { %p5453_p12 = por %p5452_p1, %p5451_p0 }
 0x35c   : > { %p5447_p11 = pneg %p5446_p3 }
 0x35e   : > { %p5454_p4 = pnand %p5453_p12, %p5447_p11 }
 0x360   : > { %5457 = shalt.err (!%p5454_p4)
}
 0x361   : > { %s6903_s0 = sld [smem:[#allocation95_spill]] }
 0x362   : > { %4334 = dma.hbm_to_vmem [thread:$0]  (!%p6887_p2), %s5887_s29, 16, %s1161_s8, [#allocation46]  }
 0x367   : > { %s6904_s2 = smov %s6903_s0  ;;  %s5458_s10 = scalar_lea.hbm %s6903_s0, 16 }
 0x368   : > { %p5459_p13 = scmp.ne.s32.totalorder %s6904_s2, %s5458_s10  ;;  %p5465_p10 = scmp.lt.u32.totalorder %s5458_s10, %s6904_s2 }
 0x36a   : > { %p5461_p8 = pnand %p5459_p13, %p6886_p5 }
 0x36c   : > { %p5462_p6 = pneg %p5461_p8 }
 0x36e   : > { %p5467_p9 = pnand %p5465_p10, %p5462_p6 }
 0x370   : > { %5470 = shalt.err (!%p5467_p9)
}
 0x371   : > { %s5471_s12 = scalar_lea.vmem %s1183_s6, 16  ;;  %s5478_s5 = scalar_lea.vmem %s1183_s6, 32 }
 0x372   : > { %p5472_p7 = scmp.ne.s32.totalorder %s1183_s6, %s5471_s12  ;;  %p5479_p0 = scmp.lt.s32.totalorder %s1183_s6, %s1183_s6 }
 0x373   : > { %p5480_p1 = scmp.lt.s32.totalorder %s5478_s5, %s5471_s12 }
 0x374   : > { %p5474_p3 = pnand %p5472_p7, %p6886_p5 }
 0x375   : > { %p5481_p12 = por %p5480_p1, %p5479_p0 }
 0x376   : > { %p5475_p11 = pneg %p5474_p3 }
 0x378   : > { %p5482_p4 = pnand %p5481_p12, %p5475_p11 }
 0x37a   : > { %5485 = shalt.err (!%p5482_p4)
}
 0x37b   : > { %s6905_s8 = sld [smem:[#allocation100_spill]]  ;;  %s6906_s9 = sld [smem:[#allocation99_spill]] }
 0x37c   : > { %s6907_s0 = sld [smem:[#allocation75_spill]]  ;;  %p6910_p13 = scmp.ne.s32.totalorder %s6873_s11, 0 }
 0x37d   : > { %4340 = dma.hbm_to_vmem [thread:$0]  (!%p6887_p2), %s6904_s2, 16, %s1183_s6, [#allocation49]  }
 0x381   : > { %s3777_s10 = sshll.u32 %s6905_s8, 4  ;;  %s6909_s27 = sand.u32 1, %s6906_s9  }
 0x382   : > { %s6908_s1 = smov %s6907_s0  ;;  %s1250_s3 = scalar_lea.vmem [#allocation12], %s6909_s27 }
 0x383   : > { %s1257_s4 = sshll.u32 %s1250_s3, 4  ;;  %s1255_s13 = scalar_lea.hbm %s6907_s0, %s3777_s10  ;;  %s1258_s4 = int_to_ptr.vmem [resolvable:$true] %s1257_s4 }
 0x384   : > { %s5486_s12 = scalar_lea.hbm %s1255_s13, 16  ;;  %s5491_s18 = scalar_lea.hbm %s6908_s1, 32 }
 0x385   : > { %p5487_p5 = scmp.ne.s32.totalorder %s1255_s13, %s5486_s12  ;;  %p5492_p10 = scmp.lt.u32.totalorder %s1255_s13, %s6908_s1 }
 0x386   : > { %p5493_p9 = scmp.lt.u32.totalorder %s5491_s18, %s5486_s12  ;;  %p5495_p3 = scmp.lt.u32.totalorder %s5486_s12, %s1255_s13 }
 0x387   : > { %p5489_p8 = pnand %p5487_p5, %p6910_p13 }
 0x388   : > { %p5494_p7 = por %p5493_p9, %p5492_p10 }
 0x389   : > { %p5490_p6 = pneg %p5489_p8 }
 0x38a   : > { %p5496_p11 = por %p5495_p3, %p5494_p7 }
 0x38c   : > { %p5497_p0 = pnand %p5496_p11, %p5490_p6 }
 0x38e   : > { %5500 = shalt.err (!%p5497_p0)
}
 0x38f   : > { %s5501_s6 = scalar_lea.vmem %s1258_s4, 16  ;;  %s5719_s3 = smov [#allocation12]  }
 0x390   : > { %p5502_p2 = scmp.ne.s32.totalorder %s1258_s4, %s5501_s6  ;;  %s5506_s5 = sshll.u32 %s5719_s3, 4  ;;  %s5507_s5 = int_to_ptr.vmem [resolvable:$false] %s5506_s5 }
 0x391   : > { %s5508_s8 = scalar_lea.vmem %s5507_s5, 32  ;;  %p5509_p4 = scmp.lt.s32.totalorder %s1258_s4, %s5507_s5 }
 0x392   : > { %p5504_p1 = pnand %p5502_p2, %p6910_p13  ;;  %p5510_p5 = scmp.lt.s32.totalorder %s5508_s8, %s5501_s6 }
 0x394   : > { %p5505_p12 = pneg %p5504_p1  ;;  %p5511_p8 = por %p5510_p5, %p5509_p4 }
 0x396   : > { %p5512_p9 = pnand %p5511_p8, %p5505_p12 }
 0x398   : > { %5515 = shalt.err (!%p5512_p9)
}
 0x399   : > { %p6911_p10 = scmp.ne.s32.totalorder %s6872_s7, 0  ;;  %s6912_s9 = sld [smem:[#allocation107_spill]] }
 0x39b   : > { %4353 = dma.hbm_to_vmem [thread:$0]  (!%p6911_p10), %s1255_s13, 16, %s1258_s4, %s6002_s23  }
 0x39f   : > { %p6913_p6 = scmp.ne.s32.totalorder %s6912_s9, 0 }
 0x3a0   : > { %s6914_s0 = sld [smem:[#allocation101_spill]] (!%p6913_p6)  ;;  %s6915_s11 = sld [smem:[#allocation98_spill]] (!%p6913_p6) }
 0x3a1   : > { %1266 = sbr.rel (%p6913_p6) target bundleno = 5634 (0x1602), region = 152  ;;  %s6916_s10 = sld [smem:[#allocation104_spill]] (!%p6913_p6) }
 0x3a6   : > { %s1268_s27 = sand.u32 (!%p6913_p6), 1, %s6914_s0   ;;  %s6410_s12 = sand.u32 (!%p6913_p6), 1, %s6915_s11  }
 0x3a7   : > { %s6413_s18 = sshll.u32 (!%p6913_p6), %s6410_s12, 3  ;;  %s1269_s6 = scalar_lea.sflag (!%p6913_p6), [#allocation3], %s1268_s27 }
 0x3a8   : > { %s1272_s3 = scalar_lea.vmem [#allocation2], %s6413_s18  ;;  %p6917_p13 = scmp.ne.s32.totalorder %s6916_s10, 0 }
 0x3aa   : > { %5561 = dma.done.wait (%p6917_p13), %s1269_s6, 128  }
 0x3ab   : > { %5563 = vsyncadd (%p6917_p13), %s1269_s6, 4294967168  ;;  %p6918_p7 = scmp.eq.s32.totalorder %s6914_s0, 0 }
 0x3ad   : > { %5565 = dma.done.wait (%p6918_p7), [#allocation6], 144   ;;  %p6919_p3 = pmov %p6918_p7 }
 0x3af   : > { %5567 = vsyncadd (%p6919_p3), [#allocation6], 4294967152  ;;  %p6920_p11 = pmov %p6919_p3 }
 0x3b0   : > { %p6921_p0 = pmov %p6919_p3 }
 0x3b1   : > { %5569 = dma.done.wait (%p6920_p11), [#allocation9], 16  }
 0x3b2   : > { %5571 = vsyncadd (%p6921_p0), [#allocation9], 4294967280  ;;  %s1293_s13 = scalar_lea.vmem [#allocation10], %s6413_s18 }
 0x3b3   : > { %5573 = dma.done.wait (%p6917_p13), %s1269_s6, 272  }
 0x3b4   : > { %5575 = vsyncadd (%p6917_p13), %s1269_s6, 4294967024  ;;  %s1302_s7 = scalar_lea.vmem [#allocation11], %s6413_s18  ;;  %s1310_s23 = scalar_lea.vmem [#allocation12], %s6410_s12 }
 0x3b5   : > { %p6922_p2 = pmov %p6921_p0 }
 0x3b6   : > { %p6923_p1 = pmov %p6921_p0 }
 0x3b7   : > { %5577 = dma.done.wait (%p6922_p2), [#allocation6], 256  }
 0x3b8   : > { %5579 = vsyncadd (%p6923_p1), [#allocation6], 4294967040  ;;  %p6924_p12 = pmov %p6921_p0 }
 0x3b9   : > { %p6925_p4 = pmov %p6921_p0 }
 0x3ba   : > { %5581 = dma.done.wait (%p6924_p12), [#allocation9], 16  }
 0x3bb   : > { %5583 = vsyncadd (%p6925_p4), [#allocation9], 4294967280  ;;  %p6926_p5 = pmov %p6921_p0 }
 0x3bc   : > { %p6927_p8 = pmov %p6921_p0 }
 0x3bd   : > { %5585 = dma.done.wait (%p6926_p5), [#allocation16], 272  }
 0x3be   : > { %5587 = vsyncadd (%p6927_p8), [#allocation16], 4294967024  ;;  %p6928_p9 = pmov %p6921_p0 }
 0x3bf   : > { %p6929_p10 = pmov %p6921_p0 }
 0x3c0   : > { %5589 = dma.done.wait (%p6928_p9), [#allocation19], 272  }
 0x3c1   : > { %5591 = vsyncadd (%p6929_p10), [#allocation19], 4294967024  ;;  %p6930_p6 = pmov %p6921_p0 }
 0x3c2   : > { %p6931_p13 = pmov %p6921_p0 }
 0x3c3   : > { %5593 = dma.done.wait (%p6930_p6), [#allocation22], 272  }
 0x3c4   : > { %5595 = vsyncadd (%p6931_p13), [#allocation22], 4294967024  ;;  %p6932_p7 = pmov %p6921_p0 }
 0x3c5   : > { %p6933_p3 = pmov %p6921_p0 }
 0x3c6   : > { %5597 = dma.done.wait (%p6932_p7), [#allocation25], 32  }
 0x3c7   : > { %5599 = vsyncadd (%p6933_p3), [#allocation25], 4294967264  ;;  %p6934_p11 = pmov %p6921_p0 }
 0x3c9   : > { %5601 = dma.done.wait (%p6934_p11), [#allocation28], 272  }
 0x3ca   : > { %5603 = vsyncadd (%p6921_p0), [#allocation28], 4294967024  ;;  %p6935_p2 = pmov %p6921_p0 }
 0x3cb   : > { %p6936_p1 = pmov %p6921_p0 }
 0x3cc   : > { %5605 = dma.done.wait (%p6935_p2), [#allocation31], 272  }
 0x3cd   : > { %5607 = vsyncadd (%p6936_p1), [#allocation31], 4294967024  ;;  %p6937_p12 = pmov %p6921_p0 }
 0x3ce   : > { %p6938_p4 = pmov %p6921_p0 }
 0x3cf   : > { %5609 = dma.done.wait (%p6937_p12), [#allocation34], 272  }
 0x3d0   : > { %5611 = vsyncadd (%p6938_p4), [#allocation34], 4294967024  ;;  %p6939_p5 = pmov %p6921_p0 }
 0x3d1   : > { %p6940_p8 = pmov %p6921_p0 }
 0x3d2   : > { %5613 = dma.done.wait (%p6939_p5), [#allocation37], 272  }
 0x3d3   : > { %5615 = vsyncadd (%p6940_p8), [#allocation37], 4294967024  ;;  %p6941_p9 = pmov %p6921_p0 }
 0x3d4   : > { %p6942_p10 = pmov %p6921_p0 }
 0x3d5   : > { %5617 = dma.done.wait (%p6941_p9), [#allocation40], 32  }
 0x3d6   : > { %5619 = vsyncadd (%p6942_p10), [#allocation40], 4294967264  ;;  %p6943_p6 = pmov %p6921_p0 }
 0x3d7   : > { %p6944_p13 = pmov %p6921_p0 }
 0x3d8   : > { %5621 = dma.done.wait (%p6943_p6), [#allocation43], 272  }
 0x3d9   : > { %5623 = vsyncadd (%p6944_p13), [#allocation43], 4294967024  ;;  %p6945_p7 = pmov %p6921_p0 }
 0x3da   : > { %p6946_p3 = pmov %p6921_p0 }
 0x3db   : > { %5625 = dma.done.wait (%p6945_p7), [#allocation46], 528  }
 0x3dc   : > { %5627 = vsyncadd (%p6946_p3), [#allocation46], 4294966768  ;;  %p6947_p11 = pmov %p6921_p0 }
 0x3de   : > { %5629 = dma.done.wait (%p6947_p11), [#allocation49], 32  }
 0x3df   : > { %5631 = vsyncadd (%p6921_p0), [#allocation49], 4294967264  ;;  %v1512_v0 = vld [vmem:[%s1272_s3] sm:$0xff]  ;;  %v1513_v1 = vld [vmem:[#allocation5] sm:$0xff]  ;;  %vm1517_vm0 = vcmask 261120   ;;  %v5720_v11 = vmov 0.0  }
 0x3e0   : > { %v1514_v2 = vadd.f32 %v1513_v1, %v1512_v0  ;;  %v4522_v9 = vld [vmem:[#allocation13] sm:$0xff]   ;;  %v4523_v10 = vld [vmem:[#allocation15] sm:$0xff]   ;;  %3947 = vmatprep.subr.bf16.mxu0 %v5720_v11  ;;  %3955 = vmatprep.subr.bf16.mxu1 %v5720_v11  ;;  %v4524_v12 = vld [vmem:[#allocation13 + $0x8] sm:$0xff]   ;;  %vm5721_vm1 = vmmov 0   ;;  %vm1782_vm2 = vcmask 64512   ;;  %s5722_s4 = smov 120  }
 0x3e1   : > { %3948 = vmatpush3.bf16.msra.mxu0 %v4522_v9  ;;  %3956 = vmatpush3.bf16.msra.mxu1 %v4523_v10  ;;  %v4525_v13 = vld [vmem:[#allocation15 + $0x8] sm:$0xff]   ;;  %v4526_v23 = vld [vmem:[#allocation18] sm:$0xff]   ;;  %v4527_v25 = vld [vmem:[#allocation18 + $0x8] sm:$0xff]   ;;  %s5723_s5 = smov 112   ;;  %s5724_s8 = smov 104   ;;  %vm2027_vm3 = vcmask 1043456  }
 0x3e2   : > { %v1518_v3 = vsel %vm1517_vm0, %v1514_v2, 0.0  ;;  %3949 = vmatprep.subr.bf16.mxu0 %v5720_v11  ;;  %3957 = vmatprep.subr.bf16.mxu1 %v5720_v11  ;;  %v3812_v18 = vld [vmem:[#allocation7] ss:$0 sm:$0xff]  ;;  %v3813_v20 = vld [vmem:[#allocation8] ss:$0 sm:$0xff]  ;;  %s5725_s9 = smov 8  }
 0x3e3   : > { %1519 = vadd.xlane.f32.xlu0 %v1518_v3  ;;  %3951 = vmatprep.mubr.msk.bf16.mxu0 %vm5721_vm1, %v5720_v11  ;;  %v3814_v26 = vld [vmem:[#allocation14] ss:$0 sm:$0xff]  ;;  %v3818_v27 = vld [vmem:[#allocation17] ss:$0 sm:$0xff]  ;;  %v3822_v48 = vld [vmem:[#allocation20] ss:$0 sm:$0xff] }
 0x3e4   : > { %3959 = vmatprep.mubr.msk.bf16.mxu1 %vm5721_vm1, %v5720_v11  ;;  %v1971_v1 = vld [vmem:[%s1302_s7] sm:$0xff]  ;;  %s5726_s11 = smov 16   ;;  %s5727_s10 = smov 24   ;;  %vm2222_vm4 = vcmask 130048   ;;  %vm2224_vm5 = vcmask 195584   ;;  %vm3213_vm6 = vcmask 523264  }
 0x3e5   : > { %3950 = vmatpush3.bf16.msra.mxu0 %v4524_v12  ;;  %3958 = vmatpush3.bf16.msra.mxu1 %v4525_v13  ;;  %s6948_s27 = sld [smem:[#allocation96_spill]]  ;;  %s3811_s18 = sshll.u32 %s6410_s12, 2  ;;  %vm3288_vm7 = vcmask 257024  }
 0x3e6   : > { %3963 = vmatprep.subr.bf16.mxu0 %v5720_v11  ;;  %3971 = vmatprep.subr.bf16.mxu1 %v5720_v11  ;;  %s6949_s6 = sld [smem:[#allocation105_spill]]  ;;  %s3880_s3 = sshll.u32 %s6914_s0, 6 }
 0x3e7   : > { %s5728_s0 = smov [#allocation51]  }
 0x3ec   : > { %p6950_p1 = scmp.ne.s32.totalorder %s6949_s6, 0 }
 0x470   : > { %v1520_v4 = vpop.xlane.xlu0 %1519 }
 0x471   : > { %v1522_v5 = vmul.f32 0.03125, %v1520_v4 }
 0x473   : > { %v1523_v6 = vsub.f32 %v1514_v2, %v1522_v5 }
 0x475   : > { %v1524_v7 = vmul.f32 %v1523_v6, %v1523_v6 }
 0x477   : > { %v1525_v8 = vsel %vm1517_vm0, %v1524_v7, 0.0 }
 0x478   : > { %1526 = vadd.xlane.f32.xlu0 %v1525_v8 }
 0x505   : > { %v1527_v14 = vpop.xlane.xlu0 %1526 }
 0x506   : > { %v1528_v15 = vmul.f32 0.03125, %v1527_v14 }
 0x508   : > { %v1529_v16 = vadd.f32 1e-05, %v1528_v15 }
 0x50a   : > { %4544 = vrsqrt.f32 %v1529_v16 }
 0x514   : > { %v4545_v17 = vpop.eup %4544 }
 0x515   : > { %v1531_v19 = vmul.f32 %v4545_v17, %v1523_v6 }
 0x517   : > { %v1538_v21 = vmul.f32 %v3812_v18, %v1531_v19 }
 0x519   : > { %v6505_v22 = vadd.f32 %v3813_v20, %v1538_v21 }
 0x51b   : > { %v1547_v24 = vpack.c.bf16 %v6505_v22, %v6505_v22 }
 0x51d   : > { %3952 = vmatmul.mubr.msk.bf16.vlgmr.msra.gmra.mrb[0].mxu0 %vm1517_vm0, %v1547_v24  ;;  %3960 = vmatmul.mubr.msk.bf16.vlgmr.msra.gmra.mrb[0].mxu1 %vm1517_vm0, %v1547_v24 }
 0x51e   : > { %3964 = vmatpush3.bf16.msra.mxu0 %v4526_v23  ;;  %3967 = vmatprep.mubr.msk.bf16.mxu0 %vm5721_vm1, %v5720_v11 }
 0x51f   : > { %3965 = vmatprep.subr.bf16.mxu0 %v5720_v11  ;;  %3973 = vmatprep.mubr.msk.bf16.mxu1 %vm5721_vm1, %v5720_v11 }
 0x522   : > { %3966 = vmatpush3.bf16.msra.mxu0 %v4527_v25 }
 0x523   : > { %3977 = vmatprep.subr.bf16.mxu0 %v5720_v11 }
 0x525   : > { %3968 = vmatmul.mubr.msk.bf16.vlgmr.msra.gmra.mrb[4].mxu0 %vm1517_vm0, %v1547_v24 }
 0x526   : > { %3979 = vmatprep.mubr.msk.bf16.mxu0 %vm5721_vm1, %v5720_v11 }
 0x5f0   : > { %v1608_v28 = vpop.f32.mrb[0].mxu0  ;;  %v1671_v29 = vpop.f32.mrb[0].mxu1 }
 0x5f1   : > { %v1609_v30 = vadd.f32 %v3814_v26, %v1608_v28  ;;  %v1672_v31 = vadd.f32 %v3818_v27, %v1671_v29  ;;  %v3953_v32 = vpop.f32.mrb[1].mxu0  ;;  %v3961_v33 = vpop.f32.mrb[1].mxu1 }
 0x5f2   : > { %v1611_v34 = vpop.f32.mrb[2].mxu0  ;;  %v1674_v35 = vpop.f32.mrb[2].mxu1 }
 0x5f3   : > { %1755 = vrot.lane.b32.xlu1 %v1672_v31, %s5722_s4  ;;  %v3962_v36 = vpop.f32.mrb[3].mxu1  ;;  %1741 = vrot.lane.b32.xlu0 %v1609_v30, %s5722_s4  ;;  %v3954_v37 = vpop.f32.mrb[3].mxu0  ;;  %v1764_v38 = vpack.c.bf16 %v1672_v31, %v1672_v31  ;;  %v1750_v43 = vpack.c.bf16 %v1609_v30, %v1609_v30 }
 0x5f5   : > { %v1787_v39 = vsel %vm1782_vm2, %v1764_v38, 0 }
 0x5f6   : > { %3972 = vmatpush3.bf16.xpose.msra.mxu1 %v1787_v39 }
 0x5f7   : > { %1758 = vrot.lane.b32.xlu1 %v1672_v31, %s5723_s5  ;;  %3983 = vmatprep.subr.bf16.mxu1 %v5720_v11 }
 0x5f8   : > { %v1734_v40 = vpop.f32.mrb[4].mxu0 }
 0x5f9   : > { %v3969_v41 = vpop.f32.mrb[5].mxu0  ;;  %v6533_v52 = vadd.f32 %v3822_v48, %v1734_v40 }
 0x5fa   : > { %v1737_v42 = vpop.f32.mrb[6].mxu0 }
 0x5fb   : > { %1761 = vrot.lane.b32.xlu1 %v1672_v31, %s5724_s8  ;;  %v3970_v44 = vpop.f32.mrb[7].mxu0  ;;  %v1778_v58 = vpack.c.bf16 %v6533_v52, %v6533_v52 }
 0x5fd   : > { %3974 = vmatmul.mubr.msk.bf16.vlgmr.msra.gmra.mrb[4].mxu1 %vm1782_vm2, %v1750_v43  ;;  %v2029_v61 = vsel %vm2027_vm3, %v1778_v58, 0 }
 0x5fe   : > { %3985 = vmatprep.mubr.msk.bf16.mxu1 %vm5721_vm1, %v5720_v11 }
 0x5ff   : > { %1744 = vrot.lane.b32.xlu1 %v1609_v30, %s5723_s5 }
 0x603   : > { %1747 = vrot.lane.b32.xlu1 %v1609_v30, %s5724_s8 }
 0x665   : > { %v1756_v45 = vpop.permute.xlu1 %1755  ;;  %v1742_v51 = vpop.permute.xlu0 %1741 }
 0x666   : > { %v1765_v46 = vpack.c.bf16 %v1756_v45, %v1756_v45  ;;  %v1751_v55 = vpack.c.bf16 %v1742_v51, %v1742_v51 }
 0x668   : > { %v1833_v47 = vsel %vm1782_vm2, %v1765_v46, 0 }
 0x669   : > { %v1759_v49 = vpop.permute.xlu1 %1758  ;;  %3978 = vmatpush3.bf16.xpose.msra.mxu0 %v1833_v47 }
 0x66a   : > { %v1766_v50 = vpack.c.bf16 %v1759_v49, %v1759_v49  ;;  %3989 = vmatprep.subr.bf16.mxu0 %v5720_v11 }
 0x66c   : > { %v1879_v53 = vsel %vm1782_vm2, %v1766_v50, 0 }
 0x66d   : > { %v1762_v54 = vpop.permute.xlu1 %1761  ;;  %3984 = vmatpush3.bf16.xpose.msra.mxu1 %v1879_v53 }
 0x66e   : > { %v1767_v56 = vpack.c.bf16 %v1762_v54, %v1762_v54  ;;  %3995 = vmatprep.subr.bf16.mxu1 %v5720_v11 }
 0x670   : > { %v1925_v57 = vsel %vm1782_vm2, %v1767_v56, 0  ;;  %3980 = vmatmul.mubr.msk.bf16.vlgmr.msra.gmra.mrb[8].mxu0 %vm1782_vm2, %v1751_v55 }
 0x671   : > { %v1745_v59 = vpop.permute.xlu1 %1744  ;;  %3990 = vmatpush3.bf16.xpose.msra.mxu0 %v1925_v57  ;;  %3991 = vmatprep.mubr.msk.bf16.mxu0 %vm5721_vm1, %v5720_v11 }
 0x672   : > { %v1752_v60 = vpack.c.bf16 %v1745_v59, %v1745_v59  ;;  %4001 = vmatprep.subr.bf16.mxu0 %v5720_v11 }
 0x674   : > { %3986 = vmatmul.mubr.msk.bf16.vlgmr.msra.gmra.mrb[8].mxu1 %vm1782_vm2, %v1752_v60 }
 0x675   : > { %v1748_v62 = vpop.permute.xlu1 %1747  ;;  %3996 = vmatpush3.bf16.msra.mxu1 %v2029_v61  ;;  %3997 = vmatprep.mubr.msk.bf16.mxu1 %vm5721_vm1, %v5720_v11 }
 0x676   : > { %v1753_v63 = vpack.c.bf16 %v1748_v62, %v1748_v62  ;;  %4007 = vmatprep.subr.bf16.mxu1 %v5720_v11 }
 0x678   : > { %3992 = vmatmul.mubr.msk.bf16.vlgmr.msra.gmra.mrb[12].mxu0 %vm1782_vm2, %v1753_v63 }
 0x679   : > { %4003 = vmatprep.mubr.msk.bf16.mxu0 %vm5721_vm1, %v5720_v11 }
 0x6d0   : > { %v1823_v0 = vpop.f32.mrb[4].mxu1 }
 0x6d1   : > { %v1967_v2 = vmul.f32 0.35355338, %v1823_v0  ;;  %v3975_v3 = vpop.f32.mrb[5].mxu1 }
 0x6d2   : > { %v1826_v4 = vpop.f32.mrb[6].mxu1 }
 0x6d3   : > { %v3976_v5 = vpop.f32.mrb[7].mxu1  ;;  %v1972_v6 = vadd.f32 %v1971_v1, %v1967_v2 }
 0x6d5   : > { %v1976_v7 = vsel %vm1782_vm2, %v1972_v6, -inf }
 0x6d6   : > { %1977 = vmax.xlane.f32.xlu1 %v1976_v7 }
 0x743   : > { %v1869_v8 = vpop.f32.mrb[8].mxu0 }
 0x744   : > { %v1968_v9 = vmul.f32 0.35355338, %v1869_v8  ;;  %v3981_v10 = vpop.f32.mrb[9].mxu0 }
 0x745   : > { %v1872_v12 = vpop.f32.mrb[10].mxu0 }
 0x746   : > { %v3982_v13 = vpop.f32.mrb[11].mxu0  ;;  %v1973_v14 = vadd.f32 %v1971_v1, %v1968_v9 }
 0x747   : > { %v1915_v15 = vpop.f32.mrb[8].mxu1 }
 0x748   : > { %v1969_v16 = vmul.f32 0.35355338, %v1915_v15  ;;  %v3987_v17 = vpop.f32.mrb[9].mxu1  ;;  %v1979_v18 = vsel %vm1782_vm2, %v1973_v14, -inf }
 0x749   : > { %v1918_v19 = vpop.f32.mrb[10].mxu1  ;;  %1980 = vmax.xlane.f32.xlu0 %v1979_v18  ;;  %v4528_v17 = vld [vmem:[#allocation21] sm:$0xff]  }
 0x74a   : > { %v3988_v20 = vpop.f32.mrb[11].mxu1  ;;  %v1974_v21 = vadd.f32 %v1971_v1, %v1969_v16 }
 0x74b   : > { %v1961_v23 = vpop.f32.mrb[12].mxu0 }
 0x74c   : > { %v1970_v24 = vmul.f32 0.35355338, %v1961_v23  ;;  %v3993_v25 = vpop.f32.mrb[13].mxu0  ;;  %v1982_v26 = vsel %vm1782_vm2, %v1974_v21, -inf }
 0x74d   : > { %1983 = vmax.xlane.f32.xlu1 %v1982_v26  ;;  %v1964_v27 = vpop.f32.mrb[14].mxu0 }
 0x74e   : > { %v3994_v28 = vpop.f32.mrb[15].mxu0  ;;  %v1975_v29 = vadd.f32 %v1971_v1, %v1970_v24  ;;  %v4529_v27 = vld [vmem:[#allocation21 + $0x8] sm:$0xff]  }
 0x750   : > { %v1985_v30 = vsel %vm1782_vm2, %v1975_v29, -inf }
 0x751   : > { %1986 = vmax.xlane.f32.xlu1 %v1985_v30 }
 0x763   : > { %v1978_v31 = vpop.xlane.xlu1 %1977 }
 0x764   : > { %v1988_v32 = vsub.f32 %v1972_v6, %v1978_v31 }
 0x766   : > { %v1992_v33 = vmul.f32 1.442695, %v1988_v32 }
 0x768   : > { %4546 = vpow2.f32 %v1992_v33 }
 0x772   : > { %v4547_v34 = vpop.eup %4546 }
 0x773   : > { %v2000_v35 = vsel %vm1782_vm2, %v4547_v34, 0.0 }
 0x774   : > { %2001 = vadd.xlane.f32.xlu0 %v2000_v35 }
 0x7d6   : > { %v1981_v36 = vpop.xlane.xlu0 %1980 }
 0x7d7   : > { %v1989_v37 = vsub.f32 %v1973_v14, %v1981_v36 }
 0x7d9   : > { %v1994_v38 = vmul.f32 1.442695, %v1989_v37 }
 0x7da   : > { %v1984_v39 = vpop.xlane.xlu1 %1983 }
 0x7db   : > { %4548 = vpow2.f32 %v1994_v38  ;;  %v1990_v40 = vsub.f32 %v1974_v21, %v1984_v39  ;;  %v3834_v39 = vld [vmem:[#allocation23] ss:$0 sm:$0xff] }
 0x7dd   : > { %v1996_v41 = vmul.f32 1.442695, %v1990_v40 }
 0x7de   : > { %v1987_v47 = vpop.xlane.xlu1 %1986 }
 0x7df   : > { %4550 = vpow2.f32 %v1996_v41  ;;  %v1991_v48 = vsub.f32 %v1975_v29, %v1987_v47 }
 0x7e1   : > { %v1998_v49 = vmul.f32 1.442695, %v1991_v48 }
 0x7e5   : > { %v4549_v42 = vpop.eup %4548 }
 0x7e6   : > { %v2003_v43 = vsel %vm1782_vm2, %v4549_v42, 0.0 }
 0x7e7   : > { %2004 = vadd.xlane.f32.xlu1 %v2003_v43 }
 0x7e9   : > { %v4551_v44 = vpop.eup %4550 }
 0x7ea   : > { %v2006_v45 = vsel %vm1782_vm2, %v4551_v44, 0.0 }
 0x7eb   : > { %2007 = vadd.xlane.f32.xlu0 %v2006_v45 }
 0x7f8   : > { %1772 = vrot.lane.b32.xlu1 %v6533_v52, %s5723_s5 }
 0x801   : > { %1769 = vrot.lane.b32.xlu0 %v6533_v52, %s5722_s4  ;;  %v2002_v46 = vpop.xlane.xlu0 %2001 }
 0x802   : > { %4552 = vrcp.f32 %v2002_v46 }
 0x803   : > { %4554 = vpow2.f32 %v1998_v49 }
 0x80c   : > { %v4553_v50 = vpop.eup %4552 }
 0x80d   : > { %v2016_v51 = vmul.f32 %v4553_v50, %v4547_v34  ;;  %v4555_v54 = vpop.eup %4554 }
 0x80e   : > { %v2009_v55 = vsel %vm1782_vm2, %v4555_v54, 0.0 }
 0x80f   : > { %v2020_v53 = vpack.c.bf16 %v2016_v51, %v2016_v51 }
 0x811   : > { %3998 = vmatmul.mubr.msk.bf16.vlgmr.msra.gmra.mrb[12].mxu1 %vm1782_vm2, %v2020_v53  ;;  %v4530_v53 = vld [vmem:[#allocation30] sm:$0xff]  }
 0x812   : > { %4009 = vmatprep.mubr.msk.bf16.mxu1 %vm5721_vm1, %v5720_v11 }
 0x81c   : > { %2010 = vadd.xlane.f32.xlu1 %v2009_v55  ;;  %v1546_v55 = vld [vmem:[%s1293_s13] sm:$0xff]  ;;  %s1510_s13 = scalar_lea.vmem [#allocation51], %s3811_s18 }
 0x81d   : > { %s3304_s7 = sshll.u32 %s1510_s13, 4  ;;  %s6713_s7 = int_to_ptr.vmem [resolvable:$true] %s3304_s7 }
 0x82d   : > { %1775 = vrot.lane.b32.xlu1 %v6533_v52, %s5724_s8 }
 0x874   : > { %v2005_v56 = vpop.xlane.xlu1 %2004 }
 0x875   : > { %4556 = vrcp.f32 %v2005_v56  ;;  %v2324_v56 = vpack.c.bf16 %v1546_v55, %v1546_v55 }
 0x878   : > { %v2008_v57 = vpop.xlane.xlu0 %2007  ;;  %v1773_v58 = vpop.permute.xlu1 %1772 }
 0x879   : > { %4558 = vrcp.f32 %v2008_v57  ;;  %v1780_v59 = vpack.c.bf16 %v1773_v58, %v1773_v58  ;;  %v4533_v57 = vld [vmem:[#allocation27 + $0x8] sm:$0xff]  }
 0x87b   : > { %v2121_v60 = vsel %vm2027_vm3, %v1780_v59, 0 }
 0x87c   : > { %v1770_v61 = vpop.permute.xlu0 %1769  ;;  %4008 = vmatpush3.bf16.msra.mxu1 %v2121_v60 }
 0x87d   : > { %v1779_v62 = vpack.c.bf16 %v1770_v61, %v1770_v61  ;;  %4019 = vmatprep.subr.bf16.mxu1 %v5720_v11 }
 0x87f   : > { %v4557_v63 = vpop.eup %4556  ;;  %v2075_v0 = vsel %vm2027_vm3, %v1779_v62, 0  ;;  %v3838_v62 = vld [vmem:[#allocation24] ss:$0 sm:$0xff] }
 0x880   : > { %v2017_v1 = vmul.f32 %v4557_v63, %v4549_v42  ;;  %4002 = vmatpush3.bf16.msra.mxu0 %v2075_v0  ;;  %v3839_v0 = vld [vmem:[#allocation26] ss:$0 sm:$0xff] }
 0x881   : > { %4013 = vmatprep.subr.bf16.mxu0 %v5720_v11 }
 0x882   : > { %v2021_v52 = vpack.c.bf16 %v2017_v1, %v2017_v1 }
 0x883   : > { %v4559_v2 = vpop.eup %4558 }
 0x884   : > { %v2018_v3 = vmul.f32 %v4559_v2, %v4551_v44  ;;  %4004 = vmatmul.mubr.msk.bf16.vlgmr.msra.gmra.mrb[16].mxu0 %vm1782_vm2, %v2021_v52 }
 0x885   : > { %4015 = vmatprep.mubr.msk.bf16.mxu0 %vm5721_vm1, %v5720_v11 }
 0x886   : > { %v2022_v4 = vpack.c.bf16 %v2018_v3, %v2018_v3  ;;  %v3844_v3 = vld [vmem:[#allocation32] ss:$0 sm:$0xff] }
 0x888   : > { %4010 = vmatmul.mubr.msk.bf16.vlgmr.msra.gmra.mrb[16].mxu1 %vm1782_vm2, %v2022_v4 }
 0x889   : > { %4023 = vmatprep.mubr.msk.bf16.mxu1 %vm5721_vm1, %v5720_v11  ;;  %4020 = vmatpush3.bf16.msra.mxu1 %v4528_v17 }
 0x88a   : > { %4021 = vmatprep.subr.bf16.mxu1 %v5720_v11 }
 0x88d   : > { %4022 = vmatpush3.bf16.msra.mxu1 %v4529_v27 }
 0x88e   : > { %4035 = vmatprep.subr.bf16.mxu1 %v5720_v11 }
 0x8a9   : > { %v2011_v5 = vpop.xlane.xlu1 %2010 }
 0x8aa   : > { %4560 = vrcp.f32 %v2011_v5 }
 0x8ad   : > { %v1776_v6 = vpop.permute.xlu1 %1775 }
 0x8ae   : > { %v1781_v7 = vpack.c.bf16 %v1776_v6, %v1776_v6 }
 0x8b0   : > { %v2167_v8 = vsel %vm2027_vm3, %v1781_v7, 0 }
 0x8b1   : > { %4014 = vmatpush3.bf16.msra.mxu0 %v2167_v8 }
 0x8b2   : > { %4027 = vmatprep.subr.bf16.mxu0 %v5720_v11 }
 0x8b4   : > { %v4561_v9 = vpop.eup %4560 }
 0x8b5   : > { %v2019_v10 = vmul.f32 %v4561_v9, %v4555_v54  ;;  %v4531_v54 = vld [vmem:[#allocation30 + $0x8] sm:$0xff]  }
 0x8b7   : > { %v2023_v12 = vpack.c.bf16 %v2019_v10, %v2019_v10 }
 0x8b9   : > { %4016 = vmatmul.mubr.msk.bf16.vlgmr.msra.gmra.mrb[20].mxu0 %vm1782_vm2, %v2023_v12  ;;  %v4534_v12 = vld [vmem:[#allocation33] sm:$0xff]  }
 0x8ba   : > { %4031 = vmatprep.mubr.msk.bf16.mxu0 %vm5721_vm1, %v5720_v11 }
 0x8e4   : > { %v2065_v13 = vpop.f32.mrb[12].mxu1 }
 0x8e5   : > { %v3999_v14 = vpop.f32.mrb[13].mxu1 }
 0x8e6   : > { %v2068_v15 = vpop.f32.mrb[14].mxu1 }
 0x8e7   : > { %v4000_v16 = vpop.f32.mrb[15].mxu1 }
 0x957   : > { %v2111_v18 = vpop.f32.mrb[16].mxu0 }
 0x958   : > { %2210 = vrot.lane.b32.xlu0 %v2111_v18, %s5725_s9  ;;  %v4005_v19 = vpop.f32.mrb[17].mxu0  ;;  %v3840_v18 = vld [vmem:[#allocation29] ss:$0 sm:$0xff] }
 0x959   : > { %v2114_v20 = vpop.f32.mrb[18].mxu0 }
 0x95a   : > { %v4006_v21 = vpop.f32.mrb[19].mxu0 }
 0x95b   : > { %v2157_v23 = vpop.f32.mrb[16].mxu1 }
 0x95c   : > { %2214 = vrot.lane.b32.xlu1 %v2157_v23, %s5726_s11  ;;  %v4011_v24 = vpop.f32.mrb[17].mxu1 }
 0x95d   : > { %v2160_v25 = vpop.f32.mrb[18].mxu1 }
 0x95e   : > { %v4012_v26 = vpop.f32.mrb[19].mxu1 }
 0x98c   : > { %v2203_v28 = vpop.f32.mrb[20].mxu0 }
 0x98d   : > { %2218 = vrot.lane.b32.xlu0 %v2203_v28, %s5727_s10  ;;  %v4017_v29 = vpop.f32.mrb[21].mxu0 }
 0x98e   : > { %v2206_v30 = vpop.f32.mrb[22].mxu0 }
 0x98f   : > { %v4018_v31 = vpop.f32.mrb[23].mxu0 }
 0x9ca   : > { %v2211_v32 = vpop.permute.xlu0 %2210 }
 0x9cb   : > { %v2221_v34 = vsel %vm1782_vm2, %v2065_v13, %v2211_v32  ;;  %v4535_v13 = vld [vmem:[#allocation33 + $0x8] sm:$0xff]   ;;  %v3848_v32 = vld [vmem:[#allocation35] ss:$0 sm:$0xff] }
 0x9ce   : > { %v2215_v33 = vpop.permute.xlu1 %2214 }
 0x9cf   : > { %v2223_v35 = vsel %vm2222_vm4, %v2221_v34, %v2215_v33 }
 0x9ff   : > { %v2219_v36 = vpop.permute.xlu0 %2218 }
 0xa00   : > { %v2225_v37 = vsel %vm2224_vm5, %v2223_v35, %v2219_v36 }
 0xa01   : > { %v2226_v38 = vpack.c.bf16 %v2225_v37, %v2225_v37 }
 0xa03   : > { %4024 = vmatmul.mubr.msk.bf16.vlgmr.msra.gmra.mrb[20].mxu1 %vm1517_vm0, %v2226_v38 }
 0xa04   : > { %4039 = vmatprep.mubr.msk.bf16.mxu1 %vm5721_vm1, %v5720_v11  ;;  %4036 = vmatpush3.bf16.msra.mxu1 %v4530_v53 }
 0xa05   : > { %4037 = vmatprep.subr.bf16.mxu1 %v5720_v11 }
 0xa08   : > { %4038 = vmatpush3.bf16.msra.mxu1 %v4531_v54 }
 0xa09   : > { %4051 = vmatprep.subr.bf16.mxu1 %v5720_v11 }
 0xa0b   : > { %4040 = vmatmul.mubr.msk.bf16.vlgmr.msra.gmra.mrb[24].mxu1 %vm1517_vm0, %v2324_v56 }
 0xa0c   : > { %4053 = vmatprep.mubr.msk.bf16.mxu1 %vm5721_vm1, %v5720_v11 }
 0xad6   : > { %v2287_v40 = vpop.f32.mrb[20].mxu1 }
 0xad7   : > { %v2288_v41 = vadd.f32 %v3834_v39, %v2287_v40  ;;  %v4025_v42 = vpop.f32.mrb[21].mxu1 }
 0xad8   : > { %v2290_v43 = vpop.f32.mrb[22].mxu1 }
 0xad9   : > { %v4026_v44 = vpop.f32.mrb[23].mxu1  ;;  %v2293_v45 = vadd.f32 %v2288_v41, %v6505_v22  ;;  %v4532_v22 = vld [vmem:[#allocation27] sm:$0xff]  }
 0xada   : > { %4028 = vmatpush3.bf16.msra.mxu0 %v4532_v22 }
 0xadb   : > { %v2296_v46 = vsel %vm1517_vm0, %v2293_v45, 0.0  ;;  %4029 = vmatprep.subr.bf16.mxu0 %v5720_v11 }
 0xadc   : > { %2297 = vadd.xlane.f32.xlu1 %v2296_v46  ;;  %v3856_v46 = vld [vmem:[%s1310_s23] ss:$0 sm:$0xff]  ;;  %s6711_s23 = scalar_lea.hbm %s6948_s27, %s3880_s3 }
 0xade   : > { %4030 = vmatpush3.bf16.msra.mxu0 %v4533_v57  ;;  %v2451_v4 = vpop.f32.mrb[24].mxu1 }
 0xadf   : > { %4043 = vmatprep.subr.bf16.mxu0 %v5720_v11  ;;  %v2452_v5 = vadd.f32 %v3844_v3, %v2451_v4  ;;  %v4041_v6 = vpop.f32.mrb[25].mxu1 }
 0xae0   : > { %v2454_v7 = vpop.f32.mrb[26].mxu1 }
 0xae1   : > { %v4042_v8 = vpop.f32.mrb[27].mxu1  ;;  %v2544_v9 = vpack.c.bf16 %v2452_v5, %v2452_v5 }
 0xae3   : > { %v2566_v10 = vsel %vm1782_vm2, %v2544_v9, 0 }
 0xae4   : > { %4052 = vmatpush3.bf16.xpose.msra.mxu1 %v2566_v10 }
 0xae5   : > { %4063 = vmatprep.subr.bf16.mxu1 %v5720_v11 }
 0xaed   : > { %2538 = vrot.lane.b32.xlu1 %v2452_v5, %s5723_s5 }
 0xb69   : > { %v2298_v47 = vpop.xlane.xlu1 %2297 }
 0xb6a   : > { %v2299_v48 = vmul.f32 0.03125, %v2298_v47 }
 0xb6c   : > { %v2300_v49 = vsub.f32 %v2293_v45, %v2299_v48 }
 0xb6d   : > { %v2539_v17 = vpop.permute.xlu1 %2538 }
 0xb6e   : > { %v2301_v50 = vmul.f32 %v2300_v49, %v2300_v49  ;;  %v2546_v19 = vpack.c.bf16 %v2539_v17, %v2539_v17 }
 0xb70   : > { %v2302_v51 = vsel %vm1517_vm0, %v2301_v50, 0.0  ;;  %v2658_v27 = vsel %vm1782_vm2, %v2546_v19, 0 }
 0xb71   : > { %2303 = vadd.xlane.f32.xlu0 %v2302_v51 }
 0xb87   : > { %2535 = vrot.lane.b32.xlu0 %v2452_v5, %s5722_s4 }
 0xb8b   : > { %2541 = vrot.lane.b32.xlu0 %v2452_v5, %s5724_s8 }
 0xbfe   : > { %v2304_v58 = vpop.xlane.xlu0 %2303 }
 0xbff   : > { %v2305_v59 = vmul.f32 0.03125, %v2304_v58 }
 0xc01   : > { %v2306_v60 = vadd.f32 1e-05, %v2305_v59 }
 0xc02   : > { %v2536_v14 = vpop.permute.xlu0 %2535 }
 0xc03   : > { %4562 = vrsqrt.f32 %v2306_v60  ;;  %v2545_v15 = vpack.c.bf16 %v2536_v14, %v2536_v14 }
 0xc05   : > { %v2612_v16 = vsel %vm1782_vm2, %v2545_v15, 0 }
 0xc06   : > { %v2542_v33 = vpop.permute.xlu0 %2541 }
 0xc07   : > { %v2547_v35 = vpack.c.bf16 %v2542_v33, %v2542_v33 }
 0xc09   : > { %v2704_v39 = vsel %vm1782_vm2, %v2547_v35, 0 }
 0xc0d   : > { %v4563_v61 = vpop.eup %4562 }
 0xc0e   : > { %v2308_v63 = vmul.f32 %v4563_v61, %v2300_v49 }
 0xc10   : > { %v2315_v1 = vmul.f32 %v3838_v62, %v2308_v63 }
 0xc12   : > { %v6609_v52 = vadd.f32 %v3839_v0, %v2315_v1 }
 0xc14   : > { %v2323_v2 = vpack.c.bf16 %v6609_v52, %v6609_v52 }
 0xc16   : > { %4032 = vmatmul.mubr.msk.bf16.vlgmr.msra.gmra.mrb[24].mxu0 %vm1517_vm0, %v2323_v2 }
 0xc17   : > { %4047 = vmatprep.mubr.msk.bf16.mxu0 %vm5721_vm1, %v5720_v11  ;;  %4044 = vmatpush3.bf16.msra.mxu0 %v4534_v12 }
 0xc18   : > { %4045 = vmatprep.subr.bf16.mxu0 %v5720_v11 }
 0xc1b   : > { %4046 = vmatpush3.bf16.msra.mxu0 %v4535_v13 }
 0xc1c   : > { %4057 = vmatprep.subr.bf16.mxu0 %v5720_v11 }
 0xc1e   : > { %4048 = vmatmul.mubr.msk.bf16.vlgmr.msra.gmra.mrb[28].mxu0 %vm1517_vm0, %v2324_v56 }
 0xc1f   : > { %4059 = vmatprep.mubr.msk.bf16.mxu0 %vm5721_vm1, %v5720_v11 }
 0xc24   : > { %4058 = vmatpush3.bf16.xpose.msra.mxu0 %v2612_v16 }
 0xc25   : > { %4069 = vmatprep.subr.bf16.mxu0 %v5720_v11 }
 0xce9   : > { %v2385_v20 = vpop.f32.mrb[24].mxu0 }
 0xcea   : > { %v2386_v21 = vadd.f32 %v3840_v18, %v2385_v20  ;;  %v4033_v23 = vpop.f32.mrb[25].mxu0 }
 0xceb   : > { %v2388_v24 = vpop.f32.mrb[26].mxu0 }
 0xcec   : > { %v2530_v25 = vpack.c.bf16 %v2386_v21, %v2386_v21  ;;  %2527 = vrot.lane.b32.xlu0 %v2386_v21, %s5724_s8  ;;  %2521 = vrot.lane.b32.xlu1 %v2386_v21, %s5722_s4  ;;  %v4034_v26 = vpop.f32.mrb[27].mxu0 }
 0xcee   : > { %4054 = vmatmul.mubr.msk.bf16.vlgmr.msra.gmra.mrb[28].mxu1 %vm1782_vm2, %v2530_v25 }
 0xcef   : > { %4064 = vmatpush3.bf16.xpose.msra.mxu1 %v2658_v27  ;;  %4065 = vmatprep.mubr.msk.bf16.mxu1 %vm5721_vm1, %v5720_v11 }
 0xcf0   : > { %2524 = vrot.lane.b32.xlu1 %v2386_v21, %s5723_s5  ;;  %4075 = vmatprep.subr.bf16.mxu1 %v5720_v11 }
 0xcf1   : > { %v2514_v28 = vpop.f32.mrb[28].mxu0 }
 0xcf2   : > { %v4049_v29 = vpop.f32.mrb[29].mxu0  ;;  %v6636_v34 = vadd.f32 %v3848_v32, %v2514_v28 }
 0xcf3   : > { %v2517_v30 = vpop.f32.mrb[30].mxu0 }
 0xcf4   : > { %v4050_v31 = vpop.f32.mrb[31].mxu0  ;;  %v2558_v38 = vpack.c.bf16 %v6636_v34, %v6636_v34 }
 0xcf6   : > { %v2813_v42 = vsel %vm2027_vm3, %v2558_v38, 0 }
 0xd5e   : > { %v2522_v36 = vpop.permute.xlu1 %2521  ;;  %v2528_v43 = vpop.permute.xlu0 %2527 }
 0xd5f   : > { %v2531_v37 = vpack.c.bf16 %v2522_v36, %v2522_v36  ;;  %v2533_v44 = vpack.c.bf16 %v2528_v43, %v2528_v43 }
 0xd61   : > { %4060 = vmatmul.mubr.msk.bf16.vlgmr.msra.gmra.mrb[32].mxu0 %vm1782_vm2, %v2531_v37 }
 0xd62   : > { %4070 = vmatpush3.bf16.xpose.msra.mxu0 %v2704_v39  ;;  %v2525_v40 = vpop.permute.xlu1 %2524  ;;  %4071 = vmatprep.mubr.msk.bf16.mxu0 %vm5721_vm1, %v5720_v11 }
 0xd63   : > { %v2532_v41 = vpack.c.bf16 %v2525_v40, %v2525_v40  ;;  %4081 = vmatprep.subr.bf16.mxu0 %v5720_v11 }
 0xd65   : > { %4066 = vmatmul.mubr.msk.bf16.vlgmr.msra.gmra.mrb[32].mxu1 %vm1782_vm2, %v2532_v41 }
 0xd66   : > { %4076 = vmatpush3.bf16.msra.mxu1 %v2813_v42  ;;  %4077 = vmatprep.mubr.msk.bf16.mxu1 %vm5721_vm1, %v5720_v11 }
 0xd67   : > { %4087 = vmatprep.subr.bf16.mxu1 %v5720_v11 }
 0xd69   : > { %4072 = vmatmul.mubr.msk.bf16.vlgmr.msra.gmra.mrb[36].mxu0 %vm1782_vm2, %v2533_v44 }
 0xd6a   : > { %4083 = vmatprep.mubr.msk.bf16.mxu0 %vm5721_vm1, %v5720_v11 }
 0xdc1   : > { %v2602_v45 = vpop.f32.mrb[28].mxu1 }
 0xdc2   : > { %v2746_v47 = vmul.f32 0.35355338, %v2602_v45  ;;  %v4055_v48 = vpop.f32.mrb[29].mxu1 }
 0xdc3   : > { %v2605_v49 = vpop.f32.mrb[30].mxu1 }
 0xdc4   : > { %v4056_v50 = vpop.f32.mrb[31].mxu1  ;;  %v2757_v51 = vadd.f32 %v3856_v46, %v2746_v47 }
 0xdc6   : > { %v2761_v53 = vsel %vm1782_vm2, %v2757_v51, -inf }
 0xdc7   : > { %2762 = vmax.xlane.f32.xlu1 %v2761_v53 }
 0xe34   : > { %v2648_v54 = vpop.f32.mrb[32].mxu0 }
 0xe35   : > { %v2747_v55 = vmul.f32 0.35355338, %v2648_v54  ;;  %v4061_v56 = vpop.f32.mrb[33].mxu0 }
 0xe36   : > { %v2651_v22 = vpop.f32.mrb[34].mxu0 }
 0xe37   : > { %v4062_v57 = vpop.f32.mrb[35].mxu0  ;;  %v2758_v58 = vadd.f32 %v3856_v46, %v2747_v55 }
 0xe38   : > { %v2694_v59 = vpop.f32.mrb[32].mxu1 }
 0xe39   : > { %v2748_v60 = vmul.f32 0.35355338, %v2694_v59  ;;  %v4067_v61 = vpop.f32.mrb[33].mxu1  ;;  %v2764_v62 = vsel %vm1782_vm2, %v2758_v58, -inf }
 0xe3a   : > { %v2697_v63 = vpop.f32.mrb[34].mxu1  ;;  %2765 = vmax.xlane.f32.xlu0 %v2764_v62  ;;  %v4536_v61 = vld [vmem:[#allocation36] sm:$0xff]  }
 0xe3b   : > { %v4068_v0 = vpop.f32.mrb[35].mxu1  ;;  %v2759_v1 = vadd.f32 %v3856_v46, %v2748_v60 }
 0xe3c   : > { %v2740_v2 = vpop.f32.mrb[36].mxu0 }
 0xe3d   : > { %v2749_v3 = vmul.f32 0.35355338, %v2740_v2  ;;  %v4073_v4 = vpop.f32.mrb[37].mxu0  ;;  %v2767_v5 = vsel %vm1782_vm2, %v2759_v1, -inf }
 0xe3e   : > { %2768 = vmax.xlane.f32.xlu0 %v2767_v5  ;;  %v2743_v6 = vpop.f32.mrb[38].mxu0 }
 0xe3f   : > { %v4074_v7 = vpop.f32.mrb[39].mxu0  ;;  %v2760_v8 = vadd.f32 %v3856_v46, %v2749_v3  ;;  %v4537_v6 = vld [vmem:[#allocation36 + $0x8] sm:$0xff]  }
 0xe41   : > { %v2770_v9 = vsel %vm1782_vm2, %v2760_v8, -inf }
 0xe42   : > { %2771 = vmax.xlane.f32.xlu1 %v2770_v9 }
 0xe54   : > { %v2763_v10 = vpop.xlane.xlu1 %2762 }
 0xe55   : > { %v2773_v12 = vsub.f32 %v2757_v51, %v2763_v10 }
 0xe57   : > { %v2777_v13 = vmul.f32 1.442695, %v2773_v12 }
 0xe59   : > { %4564 = vpow2.f32 %v2777_v13 }
 0xe63   : > { %v4565_v14 = vpop.eup %4564 }
 0xe64   : > { %v2785_v15 = vsel %vm1782_vm2, %v4565_v14, 0.0 }
 0xe65   : > { %2786 = vadd.xlane.f32.xlu0 %v2785_v15 }
 0xec7   : > { %v2766_v16 = vpop.xlane.xlu0 %2765 }
 0xec8   : > { %v2774_v17 = vsub.f32 %v2758_v58, %v2766_v16 }
 0xeca   : > { %v2779_v18 = vmul.f32 1.442695, %v2774_v17 }
 0xecb   : > { %v2769_v19 = vpop.xlane.xlu0 %2768 }
 0xecc   : > { %4566 = vpow2.f32 %v2779_v18  ;;  %v2775_v20 = vsub.f32 %v2759_v1, %v2769_v19  ;;  %v3861_v19 = vld [vmem:[#allocation38] ss:$0 sm:$0xff] }
 0xece   : > { %v2781_v21 = vmul.f32 1.442695, %v2775_v20 }
 0xecf   : > { %v2772_v28 = vpop.xlane.xlu1 %2771 }
 0xed0   : > { %4568 = vpow2.f32 %v2781_v21  ;;  %v2776_v29 = vsub.f32 %v2760_v8, %v2772_v28 }
 0xed2   : > { %v2783_v30 = vmul.f32 1.442695, %v2776_v29 }
 0xed6   : > { %v4567_v23 = vpop.eup %4566 }
 0xed7   : > { %v2788_v24 = vsel %vm1782_vm2, %v4567_v23, 0.0 }
 0xed8   : > { %2789 = vadd.xlane.f32.xlu1 %v2788_v24 }
 0xeda   : > { %v4569_v25 = vpop.eup %4568 }
 0xedb   : > { %v2791_v26 = vsel %vm1782_vm2, %v4569_v25, 0.0 }
 0xedc   : > { %2792 = vadd.xlane.f32.xlu0 %v2791_v26 }
 0xee9   : > { %2552 = vrot.lane.b32.xlu1 %v6636_v34, %s5723_s5  ;;  %s5516_s5 = scalar_lea.vmem %s6713_s7, 64 }
 0xeea   : > { %p5517_p2 = scmp.ne.s32.totalorder %s6713_s7, %s5516_s5 }
 0xeec   : > { %p5518_p12 = pnand %p5517_p2, %p6950_p1 }
 0xeee   : > { %p5519_p4 = pneg %p5518_p12 }
 0xef2   : > { %2549 = vrot.lane.b32.xlu0 %v6636_v34, %s5722_s4  ;;  %v2787_v27 = vpop.xlane.xlu0 %2786  ;;  %s3291_s4 = scalar_lea.sflag [#allocation4], %s6410_s12 }
 0xef3   : > { %4570 = vrcp.f32 %v2787_v27 }
 0xef4   : > { %4572 = vpow2.f32 %v2783_v30 }
 0xefd   : > { %v4571_v31 = vpop.eup %4570 }
 0xefe   : > { %v2801_v32 = vmul.f32 %v4571_v31, %v4565_v14  ;;  %v4573_v35 = vpop.eup %4572 }
 0xeff   : > { %v2794_v36 = vsel %vm1782_vm2, %v4573_v35, 0.0 }
 0xf00   : > { %v2805_v33 = vpack.c.bf16 %v2801_v32, %v2801_v32 }
 0xf02   : > { %4078 = vmatmul.mubr.msk.bf16.vlgmr.msra.gmra.mrb[36].mxu1 %vm1782_vm2, %v2805_v33  ;;  %v4538_v33 = vld [vmem:[#allocation42] sm:$0xff]  }
 0xf03   : > { %4089 = vmatprep.mubr.msk.bf16.mxu1 %vm5721_vm1, %v5720_v11 }
 0xf0d   : > { %2795 = vadd.xlane.f32.xlu1 %v2794_v36  ;;  %v4540_v36 = vld [vmem:[#allocation45] sm:$0xff]  }
 0xf1e   : > { %2555 = vrot.lane.b32.xlu1 %v6636_v34, %s5724_s8  ;;  %s5520_s8 = sshll.u32 %s5728_s0, 4  ;;  %s5521_s8 = int_to_ptr.vmem [resolvable:$false] %s5520_s8 }
 0xf1f   : > { %p5523_p5 = scmp.lt.s32.totalorder %s6713_s7, %s5521_s8 }
 0xf65   : > { %v2790_v37 = vpop.xlane.xlu1 %2789 }
 0xf66   : > { %4574 = vrcp.f32 %v2790_v37  ;;  %v4541_v37 = vld [vmem:[#allocation45 + $0x8] sm:$0xff]  }
 0xf69   : > { %v2793_v38 = vpop.xlane.xlu0 %2792  ;;  %v2553_v39 = vpop.permute.xlu1 %2552 }
 0xf6a   : > { %4576 = vrcp.f32 %v2793_v38  ;;  %v2560_v40 = vpack.c.bf16 %v2553_v39, %v2553_v39 }
 0xf6c   : > { %v2905_v41 = vsel %vm2027_vm3, %v2560_v40, 0 }
 0xf6d   : > { %v2550_v42 = vpop.permute.xlu0 %2549  ;;  %4088 = vmatpush3.bf16.msra.mxu1 %v2905_v41  ;;  %v3865_v41 = vld [vmem:[#allocation39] ss:$0 sm:$0xff] }
 0xf6e   : > { %v2559_v43 = vpack.c.bf16 %v2550_v42, %v2550_v42  ;;  %4099 = vmatprep.subr.bf16.mxu1 %v5720_v11 }
 0xf70   : > { %v4575_v44 = vpop.eup %4574  ;;  %v2859_v45 = vsel %vm2027_vm3, %v2559_v43, 0  ;;  %v3866_v43 = vld [vmem:[#allocation41] ss:$0 sm:$0xff] }
 0xf71   : > { %v2802_v46 = vmul.f32 %v4575_v44, %v4567_v23  ;;  %4082 = vmatpush3.bf16.msra.mxu0 %v2859_v45 }
 0xf72   : > { %4093 = vmatprep.subr.bf16.mxu0 %v5720_v11 }
 0xf73   : > { %v2806_v34 = vpack.c.bf16 %v2802_v46, %v2802_v46 }
 0xf74   : > { %v4577_v47 = vpop.eup %4576 }
 0xf75   : > { %v2803_v48 = vmul.f32 %v4577_v47, %v4569_v25  ;;  %4084 = vmatmul.mubr.msk.bf16.vlgmr.msra.gmra.mrb[40].mxu0 %vm1782_vm2, %v2806_v34  ;;  %v4542_v34 = vld [vmem:[#allocation45 + $0x10] sm:$0xff]   ;;  %v4543_v47 = vld [vmem:[#allocation45 + $0x18] sm:$0xff]  }
 0xf76   : > { %4095 = vmatprep.mubr.msk.bf16.mxu0 %vm5721_vm1, %v5720_v11 }
 0xf77   : > { %v2807_v49 = vpack.c.bf16 %v2803_v48, %v2803_v48  ;;  %v3867_v48 = vld [vmem:[#allocation44] ss:$0 sm:$0xff] }
 0xf79   : > { %4090 = vmatmul.mubr.msk.bf16.vlgmr.msra.gmra.mrb[40].mxu1 %vm1782_vm2, %v2807_v49 }
 0xf7a   : > { %4103 = vmatprep.mubr.msk.bf16.mxu1 %vm5721_vm1, %v5720_v11  ;;  %4100 = vmatpush3.bf16.msra.mxu1 %v4536_v61 }
 0xf7b   : > { %4101 = vmatprep.subr.bf16.mxu1 %v5720_v11 }
 0xf7e   : > { %4102 = vmatpush3.bf16.msra.mxu1 %v4537_v6 }
 0xf7f   : > { %4115 = vmatprep.subr.bf16.mxu1 %v5720_v11 }
 0xf9a   : > { %v2796_v50 = vpop.xlane.xlu1 %2795 }
 0xf9b   : > { %4578 = vrcp.f32 %v2796_v50 }
 0xf9e   : > { %v2556_v51 = vpop.permute.xlu1 %2555 }
 0xf9f   : > { %v2561_v53 = vpack.c.bf16 %v2556_v51, %v2556_v51 }
 0xfa1   : > { %v2951_v54 = vsel %vm2027_vm3, %v2561_v53, 0 }
 0xfa2   : > { %4094 = vmatpush3.bf16.msra.mxu0 %v2951_v54 }
 0xfa3   : > { %4107 = vmatprep.subr.bf16.mxu0 %v5720_v11 }
 0xfa5   : > { %v4579_v55 = vpop.eup %4578 }
 0xfa6   : > { %v2804_v56 = vmul.f32 %v4579_v55, %v4573_v35  ;;  %v4539_v35 = vld [vmem:[#allocation42 + $0x8] sm:$0xff]  }
 0xfa8   : > { %v2808_v22 = vpack.c.bf16 %v2804_v56, %v2804_v56 }
 0xfaa   : > { %4096 = vmatmul.mubr.msk.bf16.vlgmr.msra.gmra.mrb[44].mxu0 %vm1782_vm2, %v2808_v22  ;;  %v3871_v22 = vld [vmem:[#allocation47] ss:$0 sm:$0xff] }
 0xfab   : > { %4111 = vmatprep.mubr.msk.bf16.mxu0 %vm5721_vm1, %v5720_v11  ;;  %4108 = vmatpush3.bf16.msra.mxu0 %v4538_v33 }
 0xfac   : > { %4109 = vmatprep.subr.bf16.mxu0 %v5720_v11 }
 0xfaf   : > { %4110 = vmatpush3.bf16.msra.mxu0 %v4539_v35 }
 0xfd5   : > { %v2849_v57 = vpop.f32.mrb[36].mxu1 }
 0xfd6   : > { %v4079_v58 = vpop.f32.mrb[37].mxu1 }
 0xfd7   : > { %v2852_v59 = vpop.f32.mrb[38].mxu1 }
 0xfd8   : > { %v4080_v60 = vpop.f32.mrb[39].mxu1 }
0x1048   : > { %v2895_v62 = vpop.f32.mrb[40].mxu0 }
0x1049   : > { %2994 = vrot.lane.b32.xlu0 %v2895_v62, %s5725_s9  ;;  %v4085_v63 = vpop.f32.mrb[41].mxu0  ;;  %s5522_s9 = scalar_lea.vmem %s5521_s8, 128 }
0x104a   : > { %v2898_v0 = vpop.f32.mrb[42].mxu0  ;;  %p5524_p8 = scmp.lt.s32.totalorder %s5522_s9, %s5516_s5 }
0x104b   : > { %v4086_v1 = vpop.f32.mrb[43].mxu0 }
0x104c   : > { %v2941_v2 = vpop.f32.mrb[40].mxu1  ;;  %p5525_p9 = por %p5524_p8, %p5523_p5 }
0x104d   : > { %2998 = vrot.lane.b32.xlu1 %v2941_v2, %s5726_s11  ;;  %v4091_v3 = vpop.f32.mrb[41].mxu1 }
0x104e   : > { %v2944_v4 = vpop.f32.mrb[42].mxu1  ;;  %p5526_p10 = pnand %p5525_p9, %p5519_p4 }
0x104f   : > { %v4092_v5 = vpop.f32.mrb[43].mxu1 }
0x107d   : > { %v2987_v7 = vpop.f32.mrb[44].mxu0 }
0x107e   : > { %3002 = vrot.lane.b32.xlu0 %v2987_v7, %s5727_s10  ;;  %v4097_v8 = vpop.f32.mrb[45].mxu0 }
0x107f   : > { %v2990_v9 = vpop.f32.mrb[46].mxu0  ;;  %v3877_v8 = vld [vmem:[#allocation48] ss:$0 sm:$0xff] }
0x1080   : > { %v4098_v10 = vpop.f32.mrb[47].mxu0 }
0x1081   : > { %v3878_v10 = vld [vmem:[#allocation50] ss:$0 sm:$0xff] }
0x10bb   : > { %v2995_v12 = vpop.permute.xlu0 %2994 }
0x10bc   : > { %v3005_v14 = vsel %vm1782_vm2, %v2849_v57, %v2995_v12 }
0x10bf   : > { %v2999_v13 = vpop.permute.xlu1 %2998 }
0x10c0   : > { %v3006_v15 = vsel %vm2222_vm4, %v3005_v14, %v2999_v13 }
0x10f0   : > { %v3003_v16 = vpop.permute.xlu0 %3002 }
0x10f1   : > { %v3007_v17 = vsel %vm2224_vm5, %v3006_v15, %v3003_v16 }
0x10f2   : > { %v3008_v18 = vpack.c.bf16 %v3007_v17, %v3007_v17 }
0x10f4   : > { %4104 = vmatmul.mubr.msk.bf16.vlgmr.msra.gmra.mrb[44].mxu1 %vm1517_vm0, %v3008_v18 }
0x10f5   : > { %4123 = vmatprep.mubr.msk.bf16.mxu1 %vm5721_vm1, %v5720_v11  ;;  %4116 = vmatpush3.bf16.msra.mxu1 %v4540_v36 }
0x10f6   : > { %4117 = vmatprep.subr.bf16.mxu1 %v5720_v11 }
0x10f9   : > { %4118 = vmatpush3.bf16.msra.mxu1 %v4541_v37 }
0x10fa   : > { %4119 = vmatprep.subr.bf16.mxu1 %v5720_v11 }
0x10fd   : > { %4120 = vmatpush3.bf16.msra.mxu1 %v4542_v34 }
0x10fe   : > { %4121 = vmatprep.subr.bf16.mxu1 %v5720_v11 }
0x1101   : > { %4122 = vmatpush3.bf16.msra.mxu1 %v4543_v47 }
0x11c7   : > { %v3069_v20 = vpop.f32.mrb[44].mxu1 }
0x11c8   : > { %v3070_v21 = vadd.f32 %v3861_v19, %v3069_v20  ;;  %v4105_v23 = vpop.f32.mrb[45].mxu1 }
0x11c9   : > { %v3072_v24 = vpop.f32.mrb[46].mxu1 }
0x11ca   : > { %v4106_v25 = vpop.f32.mrb[47].mxu1  ;;  %v3075_v26 = vadd.f32 %v3070_v21, %v6609_v52 }
0x11cc   : > { %v3078_v27 = vsel %vm1517_vm0, %v3075_v26, 0.0 }
0x11cd   : > { %3079 = vadd.xlane.f32.xlu1 %v3078_v27 }
0x125a   : > { %v3080_v28 = vpop.xlane.xlu1 %3079 }
0x125b   : > { %v3081_v29 = vmul.f32 0.03125, %v3080_v28 }
0x125d   : > { %v3082_v30 = vsub.f32 %v3075_v26, %v3081_v29 }
0x125f   : > { %v3083_v31 = vmul.f32 %v3082_v30, %v3082_v30 }
0x1261   : > { %v3084_v32 = vsel %vm1517_vm0, %v3083_v31, 0.0 }
0x1262   : > { %3085 = vadd.xlane.f32.xlu0 %v3084_v32 }
0x12ef   : > { %v3086_v52 = vpop.xlane.xlu0 %3085 }
0x12f0   : > { %v3087_v38 = vmul.f32 0.03125, %v3086_v52 }
0x12f2   : > { %v3088_v39 = vadd.f32 1e-05, %v3087_v38 }
0x12f4   : > { %4580 = vrsqrt.f32 %v3088_v39 }
0x12fe   : > { %v4581_v40 = vpop.eup %4580 }
0x12ff   : > { %v3090_v42 = vmul.f32 %v4581_v40, %v3082_v30 }
0x1301   : > { %v3097_v44 = vmul.f32 %v3865_v41, %v3090_v42 }
0x1303   : > { %v3104_v45 = vadd.f32 %v3866_v43, %v3097_v44 }
0x1305   : > { %v3105_v46 = vpack.c.bf16 %v3104_v45, %v3104_v45 }
0x1307   : > { %4112 = vmatmul.mubr.msk.bf16.vlgmr.msra.gmra.mrb[48].mxu0 %vm1517_vm0, %v3105_v46 }
0x13da   : > { %v3166_v49 = vpop.f32.mrb[48].mxu0 }
0x13db   : > { %v3167_v50 = vadd.f32 %v3867_v48, %v3166_v49  ;;  %v4113_v51 = vpop.f32.mrb[49].mxu0 }
0x13dc   : > { %v3169_v53 = vpop.f32.mrb[50].mxu0 }
0x13dd   : > { %v3172_v54 = vmax.f32 %v3167_v50, 0.0  ;;  %v4114_v55 = vpop.f32.mrb[51].mxu0 }
0x13df   : > { %v3173_v56 = vpack.c.bf16 %v3172_v54, %v3172_v54 }
0x13e1   : > { %4124 = vmatmul.mubr.msk.bf16.vlgmr.msra.gmra.mrb[48].mxu1 %vm3213_vm6, %v3173_v56 }
0x14b4   : > { %v3251_v57 = vpop.f32.mrb[48].mxu1 }
0x14b5   : > { %v3252_v58 = vadd.f32 %v3871_v22, %v3251_v57  ;;  %v4125_v59 = vpop.f32.mrb[49].mxu1 }
0x14b6   : > { %v3254_v60 = vpop.f32.mrb[50].mxu1 }
0x14b7   : > { %v4126_v61 = vpop.f32.mrb[51].mxu1  ;;  %v3257_v11 = vadd.f32 %v3252_v58, %v3104_v45 }
0x14b9   : > { %v3260_v62 = vsel %vm1517_vm0, %v3257_v11, 0.0 }
0x14ba   : > { %3261 = vadd.xlane.f32.xlu0 %v3260_v62 }
0x1547   : > { %v3262_v63 = vpop.xlane.xlu0 %3261 }
0x1548   : > { %v3263_v0 = vmul.f32 0.03125, %v3262_v63 }
0x154a   : > { %v3264_v1 = vsub.f32 %v3257_v11, %v3263_v0 }
0x154c   : > { %v3265_v2 = vmul.f32 %v3264_v1, %v3264_v1 }
0x154e   : > { %v3266_v3 = vsel %vm1517_vm0, %v3265_v2, 0.0 }
0x154f   : > { %3267 = vadd.xlane.f32.xlu1 %v3266_v3 }
0x15dc   : > { %v3268_v4 = vpop.xlane.xlu1 %3267 }
0x15dd   : > { %v3269_v5 = vmul.f32 0.03125, %v3268_v4 }
0x15df   : > { %v3270_v6 = vadd.f32 1e-05, %v3269_v5 }
0x15e1   : > { %4582 = vrsqrt.f32 %v3270_v6 }
0x15eb   : > { %v4583_v7 = vpop.eup %4582 }
0x15ec   : > { %v3272_v9 = vmul.f32 %v4583_v7, %v3264_v1 }
0x15ee   : > { %v3279_v12 = vmul.f32 %v3877_v8, %v3272_v9 }
0x15f0   : > { %v3286_v13 = vadd.f32 %v3878_v10, %v3279_v12 }
0x15f2   : > { %v3287_v14 = vpack.c.bf16 %v3286_v13, %v3286_v13 }
0x15f4   : > { %3289 = vst.msk [vmem:[%s1510_s13] sm:$0xf] %vm3288_vm7, %v3287_v14 }
0x15f5   : > { %5529 = shalt.err (!%p5526_p10)
}
0x15f6   : > { %s5530_s12 = scalar_lea.hbm %s6711_s23, 64  ;;  %s5534_s11 = scalar_lea.hbm %s6948_s27, 128 }
0x15f7   : > { %p5531_p6 = scmp.ne.s32.totalorder %s6711_s23, %s5530_s12  ;;  %p5535_p3 = scmp.lt.u32.totalorder %s6711_s23, %s6948_s27 }
0x15f8   : > { %p5536_p11 = scmp.lt.u32.totalorder %s5534_s11, %s5530_s12  ;;  %p5538_p2 = scmp.lt.u32.totalorder %s5530_s12, %s6711_s23 }
0x15f9   : > { %p5532_p13 = pnand %p5531_p6, %p6950_p1 }
0x15fa   : > { %p5537_p0 = por %p5536_p11, %p5535_p3 }
0x15fb   : > { %p5533_p7 = pneg %p5532_p13 }
0x15fc   : > { %p5539_p12 = por %p5538_p2, %p5537_p0 }
0x15fe   : > { %p5540_p4 = pnand %p5539_p12, %p5533_p7 }
0x1600   : > { %5543 = shalt.err (!%p5540_p4)
}
0x1601   : > { %4251 = dma.vmem_to_hbm [thread:$0]  (%p6950_p1), %s6713_s7, 64, %s6711_s23, %s3291_s4  }
0x1602 PF: > { %s6951_s10 = sld [smem:[#allocation97_spill]]  ;;  %s6952_s18 = sld [smem:[#allocation106_spill]] }
0x1603   : > { %s6953_s3 = sld [smem:[#allocation100_spill]] }
0x1608   : > { %s3316_s13 = sand.u32 1, %s6951_s10   ;;  %p6954_p5 = scmp.ne.s32.totalorder %s6952_s18, 0 }
0x1609   : > { %p6955_p8 = scmp.ge.s32.totalorder %s6953_s3, 2  ;;  %s3317_s5 = scalar_lea.sflag [#allocation4], %s3316_s13 }
0x160b   : > { %p4355_p9 = pnand %p6955_p8, %p6954_p5 }
0x160d   : > { %5633 = dma.done.wait (!%p4355_p9), %s3317_s5, 64  }
0x160e   : > { %5635 = vsyncadd (!%p4355_p9), %s3317_s5, 4294967232  ;;  %s6956_s11 = sld [smem:[#allocation102_spill]]  ;;  %s6957_s0 = sld [smem:[#allocation98_spill]] }
0x160f   : > { %s6958_s7 = sld [smem:[#allocation99_spill]]  ;;  %s6959_s10 = sld [smem:[#allocation103_spill]] }
0x1614   : > { %p94_p10 = scmp.ge.s32.totalorder %s6956_s11, 4  }
0x1616   :  { %96 = sbr.rel (!%p94_p10) target bundleno = 83 (0x53), region = 379 }
0x161d   :  { %3322 = vsyncpa [#allocation3], 1 }
0x161e   :  { %3324 = vsyncpa [#allocation3 + $0x1], 1 }
0x161f   :  { %3325 = vsyncpa [#allocation6], 1 }
0x1620   :  { %3326 = vsyncpa [#allocation9], 1 }
0x1621   :  { %3327 = vsyncpa [#allocation16], 1 }
0x1622   :  { %3328 = vsyncpa [#allocation19], 1 }
0x1623   :  { %3329 = vsyncpa [#allocation22], 1 }
0x1624   :  { %3330 = vsyncpa [#allocation25], 1 }
0x1625   :  { %3331 = vsyncpa [#allocation28], 1 }
0x1626   :  { %3332 = vsyncpa [#allocation31], 1 }
0x1627   :  { %3333 = vsyncpa [#allocation34], 1 }
0x1628   :  { %3334 = vsyncpa [#allocation37], 1 }
0x1629   :  { %3335 = vsyncpa [#allocation40], 1 }
0x162a   :  { %3336 = vsyncpa [#allocation43], 1 }
0x162b   :  { %3337 = vsyncpa [#allocation46], 1 }
0x162c   :  { %3338 = vsyncpa [#allocation49], 1 }
0x162d   :  { %3339 = vsyncpa [#allocation4], 1 }
0x162e   :  { %3341 = vsyncpa [#allocation4 + $0x1], 1 }

</bundles_post_ra>
